<compile_context>
chip_gen: v7x
topology: tpu7x:2x2x1
jax: 0.10.0
libtpu: 0.0.40
codegen_flags: <defaults>
</compile_context>

<pallas_src>
import math
import functools

import jax
import jax.numpy as jnp
from jax.experimental import pallas as pl
from jax.experimental.pallas import tpu as pltpu


# ----------------------------------------------------------------------------
# Fused whole-model kernel (encoder stack + decoder stack + output projection)
# ----------------------------------------------------------------------------

def _layer_norm(x, g, b):
    # LayerNorm over last dim, eps = 1e-5 (PyTorch default).  f32 math.
    mean = jnp.mean(x, axis=-1, keepdims=True)
    var = jnp.mean(jnp.square(x - mean), axis=-1, keepdims=True)
    return (x - mean) * jax.lax.rsqrt(var + 1e-5) * g + b


def _make_fused_kernel(treedef, n_leaves, *, S, T, N, E, H, nhead, Vp, nlayers):
    hd = E // nhead
    scale = 1.0 / math.sqrt(hd)

    def mm(a, w):
        # bf16 MXU matmul (weights already bf16), f32 accumulation.
        return jnp.dot(a.astype(jnp.bfloat16), w,
                       preferred_element_type=jnp.float32)

    def mha(xq, xkv, Tq, Tk, ap, l):
        # xq: (N*Tq, E), xkv: (N*Tk, E) values.
        wq = ap["wq"][0, l]; bq = ap["bq"][0, l]
        wk = ap["wk"][0, l]
        wv = ap["wv"][0, l]; bv = ap["bv"][0, l]
        wo = ap["wo"][0, l]; bo = ap["bo"][0, l]

        # Full-width projections: one MXU matmul each, all heads at once.
        q = mm(xq, wq) + bq            # (N*Tq, E)
        # Key bias intentionally omitted: adds a per-query-row constant to the
        # scores which cancels exactly in softmax.
        k = mm(xkv, wk)                # (N*Tk, E)
        v = mm(xkv, wv) + bv           # (N*Tk, E)

        q3 = q.reshape(N, Tq, E)
        k3 = k.reshape(N, Tk, E)
        v3 = v.reshape(N, Tk, E)

        ctx = []
        for h in range(nhead):
            lo = h * hd
            qh = q3[:, :, lo:lo + hd]          # (N, Tq, hd) static lane slice
            kh = k3[:, :, lo:lo + hd]
            vh = v3[:, :, lo:lo + hd]
            s = jax.lax.dot_general(            # batched over N
                qh, kh, (((2,), (2,)), ((0,), (0,))),
                preferred_element_type=jnp.float32) * scale     # (N, Tq, Tk)
            mx = jnp.max(s, axis=-1, keepdims=True)
            e = jnp.exp(s - mx)
            p = e / jnp.sum(e, axis=-1, keepdims=True)          # exact softmax
            ctx.append(jax.lax.dot_general(
                p, vh, (((2,), (1,)), ((0,), (0,))),
                preferred_element_type=jnp.float32))            # (N, Tq, hd)

        # Lane concat of heads (XLU slot has slack), then ONE O-projection.
        ctx = jnp.concatenate(ctx, axis=-1).reshape(N * Tq, E)
        return mm(ctx, wo) + bo                                  # (N*Tq, E)

    def ffn(x, lp, l):
        h1 = mm(x, lp["fw1"][0, l]) + lp["fb1"][0, l]
        h1 = jnp.maximum(h1, 0.0)
        return mm(h1, lp["fw2"][0, l]) + lp["fb2"][0, l]

    def kernel(src_ref, tgt_ref, decw_ref, decb_ref, *rest):
        mp = jax.tree_util.tree_unflatten(treedef, rest[:n_leaves])
        out_ref = rest[n_leaves]

        # ---------------- Encoder stack + final norm -> memory ----------------
        x = src_ref[...]                                 # (N*S, E)
        ep = mp["enc"]
        for l in range(nlayers):
            sa = mha(x, x, S, S, ep["attn"], l)
            x = _layer_norm(x + sa, ep["ln1g"][0, l], ep["ln1b"][0, l])
            ff = ffn(x, ep, l)
            x = _layer_norm(x + ff, ep["ln2g"][0, l], ep["ln2b"][0, l])
        memory = _layer_norm(x, mp["enc_norm_g"][0], mp["enc_norm_b"][0])

        # ---------------- Decoder stack + final norm ----------------
        y = tgt_ref[...]                                 # (N*T, E)
        dp = mp["dec"]
        for l in range(nlayers):
            sa = mha(y, y, T, T, dp["sa"], l)
            y = _layer_norm(y + sa, dp["ln1g"][0, l], dp["ln1b"][0, l])
            ca = mha(y, memory, T, S, dp["ca"], l)
            y = _layer_norm(y + ca, dp["ln2g"][0, l], dp["ln2b"][0, l])
            ff = ffn(y, dp, l)
            y = _layer_norm(y + ff, dp["ln3g"][0, l], dp["ln3b"][0, l])
        y = _layer_norm(y, mp["dec_norm_g"][0], mp["dec_norm_b"][0])

        # ---------------- Shared output head (lane-dense, Vp % 128 == 0) ------
        logits = mm(y, decw_ref[...]) + decb_ref[...]
        out_ref[0] = logits.astype(out_ref.dtype)

    return kernel


# ----------------------------------------------------------------------------
# Wrapper: one pallas_call, grid over the encoder/decoder pairs
# ----------------------------------------------------------------------------

def multi_encoder_decoder_forward(src, tgt, params, nhead):
    # src: (S, N, E), tgt: (T, N, E); masks/key-padding masks are None here.
    S, N, E = src.shape
    T = tgt.shape[0]

    mp = params["models"]                       # pytree, every leaf has leading dim P
    leaves, treedef = jax.tree_util.tree_flatten(mp)
    P = leaves[0].shape[0]
    nlayers = mp["enc"]["fw1"].shape[1]
    H = mp["enc"]["fw1"].shape[-1]

    dec_w = params["decoder_w"]                 # (E, V) f32, shared across models
    dec_b = params["decoder_b"]                 # (V,)
    V = dec_w.shape[1]
    Vp = ((V + 127) // 128) * 128               # lane-dense padded vocab

    dec_w_p = jnp.zeros((E, Vp), jnp.bfloat16).at[:, :V].set(dec_w.astype(jnp.bfloat16))
    dec_b_p = jnp.zeros((1, Vp), jnp.float32).at[:, :V].set(dec_b.reshape(1, V))

    # Batch-major 2-D slabs so the kernel never has to transpose.
    src2d = jnp.transpose(src, (1, 0, 2)).reshape(N * S, E)
    tgt2d = jnp.transpose(tgt, (1, 0, 2)).reshape(N * T, E)

    kernel = _make_fused_kernel(treedef, len(leaves),
                                S=S, T=T, N=N, E=E, H=H, nhead=nhead,
                                Vp=Vp, nlayers=nlayers)

    def shared_spec(a):
        nd = a.ndim
        return pl.BlockSpec(a.shape, lambda m, _nd=nd: (0,) * _nd)

    def model_spec(a):
        nd = a.ndim
        blk = (1,) + tuple(a.shape[1:])
        return pl.BlockSpec(blk, lambda m, _nd=nd: (m,) + (0,) * (_nd - 1))

    in_specs = ([shared_spec(src2d), shared_spec(tgt2d),
                 shared_spec(dec_w_p), shared_spec(dec_b_p)]
                + [model_spec(a) for a in leaves])

    out = pl.pallas_call(
        kernel,
        out_shape=jax.ShapeDtypeStruct((P, N * T, Vp), jnp.float32),
        grid=(P,),
        in_specs=in_specs,
        out_specs=pl.BlockSpec((1, N * T, Vp), lambda m: (m, 0, 0)),
        compiler_params=pltpu.CompilerParams(
            dimension_semantics=("parallel",),      # shards models across TCs (v7x)
            vmem_limit_bytes=32 * 1024 * 1024),
    )(src2d, tgt2d, dec_w_p, dec_b_p, *leaves)

    # Strip vocab padding; one transpose back to sequence-major (T, N, ntoken).
    out = out[:, :, :V].reshape(P, N, T, V)
    out = jnp.transpose(out, (0, 2, 1, 3))          # (P, T, N, V)
    return [out[i] for i in range(P)]


# ----------------------------------------------------------------------------
# Deterministic parameter init (full-width attention weights, matmul W in bf16)
# ----------------------------------------------------------------------------

def _init_linear(key, fan_in, fan_out):
    k1, k2 = jax.random.split(key)
    bound = 1.0 / math.sqrt(fan_in)
    w = jax.random.uniform(k1, (fan_in, fan_out), jnp.float32, -bound, bound)
    b = jax.random.uniform(k2, (fan_out,), jnp.float32, -bound, bound)
    return w, b


def _init_mha(key, E, nhead):
    ks = jax.random.split(key, 4)
    wq, bq = _init_linear(ks[0], E, E)
    wk, _bk = _init_linear(ks[1], E, E)   # key bias not stored: softmax-invariant
    wv, bv = _init_linear(ks[2], E, E)
    wo, bo = _init_linear(ks[3], E, E)
    return {
        "wq": wq.astype(jnp.bfloat16), "bq": bq.reshape(1, E),
        "wk": wk.astype(jnp.bfloat16),
        "wv": wv.astype(jnp.bfloat16), "bv": bv.reshape(1, E),
        "wo": wo.astype(jnp.bfloat16), "bo": bo.reshape(1, E),
    }


def _init_enc_layer(key, E, H, nhead):
    ks = jax.random.split(key, 3)
    w1, b1 = _init_linear(ks[1], E, H)
    w2, b2 = _init_linear(ks[2], H, E)
    return {
        "attn": _init_mha(ks[0], E, nhead),
        "ln1g": jnp.ones((1, E), jnp.float32), "ln1b": jnp.zeros((1, E), jnp.float32),
        "ln2g": jnp.ones((1, E), jnp.float32), "ln2b": jnp.zeros((1, E), jnp.float32),
        "fw1": w1.astype(jnp.bfloat16), "fb1": b1.reshape(1, H),
        "fw2": w2.astype(jnp.bfloat16), "fb2": b2.reshape(1, E),
    }


def _init_dec_layer(key, E, H, nhead):
    ks = jax.random.split(key, 4)
    w1, b1 = _init_linear(ks[2], E, H)
    w2, b2 = _init_linear(ks[3], H, E)
    d = {
        "sa": _init_mha(ks[0], E, nhead),
        "ca": _init_mha(ks[1], E, nhead),
        "fw1": w1.astype(jnp.bfloat16), "fb1": b1.reshape(1, H),
        "fw2": w2.astype(jnp.bfloat16), "fb2": b2.reshape(1, E),
    }
    for i in (1, 2, 3):
        d[f"ln{i}g"] = jnp.ones((1, E), jnp.float32)
        d[f"ln{i}b"] = jnp.zeros((1, E), jnp.float32)
    return d


def _stack_trees(trees):
    return jax.tree_util.tree_map(lambda *xs: jnp.stack(xs, axis=0), *trees)


def _init_model(key, E, H, nhead, nlayers):
    ks = jax.random.split(key, 2 * nlayers)
    enc_layers = [_init_enc_layer(ks[i], E, H, nhead) for i in range(nlayers)]
    dec_layers = [_init_dec_layer(ks[nlayers + i], E, H, nhead) for i in range(nlayers)]
    return {
        "enc": _stack_trees(enc_layers),        # leaves get leading L
        "dec": _stack_trees(dec_layers),
        "enc_norm_g": jnp.ones((1, E), jnp.float32),
        "enc_norm_b": jnp.zeros((1, E), jnp.float32),
        "dec_norm_g": jnp.ones((1, E), jnp.float32),
        "dec_norm_b": jnp.zeros((1, E), jnp.float32),
    }


def init_params(key, n_pairs, ntoken, ninp, nhead, nhid, nlayers):
    key, ek, dk = jax.random.split(key, 3)
    models = []
    for _ in range(n_pairs):
        key, mk = jax.random.split(key)
        models.append(_init_model(mk, ninp, nhid, nhead, nlayers))
    dw, db = _init_linear(dk, ninp, ntoken)
    return {
        "models": _stack_trees(models),          # leaves get leading P (n_pairs)
        # nn.Embedding(ntoken, ninp): created by the module but never used in forward().
        "embedding": jax.random.normal(ek, (ntoken, ninp), jnp.float32),
        "decoder_w": dw,
        "decoder_b": db,
    }


# ----------------------------------------------------------------------------
# Main
# ----------------------------------------------------------------------------

if __name__ == "__main__":
    n_enc_dec_pairs = 2
    ntoken = 16
    ninp = 32       # d_model
    nhead = 4
    nhid = 64       # dim_feedforward
    nlayers = 2     # encoder & decoder layers
    S, T, N = 8, 8, 2

    key = jax.random.PRNGKey(0)
    kp, ks, kt = jax.random.split(key, 3)
    params = init_params(kp, n_enc_dec_pairs, ntoken, ninp, nhead, nhid, nlayers)

    src = jax.random.normal(ks, (S, N, ninp), jnp.float32)
    tgt = jax.random.normal(kt, (T, N, ninp), jnp.float32)

    fwd = jax.jit(functools.partial(multi_encoder_decoder_forward, nhead=nhead))
    outputs = fwd(src, tgt, params)
    outputs = jax.block_until_ready(outputs)

    assert len(outputs) == n_enc_dec_pairs
    for o in outputs:
        assert o.shape == (T, N, ntoken)
        assert bool(jnp.all(jnp.isfinite(o)))

    # TODO(synk): dropout (train-mode stochasticity) and attention/key-padding
    # masks intentionally omitted — inference semantics with masks=None.
    print("KERNEL_OK")
</pallas_src>

<mosaic_0001>
module attributes {stable_mosaic.version = 11 : i64} {
  func.func @kernel(%arg0: i32, %arg1: memref<16x32xf32, #tpu.memory_space<vmem>>, %arg2: memref<16x32xf32, #tpu.memory_space<vmem>>, %arg3: memref<32x128xbf16, #tpu.memory_space<vmem>>, %arg4: memref<1x128xf32, #tpu.memory_space<vmem>>, %arg5: memref<1x2x1x32xf32, #tpu.memory_space<vmem>>, %arg6: memref<1x2x1x32xf32, #tpu.memory_space<vmem>>, %arg7: memref<1x2x1x32xf32, #tpu.memory_space<vmem>>, %arg8: memref<1x2x32x32xbf16, #tpu.memory_space<vmem>>, %arg9: memref<1x2x32x32xbf16, #tpu.memory_space<vmem>>, %arg10: memref<1x2x32x32xbf16, #tpu.memory_space<vmem>>, %arg11: memref<1x2x32x32xbf16, #tpu.memory_space<vmem>>, %arg12: memref<1x2x1x64xf32, #tpu.memory_space<vmem>>, %arg13: memref<1x2x1x32xf32, #tpu.memory_space<vmem>>, %arg14: memref<1x2x32x64xbf16, #tpu.memory_space<vmem>>, %arg15: memref<1x2x64x32xbf16, #tpu.memory_space<vmem>>, %arg16: memref<1x2x1x32xf32, #tpu.memory_space<vmem>>, %arg17: memref<1x2x1x32xf32, #tpu.memory_space<vmem>>, %arg18: memref<1x2x1x32xf32, #tpu.memory_space<vmem>>, %arg19: memref<1x2x1x32xf32, #tpu.memory_space<vmem>>, %arg20: memref<1x2x1x32xf32, #tpu.memory_space<vmem>>, %arg21: memref<1x2x1x32xf32, #tpu.memory_space<vmem>>, %arg22: memref<1x2x1x32xf32, #tpu.memory_space<vmem>>, %arg23: memref<1x2x1x32xf32, #tpu.memory_space<vmem>>, %arg24: memref<1x2x1x32xf32, #tpu.memory_space<vmem>>, %arg25: memref<1x2x32x32xbf16, #tpu.memory_space<vmem>>, %arg26: memref<1x2x32x32xbf16, #tpu.memory_space<vmem>>, %arg27: memref<1x2x32x32xbf16, #tpu.memory_space<vmem>>, %arg28: memref<1x2x32x32xbf16, #tpu.memory_space<vmem>>, %arg29: memref<1x1x32xf32, #tpu.memory_space<vmem>>, %arg30: memref<1x1x32xf32, #tpu.memory_space<vmem>>, %arg31: memref<1x2x1x32xf32, #tpu.memory_space<vmem>>, %arg32: memref<1x2x1x32xf32, #tpu.memory_space<vmem>>, %arg33: memref<1x2x1x32xf32, #tpu.memory_space<vmem>>, %arg34: memref<1x2x32x32xbf16, #tpu.memory_space<vmem>>, %arg35: memref<1x2x32x32xbf16, #tpu.memory_space<vmem>>, %arg36: memref<1x2x32x32xbf16, #tpu.memory_space<vmem>>, %arg37: memref<1x2x32x32xbf16, #tpu.memory_space<vmem>>, %arg38: memref<1x2x1x64xf32, #tpu.memory_space<vmem>>, %arg39: memref<1x2x1x32xf32, #tpu.memory_space<vmem>>, %arg40: memref<1x2x32x64xbf16, #tpu.memory_space<vmem>>, %arg41: memref<1x2x64x32xbf16, #tpu.memory_space<vmem>>, %arg42: memref<1x2x1x32xf32, #tpu.memory_space<vmem>>, %arg43: memref<1x2x1x32xf32, #tpu.memory_space<vmem>>, %arg44: memref<1x2x1x32xf32, #tpu.memory_space<vmem>>, %arg45: memref<1x2x1x32xf32, #tpu.memory_space<vmem>>, %arg46: memref<1x1x32xf32, #tpu.memory_space<vmem>>, %arg47: memref<1x1x32xf32, #tpu.memory_space<vmem>>, %arg48: memref<1x16x128xf32, #tpu.memory_space<vmem>>) attributes {dimension_semantics = [#tpu.dimension_semantics<parallel>], iteration_bounds = array<i64: 2>, scalar_prefetch = 0 : i64, scratch_operands = 0 : i64, tpu.core_type = #tpu.core_type<tc>, window_params = [{pipeline_mode = #tpu.pipeline_mode<synchronous>, transform_indices = @transform_0, window_bounds = array<i64: 16, 32>}, {pipeline_mode = #tpu.pipeline_mode<synchronous>, transform_indices = @transform_1, window_bounds = array<i64: 16, 32>}, {pipeline_mode = #tpu.pipeline_mode<synchronous>, transform_indices = @transform_2, window_bounds = array<i64: 32, 128>}, {pipeline_mode = #tpu.pipeline_mode<synchronous>, transform_indices = @transform_3, window_bounds = array<i64: 1, 128>}, {transform_indices = @transform_4, window_bounds = array<i64: 1, 2, 1, 32>}, {transform_indices = @transform_5, window_bounds = array<i64: 1, 2, 1, 32>}, {transform_indices = @transform_6, window_bounds = array<i64: 1, 2, 1, 32>}, {transform_indices = @transform_7, window_bounds = array<i64: 1, 2, 32, 32>}, {transform_indices = @transform_8, window_bounds = array<i64: 1, 2, 32, 32>}, {transform_indices = @transform_9, window_bounds = array<i64: 1, 2, 32, 32>}, {transform_indices = @transform_10, window_bounds = array<i64: 1, 2, 32, 32>}, {transform_indices = @transform_11, window_bounds = array<i64: 1, 2, 1, 64>}, {transform_indices = @transform_12, window_bounds = array<i64: 1, 2, 1, 32>}, {transform_indices = @transform_13, window_bounds = array<i64: 1, 2, 32, 64>}, {transform_indices = @transform_14, window_bounds = array<i64: 1, 2, 64, 32>}, {transform_indices = @transform_15, window_bounds = array<i64: 1, 2, 1, 32>}, {transform_indices = @transform_16, window_bounds = array<i64: 1, 2, 1, 32>}, {transform_indices = @transform_17, window_bounds = array<i64: 1, 2, 1, 32>}, {transform_indices = @transform_18, window_bounds = array<i64: 1, 2, 1, 32>}, {transform_indices = @transform_19, window_bounds = array<i64: 1, 2, 1, 32>}, {transform_indices = @transform_20, window_bounds = array<i64: 1, 2, 1, 32>}, {transform_indices = @transform_21, window_bounds = array<i64: 1, 2, 1, 32>}, {transform_indices = @transform_22, window_bounds = array<i64: 1, 2, 1, 32>}, {transform_indices = @transform_23, window_bounds = array<i64: 1, 2, 1, 32>}, {transform_indices = @transform_24, window_bounds = array<i64: 1, 2, 32, 32>}, {transform_indices = @transform_25, window_bounds = array<i64: 1, 2, 32, 32>}, {transform_indices = @transform_26, window_bounds = array<i64: 1, 2, 32, 32>}, {transform_indices = @transform_27, window_bounds = array<i64: 1, 2, 32, 32>}, {transform_indices = @transform_28, window_bounds = array<i64: 1, 1, 32>}, {transform_indices = @transform_29, window_bounds = array<i64: 1, 1, 32>}, {transform_indices = @transform_30, window_bounds = array<i64: 1, 2, 1, 32>}, {transform_indices = @transform_31, window_bounds = array<i64: 1, 2, 1, 32>}, {transform_indices = @transform_32, window_bounds = array<i64: 1, 2, 1, 32>}, {transform_indices = @transform_33, window_bounds = array<i64: 1, 2, 32, 32>}, {transform_indices = @transform_34, window_bounds = array<i64: 1, 2, 32, 32>}, {transform_indices = @transform_35, window_bounds = array<i64: 1, 2, 32, 32>}, {transform_indices = @transform_36, window_bounds = array<i64: 1, 2, 32, 32>}, {transform_indices = @transform_37, window_bounds = array<i64: 1, 2, 1, 64>}, {transform_indices = @transform_38, window_bounds = array<i64: 1, 2, 1, 32>}, {transform_indices = @transform_39, window_bounds = array<i64: 1, 2, 32, 64>}, {transform_indices = @transform_40, window_bounds = array<i64: 1, 2, 64, 32>}, {transform_indices = @transform_41, window_bounds = array<i64: 1, 2, 1, 32>}, {transform_indices = @transform_42, window_bounds = array<i64: 1, 2, 1, 32>}, {transform_indices = @transform_43, window_bounds = array<i64: 1, 2, 1, 32>}, {transform_indices = @transform_44, window_bounds = array<i64: 1, 2, 1, 32>}, {transform_indices = @transform_45, window_bounds = array<i64: 1, 1, 32>}, {transform_indices = @transform_46, window_bounds = array<i64: 1, 1, 32>}, {transform_indices = @transform_47, window_bounds = array<i64: 1, 16, 128>}]} {
    %c0 = arith.constant 0 : index
    %c0_0 = arith.constant 0 : index
    %0 = vector.load %arg1[%c0, %c0_0] : memref<16x32xf32, #tpu.memory_space<vmem>>, vector<16x32xf32>
    %c0_1 = arith.constant 0 : index
    %c0_2 = arith.constant 0 : index
    %c0_3 = arith.constant 0 : index
    %c0_4 = arith.constant 0 : index
    %1 = vector.load %arg36[%c0_1, %c0_2, %c0_3, %c0_4] : memref<1x2x32x32xbf16, #tpu.memory_space<vmem>>, vector<1x1x32x32xbf16>
    %2 = vector.shape_cast %1 : vector<1x1x32x32xbf16> to vector<32x32xbf16>
    %c0_5 = arith.constant 0 : index
    %c0_6 = arith.constant 0 : index
    %c0_7 = arith.constant 0 : index
    %c0_8 = arith.constant 0 : index
    %3 = vector.load %arg32[%c0_5, %c0_6, %c0_7, %c0_8] : memref<1x2x1x32xf32, #tpu.memory_space<vmem>>, vector<1x1x1x32xf32>
    %4 = vector.shape_cast %3 : vector<1x1x1x32xf32> to vector<1x32xf32>
    %c0_9 = arith.constant 0 : index
    %c0_10 = arith.constant 0 : index
    %c0_11 = arith.constant 0 : index
    %c0_12 = arith.constant 0 : index
    %5 = vector.load %arg34[%c0_9, %c0_10, %c0_11, %c0_12] : memref<1x2x32x32xbf16, #tpu.memory_space<vmem>>, vector<1x1x32x32xbf16>
    %6 = vector.shape_cast %5 : vector<1x1x32x32xbf16> to vector<32x32xbf16>
    %c0_13 = arith.constant 0 : index
    %c0_14 = arith.constant 0 : index
    %c0_15 = arith.constant 0 : index
    %c0_16 = arith.constant 0 : index
    %7 = vector.load %arg37[%c0_13, %c0_14, %c0_15, %c0_16] : memref<1x2x32x32xbf16, #tpu.memory_space<vmem>>, vector<1x1x32x32xbf16>
    %8 = vector.shape_cast %7 : vector<1x1x32x32xbf16> to vector<32x32xbf16>
    %c0_17 = arith.constant 0 : index
    %c0_18 = arith.constant 0 : index
    %c0_19 = arith.constant 0 : index
    %c0_20 = arith.constant 0 : index
    %9 = vector.load %arg33[%c0_17, %c0_18, %c0_19, %c0_20] : memref<1x2x1x32xf32, #tpu.memory_space<vmem>>, vector<1x1x1x32xf32>
    %10 = vector.shape_cast %9 : vector<1x1x1x32xf32> to vector<1x32xf32>
    %c0_21 = arith.constant 0 : index
    %c0_22 = arith.constant 0 : index
    %c0_23 = arith.constant 0 : index
    %c0_24 = arith.constant 0 : index
    %11 = vector.load %arg35[%c0_21, %c0_22, %c0_23, %c0_24] : memref<1x2x32x32xbf16, #tpu.memory_space<vmem>>, vector<1x1x32x32xbf16>
    %12 = vector.shape_cast %11 : vector<1x1x32x32xbf16> to vector<32x32xbf16>
    %c0_25 = arith.constant 0 : index
    %c0_26 = arith.constant 0 : index
    %c0_27 = arith.constant 0 : index
    %c0_28 = arith.constant 0 : index
    %13 = vector.load %arg31[%c0_25, %c0_26, %c0_27, %c0_28] : memref<1x2x1x32xf32, #tpu.memory_space<vmem>>, vector<1x1x1x32xf32>
    %14 = vector.shape_cast %13 : vector<1x1x1x32xf32> to vector<1x32xf32>
    %15 = arith.truncf %0 : vector<16x32xf32> to vector<16x32xbf16>
    %cst = arith.constant dense<0.000000e+00> : vector<16x32xf32>
    %16 = tpu.matmul %15, %2, %cst {dimension_numbers = #tpu.dot_dimension_numbers<[1], [0], [0], [1], [0, 0, 1, 1], [], []>} : vector<16x32xbf16>, vector<32x32xbf16>, vector<16x32xf32> -> vector<16x32xf32>
    %17 = vector.broadcast %4 : vector<1x32xf32> to vector<16x32xf32>
    %18 = arith.addf %16, %17 : vector<16x32xf32>
    %19 = arith.truncf %0 : vector<16x32xf32> to vector<16x32xbf16>
    %cst_29 = arith.constant dense<0.000000e+00> : vector<16x32xf32>
    %20 = tpu.matmul %19, %6, %cst_29 {dimension_numbers = #tpu.dot_dimension_numbers<[1], [0], [0], [1], [0, 0, 1, 1], [], []>} : vector<16x32xbf16>, vector<32x32xbf16>, vector<16x32xf32> -> vector<16x32xf32>
    %21 = arith.truncf %0 : vector<16x32xf32> to vector<16x32xbf16>
    %cst_30 = arith.constant dense<0.000000e+00> : vector<16x32xf32>
    %22 = tpu.matmul %21, %8, %cst_30 {dimension_numbers = #tpu.dot_dimension_numbers<[1], [0], [0], [1], [0, 0, 1, 1], [], []>} : vector<16x32xbf16>, vector<32x32xbf16>, vector<16x32xf32> -> vector<16x32xf32>
    %23 = vector.broadcast %10 : vector<1x32xf32> to vector<16x32xf32>
    %24 = arith.addf %22, %23 : vector<16x32xf32>
    %25 = vector.shape_cast %18 : vector<16x32xf32> to vector<2x8x32xf32>
    %26 = vector.shape_cast %20 : vector<16x32xf32> to vector<2x8x32xf32>
    %27 = vector.shape_cast %24 : vector<16x32xf32> to vector<2x8x32xf32>
    %28 = vector.extract_strided_slice %25 {offsets = [0, 0, 0], sizes = [2, 8, 8], strides = [1, 1, 1]} : vector<2x8x32xf32> to vector<2x8x8xf32>
    %29 = vector.extract_strided_slice %26 {offsets = [0, 0, 0], sizes = [2, 8, 8], strides = [1, 1, 1]} : vector<2x8x32xf32> to vector<2x8x8xf32>
    %30 = vector.extract_strided_slice %27 {offsets = [0, 0, 0], sizes = [2, 8, 8], strides = [1, 1, 1]} : vector<2x8x32xf32> to vector<2x8x8xf32>
    %cst_31 = arith.constant dense<0.000000e+00> : vector<2x8x8xf32>
    %31 = tpu.matmul %28, %29, %cst_31 {dimension_numbers = #tpu.dot_dimension_numbers<[2], [2], [1], [1], [0, 0, 0, 1, 1, 1], [0], [0]>} : vector<2x8x8xf32>, vector<2x8x8xf32>, vector<2x8x8xf32> -> vector<2x8x8xf32>
    %cst_32 = arith.constant 0.353553385 : f32
    %32 = vector.broadcast %cst_32 : f32 to vector<2x8x8xf32>
    %33 = arith.mulf %31, %32 : vector<2x8x8xf32>
    %cst_33 = arith.constant dense<0xFF800000> : vector<2x8xf32>
    %34 = vector.multi_reduction <maximumf>, %33, %cst_33 [2] : vector<2x8x8xf32> to vector<2x8xf32>
    %35 = vector.shape_cast %34 : vector<2x8xf32> to vector<2x8x1xf32>
    %36 = vector.broadcast %35 : vector<2x8x1xf32> to vector<2x8x8xf32>
    %37 = arith.subf %33, %36 : vector<2x8x8xf32>
    %38 = math.exp %37 : vector<2x8x8xf32>
    %cst_34 = arith.constant dense<0.000000e+00> : vector<2x8xf32>
    %39 = vector.multi_reduction <add>, %38, %cst_34 [2] : vector<2x8x8xf32> to vector<2x8xf32>
    %40 = vector.shape_cast %39 : vector<2x8xf32> to vector<2x8x1xf32>
    %41 = vector.broadcast %40 : vector<2x8x1xf32> to vector<2x8x8xf32>
    %42 = arith.divf %38, %41 : vector<2x8x8xf32>
    %cst_35 = arith.constant dense<0.000000e+00> : vector<2x8x8xf32>
    %43 = tpu.matmul %42, %30, %cst_35 {dimension_numbers = #tpu.dot_dimension_numbers<[2], [1], [1], [2], [0, 0, 0, 1, 1, 2], [0], [0]>} : vector<2x8x8xf32>, vector<2x8x8xf32>, vector<2x8x8xf32> -> vector<2x8x8xf32>
    %44 = vector.extract_strided_slice %25 {offsets = [0, 0, 8], sizes = [2, 8, 8], strides = [1, 1, 1]} : vector<2x8x32xf32> to vector<2x8x8xf32>
    %45 = vector.extract_strided_slice %26 {offsets = [0, 0, 8], sizes = [2, 8, 8], strides = [1, 1, 1]} : vector<2x8x32xf32> to vector<2x8x8xf32>
    %46 = vector.extract_strided_slice %27 {offsets = [0, 0, 8], sizes = [2, 8, 8], strides = [1, 1, 1]} : vector<2x8x32xf32> to vector<2x8x8xf32>
    %cst_36 = arith.constant dense<0.000000e+00> : vector<2x8x8xf32>
    %47 = tpu.matmul %44, %45, %cst_36 {dimension_numbers = #tpu.dot_dimension_numbers<[2], [2], [1], [1], [0, 0, 0, 1, 1, 1], [0], [0]>} : vector<2x8x8xf32>, vector<2x8x8xf32>, vector<2x8x8xf32> -> vector<2x8x8xf32>
    %cst_37 = arith.constant 0.353553385 : f32
    %48 = vector.broadcast %cst_37 : f32 to vector<2x8x8xf32>
    %49 = arith.mulf %47, %48 : vector<2x8x8xf32>
    %cst_38 = arith.constant dense<0xFF800000> : vector<2x8xf32>
    %50 = vector.multi_reduction <maximumf>, %49, %cst_38 [2] : vector<2x8x8xf32> to vector<2x8xf32>
    %51 = vector.shape_cast %50 : vector<2x8xf32> to vector<2x8x1xf32>
    %52 = vector.broadcast %51 : vector<2x8x1xf32> to vector<2x8x8xf32>
    %53 = arith.subf %49, %52 : vector<2x8x8xf32>
    %54 = math.exp %53 : vector<2x8x8xf32>
    %cst_39 = arith.constant dense<0.000000e+00> : vector<2x8xf32>
    %55 = vector.multi_reduction <add>, %54, %cst_39 [2] : vector<2x8x8xf32> to vector<2x8xf32>
    %56 = vector.shape_cast %55 : vector<2x8xf32> to vector<2x8x1xf32>
    %57 = vector.broadcast %56 : vector<2x8x1xf32> to vector<2x8x8xf32>
    %58 = arith.divf %54, %57 : vector<2x8x8xf32>
    %cst_40 = arith.constant dense<0.000000e+00> : vector<2x8x8xf32>
    %59 = tpu.matmul %58, %46, %cst_40 {dimension_numbers = #tpu.dot_dimension_numbers<[2], [1], [1], [2], [0, 0, 0, 1, 1, 2], [0], [0]>} : vector<2x8x8xf32>, vector<2x8x8xf32>, vector<2x8x8xf32> -> vector<2x8x8xf32>
    %60 = vector.extract_strided_slice %25 {offsets = [0, 0, 16], sizes = [2, 8, 8], strides = [1, 1, 1]} : vector<2x8x32xf32> to vector<2x8x8xf32>
    %61 = vector.extract_strided_slice %26 {offsets = [0, 0, 16], sizes = [2, 8, 8], strides = [1, 1, 1]} : vector<2x8x32xf32> to vector<2x8x8xf32>
    %62 = vector.extract_strided_slice %27 {offsets = [0, 0, 16], sizes = [2, 8, 8], strides = [1, 1, 1]} : vector<2x8x32xf32> to vector<2x8x8xf32>
    %cst_41 = arith.constant dense<0.000000e+00> : vector<2x8x8xf32>
    %63 = tpu.matmul %60, %61, %cst_41 {dimension_numbers = #tpu.dot_dimension_numbers<[2], [2], [1], [1], [0, 0, 0, 1, 1, 1], [0], [0]>} : vector<2x8x8xf32>, vector<2x8x8xf32>, vector<2x8x8xf32> -> vector<2x8x8xf32>
    %cst_42 = arith.constant 0.353553385 : f32
    %64 = vector.broadcast %cst_42 : f32 to vector<2x8x8xf32>
    %65 = arith.mulf %63, %64 : vector<2x8x8xf32>
    %cst_43 = arith.constant dense<0xFF800000> : vector<2x8xf32>
    %66 = vector.multi_reduction <maximumf>, %65, %cst_43 [2] : vector<2x8x8xf32> to vector<2x8xf32>
    %67 = vector.shape_cast %66 : vector<2x8xf32> to vector<2x8x1xf32>
    %68 = vector.broadcast %67 : vector<2x8x1xf32> to vector<2x8x8xf32>
    %69 = arith.subf %65, %68 : vector<2x8x8xf32>
    %70 = math.exp %69 : vector<2x8x8xf32>
    %cst_44 = arith.constant dense<0.000000e+00> : vector<2x8xf32>
    %71 = vector.multi_reduction <add>, %70, %cst_44 [2] : vector<2x8x8xf32> to vector<2x8xf32>
    %72 = vector.shape_cast %71 : vector<2x8xf32> to vector<2x8x1xf32>
    %73 = vector.broadcast %72 : vector<2x8x1xf32> to vector<2x8x8xf32>
    %74 = arith.divf %70, %73 : vector<2x8x8xf32>
    %cst_45 = arith.constant dense<0.000000e+00> : vector<2x8x8xf32>
    %75 = tpu.matmul %74, %62, %cst_45 {dimension_numbers = #tpu.dot_dimension_numbers<[2], [1], [1], [2], [0, 0, 0, 1, 1, 2], [0], [0]>} : vector<2x8x8xf32>, vector<2x8x8xf32>, vector<2x8x8xf32> -> vector<2x8x8xf32>
    %76 = vector.extract_strided_slice %25 {offsets = [0, 0, 24], sizes = [2, 8, 8], strides = [1, 1, 1]} : vector<2x8x32xf32> to vector<2x8x8xf32>
    %77 = vector.extract_strided_slice %26 {offsets = [0, 0, 24], sizes = [2, 8, 8], strides = [1, 1, 1]} : vector<2x8x32xf32> to vector<2x8x8xf32>
    %78 = vector.extract_strided_slice %27 {offsets = [0, 0, 24], sizes = [2, 8, 8], strides = [1, 1, 1]} : vector<2x8x32xf32> to vector<2x8x8xf32>
    %cst_46 = arith.constant dense<0.000000e+00> : vector<2x8x8xf32>
    %79 = tpu.matmul %76, %77, %cst_46 {dimension_numbers = #tpu.dot_dimension_numbers<[2], [2], [1], [1], [0, 0, 0, 1, 1, 1], [0], [0]>} : vector<2x8x8xf32>, vector<2x8x8xf32>, vector<2x8x8xf32> -> vector<2x8x8xf32>
    %cst_47 = arith.constant 0.353553385 : f32
    %80 = vector.broadcast %cst_47 : f32 to vector<2x8x8xf32>
    %81 = arith.mulf %79, %80 : vector<2x8x8xf32>
    %cst_48 = arith.constant dense<0xFF800000> : vector<2x8xf32>
    %82 = vector.multi_reduction <maximumf>, %81, %cst_48 [2] : vector<2x8x8xf32> to vector<2x8xf32>
    %83 = vector.shape_cast %82 : vector<2x8xf32> to vector<2x8x1xf32>
    %84 = vector.broadcast %83 : vector<2x8x1xf32> to vector<2x8x8xf32>
    %85 = arith.subf %81, %84 : vector<2x8x8xf32>
    %86 = math.exp %85 : vector<2x8x8xf32>
    %cst_49 = arith.constant dense<0.000000e+00> : vector<2x8xf32>
    %87 = vector.multi_reduction <add>, %86, %cst_49 [2] : vector<2x8x8xf32> to vector<2x8xf32>
    %88 = vector.shape_cast %87 : vector<2x8xf32> to vector<2x8x1xf32>
    %89 = vector.broadcast %88 : vector<2x8x1xf32> to vector<2x8x8xf32>
    %90 = arith.divf %86, %89 : vector<2x8x8xf32>
    %cst_50 = arith.constant dense<0.000000e+00> : vector<2x8x8xf32>
    %91 = tpu.matmul %90, %78, %cst_50 {dimension_numbers = #tpu.dot_dimension_numbers<[2], [1], [1], [2], [0, 0, 0, 1, 1, 2], [0], [0]>} : vector<2x8x8xf32>, vector<2x8x8xf32>, vector<2x8x8xf32> -> vector<2x8x8xf32>
    %92 = tpu.concatenate %43, %59, %75, %91 in 2 : vector<2x8x8xf32>, vector<2x8x8xf32>, vector<2x8x8xf32>, vector<2x8x8xf32> -> vector<2x8x32xf32>
    %93 = vector.shape_cast %92 : vector<2x8x32xf32> to vector<16x32xf32>
    %94 = arith.truncf %93 : vector<16x32xf32> to vector<16x32xbf16>
    %cst_51 = arith.constant dense<0.000000e+00> : vector<16x32xf32>
    %95 = tpu.matmul %94, %12, %cst_51 {dimension_numbers = #tpu.dot_dimension_numbers<[1], [0], [0], [1], [0, 0, 1, 1], [], []>} : vector<16x32xbf16>, vector<32x32xbf16>, vector<16x32xf32> -> vector<16x32xf32>
    %96 = vector.broadcast %14 : vector<1x32xf32> to vector<16x32xf32>
    %97 = arith.addf %95, %96 : vector<16x32xf32>
    %98 = arith.addf %0, %97 : vector<16x32xf32>
    %c0_52 = arith.constant 0 : index
    %c0_53 = arith.constant 0 : index
    %c0_54 = arith.constant 0 : index
    %c0_55 = arith.constant 0 : index
    %99 = vector.load %arg43[%c0_52, %c0_53, %c0_54, %c0_55] : memref<1x2x1x32xf32, #tpu.memory_space<vmem>>, vector<1x1x1x32xf32>
    %100 = vector.shape_cast %99 : vector<1x1x1x32xf32> to vector<1x32xf32>
    %c0_56 = arith.constant 0 : index
    %c0_57 = arith.constant 0 : index
    %c0_58 = arith.constant 0 : index
    %c0_59 = arith.constant 0 : index
    %101 = vector.load %arg42[%c0_56, %c0_57, %c0_58, %c0_59] : memref<1x2x1x32xf32, #tpu.memory_space<vmem>>, vector<1x1x1x32xf32>
    %102 = vector.shape_cast %101 : vector<1x1x1x32xf32> to vector<1x32xf32>
    %cst_60 = arith.constant dense<0.000000e+00> : vector<16xf32>
    %103 = vector.multi_reduction <add>, %98, %cst_60 [1] : vector<16x32xf32> to vector<16xf32>
    %104 = vector.shape_cast %103 : vector<16xf32> to vector<16x1xf32>
    %cst_61 = arith.constant 3.200000e+01 : f32
    %105 = vector.broadcast %cst_61 : f32 to vector<16x1xf32>
    %106 = arith.divf %104, %105 : vector<16x1xf32>
    %107 = vector.broadcast %106 : vector<16x1xf32> to vector<16x32xf32>
    %108 = arith.subf %98, %107 : vector<16x32xf32>
    %109 = arith.mulf %108, %108 : vector<16x32xf32>
    %cst_62 = arith.constant dense<0.000000e+00> : vector<16xf32>
    %110 = vector.multi_reduction <add>, %109, %cst_62 [1] : vector<16x32xf32> to vector<16xf32>
    %111 = vector.shape_cast %110 : vector<16xf32> to vector<16x1xf32>
    %cst_63 = arith.constant 3.200000e+01 : f32
    %112 = vector.broadcast %cst_63 : f32 to vector<16x1xf32>
    %113 = arith.divf %111, %112 : vector<16x1xf32>
    %114 = vector.broadcast %106 : vector<16x1xf32> to vector<16x32xf32>
    %115 = arith.subf %98, %114 : vector<16x32xf32>
    %cst_64 = arith.constant 9.99999974E-6 : f32
    %116 = vector.broadcast %cst_64 : f32 to vector<16x1xf32>
    %117 = arith.addf %113, %116 : vector<16x1xf32>
    %118 = math.rsqrt %117 : vector<16x1xf32>
    %119 = vector.broadcast %118 : vector<16x1xf32> to vector<16x32xf32>
    %120 = arith.mulf %115, %119 : vector<16x32xf32>
    %121 = vector.broadcast %100 : vector<1x32xf32> to vector<16x32xf32>
    %122 = arith.mulf %120, %121 : vector<16x32xf32>
    %123 = vector.broadcast %102 : vector<1x32xf32> to vector<16x32xf32>
    %124 = arith.addf %122, %123 : vector<16x32xf32>
    %c0_65 = arith.constant 0 : index
    %c0_66 = arith.constant 0 : index
    %c0_67 = arith.constant 0 : index
    %c0_68 = arith.constant 0 : index
    %125 = vector.load %arg40[%c0_65, %c0_66, %c0_67, %c0_68] : memref<1x2x32x64xbf16, #tpu.memory_space<vmem>>, vector<1x1x32x64xbf16>
    %126 = vector.shape_cast %125 : vector<1x1x32x64xbf16> to vector<32x64xbf16>
    %127 = arith.truncf %124 : vector<16x32xf32> to vector<16x32xbf16>
    %cst_69 = arith.constant dense<0.000000e+00> : vector<16x64xf32>
    %128 = tpu.matmul %127, %126, %cst_69 {dimension_numbers = #tpu.dot_dimension_numbers<[1], [0], [0], [1], [0, 0, 1, 1], [], []>} : vector<16x32xbf16>, vector<32x64xbf16>, vector<16x64xf32> -> vector<16x64xf32>
    %c0_70 = arith.constant 0 : index
    %c0_71 = arith.constant 0 : index
    %c0_72 = arith.constant 0 : index
    %c0_73 = arith.constant 0 : index
    %129 = vector.load %arg38[%c0_70, %c0_71, %c0_72, %c0_73] : memref<1x2x1x64xf32, #tpu.memory_space<vmem>>, vector<1x1x1x64xf32>
    %130 = vector.shape_cast %129 : vector<1x1x1x64xf32> to vector<1x64xf32>
    %131 = vector.broadcast %130 : vector<1x64xf32> to vector<16x64xf32>
    %132 = arith.addf %128, %131 : vector<16x64xf32>
    %cst_74 = arith.constant 0.000000e+00 : f32
    %133 = vector.broadcast %cst_74 : f32 to vector<16x64xf32>
    %134 = arith.maximumf %132, %133 : vector<16x64xf32>
    %c0_75 = arith.constant 0 : index
    %c0_76 = arith.constant 0 : index
    %c0_77 = arith.constant 0 : index
    %c0_78 = arith.constant 0 : index
    %135 = vector.load %arg41[%c0_75, %c0_76, %c0_77, %c0_78] : memref<1x2x64x32xbf16, #tpu.memory_space<vmem>>, vector<1x1x64x32xbf16>
    %136 = vector.shape_cast %135 : vector<1x1x64x32xbf16> to vector<64x32xbf16>
    %137 = arith.truncf %134 : vector<16x64xf32> to vector<16x64xbf16>
    %cst_79 = arith.constant dense<0.000000e+00> : vector<16x32xf32>
    %138 = tpu.matmul %137, %136, %cst_79 {dimension_numbers = #tpu.dot_dimension_numbers<[1], [0], [0], [1], [0, 0, 1, 1], [], []>} : vector<16x64xbf16>, vector<64x32xbf16>, vector<16x32xf32> -> vector<16x32xf32>
    %c0_80 = arith.constant 0 : index
    %c0_81 = arith.constant 0 : index
    %c0_82 = arith.constant 0 : index
    %c0_83 = arith.constant 0 : index
    %139 = vector.load %arg39[%c0_80, %c0_81, %c0_82, %c0_83] : memref<1x2x1x32xf32, #tpu.memory_space<vmem>>, vector<1x1x1x32xf32>
    %140 = vector.shape_cast %139 : vector<1x1x1x32xf32> to vector<1x32xf32>
    %141 = vector.broadcast %140 : vector<1x32xf32> to vector<16x32xf32>
    %142 = arith.addf %138, %141 : vector<16x32xf32>
    %143 = arith.addf %124, %142 : vector<16x32xf32>
    %c0_84 = arith.constant 0 : index
    %c0_85 = arith.constant 0 : index
    %c0_86 = arith.constant 0 : index
    %c0_87 = arith.constant 0 : index
    %144 = vector.load %arg45[%c0_84, %c0_85, %c0_86, %c0_87] : memref<1x2x1x32xf32, #tpu.memory_space<vmem>>, vector<1x1x1x32xf32>
    %145 = vector.shape_cast %144 : vector<1x1x1x32xf32> to vector<1x32xf32>
    %c0_88 = arith.constant 0 : index
    %c0_89 = arith.constant 0 : index
    %c0_90 = arith.constant 0 : index
    %c0_91 = arith.constant 0 : index
    %146 = vector.load %arg44[%c0_88, %c0_89, %c0_90, %c0_91] : memref<1x2x1x32xf32, #tpu.memory_space<vmem>>, vector<1x1x1x32xf32>
    %147 = vector.shape_cast %146 : vector<1x1x1x32xf32> to vector<1x32xf32>
    %cst_92 = arith.constant dense<0.000000e+00> : vector<16xf32>
    %148 = vector.multi_reduction <add>, %143, %cst_92 [1] : vector<16x32xf32> to vector<16xf32>
    %149 = vector.shape_cast %148 : vector<16xf32> to vector<16x1xf32>
    %cst_93 = arith.constant 3.200000e+01 : f32
    %150 = vector.broadcast %cst_93 : f32 to vector<16x1xf32>
    %151 = arith.divf %149, %150 : vector<16x1xf32>
    %152 = vector.broadcast %151 : vector<16x1xf32> to vector<16x32xf32>
    %153 = arith.subf %143, %152 : vector<16x32xf32>
    %154 = arith.mulf %153, %153 : vector<16x32xf32>
    %cst_94 = arith.constant dense<0.000000e+00> : vector<16xf32>
    %155 = vector.multi_reduction <add>, %154, %cst_94 [1] : vector<16x32xf32> to vector<16xf32>
    %156 = vector.shape_cast %155 : vector<16xf32> to vector<16x1xf32>
    %cst_95 = arith.constant 3.200000e+01 : f32
    %157 = vector.broadcast %cst_95 : f32 to vector<16x1xf32>
    %158 = arith.divf %156, %157 : vector<16x1xf32>
    %159 = vector.broadcast %151 : vector<16x1xf32> to vector<16x32xf32>
    %160 = arith.subf %143, %159 : vector<16x32xf32>
    %cst_96 = arith.constant 9.99999974E-6 : f32
    %161 = vector.broadcast %cst_96 : f32 to vector<16x1xf32>
    %162 = arith.addf %158, %161 : vector<16x1xf32>
    %163 = math.rsqrt %162 : vector<16x1xf32>
    %164 = vector.broadcast %163 : vector<16x1xf32> to vector<16x32xf32>
    %165 = arith.mulf %160, %164 : vector<16x32xf32>
    %166 = vector.broadcast %145 : vector<1x32xf32> to vector<16x32xf32>
    %167 = arith.mulf %165, %166 : vector<16x32xf32>
    %168 = vector.broadcast %147 : vector<1x32xf32> to vector<16x32xf32>
    %169 = arith.addf %167, %168 : vector<16x32xf32>
    %c0_97 = arith.constant 0 : index
    %c1 = arith.constant 1 : index
    %c0_98 = arith.constant 0 : index
    %c0_99 = arith.constant 0 : index
    %170 = vector.load %arg36[%c0_97, %c1, %c0_98, %c0_99] : memref<1x2x32x32xbf16, #tpu.memory_space<vmem>>, vector<1x1x32x32xbf16>
    %171 = vector.shape_cast %170 : vector<1x1x32x32xbf16> to vector<32x32xbf16>
    %c0_100 = arith.constant 0 : index
    %c1_101 = arith.constant 1 : index
    %c0_102 = arith.constant 0 : index
    %c0_103 = arith.constant 0 : index
    %172 = vector.load %arg32[%c0_100, %c1_101, %c0_102, %c0_103] : memref<1x2x1x32xf32, #tpu.memory_space<vmem>>, vector<1x1x1x32xf32>
    %173 = vector.shape_cast %172 : vector<1x1x1x32xf32> to vector<1x32xf32>
    %c0_104 = arith.constant 0 : index
    %c1_105 = arith.constant 1 : index
    %c0_106 = arith.constant 0 : index
    %c0_107 = arith.constant 0 : index
    %174 = vector.load %arg34[%c0_104, %c1_105, %c0_106, %c0_107] : memref<1x2x32x32xbf16, #tpu.memory_space<vmem>>, vector<1x1x32x32xbf16>
    %175 = vector.shape_cast %174 : vector<1x1x32x32xbf16> to vector<32x32xbf16>
    %c0_108 = arith.constant 0 : index
    %c1_109 = arith.constant 1 : index
    %c0_110 = arith.constant 0 : index
    %c0_111 = arith.constant 0 : index
    %176 = vector.load %arg37[%c0_108, %c1_109, %c0_110, %c0_111] : memref<1x2x32x32xbf16, #tpu.memory_space<vmem>>, vector<1x1x32x32xbf16>
    %177 = vector.shape_cast %176 : vector<1x1x32x32xbf16> to vector<32x32xbf16>
    %c0_112 = arith.constant 0 : index
    %c1_113 = arith.constant 1 : index
    %c0_114 = arith.constant 0 : index
    %c0_115 = arith.constant 0 : index
    %178 = vector.load %arg33[%c0_112, %c1_113, %c0_114, %c0_115] : memref<1x2x1x32xf32, #tpu.memory_space<vmem>>, vector<1x1x1x32xf32>
    %179 = vector.shape_cast %178 : vector<1x1x1x32xf32> to vector<1x32xf32>
    %c0_116 = arith.constant 0 : index
    %c1_117 = arith.constant 1 : index
    %c0_118 = arith.constant 0 : index
    %c0_119 = arith.constant 0 : index
    %180 = vector.load %arg35[%c0_116, %c1_117, %c0_118, %c0_119] : memref<1x2x32x32xbf16, #tpu.memory_space<vmem>>, vector<1x1x32x32xbf16>
    %181 = vector.shape_cast %180 : vector<1x1x32x32xbf16> to vector<32x32xbf16>
    %c0_120 = arith.constant 0 : index
    %c1_121 = arith.constant 1 : index
    %c0_122 = arith.constant 0 : index
    %c0_123 = arith.constant 0 : index
    %182 = vector.load %arg31[%c0_120, %c1_121, %c0_122, %c0_123] : memref<1x2x1x32xf32, #tpu.memory_space<vmem>>, vector<1x1x1x32xf32>
    %183 = vector.shape_cast %182 : vector<1x1x1x32xf32> to vector<1x32xf32>
    %184 = arith.truncf %169 : vector<16x32xf32> to vector<16x32xbf16>
    %cst_124 = arith.constant dense<0.000000e+00> : vector<16x32xf32>
    %185 = tpu.matmul %184, %171, %cst_124 {dimension_numbers = #tpu.dot_dimension_numbers<[1], [0], [0], [1], [0, 0, 1, 1], [], []>} : vector<16x32xbf16>, vector<32x32xbf16>, vector<16x32xf32> -> vector<16x32xf32>
    %186 = vector.broadcast %173 : vector<1x32xf32> to vector<16x32xf32>
    %187 = arith.addf %185, %186 : vector<16x32xf32>
    %188 = arith.truncf %169 : vector<16x32xf32> to vector<16x32xbf16>
    %cst_125 = arith.constant dense<0.000000e+00> : vector<16x32xf32>
    %189 = tpu.matmul %188, %175, %cst_125 {dimension_numbers = #tpu.dot_dimension_numbers<[1], [0], [0], [1], [0, 0, 1, 1], [], []>} : vector<16x32xbf16>, vector<32x32xbf16>, vector<16x32xf32> -> vector<16x32xf32>
    %190 = arith.truncf %169 : vector<16x32xf32> to vector<16x32xbf16>
    %cst_126 = arith.constant dense<0.000000e+00> : vector<16x32xf32>
    %191 = tpu.matmul %190, %177, %cst_126 {dimension_numbers = #tpu.dot_dimension_numbers<[1], [0], [0], [1], [0, 0, 1, 1], [], []>} : vector<16x32xbf16>, vector<32x32xbf16>, vector<16x32xf32> -> vector<16x32xf32>
    %192 = vector.broadcast %179 : vector<1x32xf32> to vector<16x32xf32>
    %193 = arith.addf %191, %192 : vector<16x32xf32>
    %194 = vector.shape_cast %187 : vector<16x32xf32> to vector<2x8x32xf32>
    %195 = vector.shape_cast %189 : vector<16x32xf32> to vector<2x8x32xf32>
    %196 = vector.shape_cast %193 : vector<16x32xf32> to vector<2x8x32xf32>
    %197 = vector.extract_strided_slice %194 {offsets = [0, 0, 0], sizes = [2, 8, 8], strides = [1, 1, 1]} : vector<2x8x32xf32> to vector<2x8x8xf32>
    %198 = vector.extract_strided_slice %195 {offsets = [0, 0, 0], sizes = [2, 8, 8], strides = [1, 1, 1]} : vector<2x8x32xf32> to vector<2x8x8xf32>
    %199 = vector.extract_strided_slice %196 {offsets = [0, 0, 0], sizes = [2, 8, 8], strides = [1, 1, 1]} : vector<2x8x32xf32> to vector<2x8x8xf32>
    %cst_127 = arith.constant dense<0.000000e+00> : vector<2x8x8xf32>
    %200 = tpu.matmul %197, %198, %cst_127 {dimension_numbers = #tpu.dot_dimension_numbers<[2], [2], [1], [1], [0, 0, 0, 1, 1, 1], [0], [0]>} : vector<2x8x8xf32>, vector<2x8x8xf32>, vector<2x8x8xf32> -> vector<2x8x8xf32>
    %cst_128 = arith.constant 0.353553385 : f32
    %201 = vector.broadcast %cst_128 : f32 to vector<2x8x8xf32>
    %202 = arith.mulf %200, %201 : vector<2x8x8xf32>
    %cst_129 = arith.constant dense<0xFF800000> : vector<2x8xf32>
    %203 = vector.multi_reduction <maximumf>, %202, %cst_129 [2] : vector<2x8x8xf32> to vector<2x8xf32>
    %204 = vector.shape_cast %203 : vector<2x8xf32> to vector<2x8x1xf32>
    %205 = vector.broadcast %204 : vector<2x8x1xf32> to vector<2x8x8xf32>
    %206 = arith.subf %202, %205 : vector<2x8x8xf32>
    %207 = math.exp %206 : vector<2x8x8xf32>
    %cst_130 = arith.constant dense<0.000000e+00> : vector<2x8xf32>
    %208 = vector.multi_reduction <add>, %207, %cst_130 [2] : vector<2x8x8xf32> to vector<2x8xf32>
    %209 = vector.shape_cast %208 : vector<2x8xf32> to vector<2x8x1xf32>
    %210 = vector.broadcast %209 : vector<2x8x1xf32> to vector<2x8x8xf32>
    %211 = arith.divf %207, %210 : vector<2x8x8xf32>
    %cst_131 = arith.constant dense<0.000000e+00> : vector<2x8x8xf32>
    %212 = tpu.matmul %211, %199, %cst_131 {dimension_numbers = #tpu.dot_dimension_numbers<[2], [1], [1], [2], [0, 0, 0, 1, 1, 2], [0], [0]>} : vector<2x8x8xf32>, vector<2x8x8xf32>, vector<2x8x8xf32> -> vector<2x8x8xf32>
    %213 = vector.extract_strided_slice %194 {offsets = [0, 0, 8], sizes = [2, 8, 8], strides = [1, 1, 1]} : vector<2x8x32xf32> to vector<2x8x8xf32>
    %214 = vector.extract_strided_slice %195 {offsets = [0, 0, 8], sizes = [2, 8, 8], strides = [1, 1, 1]} : vector<2x8x32xf32> to vector<2x8x8xf32>
    %215 = vector.extract_strided_slice %196 {offsets = [0, 0, 8], sizes = [2, 8, 8], strides = [1, 1, 1]} : vector<2x8x32xf32> to vector<2x8x8xf32>
    %cst_132 = arith.constant dense<0.000000e+00> : vector<2x8x8xf32>
    %216 = tpu.matmul %213, %214, %cst_132 {dimension_numbers = #tpu.dot_dimension_numbers<[2], [2], [1], [1], [0, 0, 0, 1, 1, 1], [0], [0]>} : vector<2x8x8xf32>, vector<2x8x8xf32>, vector<2x8x8xf32> -> vector<2x8x8xf32>
    %cst_133 = arith.constant 0.353553385 : f32
    %217 = vector.broadcast %cst_133 : f32 to vector<2x8x8xf32>
    %218 = arith.mulf %216, %217 : vector<2x8x8xf32>
    %cst_134 = arith.constant dense<0xFF800000> : vector<2x8xf32>
    %219 = vector.multi_reduction <maximumf>, %218, %cst_134 [2] : vector<2x8x8xf32> to vector<2x8xf32>
    %220 = vector.shape_cast %219 : vector<2x8xf32> to vector<2x8x1xf32>
    %221 = vector.broadcast %220 : vector<2x8x1xf32> to vector<2x8x8xf32>
    %222 = arith.subf %218, %221 : vector<2x8x8xf32>
    %223 = math.exp %222 : vector<2x8x8xf32>
    %cst_135 = arith.constant dense<0.000000e+00> : vector<2x8xf32>
    %224 = vector.multi_reduction <add>, %223, %cst_135 [2] : vector<2x8x8xf32> to vector<2x8xf32>
    %225 = vector.shape_cast %224 : vector<2x8xf32> to vector<2x8x1xf32>
    %226 = vector.broadcast %225 : vector<2x8x1xf32> to vector<2x8x8xf32>
    %227 = arith.divf %223, %226 : vector<2x8x8xf32>
    %cst_136 = arith.constant dense<0.000000e+00> : vector<2x8x8xf32>
    %228 = tpu.matmul %227, %215, %cst_136 {dimension_numbers = #tpu.dot_dimension_numbers<[2], [1], [1], [2], [0, 0, 0, 1, 1, 2], [0], [0]>} : vector<2x8x8xf32>, vector<2x8x8xf32>, vector<2x8x8xf32> -> vector<2x8x8xf32>
    %229 = vector.extract_strided_slice %194 {offsets = [0, 0, 16], sizes = [2, 8, 8], strides = [1, 1, 1]} : vector<2x8x32xf32> to vector<2x8x8xf32>
    %230 = vector.extract_strided_slice %195 {offsets = [0, 0, 16], sizes = [2, 8, 8], strides = [1, 1, 1]} : vector<2x8x32xf32> to vector<2x8x8xf32>
    %231 = vector.extract_strided_slice %196 {offsets = [0, 0, 16], sizes = [2, 8, 8], strides = [1, 1, 1]} : vector<2x8x32xf32> to vector<2x8x8xf32>
    %cst_137 = arith.constant dense<0.000000e+00> : vector<2x8x8xf32>
    %232 = tpu.matmul %229, %230, %cst_137 {dimension_numbers = #tpu.dot_dimension_numbers<[2], [2], [1], [1], [0, 0, 0, 1, 1, 1], [0], [0]>} : vector<2x8x8xf32>, vector<2x8x8xf32>, vector<2x8x8xf32> -> vector<2x8x8xf32>
    %cst_138 = arith.constant 0.353553385 : f32
    %233 = vector.broadcast %cst_138 : f32 to vector<2x8x8xf32>
    %234 = arith.mulf %232, %233 : vector<2x8x8xf32>
    %cst_139 = arith.constant dense<0xFF800000> : vector<2x8xf32>
    %235 = vector.multi_reduction <maximumf>, %234, %cst_139 [2] : vector<2x8x8xf32> to vector<2x8xf32>
    %236 = vector.shape_cast %235 : vector<2x8xf32> to vector<2x8x1xf32>
    %237 = vector.broadcast %236 : vector<2x8x1xf32> to vector<2x8x8xf32>
    %238 = arith.subf %234, %237 : vector<2x8x8xf32>
    %239 = math.exp %238 : vector<2x8x8xf32>
    %cst_140 = arith.constant dense<0.000000e+00> : vector<2x8xf32>
    %240 = vector.multi_reduction <add>, %239, %cst_140 [2] : vector<2x8x8xf32> to vector<2x8xf32>
    %241 = vector.shape_cast %240 : vector<2x8xf32> to vector<2x8x1xf32>
    %242 = vector.broadcast %241 : vector<2x8x1xf32> to vector<2x8x8xf32>
    %243 = arith.divf %239, %242 : vector<2x8x8xf32>
    %cst_141 = arith.constant dense<0.000000e+00> : vector<2x8x8xf32>
    %244 = tpu.matmul %243, %231, %cst_141 {dimension_numbers = #tpu.dot_dimension_numbers<[2], [1], [1], [2], [0, 0, 0, 1, 1, 2], [0], [0]>} : vector<2x8x8xf32>, vector<2x8x8xf32>, vector<2x8x8xf32> -> vector<2x8x8xf32>
    %245 = vector.extract_strided_slice %194 {offsets = [0, 0, 24], sizes = [2, 8, 8], strides = [1, 1, 1]} : vector<2x8x32xf32> to vector<2x8x8xf32>
    %246 = vector.extract_strided_slice %195 {offsets = [0, 0, 24], sizes = [2, 8, 8], strides = [1, 1, 1]} : vector<2x8x32xf32> to vector<2x8x8xf32>
    %247 = vector.extract_strided_slice %196 {offsets = [0, 0, 24], sizes = [2, 8, 8], strides = [1, 1, 1]} : vector<2x8x32xf32> to vector<2x8x8xf32>
    %cst_142 = arith.constant dense<0.000000e+00> : vector<2x8x8xf32>
    %248 = tpu.matmul %245, %246, %cst_142 {dimension_numbers = #tpu.dot_dimension_numbers<[2], [2], [1], [1], [0, 0, 0, 1, 1, 1], [0], [0]>} : vector<2x8x8xf32>, vector<2x8x8xf32>, vector<2x8x8xf32> -> vector<2x8x8xf32>
    %cst_143 = arith.constant 0.353553385 : f32
    %249 = vector.broadcast %cst_143 : f32 to vector<2x8x8xf32>
    %250 = arith.mulf %248, %249 : vector<2x8x8xf32>
    %cst_144 = arith.constant dense<0xFF800000> : vector<2x8xf32>
    %251 = vector.multi_reduction <maximumf>, %250, %cst_144 [2] : vector<2x8x8xf32> to vector<2x8xf32>
    %252 = vector.shape_cast %251 : vector<2x8xf32> to vector<2x8x1xf32>
    %253 = vector.broadcast %252 : vector<2x8x1xf32> to vector<2x8x8xf32>
    %254 = arith.subf %250, %253 : vector<2x8x8xf32>
    %255 = math.exp %254 : vector<2x8x8xf32>
    %cst_145 = arith.constant dense<0.000000e+00> : vector<2x8xf32>
    %256 = vector.multi_reduction <add>, %255, %cst_145 [2] : vector<2x8x8xf32> to vector<2x8xf32>
    %257 = vector.shape_cast %256 : vector<2x8xf32> to vector<2x8x1xf32>
    %258 = vector.broadcast %257 : vector<2x8x1xf32> to vector<2x8x8xf32>
    %259 = arith.divf %255, %258 : vector<2x8x8xf32>
    %cst_146 = arith.constant dense<0.000000e+00> : vector<2x8x8xf32>
    %260 = tpu.matmul %259, %247, %cst_146 {dimension_numbers = #tpu.dot_dimension_numbers<[2], [1], [1], [2], [0, 0, 0, 1, 1, 2], [0], [0]>} : vector<2x8x8xf32>, vector<2x8x8xf32>, vector<2x8x8xf32> -> vector<2x8x8xf32>
    %261 = tpu.concatenate %212, %228, %244, %260 in 2 : vector<2x8x8xf32>, vector<2x8x8xf32>, vector<2x8x8xf32>, vector<2x8x8xf32> -> vector<2x8x32xf32>
    %262 = vector.shape_cast %261 : vector<2x8x32xf32> to vector<16x32xf32>
    %263 = arith.truncf %262 : vector<16x32xf32> to vector<16x32xbf16>
    %cst_147 = arith.constant dense<0.000000e+00> : vector<16x32xf32>
    %264 = tpu.matmul %263, %181, %cst_147 {dimension_numbers = #tpu.dot_dimension_numbers<[1], [0], [0], [1], [0, 0, 1, 1], [], []>} : vector<16x32xbf16>, vector<32x32xbf16>, vector<16x32xf32> -> vector<16x32xf32>
    %265 = vector.broadcast %183 : vector<1x32xf32> to vector<16x32xf32>
    %266 = arith.addf %264, %265 : vector<16x32xf32>
    %267 = arith.addf %169, %266 : vector<16x32xf32>
    %c0_148 = arith.constant 0 : index
    %c1_149 = arith.constant 1 : index
    %c0_150 = arith.constant 0 : index
    %c0_151 = arith.constant 0 : index
    %268 = vector.load %arg43[%c0_148, %c1_149, %c0_150, %c0_151] : memref<1x2x1x32xf32, #tpu.memory_space<vmem>>, vector<1x1x1x32xf32>
    %269 = vector.shape_cast %268 : vector<1x1x1x32xf32> to vector<1x32xf32>
    %c0_152 = arith.constant 0 : index
    %c1_153 = arith.constant 1 : index
    %c0_154 = arith.constant 0 : index
    %c0_155 = arith.constant 0 : index
    %270 = vector.load %arg42[%c0_152, %c1_153, %c0_154, %c0_155] : memref<1x2x1x32xf32, #tpu.memory_space<vmem>>, vector<1x1x1x32xf32>
    %271 = vector.shape_cast %270 : vector<1x1x1x32xf32> to vector<1x32xf32>
    %cst_156 = arith.constant dense<0.000000e+00> : vector<16xf32>
    %272 = vector.multi_reduction <add>, %267, %cst_156 [1] : vector<16x32xf32> to vector<16xf32>
    %273 = vector.shape_cast %272 : vector<16xf32> to vector<16x1xf32>
    %cst_157 = arith.constant 3.200000e+01 : f32
    %274 = vector.broadcast %cst_157 : f32 to vector<16x1xf32>
    %275 = arith.divf %273, %274 : vector<16x1xf32>
    %276 = vector.broadcast %275 : vector<16x1xf32> to vector<16x32xf32>
    %277 = arith.subf %267, %276 : vector<16x32xf32>
    %278 = arith.mulf %277, %277 : vector<16x32xf32>
    %cst_158 = arith.constant dense<0.000000e+00> : vector<16xf32>
    %279 = vector.multi_reduction <add>, %278, %cst_158 [1] : vector<16x32xf32> to vector<16xf32>
    %280 = vector.shape_cast %279 : vector<16xf32> to vector<16x1xf32>
    %cst_159 = arith.constant 3.200000e+01 : f32
    %281 = vector.broadcast %cst_159 : f32 to vector<16x1xf32>
    %282 = arith.divf %280, %281 : vector<16x1xf32>
    %283 = vector.broadcast %275 : vector<16x1xf32> to vector<16x32xf32>
    %284 = arith.subf %267, %283 : vector<16x32xf32>
    %cst_160 = arith.constant 9.99999974E-6 : f32
    %285 = vector.broadcast %cst_160 : f32 to vector<16x1xf32>
    %286 = arith.addf %282, %285 : vector<16x1xf32>
    %287 = math.rsqrt %286 : vector<16x1xf32>
    %288 = vector.broadcast %287 : vector<16x1xf32> to vector<16x32xf32>
    %289 = arith.mulf %284, %288 : vector<16x32xf32>
    %290 = vector.broadcast %269 : vector<1x32xf32> to vector<16x32xf32>
    %291 = arith.mulf %289, %290 : vector<16x32xf32>
    %292 = vector.broadcast %271 : vector<1x32xf32> to vector<16x32xf32>
    %293 = arith.addf %291, %292 : vector<16x32xf32>
    %c0_161 = arith.constant 0 : index
    %c1_162 = arith.constant 1 : index
    %c0_163 = arith.constant 0 : index
    %c0_164 = arith.constant 0 : index
    %294 = vector.load %arg40[%c0_161, %c1_162, %c0_163, %c0_164] : memref<1x2x32x64xbf16, #tpu.memory_space<vmem>>, vector<1x1x32x64xbf16>
    %295 = vector.shape_cast %294 : vector<1x1x32x64xbf16> to vector<32x64xbf16>
    %296 = arith.truncf %293 : vector<16x32xf32> to vector<16x32xbf16>
    %cst_165 = arith.constant dense<0.000000e+00> : vector<16x64xf32>
    %297 = tpu.matmul %296, %295, %cst_165 {dimension_numbers = #tpu.dot_dimension_numbers<[1], [0], [0], [1], [0, 0, 1, 1], [], []>} : vector<16x32xbf16>, vector<32x64xbf16>, vector<16x64xf32> -> vector<16x64xf32>
    %c0_166 = arith.constant 0 : index
    %c1_167 = arith.constant 1 : index
    %c0_168 = arith.constant 0 : index
    %c0_169 = arith.constant 0 : index
    %298 = vector.load %arg38[%c0_166, %c1_167, %c0_168, %c0_169] : memref<1x2x1x64xf32, #tpu.memory_space<vmem>>, vector<1x1x1x64xf32>
    %299 = vector.shape_cast %298 : vector<1x1x1x64xf32> to vector<1x64xf32>
    %300 = vector.broadcast %299 : vector<1x64xf32> to vector<16x64xf32>
    %301 = arith.addf %297, %300 : vector<16x64xf32>
    %cst_170 = arith.constant 0.000000e+00 : f32
    %302 = vector.broadcast %cst_170 : f32 to vector<16x64xf32>
    %303 = arith.maximumf %301, %302 : vector<16x64xf32>
    %c0_171 = arith.constant 0 : index
    %c1_172 = arith.constant 1 : index
    %c0_173 = arith.constant 0 : index
    %c0_174 = arith.constant 0 : index
    %304 = vector.load %arg41[%c0_171, %c1_172, %c0_173, %c0_174] : memref<1x2x64x32xbf16, #tpu.memory_space<vmem>>, vector<1x1x64x32xbf16>
    %305 = vector.shape_cast %304 : vector<1x1x64x32xbf16> to vector<64x32xbf16>
    %306 = arith.truncf %303 : vector<16x64xf32> to vector<16x64xbf16>
    %cst_175 = arith.constant dense<0.000000e+00> : vector<16x32xf32>
    %307 = tpu.matmul %306, %305, %cst_175 {dimension_numbers = #tpu.dot_dimension_numbers<[1], [0], [0], [1], [0, 0, 1, 1], [], []>} : vector<16x64xbf16>, vector<64x32xbf16>, vector<16x32xf32> -> vector<16x32xf32>
    %c0_176 = arith.constant 0 : index
    %c1_177 = arith.constant 1 : index
    %c0_178 = arith.constant 0 : index
    %c0_179 = arith.constant 0 : index
    %308 = vector.load %arg39[%c0_176, %c1_177, %c0_178, %c0_179] : memref<1x2x1x32xf32, #tpu.memory_space<vmem>>, vector<1x1x1x32xf32>
    %309 = vector.shape_cast %308 : vector<1x1x1x32xf32> to vector<1x32xf32>
    %310 = vector.broadcast %309 : vector<1x32xf32> to vector<16x32xf32>
    %311 = arith.addf %307, %310 : vector<16x32xf32>
    %312 = arith.addf %293, %311 : vector<16x32xf32>
    %c0_180 = arith.constant 0 : index
    %c1_181 = arith.constant 1 : index
    %c0_182 = arith.constant 0 : index
    %c0_183 = arith.constant 0 : index
    %313 = vector.load %arg45[%c0_180, %c1_181, %c0_182, %c0_183] : memref<1x2x1x32xf32, #tpu.memory_space<vmem>>, vector<1x1x1x32xf32>
    %314 = vector.shape_cast %313 : vector<1x1x1x32xf32> to vector<1x32xf32>
    %c0_184 = arith.constant 0 : index
    %c1_185 = arith.constant 1 : index
    %c0_186 = arith.constant 0 : index
    %c0_187 = arith.constant 0 : index
    %315 = vector.load %arg44[%c0_184, %c1_185, %c0_186, %c0_187] : memref<1x2x1x32xf32, #tpu.memory_space<vmem>>, vector<1x1x1x32xf32>
    %316 = vector.shape_cast %315 : vector<1x1x1x32xf32> to vector<1x32xf32>
    %cst_188 = arith.constant dense<0.000000e+00> : vector<16xf32>
    %317 = vector.multi_reduction <add>, %312, %cst_188 [1] : vector<16x32xf32> to vector<16xf32>
    %318 = vector.shape_cast %317 : vector<16xf32> to vector<16x1xf32>
    %cst_189 = arith.constant 3.200000e+01 : f32
    %319 = vector.broadcast %cst_189 : f32 to vector<16x1xf32>
    %320 = arith.divf %318, %319 : vector<16x1xf32>
    %321 = vector.broadcast %320 : vector<16x1xf32> to vector<16x32xf32>
    %322 = arith.subf %312, %321 : vector<16x32xf32>
    %323 = arith.mulf %322, %322 : vector<16x32xf32>
    %cst_190 = arith.constant dense<0.000000e+00> : vector<16xf32>
    %324 = vector.multi_reduction <add>, %323, %cst_190 [1] : vector<16x32xf32> to vector<16xf32>
    %325 = vector.shape_cast %324 : vector<16xf32> to vector<16x1xf32>
    %cst_191 = arith.constant 3.200000e+01 : f32
    %326 = vector.broadcast %cst_191 : f32 to vector<16x1xf32>
    %327 = arith.divf %325, %326 : vector<16x1xf32>
    %328 = vector.broadcast %320 : vector<16x1xf32> to vector<16x32xf32>
    %329 = arith.subf %312, %328 : vector<16x32xf32>
    %cst_192 = arith.constant 9.99999974E-6 : f32
    %330 = vector.broadcast %cst_192 : f32 to vector<16x1xf32>
    %331 = arith.addf %327, %330 : vector<16x1xf32>
    %332 = math.rsqrt %331 : vector<16x1xf32>
    %333 = vector.broadcast %332 : vector<16x1xf32> to vector<16x32xf32>
    %334 = arith.mulf %329, %333 : vector<16x32xf32>
    %335 = vector.broadcast %314 : vector<1x32xf32> to vector<16x32xf32>
    %336 = arith.mulf %334, %335 : vector<16x32xf32>
    %337 = vector.broadcast %316 : vector<1x32xf32> to vector<16x32xf32>
    %338 = arith.addf %336, %337 : vector<16x32xf32>
    %c0_193 = arith.constant 0 : index
    %c0_194 = arith.constant 0 : index
    %c0_195 = arith.constant 0 : index
    %339 = vector.load %arg47[%c0_193, %c0_194, %c0_195] : memref<1x1x32xf32, #tpu.memory_space<vmem>>, vector<1x1x32xf32>
    %340 = vector.shape_cast %339 : vector<1x1x32xf32> to vector<1x32xf32>
    %c0_196 = arith.constant 0 : index
    %c0_197 = arith.constant 0 : index
    %c0_198 = arith.constant 0 : index
    %341 = vector.load %arg46[%c0_196, %c0_197, %c0_198] : memref<1x1x32xf32, #tpu.memory_space<vmem>>, vector<1x1x32xf32>
    %342 = vector.shape_cast %341 : vector<1x1x32xf32> to vector<1x32xf32>
    %cst_199 = arith.constant dense<0.000000e+00> : vector<16xf32>
    %343 = vector.multi_reduction <add>, %338, %cst_199 [1] : vector<16x32xf32> to vector<16xf32>
    %344 = vector.shape_cast %343 : vector<16xf32> to vector<16x1xf32>
    %cst_200 = arith.constant 3.200000e+01 : f32
    %345 = vector.broadcast %cst_200 : f32 to vector<16x1xf32>
    %346 = arith.divf %344, %345 : vector<16x1xf32>
    %347 = vector.broadcast %346 : vector<16x1xf32> to vector<16x32xf32>
    %348 = arith.subf %338, %347 : vector<16x32xf32>
    %349 = arith.mulf %348, %348 : vector<16x32xf32>
    %cst_201 = arith.constant dense<0.000000e+00> : vector<16xf32>
    %350 = vector.multi_reduction <add>, %349, %cst_201 [1] : vector<16x32xf32> to vector<16xf32>
    %351 = vector.shape_cast %350 : vector<16xf32> to vector<16x1xf32>
    %cst_202 = arith.constant 3.200000e+01 : f32
    %352 = vector.broadcast %cst_202 : f32 to vector<16x1xf32>
    %353 = arith.divf %351, %352 : vector<16x1xf32>
    %354 = vector.broadcast %346 : vector<16x1xf32> to vector<16x32xf32>
    %355 = arith.subf %338, %354 : vector<16x32xf32>
    %cst_203 = arith.constant 9.99999974E-6 : f32
    %356 = vector.broadcast %cst_203 : f32 to vector<16x1xf32>
    %357 = arith.addf %353, %356 : vector<16x1xf32>
    %358 = math.rsqrt %357 : vector<16x1xf32>
    %359 = vector.broadcast %358 : vector<16x1xf32> to vector<16x32xf32>
    %360 = arith.mulf %355, %359 : vector<16x32xf32>
    %361 = vector.broadcast %340 : vector<1x32xf32> to vector<16x32xf32>
    %362 = arith.mulf %360, %361 : vector<16x32xf32>
    %363 = vector.broadcast %342 : vector<1x32xf32> to vector<16x32xf32>
    %364 = arith.addf %362, %363 : vector<16x32xf32>
    %c0_204 = arith.constant 0 : index
    %c0_205 = arith.constant 0 : index
    %365 = vector.load %arg2[%c0_204, %c0_205] : memref<16x32xf32, #tpu.memory_space<vmem>>, vector<16x32xf32>
    %c0_206 = arith.constant 0 : index
    %c0_207 = arith.constant 0 : index
    %c0_208 = arith.constant 0 : index
    %c0_209 = arith.constant 0 : index
    %366 = vector.load %arg27[%c0_206, %c0_207, %c0_208, %c0_209] : memref<1x2x32x32xbf16, #tpu.memory_space<vmem>>, vector<1x1x32x32xbf16>
    %367 = vector.shape_cast %366 : vector<1x1x32x32xbf16> to vector<32x32xbf16>
    %c0_210 = arith.constant 0 : index
    %c0_211 = arith.constant 0 : index
    %c0_212 = arith.constant 0 : index
    %c0_213 = arith.constant 0 : index
    %368 = vector.load %arg23[%c0_210, %c0_211, %c0_212, %c0_213] : memref<1x2x1x32xf32, #tpu.memory_space<vmem>>, vector<1x1x1x32xf32>
    %369 = vector.shape_cast %368 : vector<1x1x1x32xf32> to vector<1x32xf32>
    %c0_214 = arith.constant 0 : index
    %c0_215 = arith.constant 0 : index
    %c0_216 = arith.constant 0 : index
    %c0_217 = arith.constant 0 : index
    %370 = vector.load %arg25[%c0_214, %c0_215, %c0_216, %c0_217] : memref<1x2x32x32xbf16, #tpu.memory_space<vmem>>, vector<1x1x32x32xbf16>
    %371 = vector.shape_cast %370 : vector<1x1x32x32xbf16> to vector<32x32xbf16>
    %c0_218 = arith.constant 0 : index
    %c0_219 = arith.constant 0 : index
    %c0_220 = arith.constant 0 : index
    %c0_221 = arith.constant 0 : index
    %372 = vector.load %arg28[%c0_218, %c0_219, %c0_220, %c0_221] : memref<1x2x32x32xbf16, #tpu.memory_space<vmem>>, vector<1x1x32x32xbf16>
    %373 = vector.shape_cast %372 : vector<1x1x32x32xbf16> to vector<32x32xbf16>
    %c0_222 = arith.constant 0 : index
    %c0_223 = arith.constant 0 : index
    %c0_224 = arith.constant 0 : index
    %c0_225 = arith.constant 0 : index
    %374 = vector.load %arg24[%c0_222, %c0_223, %c0_224, %c0_225] : memref<1x2x1x32xf32, #tpu.memory_space<vmem>>, vector<1x1x1x32xf32>
    %375 = vector.shape_cast %374 : vector<1x1x1x32xf32> to vector<1x32xf32>
    %c0_226 = arith.constant 0 : index
    %c0_227 = arith.constant 0 : index
    %c0_228 = arith.constant 0 : index
    %c0_229 = arith.constant 0 : index
    %376 = vector.load %arg26[%c0_226, %c0_227, %c0_228, %c0_229] : memref<1x2x32x32xbf16, #tpu.memory_space<vmem>>, vector<1x1x32x32xbf16>
    %377 = vector.shape_cast %376 : vector<1x1x32x32xbf16> to vector<32x32xbf16>
    %c0_230 = arith.constant 0 : index
    %c0_231 = arith.constant 0 : index
    %c0_232 = arith.constant 0 : index
    %c0_233 = arith.constant 0 : index
    %378 = vector.load %arg22[%c0_230, %c0_231, %c0_232, %c0_233] : memref<1x2x1x32xf32, #tpu.memory_space<vmem>>, vector<1x1x1x32xf32>
    %379 = vector.shape_cast %378 : vector<1x1x1x32xf32> to vector<1x32xf32>
    %380 = arith.truncf %365 : vector<16x32xf32> to vector<16x32xbf16>
    %cst_234 = arith.constant dense<0.000000e+00> : vector<16x32xf32>
    %381 = tpu.matmul %380, %367, %cst_234 {dimension_numbers = #tpu.dot_dimension_numbers<[1], [0], [0], [1], [0, 0, 1, 1], [], []>} : vector<16x32xbf16>, vector<32x32xbf16>, vector<16x32xf32> -> vector<16x32xf32>
    %382 = vector.broadcast %369 : vector<1x32xf32> to vector<16x32xf32>
    %383 = arith.addf %381, %382 : vector<16x32xf32>
    %384 = arith.truncf %365 : vector<16x32xf32> to vector<16x32xbf16>
    %cst_235 = arith.constant dense<0.000000e+00> : vector<16x32xf32>
    %385 = tpu.matmul %384, %371, %cst_235 {dimension_numbers = #tpu.dot_dimension_numbers<[1], [0], [0], [1], [0, 0, 1, 1], [], []>} : vector<16x32xbf16>, vector<32x32xbf16>, vector<16x32xf32> -> vector<16x32xf32>
    %386 = arith.truncf %365 : vector<16x32xf32> to vector<16x32xbf16>
    %cst_236 = arith.constant dense<0.000000e+00> : vector<16x32xf32>
    %387 = tpu.matmul %386, %373, %cst_236 {dimension_numbers = #tpu.dot_dimension_numbers<[1], [0], [0], [1], [0, 0, 1, 1], [], []>} : vector<16x32xbf16>, vector<32x32xbf16>, vector<16x32xf32> -> vector<16x32xf32>
    %388 = vector.broadcast %375 : vector<1x32xf32> to vector<16x32xf32>
    %389 = arith.addf %387, %388 : vector<16x32xf32>
    %390 = vector.shape_cast %383 : vector<16x32xf32> to vector<2x8x32xf32>
    %391 = vector.shape_cast %385 : vector<16x32xf32> to vector<2x8x32xf32>
    %392 = vector.shape_cast %389 : vector<16x32xf32> to vector<2x8x32xf32>
    %393 = vector.extract_strided_slice %390 {offsets = [0, 0, 0], sizes = [2, 8, 8], strides = [1, 1, 1]} : vector<2x8x32xf32> to vector<2x8x8xf32>
    %394 = vector.extract_strided_slice %391 {offsets = [0, 0, 0], sizes = [2, 8, 8], strides = [1, 1, 1]} : vector<2x8x32xf32> to vector<2x8x8xf32>
    %395 = vector.extract_strided_slice %392 {offsets = [0, 0, 0], sizes = [2, 8, 8], strides = [1, 1, 1]} : vector<2x8x32xf32> to vector<2x8x8xf32>
    %cst_237 = arith.constant dense<0.000000e+00> : vector<2x8x8xf32>
    %396 = tpu.matmul %393, %394, %cst_237 {dimension_numbers = #tpu.dot_dimension_numbers<[2], [2], [1], [1], [0, 0, 0, 1, 1, 1], [0], [0]>} : vector<2x8x8xf32>, vector<2x8x8xf32>, vector<2x8x8xf32> -> vector<2x8x8xf32>
    %cst_238 = arith.constant 0.353553385 : f32
    %397 = vector.broadcast %cst_238 : f32 to vector<2x8x8xf32>
    %398 = arith.mulf %396, %397 : vector<2x8x8xf32>
    %cst_239 = arith.constant dense<0xFF800000> : vector<2x8xf32>
    %399 = vector.multi_reduction <maximumf>, %398, %cst_239 [2] : vector<2x8x8xf32> to vector<2x8xf32>
    %400 = vector.shape_cast %399 : vector<2x8xf32> to vector<2x8x1xf32>
    %401 = vector.broadcast %400 : vector<2x8x1xf32> to vector<2x8x8xf32>
    %402 = arith.subf %398, %401 : vector<2x8x8xf32>
    %403 = math.exp %402 : vector<2x8x8xf32>
    %cst_240 = arith.constant dense<0.000000e+00> : vector<2x8xf32>
    %404 = vector.multi_reduction <add>, %403, %cst_240 [2] : vector<2x8x8xf32> to vector<2x8xf32>
    %405 = vector.shape_cast %404 : vector<2x8xf32> to vector<2x8x1xf32>
    %406 = vector.broadcast %405 : vector<2x8x1xf32> to vector<2x8x8xf32>
    %407 = arith.divf %403, %406 : vector<2x8x8xf32>
    %cst_241 = arith.constant dense<0.000000e+00> : vector<2x8x8xf32>
    %408 = tpu.matmul %407, %395, %cst_241 {dimension_numbers = #tpu.dot_dimension_numbers<[2], [1], [1], [2], [0, 0, 0, 1, 1, 2], [0], [0]>} : vector<2x8x8xf32>, vector<2x8x8xf32>, vector<2x8x8xf32> -> vector<2x8x8xf32>
    %409 = vector.extract_strided_slice %390 {offsets = [0, 0, 8], sizes = [2, 8, 8], strides = [1, 1, 1]} : vector<2x8x32xf32> to vector<2x8x8xf32>
    %410 = vector.extract_strided_slice %391 {offsets = [0, 0, 8], sizes = [2, 8, 8], strides = [1, 1, 1]} : vector<2x8x32xf32> to vector<2x8x8xf32>
    %411 = vector.extract_strided_slice %392 {offsets = [0, 0, 8], sizes = [2, 8, 8], strides = [1, 1, 1]} : vector<2x8x32xf32> to vector<2x8x8xf32>
    %cst_242 = arith.constant dense<0.000000e+00> : vector<2x8x8xf32>
    %412 = tpu.matmul %409, %410, %cst_242 {dimension_numbers = #tpu.dot_dimension_numbers<[2], [2], [1], [1], [0, 0, 0, 1, 1, 1], [0], [0]>} : vector<2x8x8xf32>, vector<2x8x8xf32>, vector<2x8x8xf32> -> vector<2x8x8xf32>
    %cst_243 = arith.constant 0.353553385 : f32
    %413 = vector.broadcast %cst_243 : f32 to vector<2x8x8xf32>
    %414 = arith.mulf %412, %413 : vector<2x8x8xf32>
    %cst_244 = arith.constant dense<0xFF800000> : vector<2x8xf32>
    %415 = vector.multi_reduction <maximumf>, %414, %cst_244 [2] : vector<2x8x8xf32> to vector<2x8xf32>
    %416 = vector.shape_cast %415 : vector<2x8xf32> to vector<2x8x1xf32>
    %417 = vector.broadcast %416 : vector<2x8x1xf32> to vector<2x8x8xf32>
    %418 = arith.subf %414, %417 : vector<2x8x8xf32>
    %419 = math.exp %418 : vector<2x8x8xf32>
    %cst_245 = arith.constant dense<0.000000e+00> : vector<2x8xf32>
    %420 = vector.multi_reduction <add>, %419, %cst_245 [2] : vector<2x8x8xf32> to vector<2x8xf32>
    %421 = vector.shape_cast %420 : vector<2x8xf32> to vector<2x8x1xf32>
    %422 = vector.broadcast %421 : vector<2x8x1xf32> to vector<2x8x8xf32>
    %423 = arith.divf %419, %422 : vector<2x8x8xf32>
    %cst_246 = arith.constant dense<0.000000e+00> : vector<2x8x8xf32>
    %424 = tpu.matmul %423, %411, %cst_246 {dimension_numbers = #tpu.dot_dimension_numbers<[2], [1], [1], [2], [0, 0, 0, 1, 1, 2], [0], [0]>} : vector<2x8x8xf32>, vector<2x8x8xf32>, vector<2x8x8xf32> -> vector<2x8x8xf32>
    %425 = vector.extract_strided_slice %390 {offsets = [0, 0, 16], sizes = [2, 8, 8], strides = [1, 1, 1]} : vector<2x8x32xf32> to vector<2x8x8xf32>
    %426 = vector.extract_strided_slice %391 {offsets = [0, 0, 16], sizes = [2, 8, 8], strides = [1, 1, 1]} : vector<2x8x32xf32> to vector<2x8x8xf32>
    %427 = vector.extract_strided_slice %392 {offsets = [0, 0, 16], sizes = [2, 8, 8], strides = [1, 1, 1]} : vector<2x8x32xf32> to vector<2x8x8xf32>
    %cst_247 = arith.constant dense<0.000000e+00> : vector<2x8x8xf32>
    %428 = tpu.matmul %425, %426, %cst_247 {dimension_numbers = #tpu.dot_dimension_numbers<[2], [2], [1], [1], [0, 0, 0, 1, 1, 1], [0], [0]>} : vector<2x8x8xf32>, vector<2x8x8xf32>, vector<2x8x8xf32> -> vector<2x8x8xf32>
    %cst_248 = arith.constant 0.353553385 : f32
    %429 = vector.broadcast %cst_248 : f32 to vector<2x8x8xf32>
    %430 = arith.mulf %428, %429 : vector<2x8x8xf32>
    %cst_249 = arith.constant dense<0xFF800000> : vector<2x8xf32>
    %431 = vector.multi_reduction <maximumf>, %430, %cst_249 [2] : vector<2x8x8xf32> to vector<2x8xf32>
    %432 = vector.shape_cast %431 : vector<2x8xf32> to vector<2x8x1xf32>
    %433 = vector.broadcast %432 : vector<2x8x1xf32> to vector<2x8x8xf32>
    %434 = arith.subf %430, %433 : vector<2x8x8xf32>
    %435 = math.exp %434 : vector<2x8x8xf32>
    %cst_250 = arith.constant dense<0.000000e+00> : vector<2x8xf32>
    %436 = vector.multi_reduction <add>, %435, %cst_250 [2] : vector<2x8x8xf32> to vector<2x8xf32>
    %437 = vector.shape_cast %436 : vector<2x8xf32> to vector<2x8x1xf32>
    %438 = vector.broadcast %437 : vector<2x8x1xf32> to vector<2x8x8xf32>
    %439 = arith.divf %435, %438 : vector<2x8x8xf32>
    %cst_251 = arith.constant dense<0.000000e+00> : vector<2x8x8xf32>
    %440 = tpu.matmul %439, %427, %cst_251 {dimension_numbers = #tpu.dot_dimension_numbers<[2], [1], [1], [2], [0, 0, 0, 1, 1, 2], [0], [0]>} : vector<2x8x8xf32>, vector<2x8x8xf32>, vector<2x8x8xf32> -> vector<2x8x8xf32>
    %441 = vector.extract_strided_slice %390 {offsets = [0, 0, 24], sizes = [2, 8, 8], strides = [1, 1, 1]} : vector<2x8x32xf32> to vector<2x8x8xf32>
    %442 = vector.extract_strided_slice %391 {offsets = [0, 0, 24], sizes = [2, 8, 8], strides = [1, 1, 1]} : vector<2x8x32xf32> to vector<2x8x8xf32>
    %443 = vector.extract_strided_slice %392 {offsets = [0, 0, 24], sizes = [2, 8, 8], strides = [1, 1, 1]} : vector<2x8x32xf32> to vector<2x8x8xf32>
    %cst_252 = arith.constant dense<0.000000e+00> : vector<2x8x8xf32>
    %444 = tpu.matmul %441, %442, %cst_252 {dimension_numbers = #tpu.dot_dimension_numbers<[2], [2], [1], [1], [0, 0, 0, 1, 1, 1], [0], [0]>} : vector<2x8x8xf32>, vector<2x8x8xf32>, vector<2x8x8xf32> -> vector<2x8x8xf32>
    %cst_253 = arith.constant 0.353553385 : f32
    %445 = vector.broadcast %cst_253 : f32 to vector<2x8x8xf32>
    %446 = arith.mulf %444, %445 : vector<2x8x8xf32>
    %cst_254 = arith.constant dense<0xFF800000> : vector<2x8xf32>
    %447 = vector.multi_reduction <maximumf>, %446, %cst_254 [2] : vector<2x8x8xf32> to vector<2x8xf32>
    %448 = vector.shape_cast %447 : vector<2x8xf32> to vector<2x8x1xf32>
    %449 = vector.broadcast %448 : vector<2x8x1xf32> to vector<2x8x8xf32>
    %450 = arith.subf %446, %449 : vector<2x8x8xf32>
    %451 = math.exp %450 : vector<2x8x8xf32>
    %cst_255 = arith.constant dense<0.000000e+00> : vector<2x8xf32>
    %452 = vector.multi_reduction <add>, %451, %cst_255 [2] : vector<2x8x8xf32> to vector<2x8xf32>
    %453 = vector.shape_cast %452 : vector<2x8xf32> to vector<2x8x1xf32>
    %454 = vector.broadcast %453 : vector<2x8x1xf32> to vector<2x8x8xf32>
    %455 = arith.divf %451, %454 : vector<2x8x8xf32>
    %cst_256 = arith.constant dense<0.000000e+00> : vector<2x8x8xf32>
    %456 = tpu.matmul %455, %443, %cst_256 {dimension_numbers = #tpu.dot_dimension_numbers<[2], [1], [1], [2], [0, 0, 0, 1, 1, 2], [0], [0]>} : vector<2x8x8xf32>, vector<2x8x8xf32>, vector<2x8x8xf32> -> vector<2x8x8xf32>
    %457 = tpu.concatenate %408, %424, %440, %456 in 2 : vector<2x8x8xf32>, vector<2x8x8xf32>, vector<2x8x8xf32>, vector<2x8x8xf32> -> vector<2x8x32xf32>
    %458 = vector.shape_cast %457 : vector<2x8x32xf32> to vector<16x32xf32>
    %459 = arith.truncf %458 : vector<16x32xf32> to vector<16x32xbf16>
    %cst_257 = arith.constant dense<0.000000e+00> : vector<16x32xf32>
    %460 = tpu.matmul %459, %377, %cst_257 {dimension_numbers = #tpu.dot_dimension_numbers<[1], [0], [0], [1], [0, 0, 1, 1], [], []>} : vector<16x32xbf16>, vector<32x32xbf16>, vector<16x32xf32> -> vector<16x32xf32>
    %461 = vector.broadcast %379 : vector<1x32xf32> to vector<16x32xf32>
    %462 = arith.addf %460, %461 : vector<16x32xf32>
    %463 = arith.addf %365, %462 : vector<16x32xf32>
    %c0_258 = arith.constant 0 : index
    %c0_259 = arith.constant 0 : index
    %c0_260 = arith.constant 0 : index
    %c0_261 = arith.constant 0 : index
    %464 = vector.load %arg17[%c0_258, %c0_259, %c0_260, %c0_261] : memref<1x2x1x32xf32, #tpu.memory_space<vmem>>, vector<1x1x1x32xf32>
    %465 = vector.shape_cast %464 : vector<1x1x1x32xf32> to vector<1x32xf32>
    %c0_262 = arith.constant 0 : index
    %c0_263 = arith.constant 0 : index
    %c0_264 = arith.constant 0 : index
    %c0_265 = arith.constant 0 : index
    %466 = vector.load %arg16[%c0_262, %c0_263, %c0_264, %c0_265] : memref<1x2x1x32xf32, #tpu.memory_space<vmem>>, vector<1x1x1x32xf32>
    %467 = vector.shape_cast %466 : vector<1x1x1x32xf32> to vector<1x32xf32>
    %cst_266 = arith.constant dense<0.000000e+00> : vector<16xf32>
    %468 = vector.multi_reduction <add>, %463, %cst_266 [1] : vector<16x32xf32> to vector<16xf32>
    %469 = vector.shape_cast %468 : vector<16xf32> to vector<16x1xf32>
    %cst_267 = arith.constant 3.200000e+01 : f32
    %470 = vector.broadcast %cst_267 : f32 to vector<16x1xf32>
    %471 = arith.divf %469, %470 : vector<16x1xf32>
    %472 = vector.broadcast %471 : vector<16x1xf32> to vector<16x32xf32>
    %473 = arith.subf %463, %472 : vector<16x32xf32>
    %474 = arith.mulf %473, %473 : vector<16x32xf32>
    %cst_268 = arith.constant dense<0.000000e+00> : vector<16xf32>
    %475 = vector.multi_reduction <add>, %474, %cst_268 [1] : vector<16x32xf32> to vector<16xf32>
    %476 = vector.shape_cast %475 : vector<16xf32> to vector<16x1xf32>
    %cst_269 = arith.constant 3.200000e+01 : f32
    %477 = vector.broadcast %cst_269 : f32 to vector<16x1xf32>
    %478 = arith.divf %476, %477 : vector<16x1xf32>
    %479 = vector.broadcast %471 : vector<16x1xf32> to vector<16x32xf32>
    %480 = arith.subf %463, %479 : vector<16x32xf32>
    %cst_270 = arith.constant 9.99999974E-6 : f32
    %481 = vector.broadcast %cst_270 : f32 to vector<16x1xf32>
    %482 = arith.addf %478, %481 : vector<16x1xf32>
    %483 = math.rsqrt %482 : vector<16x1xf32>
    %484 = vector.broadcast %483 : vector<16x1xf32> to vector<16x32xf32>
    %485 = arith.mulf %480, %484 : vector<16x32xf32>
    %486 = vector.broadcast %465 : vector<1x32xf32> to vector<16x32xf32>
    %487 = arith.mulf %485, %486 : vector<16x32xf32>
    %488 = vector.broadcast %467 : vector<1x32xf32> to vector<16x32xf32>
    %489 = arith.addf %487, %488 : vector<16x32xf32>
    %c0_271 = arith.constant 0 : index
    %c0_272 = arith.constant 0 : index
    %c0_273 = arith.constant 0 : index
    %c0_274 = arith.constant 0 : index
    %490 = vector.load %arg10[%c0_271, %c0_272, %c0_273, %c0_274] : memref<1x2x32x32xbf16, #tpu.memory_space<vmem>>, vector<1x1x32x32xbf16>
    %491 = vector.shape_cast %490 : vector<1x1x32x32xbf16> to vector<32x32xbf16>
    %c0_275 = arith.constant 0 : index
    %c0_276 = arith.constant 0 : index
    %c0_277 = arith.constant 0 : index
    %c0_278 = arith.constant 0 : index
    %492 = vector.load %arg6[%c0_275, %c0_276, %c0_277, %c0_278] : memref<1x2x1x32xf32, #tpu.memory_space<vmem>>, vector<1x1x1x32xf32>
    %493 = vector.shape_cast %492 : vector<1x1x1x32xf32> to vector<1x32xf32>
    %c0_279 = arith.constant 0 : index
    %c0_280 = arith.constant 0 : index
    %c0_281 = arith.constant 0 : index
    %c0_282 = arith.constant 0 : index
    %494 = vector.load %arg8[%c0_279, %c0_280, %c0_281, %c0_282] : memref<1x2x32x32xbf16, #tpu.memory_space<vmem>>, vector<1x1x32x32xbf16>
    %495 = vector.shape_cast %494 : vector<1x1x32x32xbf16> to vector<32x32xbf16>
    %c0_283 = arith.constant 0 : index
    %c0_284 = arith.constant 0 : index
    %c0_285 = arith.constant 0 : index
    %c0_286 = arith.constant 0 : index
    %496 = vector.load %arg11[%c0_283, %c0_284, %c0_285, %c0_286] : memref<1x2x32x32xbf16, #tpu.memory_space<vmem>>, vector<1x1x32x32xbf16>
    %497 = vector.shape_cast %496 : vector<1x1x32x32xbf16> to vector<32x32xbf16>
    %c0_287 = arith.constant 0 : index
    %c0_288 = arith.constant 0 : index
    %c0_289 = arith.constant 0 : index
    %c0_290 = arith.constant 0 : index
    %498 = vector.load %arg7[%c0_287, %c0_288, %c0_289, %c0_290] : memref<1x2x1x32xf32, #tpu.memory_space<vmem>>, vector<1x1x1x32xf32>
    %499 = vector.shape_cast %498 : vector<1x1x1x32xf32> to vector<1x32xf32>
    %c0_291 = arith.constant 0 : index
    %c0_292 = arith.constant 0 : index
    %c0_293 = arith.constant 0 : index
    %c0_294 = arith.constant 0 : index
    %500 = vector.load %arg9[%c0_291, %c0_292, %c0_293, %c0_294] : memref<1x2x32x32xbf16, #tpu.memory_space<vmem>>, vector<1x1x32x32xbf16>
    %501 = vector.shape_cast %500 : vector<1x1x32x32xbf16> to vector<32x32xbf16>
    %c0_295 = arith.constant 0 : index
    %c0_296 = arith.constant 0 : index
    %c0_297 = arith.constant 0 : index
    %c0_298 = arith.constant 0 : index
    %502 = vector.load %arg5[%c0_295, %c0_296, %c0_297, %c0_298] : memref<1x2x1x32xf32, #tpu.memory_space<vmem>>, vector<1x1x1x32xf32>
    %503 = vector.shape_cast %502 : vector<1x1x1x32xf32> to vector<1x32xf32>
    %504 = arith.truncf %489 : vector<16x32xf32> to vector<16x32xbf16>
    %cst_299 = arith.constant dense<0.000000e+00> : vector<16x32xf32>
    %505 = tpu.matmul %504, %491, %cst_299 {dimension_numbers = #tpu.dot_dimension_numbers<[1], [0], [0], [1], [0, 0, 1, 1], [], []>} : vector<16x32xbf16>, vector<32x32xbf16>, vector<16x32xf32> -> vector<16x32xf32>
    %506 = vector.broadcast %493 : vector<1x32xf32> to vector<16x32xf32>
    %507 = arith.addf %505, %506 : vector<16x32xf32>
    %508 = arith.truncf %364 : vector<16x32xf32> to vector<16x32xbf16>
    %cst_300 = arith.constant dense<0.000000e+00> : vector<16x32xf32>
    %509 = tpu.matmul %508, %495, %cst_300 {dimension_numbers = #tpu.dot_dimension_numbers<[1], [0], [0], [1], [0, 0, 1, 1], [], []>} : vector<16x32xbf16>, vector<32x32xbf16>, vector<16x32xf32> -> vector<16x32xf32>
    %510 = arith.truncf %364 : vector<16x32xf32> to vector<16x32xbf16>
    %cst_301 = arith.constant dense<0.000000e+00> : vector<16x32xf32>
    %511 = tpu.matmul %510, %497, %cst_301 {dimension_numbers = #tpu.dot_dimension_numbers<[1], [0], [0], [1], [0, 0, 1, 1], [], []>} : vector<16x32xbf16>, vector<32x32xbf16>, vector<16x32xf32> -> vector<16x32xf32>
    %512 = vector.broadcast %499 : vector<1x32xf32> to vector<16x32xf32>
    %513 = arith.addf %511, %512 : vector<16x32xf32>
    %514 = vector.shape_cast %507 : vector<16x32xf32> to vector<2x8x32xf32>
    %515 = vector.shape_cast %509 : vector<16x32xf32> to vector<2x8x32xf32>
    %516 = vector.shape_cast %513 : vector<16x32xf32> to vector<2x8x32xf32>
    %517 = vector.extract_strided_slice %514 {offsets = [0, 0, 0], sizes = [2, 8, 8], strides = [1, 1, 1]} : vector<2x8x32xf32> to vector<2x8x8xf32>
    %518 = vector.extract_strided_slice %515 {offsets = [0, 0, 0], sizes = [2, 8, 8], strides = [1, 1, 1]} : vector<2x8x32xf32> to vector<2x8x8xf32>
    %519 = vector.extract_strided_slice %516 {offsets = [0, 0, 0], sizes = [2, 8, 8], strides = [1, 1, 1]} : vector<2x8x32xf32> to vector<2x8x8xf32>
    %cst_302 = arith.constant dense<0.000000e+00> : vector<2x8x8xf32>
    %520 = tpu.matmul %517, %518, %cst_302 {dimension_numbers = #tpu.dot_dimension_numbers<[2], [2], [1], [1], [0, 0, 0, 1, 1, 1], [0], [0]>} : vector<2x8x8xf32>, vector<2x8x8xf32>, vector<2x8x8xf32> -> vector<2x8x8xf32>
    %cst_303 = arith.constant 0.353553385 : f32
    %521 = vector.broadcast %cst_303 : f32 to vector<2x8x8xf32>
    %522 = arith.mulf %520, %521 : vector<2x8x8xf32>
    %cst_304 = arith.constant dense<0xFF800000> : vector<2x8xf32>
    %523 = vector.multi_reduction <maximumf>, %522, %cst_304 [2] : vector<2x8x8xf32> to vector<2x8xf32>
    %524 = vector.shape_cast %523 : vector<2x8xf32> to vector<2x8x1xf32>
    %525 = vector.broadcast %524 : vector<2x8x1xf32> to vector<2x8x8xf32>
    %526 = arith.subf %522, %525 : vector<2x8x8xf32>
    %527 = math.exp %526 : vector<2x8x8xf32>
    %cst_305 = arith.constant dense<0.000000e+00> : vector<2x8xf32>
    %528 = vector.multi_reduction <add>, %527, %cst_305 [2] : vector<2x8x8xf32> to vector<2x8xf32>
    %529 = vector.shape_cast %528 : vector<2x8xf32> to vector<2x8x1xf32>
    %530 = vector.broadcast %529 : vector<2x8x1xf32> to vector<2x8x8xf32>
    %531 = arith.divf %527, %530 : vector<2x8x8xf32>
    %cst_306 = arith.constant dense<0.000000e+00> : vector<2x8x8xf32>
    %532 = tpu.matmul %531, %519, %cst_306 {dimension_numbers = #tpu.dot_dimension_numbers<[2], [1], [1], [2], [0, 0, 0, 1, 1, 2], [0], [0]>} : vector<2x8x8xf32>, vector<2x8x8xf32>, vector<2x8x8xf32> -> vector<2x8x8xf32>
    %533 = vector.extract_strided_slice %514 {offsets = [0, 0, 8], sizes = [2, 8, 8], strides = [1, 1, 1]} : vector<2x8x32xf32> to vector<2x8x8xf32>
    %534 = vector.extract_strided_slice %515 {offsets = [0, 0, 8], sizes = [2, 8, 8], strides = [1, 1, 1]} : vector<2x8x32xf32> to vector<2x8x8xf32>
    %535 = vector.extract_strided_slice %516 {offsets = [0, 0, 8], sizes = [2, 8, 8], strides = [1, 1, 1]} : vector<2x8x32xf32> to vector<2x8x8xf32>
    %cst_307 = arith.constant dense<0.000000e+00> : vector<2x8x8xf32>
    %536 = tpu.matmul %533, %534, %cst_307 {dimension_numbers = #tpu.dot_dimension_numbers<[2], [2], [1], [1], [0, 0, 0, 1, 1, 1], [0], [0]>} : vector<2x8x8xf32>, vector<2x8x8xf32>, vector<2x8x8xf32> -> vector<2x8x8xf32>
    %cst_308 = arith.constant 0.353553385 : f32
    %537 = vector.broadcast %cst_308 : f32 to vector<2x8x8xf32>
    %538 = arith.mulf %536, %537 : vector<2x8x8xf32>
    %cst_309 = arith.constant dense<0xFF800000> : vector<2x8xf32>
    %539 = vector.multi_reduction <maximumf>, %538, %cst_309 [2] : vector<2x8x8xf32> to vector<2x8xf32>
    %540 = vector.shape_cast %539 : vector<2x8xf32> to vector<2x8x1xf32>
    %541 = vector.broadcast %540 : vector<2x8x1xf32> to vector<2x8x8xf32>
    %542 = arith.subf %538, %541 : vector<2x8x8xf32>
    %543 = math.exp %542 : vector<2x8x8xf32>
    %cst_310 = arith.constant dense<0.000000e+00> : vector<2x8xf32>
    %544 = vector.multi_reduction <add>, %543, %cst_310 [2] : vector<2x8x8xf32> to vector<2x8xf32>
    %545 = vector.shape_cast %544 : vector<2x8xf32> to vector<2x8x1xf32>
    %546 = vector.broadcast %545 : vector<2x8x1xf32> to vector<2x8x8xf32>
    %547 = arith.divf %543, %546 : vector<2x8x8xf32>
    %cst_311 = arith.constant dense<0.000000e+00> : vector<2x8x8xf32>
    %548 = tpu.matmul %547, %535, %cst_311 {dimension_numbers = #tpu.dot_dimension_numbers<[2], [1], [1], [2], [0, 0, 0, 1, 1, 2], [0], [0]>} : vector<2x8x8xf32>, vector<2x8x8xf32>, vector<2x8x8xf32> -> vector<2x8x8xf32>
    %549 = vector.extract_strided_slice %514 {offsets = [0, 0, 16], sizes = [2, 8, 8], strides = [1, 1, 1]} : vector<2x8x32xf32> to vector<2x8x8xf32>
    %550 = vector.extract_strided_slice %515 {offsets = [0, 0, 16], sizes = [2, 8, 8], strides = [1, 1, 1]} : vector<2x8x32xf32> to vector<2x8x8xf32>
    %551 = vector.extract_strided_slice %516 {offsets = [0, 0, 16], sizes = [2, 8, 8], strides = [1, 1, 1]} : vector<2x8x32xf32> to vector<2x8x8xf32>
    %cst_312 = arith.constant dense<0.000000e+00> : vector<2x8x8xf32>
    %552 = tpu.matmul %549, %550, %cst_312 {dimension_numbers = #tpu.dot_dimension_numbers<[2], [2], [1], [1], [0, 0, 0, 1, 1, 1], [0], [0]>} : vector<2x8x8xf32>, vector<2x8x8xf32>, vector<2x8x8xf32> -> vector<2x8x8xf32>
    %cst_313 = arith.constant 0.353553385 : f32
    %553 = vector.broadcast %cst_313 : f32 to vector<2x8x8xf32>
    %554 = arith.mulf %552, %553 : vector<2x8x8xf32>
    %cst_314 = arith.constant dense<0xFF800000> : vector<2x8xf32>
    %555 = vector.multi_reduction <maximumf>, %554, %cst_314 [2] : vector<2x8x8xf32> to vector<2x8xf32>
    %556 = vector.shape_cast %555 : vector<2x8xf32> to vector<2x8x1xf32>
    %557 = vector.broadcast %556 : vector<2x8x1xf32> to vector<2x8x8xf32>
    %558 = arith.subf %554, %557 : vector<2x8x8xf32>
    %559 = math.exp %558 : vector<2x8x8xf32>
    %cst_315 = arith.constant dense<0.000000e+00> : vector<2x8xf32>
    %560 = vector.multi_reduction <add>, %559, %cst_315 [2] : vector<2x8x8xf32> to vector<2x8xf32>
    %561 = vector.shape_cast %560 : vector<2x8xf32> to vector<2x8x1xf32>
    %562 = vector.broadcast %561 : vector<2x8x1xf32> to vector<2x8x8xf32>
    %563 = arith.divf %559, %562 : vector<2x8x8xf32>
    %cst_316 = arith.constant dense<0.000000e+00> : vector<2x8x8xf32>
    %564 = tpu.matmul %563, %551, %cst_316 {dimension_numbers = #tpu.dot_dimension_numbers<[2], [1], [1], [2], [0, 0, 0, 1, 1, 2], [0], [0]>} : vector<2x8x8xf32>, vector<2x8x8xf32>, vector<2x8x8xf32> -> vector<2x8x8xf32>
    %565 = vector.extract_strided_slice %514 {offsets = [0, 0, 24], sizes = [2, 8, 8], strides = [1, 1, 1]} : vector<2x8x32xf32> to vector<2x8x8xf32>
    %566 = vector.extract_strided_slice %515 {offsets = [0, 0, 24], sizes = [2, 8, 8], strides = [1, 1, 1]} : vector<2x8x32xf32> to vector<2x8x8xf32>
    %567 = vector.extract_strided_slice %516 {offsets = [0, 0, 24], sizes = [2, 8, 8], strides = [1, 1, 1]} : vector<2x8x32xf32> to vector<2x8x8xf32>
    %cst_317 = arith.constant dense<0.000000e+00> : vector<2x8x8xf32>
    %568 = tpu.matmul %565, %566, %cst_317 {dimension_numbers = #tpu.dot_dimension_numbers<[2], [2], [1], [1], [0, 0, 0, 1, 1, 1], [0], [0]>} : vector<2x8x8xf32>, vector<2x8x8xf32>, vector<2x8x8xf32> -> vector<2x8x8xf32>
    %cst_318 = arith.constant 0.353553385 : f32
    %569 = vector.broadcast %cst_318 : f32 to vector<2x8x8xf32>
    %570 = arith.mulf %568, %569 : vector<2x8x8xf32>
    %cst_319 = arith.constant dense<0xFF800000> : vector<2x8xf32>
    %571 = vector.multi_reduction <maximumf>, %570, %cst_319 [2] : vector<2x8x8xf32> to vector<2x8xf32>
    %572 = vector.shape_cast %571 : vector<2x8xf32> to vector<2x8x1xf32>
    %573 = vector.broadcast %572 : vector<2x8x1xf32> to vector<2x8x8xf32>
    %574 = arith.subf %570, %573 : vector<2x8x8xf32>
    %575 = math.exp %574 : vector<2x8x8xf32>
    %cst_320 = arith.constant dense<0.000000e+00> : vector<2x8xf32>
    %576 = vector.multi_reduction <add>, %575, %cst_320 [2] : vector<2x8x8xf32> to vector<2x8xf32>
    %577 = vector.shape_cast %576 : vector<2x8xf32> to vector<2x8x1xf32>
    %578 = vector.broadcast %577 : vector<2x8x1xf32> to vector<2x8x8xf32>
    %579 = arith.divf %575, %578 : vector<2x8x8xf32>
    %cst_321 = arith.constant dense<0.000000e+00> : vector<2x8x8xf32>
    %580 = tpu.matmul %579, %567, %cst_321 {dimension_numbers = #tpu.dot_dimension_numbers<[2], [1], [1], [2], [0, 0, 0, 1, 1, 2], [0], [0]>} : vector<2x8x8xf32>, vector<2x8x8xf32>, vector<2x8x8xf32> -> vector<2x8x8xf32>
    %581 = tpu.concatenate %532, %548, %564, %580 in 2 : vector<2x8x8xf32>, vector<2x8x8xf32>, vector<2x8x8xf32>, vector<2x8x8xf32> -> vector<2x8x32xf32>
    %582 = vector.shape_cast %581 : vector<2x8x32xf32> to vector<16x32xf32>
    %583 = arith.truncf %582 : vector<16x32xf32> to vector<16x32xbf16>
    %cst_322 = arith.constant dense<0.000000e+00> : vector<16x32xf32>
    %584 = tpu.matmul %583, %501, %cst_322 {dimension_numbers = #tpu.dot_dimension_numbers<[1], [0], [0], [1], [0, 0, 1, 1], [], []>} : vector<16x32xbf16>, vector<32x32xbf16>, vector<16x32xf32> -> vector<16x32xf32>
    %585 = vector.broadcast %503 : vector<1x32xf32> to vector<16x32xf32>
    %586 = arith.addf %584, %585 : vector<16x32xf32>
    %587 = arith.addf %489, %586 : vector<16x32xf32>
    %c0_323 = arith.constant 0 : index
    %c0_324 = arith.constant 0 : index
    %c0_325 = arith.constant 0 : index
    %c0_326 = arith.constant 0 : index
    %588 = vector.load %arg19[%c0_323, %c0_324, %c0_325, %c0_326] : memref<1x2x1x32xf32, #tpu.memory_space<vmem>>, vector<1x1x1x32xf32>
    %589 = vector.shape_cast %588 : vector<1x1x1x32xf32> to vector<1x32xf32>
    %c0_327 = arith.constant 0 : index
    %c0_328 = arith.constant 0 : index
    %c0_329 = arith.constant 0 : index
    %c0_330 = arith.constant 0 : index
    %590 = vector.load %arg18[%c0_327, %c0_328, %c0_329, %c0_330] : memref<1x2x1x32xf32, #tpu.memory_space<vmem>>, vector<1x1x1x32xf32>
    %591 = vector.shape_cast %590 : vector<1x1x1x32xf32> to vector<1x32xf32>
    %cst_331 = arith.constant dense<0.000000e+00> : vector<16xf32>
    %592 = vector.multi_reduction <add>, %587, %cst_331 [1] : vector<16x32xf32> to vector<16xf32>
    %593 = vector.shape_cast %592 : vector<16xf32> to vector<16x1xf32>
    %cst_332 = arith.constant 3.200000e+01 : f32
    %594 = vector.broadcast %cst_332 : f32 to vector<16x1xf32>
    %595 = arith.divf %593, %594 : vector<16x1xf32>
    %596 = vector.broadcast %595 : vector<16x1xf32> to vector<16x32xf32>
    %597 = arith.subf %587, %596 : vector<16x32xf32>
    %598 = arith.mulf %597, %597 : vector<16x32xf32>
    %cst_333 = arith.constant dense<0.000000e+00> : vector<16xf32>
    %599 = vector.multi_reduction <add>, %598, %cst_333 [1] : vector<16x32xf32> to vector<16xf32>
    %600 = vector.shape_cast %599 : vector<16xf32> to vector<16x1xf32>
    %cst_334 = arith.constant 3.200000e+01 : f32
    %601 = vector.broadcast %cst_334 : f32 to vector<16x1xf32>
    %602 = arith.divf %600, %601 : vector<16x1xf32>
    %603 = vector.broadcast %595 : vector<16x1xf32> to vector<16x32xf32>
    %604 = arith.subf %587, %603 : vector<16x32xf32>
    %cst_335 = arith.constant 9.99999974E-6 : f32
    %605 = vector.broadcast %cst_335 : f32 to vector<16x1xf32>
    %606 = arith.addf %602, %605 : vector<16x1xf32>
    %607 = math.rsqrt %606 : vector<16x1xf32>
    %608 = vector.broadcast %607 : vector<16x1xf32> to vector<16x32xf32>
    %609 = arith.mulf %604, %608 : vector<16x32xf32>
    %610 = vector.broadcast %589 : vector<1x32xf32> to vector<16x32xf32>
    %611 = arith.mulf %609, %610 : vector<16x32xf32>
    %612 = vector.broadcast %591 : vector<1x32xf32> to vector<16x32xf32>
    %613 = arith.addf %611, %612 : vector<16x32xf32>
    %c0_336 = arith.constant 0 : index
    %c0_337 = arith.constant 0 : index
    %c0_338 = arith.constant 0 : index
    %c0_339 = arith.constant 0 : index
    %614 = vector.load %arg14[%c0_336, %c0_337, %c0_338, %c0_339] : memref<1x2x32x64xbf16, #tpu.memory_space<vmem>>, vector<1x1x32x64xbf16>
    %615 = vector.shape_cast %614 : vector<1x1x32x64xbf16> to vector<32x64xbf16>
    %616 = arith.truncf %613 : vector<16x32xf32> to vector<16x32xbf16>
    %cst_340 = arith.constant dense<0.000000e+00> : vector<16x64xf32>
    %617 = tpu.matmul %616, %615, %cst_340 {dimension_numbers = #tpu.dot_dimension_numbers<[1], [0], [0], [1], [0, 0, 1, 1], [], []>} : vector<16x32xbf16>, vector<32x64xbf16>, vector<16x64xf32> -> vector<16x64xf32>
    %c0_341 = arith.constant 0 : index
    %c0_342 = arith.constant 0 : index
    %c0_343 = arith.constant 0 : index
    %c0_344 = arith.constant 0 : index
    %618 = vector.load %arg12[%c0_341, %c0_342, %c0_343, %c0_344] : memref<1x2x1x64xf32, #tpu.memory_space<vmem>>, vector<1x1x1x64xf32>
    %619 = vector.shape_cast %618 : vector<1x1x1x64xf32> to vector<1x64xf32>
    %620 = vector.broadcast %619 : vector<1x64xf32> to vector<16x64xf32>
    %621 = arith.addf %617, %620 : vector<16x64xf32>
    %cst_345 = arith.constant 0.000000e+00 : f32
    %622 = vector.broadcast %cst_345 : f32 to vector<16x64xf32>
    %623 = arith.maximumf %621, %622 : vector<16x64xf32>
    %c0_346 = arith.constant 0 : index
    %c0_347 = arith.constant 0 : index
    %c0_348 = arith.constant 0 : index
    %c0_349 = arith.constant 0 : index
    %624 = vector.load %arg15[%c0_346, %c0_347, %c0_348, %c0_349] : memref<1x2x64x32xbf16, #tpu.memory_space<vmem>>, vector<1x1x64x32xbf16>
    %625 = vector.shape_cast %624 : vector<1x1x64x32xbf16> to vector<64x32xbf16>
    %626 = arith.truncf %623 : vector<16x64xf32> to vector<16x64xbf16>
    %cst_350 = arith.constant dense<0.000000e+00> : vector<16x32xf32>
    %627 = tpu.matmul %626, %625, %cst_350 {dimension_numbers = #tpu.dot_dimension_numbers<[1], [0], [0], [1], [0, 0, 1, 1], [], []>} : vector<16x64xbf16>, vector<64x32xbf16>, vector<16x32xf32> -> vector<16x32xf32>
    %c0_351 = arith.constant 0 : index
    %c0_352 = arith.constant 0 : index
    %c0_353 = arith.constant 0 : index
    %c0_354 = arith.constant 0 : index
    %628 = vector.load %arg13[%c0_351, %c0_352, %c0_353, %c0_354] : memref<1x2x1x32xf32, #tpu.memory_space<vmem>>, vector<1x1x1x32xf32>
    %629 = vector.shape_cast %628 : vector<1x1x1x32xf32> to vector<1x32xf32>
    %630 = vector.broadcast %629 : vector<1x32xf32> to vector<16x32xf32>
    %631 = arith.addf %627, %630 : vector<16x32xf32>
    %632 = arith.addf %613, %631 : vector<16x32xf32>
    %c0_355 = arith.constant 0 : index
    %c0_356 = arith.constant 0 : index
    %c0_357 = arith.constant 0 : index
    %c0_358 = arith.constant 0 : index
    %633 = vector.load %arg21[%c0_355, %c0_356, %c0_357, %c0_358] : memref<1x2x1x32xf32, #tpu.memory_space<vmem>>, vector<1x1x1x32xf32>
    %634 = vector.shape_cast %633 : vector<1x1x1x32xf32> to vector<1x32xf32>
    %c0_359 = arith.constant 0 : index
    %c0_360 = arith.constant 0 : index
    %c0_361 = arith.constant 0 : index
    %c0_362 = arith.constant 0 : index
    %635 = vector.load %arg20[%c0_359, %c0_360, %c0_361, %c0_362] : memref<1x2x1x32xf32, #tpu.memory_space<vmem>>, vector<1x1x1x32xf32>
    %636 = vector.shape_cast %635 : vector<1x1x1x32xf32> to vector<1x32xf32>
    %cst_363 = arith.constant dense<0.000000e+00> : vector<16xf32>
    %637 = vector.multi_reduction <add>, %632, %cst_363 [1] : vector<16x32xf32> to vector<16xf32>
    %638 = vector.shape_cast %637 : vector<16xf32> to vector<16x1xf32>
    %cst_364 = arith.constant 3.200000e+01 : f32
    %639 = vector.broadcast %cst_364 : f32 to vector<16x1xf32>
    %640 = arith.divf %638, %639 : vector<16x1xf32>
    %641 = vector.broadcast %640 : vector<16x1xf32> to vector<16x32xf32>
    %642 = arith.subf %632, %641 : vector<16x32xf32>
    %643 = arith.mulf %642, %642 : vector<16x32xf32>
    %cst_365 = arith.constant dense<0.000000e+00> : vector<16xf32>
    %644 = vector.multi_reduction <add>, %643, %cst_365 [1] : vector<16x32xf32> to vector<16xf32>
    %645 = vector.shape_cast %644 : vector<16xf32> to vector<16x1xf32>
    %cst_366 = arith.constant 3.200000e+01 : f32
    %646 = vector.broadcast %cst_366 : f32 to vector<16x1xf32>
    %647 = arith.divf %645, %646 : vector<16x1xf32>
    %648 = vector.broadcast %640 : vector<16x1xf32> to vector<16x32xf32>
    %649 = arith.subf %632, %648 : vector<16x32xf32>
    %cst_367 = arith.constant 9.99999974E-6 : f32
    %650 = vector.broadcast %cst_367 : f32 to vector<16x1xf32>
    %651 = arith.addf %647, %650 : vector<16x1xf32>
    %652 = math.rsqrt %651 : vector<16x1xf32>
    %653 = vector.broadcast %652 : vector<16x1xf32> to vector<16x32xf32>
    %654 = arith.mulf %649, %653 : vector<16x32xf32>
    %655 = vector.broadcast %634 : vector<1x32xf32> to vector<16x32xf32>
    %656 = arith.mulf %654, %655 : vector<16x32xf32>
    %657 = vector.broadcast %636 : vector<1x32xf32> to vector<16x32xf32>
    %658 = arith.addf %656, %657 : vector<16x32xf32>
    %c0_368 = arith.constant 0 : index
    %c1_369 = arith.constant 1 : index
    %c0_370 = arith.constant 0 : index
    %c0_371 = arith.constant 0 : index
    %659 = vector.load %arg27[%c0_368, %c1_369, %c0_370, %c0_371] : memref<1x2x32x32xbf16, #tpu.memory_space<vmem>>, vector<1x1x32x32xbf16>
    %660 = vector.shape_cast %659 : vector<1x1x32x32xbf16> to vector<32x32xbf16>
    %c0_372 = arith.constant 0 : index
    %c1_373 = arith.constant 1 : index
    %c0_374 = arith.constant 0 : index
    %c0_375 = arith.constant 0 : index
    %661 = vector.load %arg23[%c0_372, %c1_373, %c0_374, %c0_375] : memref<1x2x1x32xf32, #tpu.memory_space<vmem>>, vector<1x1x1x32xf32>
    %662 = vector.shape_cast %661 : vector<1x1x1x32xf32> to vector<1x32xf32>
    %c0_376 = arith.constant 0 : index
    %c1_377 = arith.constant 1 : index
    %c0_378 = arith.constant 0 : index
    %c0_379 = arith.constant 0 : index
    %663 = vector.load %arg25[%c0_376, %c1_377, %c0_378, %c0_379] : memref<1x2x32x32xbf16, #tpu.memory_space<vmem>>, vector<1x1x32x32xbf16>
    %664 = vector.shape_cast %663 : vector<1x1x32x32xbf16> to vector<32x32xbf16>
    %c0_380 = arith.constant 0 : index
    %c1_381 = arith.constant 1 : index
    %c0_382 = arith.constant 0 : index
    %c0_383 = arith.constant 0 : index
    %665 = vector.load %arg28[%c0_380, %c1_381, %c0_382, %c0_383] : memref<1x2x32x32xbf16, #tpu.memory_space<vmem>>, vector<1x1x32x32xbf16>
    %666 = vector.shape_cast %665 : vector<1x1x32x32xbf16> to vector<32x32xbf16>
    %c0_384 = arith.constant 0 : index
    %c1_385 = arith.constant 1 : index
    %c0_386 = arith.constant 0 : index
    %c0_387 = arith.constant 0 : index
    %667 = vector.load %arg24[%c0_384, %c1_385, %c0_386, %c0_387] : memref<1x2x1x32xf32, #tpu.memory_space<vmem>>, vector<1x1x1x32xf32>
    %668 = vector.shape_cast %667 : vector<1x1x1x32xf32> to vector<1x32xf32>
    %c0_388 = arith.constant 0 : index
    %c1_389 = arith.constant 1 : index
    %c0_390 = arith.constant 0 : index
    %c0_391 = arith.constant 0 : index
    %669 = vector.load %arg26[%c0_388, %c1_389, %c0_390, %c0_391] : memref<1x2x32x32xbf16, #tpu.memory_space<vmem>>, vector<1x1x32x32xbf16>
    %670 = vector.shape_cast %669 : vector<1x1x32x32xbf16> to vector<32x32xbf16>
    %c0_392 = arith.constant 0 : index
    %c1_393 = arith.constant 1 : index
    %c0_394 = arith.constant 0 : index
    %c0_395 = arith.constant 0 : index
    %671 = vector.load %arg22[%c0_392, %c1_393, %c0_394, %c0_395] : memref<1x2x1x32xf32, #tpu.memory_space<vmem>>, vector<1x1x1x32xf32>
    %672 = vector.shape_cast %671 : vector<1x1x1x32xf32> to vector<1x32xf32>
    %673 = arith.truncf %658 : vector<16x32xf32> to vector<16x32xbf16>
    %cst_396 = arith.constant dense<0.000000e+00> : vector<16x32xf32>
    %674 = tpu.matmul %673, %660, %cst_396 {dimension_numbers = #tpu.dot_dimension_numbers<[1], [0], [0], [1], [0, 0, 1, 1], [], []>} : vector<16x32xbf16>, vector<32x32xbf16>, vector<16x32xf32> -> vector<16x32xf32>
    %675 = vector.broadcast %662 : vector<1x32xf32> to vector<16x32xf32>
    %676 = arith.addf %674, %675 : vector<16x32xf32>
    %677 = arith.truncf %658 : vector<16x32xf32> to vector<16x32xbf16>
    %cst_397 = arith.constant dense<0.000000e+00> : vector<16x32xf32>
    %678 = tpu.matmul %677, %664, %cst_397 {dimension_numbers = #tpu.dot_dimension_numbers<[1], [0], [0], [1], [0, 0, 1, 1], [], []>} : vector<16x32xbf16>, vector<32x32xbf16>, vector<16x32xf32> -> vector<16x32xf32>
    %679 = arith.truncf %658 : vector<16x32xf32> to vector<16x32xbf16>
    %cst_398 = arith.constant dense<0.000000e+00> : vector<16x32xf32>
    %680 = tpu.matmul %679, %666, %cst_398 {dimension_numbers = #tpu.dot_dimension_numbers<[1], [0], [0], [1], [0, 0, 1, 1], [], []>} : vector<16x32xbf16>, vector<32x32xbf16>, vector<16x32xf32> -> vector<16x32xf32>
    %681 = vector.broadcast %668 : vector<1x32xf32> to vector<16x32xf32>
    %682 = arith.addf %680, %681 : vector<16x32xf32>
    %683 = vector.shape_cast %676 : vector<16x32xf32> to vector<2x8x32xf32>
    %684 = vector.shape_cast %678 : vector<16x32xf32> to vector<2x8x32xf32>
    %685 = vector.shape_cast %682 : vector<16x32xf32> to vector<2x8x32xf32>
    %686 = vector.extract_strided_slice %683 {offsets = [0, 0, 0], sizes = [2, 8, 8], strides = [1, 1, 1]} : vector<2x8x32xf32> to vector<2x8x8xf32>
    %687 = vector.extract_strided_slice %684 {offsets = [0, 0, 0], sizes = [2, 8, 8], strides = [1, 1, 1]} : vector<2x8x32xf32> to vector<2x8x8xf32>
    %688 = vector.extract_strided_slice %685 {offsets = [0, 0, 0], sizes = [2, 8, 8], strides = [1, 1, 1]} : vector<2x8x32xf32> to vector<2x8x8xf32>
    %cst_399 = arith.constant dense<0.000000e+00> : vector<2x8x8xf32>
    %689 = tpu.matmul %686, %687, %cst_399 {dimension_numbers = #tpu.dot_dimension_numbers<[2], [2], [1], [1], [0, 0, 0, 1, 1, 1], [0], [0]>} : vector<2x8x8xf32>, vector<2x8x8xf32>, vector<2x8x8xf32> -> vector<2x8x8xf32>
    %cst_400 = arith.constant 0.353553385 : f32
    %690 = vector.broadcast %cst_400 : f32 to vector<2x8x8xf32>
    %691 = arith.mulf %689, %690 : vector<2x8x8xf32>
    %cst_401 = arith.constant dense<0xFF800000> : vector<2x8xf32>
    %692 = vector.multi_reduction <maximumf>, %691, %cst_401 [2] : vector<2x8x8xf32> to vector<2x8xf32>
    %693 = vector.shape_cast %692 : vector<2x8xf32> to vector<2x8x1xf32>
    %694 = vector.broadcast %693 : vector<2x8x1xf32> to vector<2x8x8xf32>
    %695 = arith.subf %691, %694 : vector<2x8x8xf32>
    %696 = math.exp %695 : vector<2x8x8xf32>
    %cst_402 = arith.constant dense<0.000000e+00> : vector<2x8xf32>
    %697 = vector.multi_reduction <add>, %696, %cst_402 [2] : vector<2x8x8xf32> to vector<2x8xf32>
    %698 = vector.shape_cast %697 : vector<2x8xf32> to vector<2x8x1xf32>
    %699 = vector.broadcast %698 : vector<2x8x1xf32> to vector<2x8x8xf32>
    %700 = arith.divf %696, %699 : vector<2x8x8xf32>
    %cst_403 = arith.constant dense<0.000000e+00> : vector<2x8x8xf32>
    %701 = tpu.matmul %700, %688, %cst_403 {dimension_numbers = #tpu.dot_dimension_numbers<[2], [1], [1], [2], [0, 0, 0, 1, 1, 2], [0], [0]>} : vector<2x8x8xf32>, vector<2x8x8xf32>, vector<2x8x8xf32> -> vector<2x8x8xf32>
    %702 = vector.extract_strided_slice %683 {offsets = [0, 0, 8], sizes = [2, 8, 8], strides = [1, 1, 1]} : vector<2x8x32xf32> to vector<2x8x8xf32>
    %703 = vector.extract_strided_slice %684 {offsets = [0, 0, 8], sizes = [2, 8, 8], strides = [1, 1, 1]} : vector<2x8x32xf32> to vector<2x8x8xf32>
    %704 = vector.extract_strided_slice %685 {offsets = [0, 0, 8], sizes = [2, 8, 8], strides = [1, 1, 1]} : vector<2x8x32xf32> to vector<2x8x8xf32>
    %cst_404 = arith.constant dense<0.000000e+00> : vector<2x8x8xf32>
    %705 = tpu.matmul %702, %703, %cst_404 {dimension_numbers = #tpu.dot_dimension_numbers<[2], [2], [1], [1], [0, 0, 0, 1, 1, 1], [0], [0]>} : vector<2x8x8xf32>, vector<2x8x8xf32>, vector<2x8x8xf32> -> vector<2x8x8xf32>
    %cst_405 = arith.constant 0.353553385 : f32
    %706 = vector.broadcast %cst_405 : f32 to vector<2x8x8xf32>
    %707 = arith.mulf %705, %706 : vector<2x8x8xf32>
    %cst_406 = arith.constant dense<0xFF800000> : vector<2x8xf32>
    %708 = vector.multi_reduction <maximumf>, %707, %cst_406 [2] : vector<2x8x8xf32> to vector<2x8xf32>
    %709 = vector.shape_cast %708 : vector<2x8xf32> to vector<2x8x1xf32>
    %710 = vector.broadcast %709 : vector<2x8x1xf32> to vector<2x8x8xf32>
    %711 = arith.subf %707, %710 : vector<2x8x8xf32>
    %712 = math.exp %711 : vector<2x8x8xf32>
    %cst_407 = arith.constant dense<0.000000e+00> : vector<2x8xf32>
    %713 = vector.multi_reduction <add>, %712, %cst_407 [2] : vector<2x8x8xf32> to vector<2x8xf32>
    %714 = vector.shape_cast %713 : vector<2x8xf32> to vector<2x8x1xf32>
    %715 = vector.broadcast %714 : vector<2x8x1xf32> to vector<2x8x8xf32>
    %716 = arith.divf %712, %715 : vector<2x8x8xf32>
    %cst_408 = arith.constant dense<0.000000e+00> : vector<2x8x8xf32>
    %717 = tpu.matmul %716, %704, %cst_408 {dimension_numbers = #tpu.dot_dimension_numbers<[2], [1], [1], [2], [0, 0, 0, 1, 1, 2], [0], [0]>} : vector<2x8x8xf32>, vector<2x8x8xf32>, vector<2x8x8xf32> -> vector<2x8x8xf32>
    %718 = vector.extract_strided_slice %683 {offsets = [0, 0, 16], sizes = [2, 8, 8], strides = [1, 1, 1]} : vector<2x8x32xf32> to vector<2x8x8xf32>
    %719 = vector.extract_strided_slice %684 {offsets = [0, 0, 16], sizes = [2, 8, 8], strides = [1, 1, 1]} : vector<2x8x32xf32> to vector<2x8x8xf32>
    %720 = vector.extract_strided_slice %685 {offsets = [0, 0, 16], sizes = [2, 8, 8], strides = [1, 1, 1]} : vector<2x8x32xf32> to vector<2x8x8xf32>
    %cst_409 = arith.constant dense<0.000000e+00> : vector<2x8x8xf32>
    %721 = tpu.matmul %718, %719, %cst_409 {dimension_numbers = #tpu.dot_dimension_numbers<[2], [2], [1], [1], [0, 0, 0, 1, 1, 1], [0], [0]>} : vector<2x8x8xf32>, vector<2x8x8xf32>, vector<2x8x8xf32> -> vector<2x8x8xf32>
    %cst_410 = arith.constant 0.353553385 : f32
    %722 = vector.broadcast %cst_410 : f32 to vector<2x8x8xf32>
    %723 = arith.mulf %721, %722 : vector<2x8x8xf32>
    %cst_411 = arith.constant dense<0xFF800000> : vector<2x8xf32>
    %724 = vector.multi_reduction <maximumf>, %723, %cst_411 [2] : vector<2x8x8xf32> to vector<2x8xf32>
    %725 = vector.shape_cast %724 : vector<2x8xf32> to vector<2x8x1xf32>
    %726 = vector.broadcast %725 : vector<2x8x1xf32> to vector<2x8x8xf32>
    %727 = arith.subf %723, %726 : vector<2x8x8xf32>
    %728 = math.exp %727 : vector<2x8x8xf32>
    %cst_412 = arith.constant dense<0.000000e+00> : vector<2x8xf32>
    %729 = vector.multi_reduction <add>, %728, %cst_412 [2] : vector<2x8x8xf32> to vector<2x8xf32>
    %730 = vector.shape_cast %729 : vector<2x8xf32> to vector<2x8x1xf32>
    %731 = vector.broadcast %730 : vector<2x8x1xf32> to vector<2x8x8xf32>
    %732 = arith.divf %728, %731 : vector<2x8x8xf32>
    %cst_413 = arith.constant dense<0.000000e+00> : vector<2x8x8xf32>
    %733 = tpu.matmul %732, %720, %cst_413 {dimension_numbers = #tpu.dot_dimension_numbers<[2], [1], [1], [2], [0, 0, 0, 1, 1, 2], [0], [0]>} : vector<2x8x8xf32>, vector<2x8x8xf32>, vector<2x8x8xf32> -> vector<2x8x8xf32>
    %734 = vector.extract_strided_slice %683 {offsets = [0, 0, 24], sizes = [2, 8, 8], strides = [1, 1, 1]} : vector<2x8x32xf32> to vector<2x8x8xf32>
    %735 = vector.extract_strided_slice %684 {offsets = [0, 0, 24], sizes = [2, 8, 8], strides = [1, 1, 1]} : vector<2x8x32xf32> to vector<2x8x8xf32>
    %736 = vector.extract_strided_slice %685 {offsets = [0, 0, 24], sizes = [2, 8, 8], strides = [1, 1, 1]} : vector<2x8x32xf32> to vector<2x8x8xf32>
    %cst_414 = arith.constant dense<0.000000e+00> : vector<2x8x8xf32>
    %737 = tpu.matmul %734, %735, %cst_414 {dimension_numbers = #tpu.dot_dimension_numbers<[2], [2], [1], [1], [0, 0, 0, 1, 1, 1], [0], [0]>} : vector<2x8x8xf32>, vector<2x8x8xf32>, vector<2x8x8xf32> -> vector<2x8x8xf32>
    %cst_415 = arith.constant 0.353553385 : f32
    %738 = vector.broadcast %cst_415 : f32 to vector<2x8x8xf32>
    %739 = arith.mulf %737, %738 : vector<2x8x8xf32>
    %cst_416 = arith.constant dense<0xFF800000> : vector<2x8xf32>
    %740 = vector.multi_reduction <maximumf>, %739, %cst_416 [2] : vector<2x8x8xf32> to vector<2x8xf32>
    %741 = vector.shape_cast %740 : vector<2x8xf32> to vector<2x8x1xf32>
    %742 = vector.broadcast %741 : vector<2x8x1xf32> to vector<2x8x8xf32>
    %743 = arith.subf %739, %742 : vector<2x8x8xf32>
    %744 = math.exp %743 : vector<2x8x8xf32>
    %cst_417 = arith.constant dense<0.000000e+00> : vector<2x8xf32>
    %745 = vector.multi_reduction <add>, %744, %cst_417 [2] : vector<2x8x8xf32> to vector<2x8xf32>
    %746 = vector.shape_cast %745 : vector<2x8xf32> to vector<2x8x1xf32>
    %747 = vector.broadcast %746 : vector<2x8x1xf32> to vector<2x8x8xf32>
    %748 = arith.divf %744, %747 : vector<2x8x8xf32>
    %cst_418 = arith.constant dense<0.000000e+00> : vector<2x8x8xf32>
    %749 = tpu.matmul %748, %736, %cst_418 {dimension_numbers = #tpu.dot_dimension_numbers<[2], [1], [1], [2], [0, 0, 0, 1, 1, 2], [0], [0]>} : vector<2x8x8xf32>, vector<2x8x8xf32>, vector<2x8x8xf32> -> vector<2x8x8xf32>
    %750 = tpu.concatenate %701, %717, %733, %749 in 2 : vector<2x8x8xf32>, vector<2x8x8xf32>, vector<2x8x8xf32>, vector<2x8x8xf32> -> vector<2x8x32xf32>
    %751 = vector.shape_cast %750 : vector<2x8x32xf32> to vector<16x32xf32>
    %752 = arith.truncf %751 : vector<16x32xf32> to vector<16x32xbf16>
    %cst_419 = arith.constant dense<0.000000e+00> : vector<16x32xf32>
    %753 = tpu.matmul %752, %670, %cst_419 {dimension_numbers = #tpu.dot_dimension_numbers<[1], [0], [0], [1], [0, 0, 1, 1], [], []>} : vector<16x32xbf16>, vector<32x32xbf16>, vector<16x32xf32> -> vector<16x32xf32>
    %754 = vector.broadcast %672 : vector<1x32xf32> to vector<16x32xf32>
    %755 = arith.addf %753, %754 : vector<16x32xf32>
    %756 = arith.addf %658, %755 : vector<16x32xf32>
    %c0_420 = arith.constant 0 : index
    %c1_421 = arith.constant 1 : index
    %c0_422 = arith.constant 0 : index
    %c0_423 = arith.constant 0 : index
    %757 = vector.load %arg17[%c0_420, %c1_421, %c0_422, %c0_423] : memref<1x2x1x32xf32, #tpu.memory_space<vmem>>, vector<1x1x1x32xf32>
    %758 = vector.shape_cast %757 : vector<1x1x1x32xf32> to vector<1x32xf32>
    %c0_424 = arith.constant 0 : index
    %c1_425 = arith.constant 1 : index
    %c0_426 = arith.constant 0 : index
    %c0_427 = arith.constant 0 : index
    %759 = vector.load %arg16[%c0_424, %c1_425, %c0_426, %c0_427] : memref<1x2x1x32xf32, #tpu.memory_space<vmem>>, vector<1x1x1x32xf32>
    %760 = vector.shape_cast %759 : vector<1x1x1x32xf32> to vector<1x32xf32>
    %cst_428 = arith.constant dense<0.000000e+00> : vector<16xf32>
    %761 = vector.multi_reduction <add>, %756, %cst_428 [1] : vector<16x32xf32> to vector<16xf32>
    %762 = vector.shape_cast %761 : vector<16xf32> to vector<16x1xf32>
    %cst_429 = arith.constant 3.200000e+01 : f32
    %763 = vector.broadcast %cst_429 : f32 to vector<16x1xf32>
    %764 = arith.divf %762, %763 : vector<16x1xf32>
    %765 = vector.broadcast %764 : vector<16x1xf32> to vector<16x32xf32>
    %766 = arith.subf %756, %765 : vector<16x32xf32>
    %767 = arith.mulf %766, %766 : vector<16x32xf32>
    %cst_430 = arith.constant dense<0.000000e+00> : vector<16xf32>
    %768 = vector.multi_reduction <add>, %767, %cst_430 [1] : vector<16x32xf32> to vector<16xf32>
    %769 = vector.shape_cast %768 : vector<16xf32> to vector<16x1xf32>
    %cst_431 = arith.constant 3.200000e+01 : f32
    %770 = vector.broadcast %cst_431 : f32 to vector<16x1xf32>
    %771 = arith.divf %769, %770 : vector<16x1xf32>
    %772 = vector.broadcast %764 : vector<16x1xf32> to vector<16x32xf32>
    %773 = arith.subf %756, %772 : vector<16x32xf32>
    %cst_432 = arith.constant 9.99999974E-6 : f32
    %774 = vector.broadcast %cst_432 : f32 to vector<16x1xf32>
    %775 = arith.addf %771, %774 : vector<16x1xf32>
    %776 = math.rsqrt %775 : vector<16x1xf32>
    %777 = vector.broadcast %776 : vector<16x1xf32> to vector<16x32xf32>
    %778 = arith.mulf %773, %777 : vector<16x32xf32>
    %779 = vector.broadcast %758 : vector<1x32xf32> to vector<16x32xf32>
    %780 = arith.mulf %778, %779 : vector<16x32xf32>
    %781 = vector.broadcast %760 : vector<1x32xf32> to vector<16x32xf32>
    %782 = arith.addf %780, %781 : vector<16x32xf32>
    %c0_433 = arith.constant 0 : index
    %c1_434 = arith.constant 1 : index
    %c0_435 = arith.constant 0 : index
    %c0_436 = arith.constant 0 : index
    %783 = vector.load %arg10[%c0_433, %c1_434, %c0_435, %c0_436] : memref<1x2x32x32xbf16, #tpu.memory_space<vmem>>, vector<1x1x32x32xbf16>
    %784 = vector.shape_cast %783 : vector<1x1x32x32xbf16> to vector<32x32xbf16>
    %c0_437 = arith.constant 0 : index
    %c1_438 = arith.constant 1 : index
    %c0_439 = arith.constant 0 : index
    %c0_440 = arith.constant 0 : index
    %785 = vector.load %arg6[%c0_437, %c1_438, %c0_439, %c0_440] : memref<1x2x1x32xf32, #tpu.memory_space<vmem>>, vector<1x1x1x32xf32>
    %786 = vector.shape_cast %785 : vector<1x1x1x32xf32> to vector<1x32xf32>
    %c0_441 = arith.constant 0 : index
    %c1_442 = arith.constant 1 : index
    %c0_443 = arith.constant 0 : index
    %c0_444 = arith.constant 0 : index
    %787 = vector.load %arg8[%c0_441, %c1_442, %c0_443, %c0_444] : memref<1x2x32x32xbf16, #tpu.memory_space<vmem>>, vector<1x1x32x32xbf16>
    %788 = vector.shape_cast %787 : vector<1x1x32x32xbf16> to vector<32x32xbf16>
    %c0_445 = arith.constant 0 : index
    %c1_446 = arith.constant 1 : index
    %c0_447 = arith.constant 0 : index
    %c0_448 = arith.constant 0 : index
    %789 = vector.load %arg11[%c0_445, %c1_446, %c0_447, %c0_448] : memref<1x2x32x32xbf16, #tpu.memory_space<vmem>>, vector<1x1x32x32xbf16>
    %790 = vector.shape_cast %789 : vector<1x1x32x32xbf16> to vector<32x32xbf16>
    %c0_449 = arith.constant 0 : index
    %c1_450 = arith.constant 1 : index
    %c0_451 = arith.constant 0 : index
    %c0_452 = arith.constant 0 : index
    %791 = vector.load %arg7[%c0_449, %c1_450, %c0_451, %c0_452] : memref<1x2x1x32xf32, #tpu.memory_space<vmem>>, vector<1x1x1x32xf32>
    %792 = vector.shape_cast %791 : vector<1x1x1x32xf32> to vector<1x32xf32>
    %c0_453 = arith.constant 0 : index
    %c1_454 = arith.constant 1 : index
    %c0_455 = arith.constant 0 : index
    %c0_456 = arith.constant 0 : index
    %793 = vector.load %arg9[%c0_453, %c1_454, %c0_455, %c0_456] : memref<1x2x32x32xbf16, #tpu.memory_space<vmem>>, vector<1x1x32x32xbf16>
    %794 = vector.shape_cast %793 : vector<1x1x32x32xbf16> to vector<32x32xbf16>
    %c0_457 = arith.constant 0 : index
    %c1_458 = arith.constant 1 : index
    %c0_459 = arith.constant 0 : index
    %c0_460 = arith.constant 0 : index
    %795 = vector.load %arg5[%c0_457, %c1_458, %c0_459, %c0_460] : memref<1x2x1x32xf32, #tpu.memory_space<vmem>>, vector<1x1x1x32xf32>
    %796 = vector.shape_cast %795 : vector<1x1x1x32xf32> to vector<1x32xf32>
    %797 = arith.truncf %782 : vector<16x32xf32> to vector<16x32xbf16>
    %cst_461 = arith.constant dense<0.000000e+00> : vector<16x32xf32>
    %798 = tpu.matmul %797, %784, %cst_461 {dimension_numbers = #tpu.dot_dimension_numbers<[1], [0], [0], [1], [0, 0, 1, 1], [], []>} : vector<16x32xbf16>, vector<32x32xbf16>, vector<16x32xf32> -> vector<16x32xf32>
    %799 = vector.broadcast %786 : vector<1x32xf32> to vector<16x32xf32>
    %800 = arith.addf %798, %799 : vector<16x32xf32>
    %801 = arith.truncf %364 : vector<16x32xf32> to vector<16x32xbf16>
    %cst_462 = arith.constant dense<0.000000e+00> : vector<16x32xf32>
    %802 = tpu.matmul %801, %788, %cst_462 {dimension_numbers = #tpu.dot_dimension_numbers<[1], [0], [0], [1], [0, 0, 1, 1], [], []>} : vector<16x32xbf16>, vector<32x32xbf16>, vector<16x32xf32> -> vector<16x32xf32>
    %803 = arith.truncf %364 : vector<16x32xf32> to vector<16x32xbf16>
    %cst_463 = arith.constant dense<0.000000e+00> : vector<16x32xf32>
    %804 = tpu.matmul %803, %790, %cst_463 {dimension_numbers = #tpu.dot_dimension_numbers<[1], [0], [0], [1], [0, 0, 1, 1], [], []>} : vector<16x32xbf16>, vector<32x32xbf16>, vector<16x32xf32> -> vector<16x32xf32>
    %805 = vector.broadcast %792 : vector<1x32xf32> to vector<16x32xf32>
    %806 = arith.addf %804, %805 : vector<16x32xf32>
    %807 = vector.shape_cast %800 : vector<16x32xf32> to vector<2x8x32xf32>
    %808 = vector.shape_cast %802 : vector<16x32xf32> to vector<2x8x32xf32>
    %809 = vector.shape_cast %806 : vector<16x32xf32> to vector<2x8x32xf32>
    %810 = vector.extract_strided_slice %807 {offsets = [0, 0, 0], sizes = [2, 8, 8], strides = [1, 1, 1]} : vector<2x8x32xf32> to vector<2x8x8xf32>
    %811 = vector.extract_strided_slice %808 {offsets = [0, 0, 0], sizes = [2, 8, 8], strides = [1, 1, 1]} : vector<2x8x32xf32> to vector<2x8x8xf32>
    %812 = vector.extract_strided_slice %809 {offsets = [0, 0, 0], sizes = [2, 8, 8], strides = [1, 1, 1]} : vector<2x8x32xf32> to vector<2x8x8xf32>
    %cst_464 = arith.constant dense<0.000000e+00> : vector<2x8x8xf32>
    %813 = tpu.matmul %810, %811, %cst_464 {dimension_numbers = #tpu.dot_dimension_numbers<[2], [2], [1], [1], [0, 0, 0, 1, 1, 1], [0], [0]>} : vector<2x8x8xf32>, vector<2x8x8xf32>, vector<2x8x8xf32> -> vector<2x8x8xf32>
    %cst_465 = arith.constant 0.353553385 : f32
    %814 = vector.broadcast %cst_465 : f32 to vector<2x8x8xf32>
    %815 = arith.mulf %813, %814 : vector<2x8x8xf32>
    %cst_466 = arith.constant dense<0xFF800000> : vector<2x8xf32>
    %816 = vector.multi_reduction <maximumf>, %815, %cst_466 [2] : vector<2x8x8xf32> to vector<2x8xf32>
    %817 = vector.shape_cast %816 : vector<2x8xf32> to vector<2x8x1xf32>
    %818 = vector.broadcast %817 : vector<2x8x1xf32> to vector<2x8x8xf32>
    %819 = arith.subf %815, %818 : vector<2x8x8xf32>
    %820 = math.exp %819 : vector<2x8x8xf32>
    %cst_467 = arith.constant dense<0.000000e+00> : vector<2x8xf32>
    %821 = vector.multi_reduction <add>, %820, %cst_467 [2] : vector<2x8x8xf32> to vector<2x8xf32>
    %822 = vector.shape_cast %821 : vector<2x8xf32> to vector<2x8x1xf32>
    %823 = vector.broadcast %822 : vector<2x8x1xf32> to vector<2x8x8xf32>
    %824 = arith.divf %820, %823 : vector<2x8x8xf32>
    %cst_468 = arith.constant dense<0.000000e+00> : vector<2x8x8xf32>
    %825 = tpu.matmul %824, %812, %cst_468 {dimension_numbers = #tpu.dot_dimension_numbers<[2], [1], [1], [2], [0, 0, 0, 1, 1, 2], [0], [0]>} : vector<2x8x8xf32>, vector<2x8x8xf32>, vector<2x8x8xf32> -> vector<2x8x8xf32>
    %826 = vector.extract_strided_slice %807 {offsets = [0, 0, 8], sizes = [2, 8, 8], strides = [1, 1, 1]} : vector<2x8x32xf32> to vector<2x8x8xf32>
    %827 = vector.extract_strided_slice %808 {offsets = [0, 0, 8], sizes = [2, 8, 8], strides = [1, 1, 1]} : vector<2x8x32xf32> to vector<2x8x8xf32>
    %828 = vector.extract_strided_slice %809 {offsets = [0, 0, 8], sizes = [2, 8, 8], strides = [1, 1, 1]} : vector<2x8x32xf32> to vector<2x8x8xf32>
    %cst_469 = arith.constant dense<0.000000e+00> : vector<2x8x8xf32>
    %829 = tpu.matmul %826, %827, %cst_469 {dimension_numbers = #tpu.dot_dimension_numbers<[2], [2], [1], [1], [0, 0, 0, 1, 1, 1], [0], [0]>} : vector<2x8x8xf32>, vector<2x8x8xf32>, vector<2x8x8xf32> -> vector<2x8x8xf32>
    %cst_470 = arith.constant 0.353553385 : f32
    %830 = vector.broadcast %cst_470 : f32 to vector<2x8x8xf32>
    %831 = arith.mulf %829, %830 : vector<2x8x8xf32>
    %cst_471 = arith.constant dense<0xFF800000> : vector<2x8xf32>
    %832 = vector.multi_reduction <maximumf>, %831, %cst_471 [2] : vector<2x8x8xf32> to vector<2x8xf32>
    %833 = vector.shape_cast %832 : vector<2x8xf32> to vector<2x8x1xf32>
    %834 = vector.broadcast %833 : vector<2x8x1xf32> to vector<2x8x8xf32>
    %835 = arith.subf %831, %834 : vector<2x8x8xf32>
    %836 = math.exp %835 : vector<2x8x8xf32>
    %cst_472 = arith.constant dense<0.000000e+00> : vector<2x8xf32>
    %837 = vector.multi_reduction <add>, %836, %cst_472 [2] : vector<2x8x8xf32> to vector<2x8xf32>
    %838 = vector.shape_cast %837 : vector<2x8xf32> to vector<2x8x1xf32>
    %839 = vector.broadcast %838 : vector<2x8x1xf32> to vector<2x8x8xf32>
    %840 = arith.divf %836, %839 : vector<2x8x8xf32>
    %cst_473 = arith.constant dense<0.000000e+00> : vector<2x8x8xf32>
    %841 = tpu.matmul %840, %828, %cst_473 {dimension_numbers = #tpu.dot_dimension_numbers<[2], [1], [1], [2], [0, 0, 0, 1, 1, 2], [0], [0]>} : vector<2x8x8xf32>, vector<2x8x8xf32>, vector<2x8x8xf32> -> vector<2x8x8xf32>
    %842 = vector.extract_strided_slice %807 {offsets = [0, 0, 16], sizes = [2, 8, 8], strides = [1, 1, 1]} : vector<2x8x32xf32> to vector<2x8x8xf32>
    %843 = vector.extract_strided_slice %808 {offsets = [0, 0, 16], sizes = [2, 8, 8], strides = [1, 1, 1]} : vector<2x8x32xf32> to vector<2x8x8xf32>
    %844 = vector.extract_strided_slice %809 {offsets = [0, 0, 16], sizes = [2, 8, 8], strides = [1, 1, 1]} : vector<2x8x32xf32> to vector<2x8x8xf32>
    %cst_474 = arith.constant dense<0.000000e+00> : vector<2x8x8xf32>
    %845 = tpu.matmul %842, %843, %cst_474 {dimension_numbers = #tpu.dot_dimension_numbers<[2], [2], [1], [1], [0, 0, 0, 1, 1, 1], [0], [0]>} : vector<2x8x8xf32>, vector<2x8x8xf32>, vector<2x8x8xf32> -> vector<2x8x8xf32>
    %cst_475 = arith.constant 0.353553385 : f32
    %846 = vector.broadcast %cst_475 : f32 to vector<2x8x8xf32>
    %847 = arith.mulf %845, %846 : vector<2x8x8xf32>
    %cst_476 = arith.constant dense<0xFF800000> : vector<2x8xf32>
    %848 = vector.multi_reduction <maximumf>, %847, %cst_476 [2] : vector<2x8x8xf32> to vector<2x8xf32>
    %849 = vector.shape_cast %848 : vector<2x8xf32> to vector<2x8x1xf32>
    %850 = vector.broadcast %849 : vector<2x8x1xf32> to vector<2x8x8xf32>
    %851 = arith.subf %847, %850 : vector<2x8x8xf32>
    %852 = math.exp %851 : vector<2x8x8xf32>
    %cst_477 = arith.constant dense<0.000000e+00> : vector<2x8xf32>
    %853 = vector.multi_reduction <add>, %852, %cst_477 [2] : vector<2x8x8xf32> to vector<2x8xf32>
    %854 = vector.shape_cast %853 : vector<2x8xf32> to vector<2x8x1xf32>
    %855 = vector.broadcast %854 : vector<2x8x1xf32> to vector<2x8x8xf32>
    %856 = arith.divf %852, %855 : vector<2x8x8xf32>
    %cst_478 = arith.constant dense<0.000000e+00> : vector<2x8x8xf32>
    %857 = tpu.matmul %856, %844, %cst_478 {dimension_numbers = #tpu.dot_dimension_numbers<[2], [1], [1], [2], [0, 0, 0, 1, 1, 2], [0], [0]>} : vector<2x8x8xf32>, vector<2x8x8xf32>, vector<2x8x8xf32> -> vector<2x8x8xf32>
    %858 = vector.extract_strided_slice %807 {offsets = [0, 0, 24], sizes = [2, 8, 8], strides = [1, 1, 1]} : vector<2x8x32xf32> to vector<2x8x8xf32>
    %859 = vector.extract_strided_slice %808 {offsets = [0, 0, 24], sizes = [2, 8, 8], strides = [1, 1, 1]} : vector<2x8x32xf32> to vector<2x8x8xf32>
    %860 = vector.extract_strided_slice %809 {offsets = [0, 0, 24], sizes = [2, 8, 8], strides = [1, 1, 1]} : vector<2x8x32xf32> to vector<2x8x8xf32>
    %cst_479 = arith.constant dense<0.000000e+00> : vector<2x8x8xf32>
    %861 = tpu.matmul %858, %859, %cst_479 {dimension_numbers = #tpu.dot_dimension_numbers<[2], [2], [1], [1], [0, 0, 0, 1, 1, 1], [0], [0]>} : vector<2x8x8xf32>, vector<2x8x8xf32>, vector<2x8x8xf32> -> vector<2x8x8xf32>
    %cst_480 = arith.constant 0.353553385 : f32
    %862 = vector.broadcast %cst_480 : f32 to vector<2x8x8xf32>
    %863 = arith.mulf %861, %862 : vector<2x8x8xf32>
    %cst_481 = arith.constant dense<0xFF800000> : vector<2x8xf32>
    %864 = vector.multi_reduction <maximumf>, %863, %cst_481 [2] : vector<2x8x8xf32> to vector<2x8xf32>
    %865 = vector.shape_cast %864 : vector<2x8xf32> to vector<2x8x1xf32>
    %866 = vector.broadcast %865 : vector<2x8x1xf32> to vector<2x8x8xf32>
    %867 = arith.subf %863, %866 : vector<2x8x8xf32>
    %868 = math.exp %867 : vector<2x8x8xf32>
    %cst_482 = arith.constant dense<0.000000e+00> : vector<2x8xf32>
    %869 = vector.multi_reduction <add>, %868, %cst_482 [2] : vector<2x8x8xf32> to vector<2x8xf32>
    %870 = vector.shape_cast %869 : vector<2x8xf32> to vector<2x8x1xf32>
    %871 = vector.broadcast %870 : vector<2x8x1xf32> to vector<2x8x8xf32>
    %872 = arith.divf %868, %871 : vector<2x8x8xf32>
    %cst_483 = arith.constant dense<0.000000e+00> : vector<2x8x8xf32>
    %873 = tpu.matmul %872, %860, %cst_483 {dimension_numbers = #tpu.dot_dimension_numbers<[2], [1], [1], [2], [0, 0, 0, 1, 1, 2], [0], [0]>} : vector<2x8x8xf32>, vector<2x8x8xf32>, vector<2x8x8xf32> -> vector<2x8x8xf32>
    %874 = tpu.concatenate %825, %841, %857, %873 in 2 : vector<2x8x8xf32>, vector<2x8x8xf32>, vector<2x8x8xf32>, vector<2x8x8xf32> -> vector<2x8x32xf32>
    %875 = vector.shape_cast %874 : vector<2x8x32xf32> to vector<16x32xf32>
    %876 = arith.truncf %875 : vector<16x32xf32> to vector<16x32xbf16>
    %cst_484 = arith.constant dense<0.000000e+00> : vector<16x32xf32>
    %877 = tpu.matmul %876, %794, %cst_484 {dimension_numbers = #tpu.dot_dimension_numbers<[1], [0], [0], [1], [0, 0, 1, 1], [], []>} : vector<16x32xbf16>, vector<32x32xbf16>, vector<16x32xf32> -> vector<16x32xf32>
    %878 = vector.broadcast %796 : vector<1x32xf32> to vector<16x32xf32>
    %879 = arith.addf %877, %878 : vector<16x32xf32>
    %880 = arith.addf %782, %879 : vector<16x32xf32>
    %c0_485 = arith.constant 0 : index
    %c1_486 = arith.constant 1 : index
    %c0_487 = arith.constant 0 : index
    %c0_488 = arith.constant 0 : index
    %881 = vector.load %arg19[%c0_485, %c1_486, %c0_487, %c0_488] : memref<1x2x1x32xf32, #tpu.memory_space<vmem>>, vector<1x1x1x32xf32>
    %882 = vector.shape_cast %881 : vector<1x1x1x32xf32> to vector<1x32xf32>
    %c0_489 = arith.constant 0 : index
    %c1_490 = arith.constant 1 : index
    %c0_491 = arith.constant 0 : index
    %c0_492 = arith.constant 0 : index
    %883 = vector.load %arg18[%c0_489, %c1_490, %c0_491, %c0_492] : memref<1x2x1x32xf32, #tpu.memory_space<vmem>>, vector<1x1x1x32xf32>
    %884 = vector.shape_cast %883 : vector<1x1x1x32xf32> to vector<1x32xf32>
    %cst_493 = arith.constant dense<0.000000e+00> : vector<16xf32>
    %885 = vector.multi_reduction <add>, %880, %cst_493 [1] : vector<16x32xf32> to vector<16xf32>
    %886 = vector.shape_cast %885 : vector<16xf32> to vector<16x1xf32>
    %cst_494 = arith.constant 3.200000e+01 : f32
    %887 = vector.broadcast %cst_494 : f32 to vector<16x1xf32>
    %888 = arith.divf %886, %887 : vector<16x1xf32>
    %889 = vector.broadcast %888 : vector<16x1xf32> to vector<16x32xf32>
    %890 = arith.subf %880, %889 : vector<16x32xf32>
    %891 = arith.mulf %890, %890 : vector<16x32xf32>
    %cst_495 = arith.constant dense<0.000000e+00> : vector<16xf32>
    %892 = vector.multi_reduction <add>, %891, %cst_495 [1] : vector<16x32xf32> to vector<16xf32>
    %893 = vector.shape_cast %892 : vector<16xf32> to vector<16x1xf32>
    %cst_496 = arith.constant 3.200000e+01 : f32
    %894 = vector.broadcast %cst_496 : f32 to vector<16x1xf32>
    %895 = arith.divf %893, %894 : vector<16x1xf32>
    %896 = vector.broadcast %888 : vector<16x1xf32> to vector<16x32xf32>
    %897 = arith.subf %880, %896 : vector<16x32xf32>
    %cst_497 = arith.constant 9.99999974E-6 : f32
    %898 = vector.broadcast %cst_497 : f32 to vector<16x1xf32>
    %899 = arith.addf %895, %898 : vector<16x1xf32>
    %900 = math.rsqrt %899 : vector<16x1xf32>
    %901 = vector.broadcast %900 : vector<16x1xf32> to vector<16x32xf32>
    %902 = arith.mulf %897, %901 : vector<16x32xf32>
    %903 = vector.broadcast %882 : vector<1x32xf32> to vector<16x32xf32>
    %904 = arith.mulf %902, %903 : vector<16x32xf32>
    %905 = vector.broadcast %884 : vector<1x32xf32> to vector<16x32xf32>
    %906 = arith.addf %904, %905 : vector<16x32xf32>
    %c0_498 = arith.constant 0 : index
    %c1_499 = arith.constant 1 : index
    %c0_500 = arith.constant 0 : index
    %c0_501 = arith.constant 0 : index
    %907 = vector.load %arg14[%c0_498, %c1_499, %c0_500, %c0_501] : memref<1x2x32x64xbf16, #tpu.memory_space<vmem>>, vector<1x1x32x64xbf16>
    %908 = vector.shape_cast %907 : vector<1x1x32x64xbf16> to vector<32x64xbf16>
    %909 = arith.truncf %906 : vector<16x32xf32> to vector<16x32xbf16>
    %cst_502 = arith.constant dense<0.000000e+00> : vector<16x64xf32>
    %910 = tpu.matmul %909, %908, %cst_502 {dimension_numbers = #tpu.dot_dimension_numbers<[1], [0], [0], [1], [0, 0, 1, 1], [], []>} : vector<16x32xbf16>, vector<32x64xbf16>, vector<16x64xf32> -> vector<16x64xf32>
    %c0_503 = arith.constant 0 : index
    %c1_504 = arith.constant 1 : index
    %c0_505 = arith.constant 0 : index
    %c0_506 = arith.constant 0 : index
    %911 = vector.load %arg12[%c0_503, %c1_504, %c0_505, %c0_506] : memref<1x2x1x64xf32, #tpu.memory_space<vmem>>, vector<1x1x1x64xf32>
    %912 = vector.shape_cast %911 : vector<1x1x1x64xf32> to vector<1x64xf32>
    %913 = vector.broadcast %912 : vector<1x64xf32> to vector<16x64xf32>
    %914 = arith.addf %910, %913 : vector<16x64xf32>
    %cst_507 = arith.constant 0.000000e+00 : f32
    %915 = vector.broadcast %cst_507 : f32 to vector<16x64xf32>
    %916 = arith.maximumf %914, %915 : vector<16x64xf32>
    %c0_508 = arith.constant 0 : index
    %c1_509 = arith.constant 1 : index
    %c0_510 = arith.constant 0 : index
    %c0_511 = arith.constant 0 : index
    %917 = vector.load %arg15[%c0_508, %c1_509, %c0_510, %c0_511] : memref<1x2x64x32xbf16, #tpu.memory_space<vmem>>, vector<1x1x64x32xbf16>
    %918 = vector.shape_cast %917 : vector<1x1x64x32xbf16> to vector<64x32xbf16>
    %919 = arith.truncf %916 : vector<16x64xf32> to vector<16x64xbf16>
    %cst_512 = arith.constant dense<0.000000e+00> : vector<16x32xf32>
    %920 = tpu.matmul %919, %918, %cst_512 {dimension_numbers = #tpu.dot_dimension_numbers<[1], [0], [0], [1], [0, 0, 1, 1], [], []>} : vector<16x64xbf16>, vector<64x32xbf16>, vector<16x32xf32> -> vector<16x32xf32>
    %c0_513 = arith.constant 0 : index
    %c1_514 = arith.constant 1 : index
    %c0_515 = arith.constant 0 : index
    %c0_516 = arith.constant 0 : index
    %921 = vector.load %arg13[%c0_513, %c1_514, %c0_515, %c0_516] : memref<1x2x1x32xf32, #tpu.memory_space<vmem>>, vector<1x1x1x32xf32>
    %922 = vector.shape_cast %921 : vector<1x1x1x32xf32> to vector<1x32xf32>
    %923 = vector.broadcast %922 : vector<1x32xf32> to vector<16x32xf32>
    %924 = arith.addf %920, %923 : vector<16x32xf32>
    %925 = arith.addf %906, %924 : vector<16x32xf32>
    %c0_517 = arith.constant 0 : index
    %c1_518 = arith.constant 1 : index
    %c0_519 = arith.constant 0 : index
    %c0_520 = arith.constant 0 : index
    %926 = vector.load %arg21[%c0_517, %c1_518, %c0_519, %c0_520] : memref<1x2x1x32xf32, #tpu.memory_space<vmem>>, vector<1x1x1x32xf32>
    %927 = vector.shape_cast %926 : vector<1x1x1x32xf32> to vector<1x32xf32>
    %c0_521 = arith.constant 0 : index
    %c1_522 = arith.constant 1 : index
    %c0_523 = arith.constant 0 : index
    %c0_524 = arith.constant 0 : index
    %928 = vector.load %arg20[%c0_521, %c1_522, %c0_523, %c0_524] : memref<1x2x1x32xf32, #tpu.memory_space<vmem>>, vector<1x1x1x32xf32>
    %929 = vector.shape_cast %928 : vector<1x1x1x32xf32> to vector<1x32xf32>
    %cst_525 = arith.constant dense<0.000000e+00> : vector<16xf32>
    %930 = vector.multi_reduction <add>, %925, %cst_525 [1] : vector<16x32xf32> to vector<16xf32>
    %931 = vector.shape_cast %930 : vector<16xf32> to vector<16x1xf32>
    %cst_526 = arith.constant 3.200000e+01 : f32
    %932 = vector.broadcast %cst_526 : f32 to vector<16x1xf32>
    %933 = arith.divf %931, %932 : vector<16x1xf32>
    %934 = vector.broadcast %933 : vector<16x1xf32> to vector<16x32xf32>
    %935 = arith.subf %925, %934 : vector<16x32xf32>
    %936 = arith.mulf %935, %935 : vector<16x32xf32>
    %cst_527 = arith.constant dense<0.000000e+00> : vector<16xf32>
    %937 = vector.multi_reduction <add>, %936, %cst_527 [1] : vector<16x32xf32> to vector<16xf32>
    %938 = vector.shape_cast %937 : vector<16xf32> to vector<16x1xf32>
    %cst_528 = arith.constant 3.200000e+01 : f32
    %939 = vector.broadcast %cst_528 : f32 to vector<16x1xf32>
    %940 = arith.divf %938, %939 : vector<16x1xf32>
    %941 = vector.broadcast %933 : vector<16x1xf32> to vector<16x32xf32>
    %942 = arith.subf %925, %941 : vector<16x32xf32>
    %cst_529 = arith.constant 9.99999974E-6 : f32
    %943 = vector.broadcast %cst_529 : f32 to vector<16x1xf32>
    %944 = arith.addf %940, %943 : vector<16x1xf32>
    %945 = math.rsqrt %944 : vector<16x1xf32>
    %946 = vector.broadcast %945 : vector<16x1xf32> to vector<16x32xf32>
    %947 = arith.mulf %942, %946 : vector<16x32xf32>
    %948 = vector.broadcast %927 : vector<1x32xf32> to vector<16x32xf32>
    %949 = arith.mulf %947, %948 : vector<16x32xf32>
    %950 = vector.broadcast %929 : vector<1x32xf32> to vector<16x32xf32>
    %951 = arith.addf %949, %950 : vector<16x32xf32>
    %c0_530 = arith.constant 0 : index
    %c0_531 = arith.constant 0 : index
    %c0_532 = arith.constant 0 : index
    %952 = vector.load %arg30[%c0_530, %c0_531, %c0_532] : memref<1x1x32xf32, #tpu.memory_space<vmem>>, vector<1x1x32xf32>
    %953 = vector.shape_cast %952 : vector<1x1x32xf32> to vector<1x32xf32>
    %c0_533 = arith.constant 0 : index
    %c0_534 = arith.constant 0 : index
    %c0_535 = arith.constant 0 : index
    %954 = vector.load %arg29[%c0_533, %c0_534, %c0_535] : memref<1x1x32xf32, #tpu.memory_space<vmem>>, vector<1x1x32xf32>
    %955 = vector.shape_cast %954 : vector<1x1x32xf32> to vector<1x32xf32>
    %cst_536 = arith.constant dense<0.000000e+00> : vector<16xf32>
    %956 = vector.multi_reduction <add>, %951, %cst_536 [1] : vector<16x32xf32> to vector<16xf32>
    %957 = vector.shape_cast %956 : vector<16xf32> to vector<16x1xf32>
    %cst_537 = arith.constant 3.200000e+01 : f32
    %958 = vector.broadcast %cst_537 : f32 to vector<16x1xf32>
    %959 = arith.divf %957, %958 : vector<16x1xf32>
    %960 = vector.broadcast %959 : vector<16x1xf32> to vector<16x32xf32>
    %961 = arith.subf %951, %960 : vector<16x32xf32>
    %962 = arith.mulf %961, %961 : vector<16x32xf32>
    %cst_538 = arith.constant dense<0.000000e+00> : vector<16xf32>
    %963 = vector.multi_reduction <add>, %962, %cst_538 [1] : vector<16x32xf32> to vector<16xf32>
    %964 = vector.shape_cast %963 : vector<16xf32> to vector<16x1xf32>
    %cst_539 = arith.constant 3.200000e+01 : f32
    %965 = vector.broadcast %cst_539 : f32 to vector<16x1xf32>
    %966 = arith.divf %964, %965 : vector<16x1xf32>
    %967 = vector.broadcast %959 : vector<16x1xf32> to vector<16x32xf32>
    %968 = arith.subf %951, %967 : vector<16x32xf32>
    %cst_540 = arith.constant 9.99999974E-6 : f32
    %969 = vector.broadcast %cst_540 : f32 to vector<16x1xf32>
    %970 = arith.addf %966, %969 : vector<16x1xf32>
    %971 = math.rsqrt %970 : vector<16x1xf32>
    %972 = vector.broadcast %971 : vector<16x1xf32> to vector<16x32xf32>
    %973 = arith.mulf %968, %972 : vector<16x32xf32>
    %974 = vector.broadcast %953 : vector<1x32xf32> to vector<16x32xf32>
    %975 = arith.mulf %973, %974 : vector<16x32xf32>
    %976 = vector.broadcast %955 : vector<1x32xf32> to vector<16x32xf32>
    %977 = arith.addf %975, %976 : vector<16x32xf32>
    %c0_541 = arith.constant 0 : index
    %c0_542 = arith.constant 0 : index
    %978 = vector.load %arg3[%c0_541, %c0_542] : memref<32x128xbf16, #tpu.memory_space<vmem>>, vector<32x128xbf16>
    %979 = arith.truncf %977 : vector<16x32xf32> to vector<16x32xbf16>
    %cst_543 = arith.constant dense<0.000000e+00> : vector<16x128xf32>
    %980 = tpu.matmul %979, %978, %cst_543 {dimension_numbers = #tpu.dot_dimension_numbers<[1], [0], [0], [1], [0, 0, 1, 1], [], []>} : vector<16x32xbf16>, vector<32x128xbf16>, vector<16x128xf32> -> vector<16x128xf32>
    %c0_544 = arith.constant 0 : index
    %c0_545 = arith.constant 0 : index
    %981 = vector.load %arg4[%c0_544, %c0_545] : memref<1x128xf32, #tpu.memory_space<vmem>>, vector<1x128xf32>
    %982 = vector.broadcast %981 : vector<1x128xf32> to vector<16x128xf32>
    %983 = arith.addf %980, %982 : vector<16x128xf32>
    %c0_546 = arith.constant 0 : index
    %c0_547 = arith.constant 0 : index
    %c0_548 = arith.constant 0 : index
    %984 = vector.load %arg48[%c0_546, %c0_547, %c0_548] : memref<1x16x128xf32, #tpu.memory_space<vmem>>, vector<1x16x128xf32>
    %985 = vector.shape_cast %984 : vector<1x16x128xf32> to vector<16x128xf32>
    %986 = vector.shape_cast %983 : vector<16x128xf32> to vector<1x16x128xf32>
    tpu.vector_store %arg48[%c0_546, %c0_547, %c0_548], %986 {strides = array<i32>} : memref<1x16x128xf32, #tpu.memory_space<vmem>>, vector<1x16x128xf32>,
    return
  }
  func.func @transform_0(%arg0: i32) -> (i32, i32) {
    %c0_i32 = arith.constant 0 : i32
    %c0_i32_0 = arith.constant 0 : i32
    %c0_i32_1 = arith.constant 0 : i32
    return %c0_i32, %c0_i32_0 : i32, i32
  }
  func.func @transform_1(%arg0: i32) -> (i32, i32) {
    %c0_i32 = arith.constant 0 : i32
    %c0_i32_0 = arith.constant 0 : i32
    %c0_i32_1 = arith.constant 0 : i32
    return %c0_i32, %c0_i32_0 : i32, i32
  }
  func.func @transform_2(%arg0: i32) -> (i32, i32) {
    %c0_i32 = arith.constant 0 : i32
    %c0_i32_0 = arith.constant 0 : i32
    %c0_i32_1 = arith.constant 0 : i32
    return %c0_i32, %c0_i32_0 : i32, i32
  }
  func.func @transform_3(%arg0: i32) -> (i32, i32) {
    %c0_i32 = arith.constant 0 : i32
    %c0_i32_0 = arith.constant 0 : i32
    %c0_i32_1 = arith.constant 0 : i32
    return %c0_i32, %c0_i32_0 : i32, i32
  }
  func.func @transform_4(%arg0: i32) -> (i32, i32, i32, i32) {
    %c0_i32 = arith.constant 0 : i32
    %c0_i32_0 = arith.constant 0 : i32
    %c0_i32_1 = arith.constant 0 : i32
    %c0_i32_2 = arith.constant 0 : i32
    return %arg0, %c0_i32, %c0_i32_0, %c0_i32_1 : i32, i32, i32, i32
  }
  func.func @transform_5(%arg0: i32) -> (i32, i32, i32, i32) {
    %c0_i32 = arith.constant 0 : i32
    %c0_i32_0 = arith.constant 0 : i32
    %c0_i32_1 = arith.constant 0 : i32
    %c0_i32_2 = arith.constant 0 : i32
    return %arg0, %c0_i32, %c0_i32_0, %c0_i32_1 : i32, i32, i32, i32
  }
  func.func @transform_6(%arg0: i32) -> (i32, i32, i32, i32) {
    %c0_i32 = arith.constant 0 : i32
    %c0_i32_0 = arith.constant 0 : i32
    %c0_i32_1 = arith.constant 0 : i32
    %c0_i32_2 = arith.constant 0 : i32
    return %arg0, %c0_i32, %c0_i32_0, %c0_i32_1 : i32, i32, i32, i32
  }
  func.func @transform_7(%arg0: i32) -> (i32, i32, i32, i32) {
    %c0_i32 = arith.constant 0 : i32
    %c0_i32_0 = arith.constant 0 : i32
    %c0_i32_1 = arith.constant 0 : i32
    %c0_i32_2 = arith.constant 0 : i32
    return %arg0, %c0_i32, %c0_i32_0, %c0_i32_1 : i32, i32, i32, i32
  }
  func.func @transform_8(%arg0: i32) -> (i32, i32, i32, i32) {
    %c0_i32 = arith.constant 0 : i32
    %c0_i32_0 = arith.constant 0 : i32
    %c0_i32_1 = arith.constant 0 : i32
    %c0_i32_2 = arith.constant 0 : i32
    return %arg0, %c0_i32, %c0_i32_0, %c0_i32_1 : i32, i32, i32, i32
  }
  func.func @transform_9(%arg0: i32) -> (i32, i32, i32, i32) {
    %c0_i32 = arith.constant 0 : i32
    %c0_i32_0 = arith.constant 0 : i32
    %c0_i32_1 = arith.constant 0 : i32
    %c0_i32_2 = arith.constant 0 : i32
    return %arg0, %c0_i32, %c0_i32_0, %c0_i32_1 : i32, i32, i32, i32
  }
  func.func @transform_10(%arg0: i32) -> (i32, i32, i32, i32) {
    %c0_i32 = arith.constant 0 : i32
    %c0_i32_0 = arith.constant 0 : i32
    %c0_i32_1 = arith.constant 0 : i32
    %c0_i32_2 = arith.constant 0 : i32
    return %arg0, %c0_i32, %c0_i32_0, %c0_i32_1 : i32, i32, i32, i32
  }
  func.func @transform_11(%arg0: i32) -> (i32, i32, i32, i32) {
    %c0_i32 = arith.constant 0 : i32
    %c0_i32_0 = arith.constant 0 : i32
    %c0_i32_1 = arith.constant 0 : i32
    %c0_i32_2 = arith.constant 0 : i32
    return %arg0, %c0_i32, %c0_i32_0, %c0_i32_1 : i32, i32, i32, i32
  }
  func.func @transform_12(%arg0: i32) -> (i32, i32, i32, i32) {
    %c0_i32 = arith.constant 0 : i32
    %c0_i32_0 = arith.constant 0 : i32
    %c0_i32_1 = arith.constant 0 : i32
    %c0_i32_2 = arith.constant 0 : i32
    return %arg0, %c0_i32, %c0_i32_0, %c0_i32_1 : i32, i32, i32, i32
  }
  func.func @transform_13(%arg0: i32) -> (i32, i32, i32, i32) {
    %c0_i32 = arith.constant 0 : i32
    %c0_i32_0 = arith.constant 0 : i32
    %c0_i32_1 = arith.constant 0 : i32
    %c0_i32_2 = arith.constant 0 : i32
    return %arg0, %c0_i32, %c0_i32_0, %c0_i32_1 : i32, i32, i32, i32
  }
  func.func @transform_14(%arg0: i32) -> (i32, i32, i32, i32) {
    %c0_i32 = arith.constant 0 : i32
    %c0_i32_0 = arith.constant 0 : i32
    %c0_i32_1 = arith.constant 0 : i32
    %c0_i32_2 = arith.constant 0 : i32
    return %arg0, %c0_i32, %c0_i32_0, %c0_i32_1 : i32, i32, i32, i32
  }
  func.func @transform_15(%arg0: i32) -> (i32, i32, i32, i32) {
    %c0_i32 = arith.constant 0 : i32
    %c0_i32_0 = arith.constant 0 : i32
    %c0_i32_1 = arith.constant 0 : i32
    %c0_i32_2 = arith.constant 0 : i32
    return %arg0, %c0_i32, %c0_i32_0, %c0_i32_1 : i32, i32, i32, i32
  }
  func.func @transform_16(%arg0: i32) -> (i32, i32, i32, i32) {
    %c0_i32 = arith.constant 0 : i32
    %c0_i32_0 = arith.constant 0 : i32
    %c0_i32_1 = arith.constant 0 : i32
    %c0_i32_2 = arith.constant 0 : i32
    return %arg0, %c0_i32, %c0_i32_0, %c0_i32_1 : i32, i32, i32, i32
  }
  func.func @transform_17(%arg0: i32) -> (i32, i32, i32, i32) {
    %c0_i32 = arith.constant 0 : i32
    %c0_i32_0 = arith.constant 0 : i32
    %c0_i32_1 = arith.constant 0 : i32
    %c0_i32_2 = arith.constant 0 : i32
    return %arg0, %c0_i32, %c0_i32_0, %c0_i32_1 : i32, i32, i32, i32
  }
  func.func @transform_18(%arg0: i32) -> (i32, i32, i32, i32) {
    %c0_i32 = arith.constant 0 : i32
    %c0_i32_0 = arith.constant 0 : i32
    %c0_i32_1 = arith.constant 0 : i32
    %c0_i32_2 = arith.constant 0 : i32
    return %arg0, %c0_i32, %c0_i32_0, %c0_i32_1 : i32, i32, i32, i32
  }
  func.func @transform_19(%arg0: i32) -> (i32, i32, i32, i32) {
    %c0_i32 = arith.constant 0 : i32
    %c0_i32_0 = arith.constant 0 : i32
    %c0_i32_1 = arith.constant 0 : i32
    %c0_i32_2 = arith.constant 0 : i32
    return %arg0, %c0_i32, %c0_i32_0, %c0_i32_1 : i32, i32, i32, i32
  }
  func.func @transform_20(%arg0: i32) -> (i32, i32, i32, i32) {
    %c0_i32 = arith.constant 0 : i32
    %c0_i32_0 = arith.constant 0 : i32
    %c0_i32_1 = arith.constant 0 : i32
    %c0_i32_2 = arith.constant 0 : i32
    return %arg0, %c0_i32, %c0_i32_0, %c0_i32_1 : i32, i32, i32, i32
  }
  func.func @transform_21(%arg0: i32) -> (i32, i32, i32, i32) {
    %c0_i32 = arith.constant 0 : i32
    %c0_i32_0 = arith.constant 0 : i32
    %c0_i32_1 = arith.constant 0 : i32
    %c0_i32_2 = arith.constant 0 : i32
    return %arg0, %c0_i32, %c0_i32_0, %c0_i32_1 : i32, i32, i32, i32
  }
  func.func @transform_22(%arg0: i32) -> (i32, i32, i32, i32) {
    %c0_i32 = arith.constant 0 : i32
    %c0_i32_0 = arith.constant 0 : i32
    %c0_i32_1 = arith.constant 0 : i32
    %c0_i32_2 = arith.constant 0 : i32
    return %arg0, %c0_i32, %c0_i32_0, %c0_i32_1 : i32, i32, i32, i32
  }
  func.func @transform_23(%arg0: i32) -> (i32, i32, i32, i32) {
    %c0_i32 = arith.constant 0 : i32
    %c0_i32_0 = arith.constant 0 : i32
    %c0_i32_1 = arith.constant 0 : i32
    %c0_i32_2 = arith.constant 0 : i32
    return %arg0, %c0_i32, %c0_i32_0, %c0_i32_1 : i32, i32, i32, i32
  }
  func.func @transform_24(%arg0: i32) -> (i32, i32, i32, i32) {
    %c0_i32 = arith.constant 0 : i32
    %c0_i32_0 = arith.constant 0 : i32
    %c0_i32_1 = arith.constant 0 : i32
    %c0_i32_2 = arith.constant 0 : i32
    return %arg0, %c0_i32, %c0_i32_0, %c0_i32_1 : i32, i32, i32, i32
  }
  func.func @transform_25(%arg0: i32) -> (i32, i32, i32, i32) {
    %c0_i32 = arith.constant 0 : i32
    %c0_i32_0 = arith.constant 0 : i32
    %c0_i32_1 = arith.constant 0 : i32
    %c0_i32_2 = arith.constant 0 : i32
    return %arg0, %c0_i32, %c0_i32_0, %c0_i32_1 : i32, i32, i32, i32
  }
  func.func @transform_26(%arg0: i32) -> (i32, i32, i32, i32) {
    %c0_i32 = arith.constant 0 : i32
    %c0_i32_0 = arith.constant 0 : i32
    %c0_i32_1 = arith.constant 0 : i32
    %c0_i32_2 = arith.constant 0 : i32
    return %arg0, %c0_i32, %c0_i32_0, %c0_i32_1 : i32, i32, i32, i32
  }
  func.func @transform_27(%arg0: i32) -> (i32, i32, i32, i32) {
    %c0_i32 = arith.constant 0 : i32
    %c0_i32_0 = arith.constant 0 : i32
    %c0_i32_1 = arith.constant 0 : i32
    %c0_i32_2 = arith.constant 0 : i32
    return %arg0, %c0_i32, %c0_i32_0, %c0_i32_1 : i32, i32, i32, i32
  }
  func.func @transform_28(%arg0: i32) -> (i32, i32, i32) {
    %c0_i32 = arith.constant 0 : i32
    %c0_i32_0 = arith.constant 0 : i32
    %c0_i32_1 = arith.constant 0 : i32
    return %arg0, %c0_i32, %c0_i32_0 : i32, i32, i32
  }
  func.func @transform_29(%arg0: i32) -> (i32, i32, i32) {
    %c0_i32 = arith.constant 0 : i32
    %c0_i32_0 = arith.constant 0 : i32
    %c0_i32_1 = arith.constant 0 : i32
    return %arg0, %c0_i32, %c0_i32_0 : i32, i32, i32
  }
  func.func @transform_30(%arg0: i32) -> (i32, i32, i32, i32) {
    %c0_i32 = arith.constant 0 : i32
    %c0_i32_0 = arith.constant 0 : i32
    %c0_i32_1 = arith.constant 0 : i32
    %c0_i32_2 = arith.constant 0 : i32
    return %arg0, %c0_i32, %c0_i32_0, %c0_i32_1 : i32, i32, i32, i32
  }
  func.func @transform_31(%arg0: i32) -> (i32, i32, i32, i32) {
    %c0_i32 = arith.constant 0 : i32
    %c0_i32_0 = arith.constant 0 : i32
    %c0_i32_1 = arith.constant 0 : i32
    %c0_i32_2 = arith.constant 0 : i32
    return %arg0, %c0_i32, %c0_i32_0, %c0_i32_1 : i32, i32, i32, i32
  }
  func.func @transform_32(%arg0: i32) -> (i32, i32, i32, i32) {
    %c0_i32 = arith.constant 0 : i32
    %c0_i32_0 = arith.constant 0 : i32
    %c0_i32_1 = arith.constant 0 : i32
    %c0_i32_2 = arith.constant 0 : i32
    return %arg0, %c0_i32, %c0_i32_0, %c0_i32_1 : i32, i32, i32, i32
  }
  func.func @transform_33(%arg0: i32) -> (i32, i32, i32, i32) {
    %c0_i32 = arith.constant 0 : i32
    %c0_i32_0 = arith.constant 0 : i32
    %c0_i32_1 = arith.constant 0 : i32
    %c0_i32_2 = arith.constant 0 : i32
    return %arg0, %c0_i32, %c0_i32_0, %c0_i32_1 : i32, i32, i32, i32
  }
  func.func @transform_34(%arg0: i32) -> (i32, i32, i32, i32) {
    %c0_i32 = arith.constant 0 : i32
    %c0_i32_0 = arith.constant 0 : i32
    %c0_i32_1 = arith.constant 0 : i32
    %c0_i32_2 = arith.constant 0 : i32
    return %arg0, %c0_i32, %c0_i32_0, %c0_i32_1 : i32, i32, i32, i32
  }
  func.func @transform_35(%arg0: i32) -> (i32, i32, i32, i32) {
    %c0_i32 = arith.constant 0 : i32
    %c0_i32_0 = arith.constant 0 : i32
    %c0_i32_1 = arith.constant 0 : i32
    %c0_i32_2 = arith.constant 0 : i32
    return %arg0, %c0_i32, %c0_i32_0, %c0_i32_1 : i32, i32, i32, i32
  }
  func.func @transform_36(%arg0: i32) -> (i32, i32, i32, i32) {
    %c0_i32 = arith.constant 0 : i32
    %c0_i32_0 = arith.constant 0 : i32
    %c0_i32_1 = arith.constant 0 : i32
    %c0_i32_2 = arith.constant 0 : i32
    return %arg0, %c0_i32, %c0_i32_0, %c0_i32_1 : i32, i32, i32, i32
  }
  func.func @transform_37(%arg0: i32) -> (i32, i32, i32, i32) {
    %c0_i32 = arith.constant 0 : i32
    %c0_i32_0 = arith.constant 0 : i32
    %c0_i32_1 = arith.constant 0 : i32
    %c0_i32_2 = arith.constant 0 : i32
    return %arg0, %c0_i32, %c0_i32_0, %c0_i32_1 : i32, i32, i32, i32
  }
  func.func @transform_38(%arg0: i32) -> (i32, i32, i32, i32) {
    %c0_i32 = arith.constant 0 : i32
    %c0_i32_0 = arith.constant 0 : i32
    %c0_i32_1 = arith.constant 0 : i32
    %c0_i32_2 = arith.constant 0 : i32
    return %arg0, %c0_i32, %c0_i32_0, %c0_i32_1 : i32, i32, i32, i32
  }
  func.func @transform_39(%arg0: i32) -> (i32, i32, i32, i32) {
    %c0_i32 = arith.constant 0 : i32
    %c0_i32_0 = arith.constant 0 : i32
    %c0_i32_1 = arith.constant 0 : i32
    %c0_i32_2 = arith.constant 0 : i32
    return %arg0, %c0_i32, %c0_i32_0, %c0_i32_1 : i32, i32, i32, i32
  }
  func.func @transform_40(%arg0: i32) -> (i32, i32, i32, i32) {
    %c0_i32 = arith.constant 0 : i32
    %c0_i32_0 = arith.constant 0 : i32
    %c0_i32_1 = arith.constant 0 : i32
    %c0_i32_2 = arith.constant 0 : i32
    return %arg0, %c0_i32, %c0_i32_0, %c0_i32_1 : i32, i32, i32, i32
  }
  func.func @transform_41(%arg0: i32) -> (i32, i32, i32, i32) {
    %c0_i32 = arith.constant 0 : i32
    %c0_i32_0 = arith.constant 0 : i32
    %c0_i32_1 = arith.constant 0 : i32
    %c0_i32_2 = arith.constant 0 : i32
    return %arg0, %c0_i32, %c0_i32_0, %c0_i32_1 : i32, i32, i32, i32
  }
  func.func @transform_42(%arg0: i32) -> (i32, i32, i32, i32) {
    %c0_i32 = arith.constant 0 : i32
    %c0_i32_0 = arith.constant 0 : i32
    %c0_i32_1 = arith.constant 0 : i32
    %c0_i32_2 = arith.constant 0 : i32
    return %arg0, %c0_i32, %c0_i32_0, %c0_i32_1 : i32, i32, i32, i32
  }
  func.func @transform_43(%arg0: i32) -> (i32, i32, i32, i32) {
    %c0_i32 = arith.constant 0 : i32
    %c0_i32_0 = arith.constant 0 : i32
    %c0_i32_1 = arith.constant 0 : i32
    %c0_i32_2 = arith.constant 0 : i32
    return %arg0, %c0_i32, %c0_i32_0, %c0_i32_1 : i32, i32, i32, i32
  }
  func.func @transform_44(%arg0: i32) -> (i32, i32, i32, i32) {
    %c0_i32 = arith.constant 0 : i32
    %c0_i32_0 = arith.constant 0 : i32
    %c0_i32_1 = arith.constant 0 : i32
    %c0_i32_2 = arith.constant 0 : i32
    return %arg0, %c0_i32, %c0_i32_0, %c0_i32_1 : i32, i32, i32, i32
  }
  func.func @transform_45(%arg0: i32) -> (i32, i32, i32) {
    %c0_i32 = arith.constant 0 : i32
    %c0_i32_0 = arith.constant 0 : i32
    %c0_i32_1 = arith.constant 0 : i32
    return %arg0, %c0_i32, %c0_i32_0 : i32, i32, i32
  }
  func.func @transform_46(%arg0: i32) -> (i32, i32, i32) {
    %c0_i32 = arith.constant 0 : i32
    %c0_i32_0 = arith.constant 0 : i32
    %c0_i32_1 = arith.constant 0 : i32
    return %arg0, %c0_i32, %c0_i32_0 : i32, i32, i32
  }
  func.func @transform_47(%arg0: i32) -> (i32, i32, i32) {
    %c0_i32 = arith.constant 0 : i32
    %c0_i32_0 = arith.constant 0 : i32
    %c0_i32_1 = arith.constant 0 : i32
    return %arg0, %c0_i32, %c0_i32_0 : i32, i32, i32
  }
}

</mosaic_0001>

<bundles_post_ra>
// kernel: multi_encoder_decoder_forward.1
= control target key start
LH: loop header
LB: loop body
LE: loop exit
PB: predicated region body
PF: predicated region fallthrough
CT: control target
= control target key end

     0   :  { %s17323_s6 = smov 1   ;;  %s17324_s10 = smov 2   ;;  %s20065_s0 = inlined_call_operand.smem [shape: u32[48], index: -1, kind: input, shape index: {}] }
   0x1   :  { %s17414_s5 = sld [smem:[%s20065_s0]]   ;;  %s17325_s14 = smov 3  }
   0x2   :  { %s17419_s9 = sld [smem:[%s20065_s0 + %s17323_s6]]   ;;  %s17326_s18 = smov 4  }
   0x3   :  { %s17424_s13 = sld [smem:[%s20065_s0 + %s17324_s10]]   ;;  %s17327_s22 = smov 5  }
   0x4   :  { %s17429_s17 = sld [smem:[%s20065_s0 + %s17325_s14]]   ;;  %s17328_s26 = smov 6  }
   0x5   :  { %s17434_s21 = sld [smem:[%s20065_s0 + %s17326_s18]]   ;;  %s17329_s30 = smov 7  }
   0x6   :  { %s17439_s25 = sld [smem:[%s20065_s0 + %s17327_s22]]   ;;  %s17330_s4 = smov 8  }
   0x7   :  { %20141 = sst [smem:[#allocation52_spill]] %s17414_s5  ;;  %s17331_s10 = smov 9  }
   0x8   :  { %20142 = sst [smem:[#allocation53_spill]] %s17419_s9  ;;  %s17332_s15 = smov 10  }
   0x9   :  { %20143 = sst [smem:[#allocation54_spill]] %s17424_s13  ;;  %s17333_s20 = smov 11  }
   0xa   :  { %20144 = sst [smem:[#allocation55_spill]] %s17429_s17  ;;  %s17335_s1 = smov 13  }
   0xb   :  { %s17444_s29 = sld [smem:[%s20065_s0 + %s17328_s26]]   ;;  %s17334_s26 = smov 12  }
   0xc   :  { %20145 = sst [smem:[#allocation56_spill]] %s17439_s25  ;;  %s17336_s7 = smov 14  }
   0xd   :  { %s17449_s3 = sld [smem:[%s20065_s0 + %s17329_s30]]   ;;  %s17338_s22 = smov 16  }
   0xe   :  { %s17454_s8 = sld [smem:[%s20065_s0 + %s17330_s4]]   ;;  %s17339_s28 = smov 17  }
   0xf   :  { %s17459_s14 = sld [smem:[%s20065_s0 + %s17331_s10]]  }
  0x10   :  { %s17464_s19 = sld [smem:[%s20065_s0 + %s17332_s15]]   ;;  %s17337_s15 = smov 15  }
  0x11   :  { %s17469_s24 = sld [smem:[%s20065_s0 + %s17333_s20]]  }
  0x12   :  { %s17474_s30 = sld [smem:[%s20065_s0 + %s17334_s26]]  }
  0x13   :  { %20146 = sst [smem:[#allocation57_spill]] %s17449_s3 }
  0x14   :  { %20147 = sst [smem:[#allocation58_spill]] %s17454_s8 }
  0x15   :  { %20148 = sst [smem:[#allocation59_spill]] %s17459_s14 }
  0x16   :  { %20149 = sst [smem:[#allocation60_spill]] %s17464_s19 }
  0x17   :  { %s17479_s6 = sld [smem:[%s20065_s0 + %s17335_s1]]  }
  0x18   :  { %s17484_s12 = sld [smem:[%s20065_s0 + %s17336_s7]]   ;;  %s17340_s7 = smov 18  }
  0x19   :  { %s17489_s20 = sld [smem:[%s20065_s0 + %s17337_s15]]   ;;  %s17341_s15 = smov 19  }
  0x1a   :  { %s17494_s27 = sld [smem:[%s20065_s0 + %s17338_s22]]   ;;  %s17342_s22 = smov 20  }
  0x1b   :  { %s17499_s4 = sld [smem:[%s20065_s0 + %s17339_s28]]   ;;  %s17343_s28 = smov 21  }
  0x1c   :  { %s17504_s17 = sld [smem:[%s20065_s0 + %s17340_s7]]   ;;  %s17344_s7 = smov 22  }
  0x1d   :  { %20150 = sst [smem:[#allocation61_spill]] %s17479_s6 }
  0x1e   :  { %20151 = sst [smem:[#allocation62_spill]] %s17484_s12 }
  0x1f   :  { %s17509_s13 = sld [smem:[%s20065_s0 + %s17341_s15]]   ;;  %s17345_s15 = smov 23  }
  0x20   :  { %20152 = sst [smem:[#allocation63_spill]] %s17494_s27 }
  0x21   :  { %20153 = sst [smem:[#allocation64_spill]] %s17499_s4 }
  0x22   :  { %20154 = sst [smem:[#allocation65_spill]] %s17504_s17 }
  0x23   :  { %s17514_s12 = sld [smem:[%s20065_s0 + %s17342_s22]]   ;;  %s17346_s22 = smov 24  }
  0x24   :  { %s17519_s6 = sld [smem:[%s20065_s0 + %s17343_s28]]   ;;  %s17347_s28 = smov 25  }
  0x25   :  { %20155 = sst [smem:[#allocation66_spill]] %s17509_s13 }
  0x26   :  { %s17524_s8 = sld [smem:[%s20065_s0 + %s17344_s7]]   ;;  %s17348_s7 = smov 26  }
  0x27   :  { %s17529_s19 = sld [smem:[%s20065_s0 + %s17345_s15]]   ;;  %s17349_s15 = smov 27  }
  0x28   :  { %s17534_s14 = sld [smem:[%s20065_s0 + %s17346_s22]]   ;;  %s17350_s22 = smov 28  }
  0x29   :  { %20156 = sst [smem:[#allocation67_spill]] %s17514_s12 }
  0x2a   :  { %20157 = sst [smem:[#allocation68_spill]] %s17519_s6 }
  0x2b   :  { %s17539_s3 = sld [smem:[%s20065_s0 + %s17347_s28]]   ;;  %s17351_s28 = smov 29  }
  0x2c   :  { %20158 = sst [smem:[#allocation69_spill]] %s17524_s8 }
  0x2d   :  { %s17544_s9 = sld [smem:[%s20065_s0 + %s17348_s7]]   ;;  %s17352_s7 = smov 30  }
  0x2e   :  { %20159 = sst [smem:[#allocation70_spill]] %s17534_s14 }
  0x2f   :  { %s17549_s5 = sld [smem:[%s20065_s0 + %s17349_s15]]   ;;  %s17353_s15 = smov 31  }
  0x30   :  { %s17554_s14 = sld [smem:[%s20065_s0 + %s17350_s22]]   ;;  %s17354_s22 = smov 32  }
  0x31   :  { %20160 = sst [smem:[#allocation71_spill]] %s17539_s3 }
  0x32   :  { %s17559_s3 = sld [smem:[%s20065_s0 + %s17351_s28]]   ;;  %s17355_s28 = smov 33  }
  0x33   :  { %20161 = sst [smem:[#allocation72_spill]] %s17544_s9 }
  0x34   :  { %s17564_s9 = sld [smem:[%s20065_s0 + %s17352_s7]]   ;;  %s17356_s7 = smov 34  }
  0x35   :  { %20162 = sst [smem:[#allocation73_spill]] %s17549_s5 }
  0x36   :  { %20163 = sst [smem:[#allocation74_spill]] %s17554_s14 }
  0x37   :  { %s17569_s5 = sld [smem:[%s20065_s0 + %s17353_s15]]   ;;  %s17357_s15 = smov 35  }
  0x38   :  { %20164 = sst [smem:[#allocation75_spill]] %s17559_s3 }
  0x39   :  { %s17574_s8 = sld [smem:[%s20065_s0 + %s17354_s22]]   ;;  %s17358_s22 = smov 36  }
  0x3a   :  { %20165 = sst [smem:[#allocation76_spill]] %s17564_s9 }
  0x3b   :  { %s17579_s3 = sld [smem:[%s20065_s0 + %s17355_s28]]   ;;  %s17359_s28 = smov 37  }
  0x3c   :  { %s17584_s12 = sld [smem:[%s20065_s0 + %s17356_s7]]   ;;  %s17360_s7 = smov 38  }
  0x3d   :  { %20166 = sst [smem:[#allocation77_spill]] %s17569_s5 }
  0x3e   :  { %s17589_s5 = sld [smem:[%s20065_s0 + %s17357_s15]]   ;;  %s17361_s15 = smov 39  }
  0x3f   :  { %20167 = sst [smem:[#allocation78_spill]] %s17574_s8 }
  0x40   :  { %s17594_s17 = sld [smem:[%s20065_s0 + %s17358_s22]]   ;;  %s17362_s22 = smov 40  }
  0x41   :  { %20168 = sst [smem:[#allocation79_spill]] %s17579_s3 }
  0x42   :  { %20169 = sst [smem:[#allocation80_spill]] %s17584_s12 }
  0x43   :  { %s17599_s3 = sld [smem:[%s20065_s0 + %s17359_s28]]   ;;  %s17363_s28 = smov 41  }
  0x44   :  { %20170 = sst [smem:[#allocation81_spill]] %s17589_s5 }
  0x45   :  { %s17604_s27 = sld [smem:[%s20065_s0 + %s17360_s7]]   ;;  %s17364_s7 = smov 42  }
  0x46   :  { %20171 = sst [smem:[#allocation82_spill]] %s17594_s17 }
  0x47   :  { %s17609_s5 = sld [smem:[%s20065_s0 + %s17361_s15]]   ;;  %s17365_s15 = smov 43  }
  0x48   :  { %s17614_s17 = sld [smem:[%s20065_s0 + %s17362_s22]]   ;;  %s17366_s22 = smov 44  }
  0x49   :  { %20172 = sst [smem:[#allocation83_spill]] %s17599_s3 }
  0x4a   :  { %s17619_s3 = sld [smem:[%s20065_s0 + %s17363_s28]]   ;;  %s17367_s28 = smov 45  }
  0x4b   :  { %20173 = sst [smem:[#allocation84_spill]] %s17604_s27 }
  0x4c   :  { %s17624_s27 = sld [smem:[%s20065_s0 + %s17364_s7]]   ;;  %s17368_s7 = smov 46  }
  0x4d   :  { %20174 = sst [smem:[#allocation85_spill]] %s17609_s5 }
  0x4e   :  { %20175 = sst [smem:[#allocation86_spill]] %s17614_s17 }
  0x4f   :  { %s17629_s5 = sld [smem:[%s20065_s0 + %s17365_s15]]   ;;  %s17369_s15 = smov 47  }
  0x50   :  { %20176 = sst [smem:[#allocation87_spill]] %s17619_s3 }
  0x51   :  { %s17634_s17 = sld [smem:[%s20065_s0 + %s17366_s22]]  }
  0x52   :  { %20177 = sst [smem:[#allocation88_spill]] %s17624_s27 }
  0x53   :  { %s17639_s3 = sld [smem:[%s20065_s0 + %s17367_s28]]  }
  0x54   :  { %s17644_s27 = sld [smem:[%s20065_s0 + %s17368_s7]]  }
  0x55   :  { %20178 = sst [smem:[#allocation89_spill]] %s17629_s5 }
  0x56   :  { %s17649_s5 = sld [smem:[%s20065_s0 + %s17369_s15]]  }
  0x57   :  { %20179 = sst [smem:[#allocation90_spill]] %s17634_s17 }
  0x59   :  { %20180 = sst [smem:[#allocation91_spill]] %s17639_s3 }
  0x5a   :  { %20181 = sst [smem:[#allocation92_spill]] %s17644_s27 }
  0x5c   :  { %20182 = sst [smem:[#allocation93_spill]] %s17649_s5 }
  0x5d   :  { %100 = vsyncpa [#allocation3], 0 }
  0x5e   :  { %102 = vsyncpa [#allocation3 + $0x1], 0 }
  0x5f   :  { %103 = vsyncpa [#allocation5], 0 }
  0x60   :  { %105 = vsyncpa [#allocation5 + $0x1], 0 }
  0x61   :  { %106 = vsyncpa [#allocation8], 0 }
  0x62   :  { %108 = vsyncpa [#allocation8 + $0x1], 0 }
  0x63   :  { %109 = vsyncpa [#allocation11], 0 }
  0x64   :  { %111 = vsyncpa [#allocation11 + $0x1], 0 }
  0x65   :  { %112 = vsyncpa [#allocation14], 0 }
  0x66   :  { %114 = vsyncpa [#allocation14 + $0x1], 0 }
  0x67   :  { %115 = vsyncpa [#allocation17], 0 }
  0x68   :  { %117 = vsyncpa [#allocation17 + $0x1], 0 }
  0x69   :  { %118 = vsyncpa [#allocation20], 0 }
  0x6a   :  { %120 = vsyncpa [#allocation20 + $0x1], 0 }
  0x6b   :  { %121 = vsyncpa [#allocation23], 0 }
  0x6c   :  { %123 = vsyncpa [#allocation23 + $0x1], 0 }
  0x6d   :  { %124 = vsyncpa [#allocation26], 0 }
  0x6e   :  { %126 = vsyncpa [#allocation26 + $0x1], 0 }
  0x6f   :  { %127 = vsyncpa [#allocation29], 0 }
  0x70   :  { %129 = vsyncpa [#allocation29 + $0x1], 0 }
  0x71   :  { %130 = vsyncpa [#allocation32], 0 }
  0x72   :  { %132 = vsyncpa [#allocation32 + $0x1], 0 }
  0x73   :  { %133 = vsyncpa [#allocation35], 0 }
  0x74   :  { %135 = vsyncpa [#allocation35 + $0x1], 0 }
  0x75   :  { %136 = vsyncpa [#allocation38], 0 }
  0x76   :  { %138 = vsyncpa [#allocation38 + $0x1], 0  ;;  %s17651_s0 = smov 0   ;;  %s17653_s22 = smov 0  }
  0x77   :  { %s17655_s23 = smov 0   ;;  %s17657_s26 = smov 0  }
  0x78 LB: > { %s20183_s14 = sld [smem:[#allocation74_spill]]  ;;  %s20185_s12 = sld [smem:[#allocation80_spill]]  ;;  %s17321_s26 = sphi %s17657_s26, %s20293_s26   ;;  %s17317_s23 = sphi %s17655_s23, %s20295_s23   ;;  %s17313_s22 = sphi %s17653_s22, %s20297_s22   ;;  %s17309_s0 = sphi %s17651_s0, %s20296_s0  }
  0x79   : > { %s20184_s13 = sld [smem:[#allocation66_spill]]  ;;  %s20186_s9 = sld [smem:[#allocation76_spill]] }
  0x7a   : > { %s20187_s8 = sld [smem:[#allocation78_spill]]  ;;  %s20188_s6 = sld [smem:[#allocation68_spill]] }
  0x7b   : > { %s20189_s4 = sld [smem:[#allocation64_spill]]  ;;  %20191 = sst [smem:[#allocation94_spill]] %s17317_s23 }
  0x7c   : > { %s20190_s25 = sld [smem:[#allocation56_spill]]  ;;  %s17670_s28 = sadd.s32 4294967295, %s17321_s26  }
  0x7d   : > { %20192 = sst [smem:[#allocation95_spill]] %s17670_s28  ;;  %s17673_s1 = sadd.s32 1, %s17321_s26  }
  0x7e   : > { %20193 = sst [smem:[#allocation96_spill]] %s17673_s1  ;;  %s232_s2 = ssub.s32 %s17321_s26, %s17673_s1 }
  0x7f   : > { %s235_s7 = sadd.s32 1, %s17317_s23  ;;  %p233_p0 = scmp.eq.s32.totalorder %s232_s2, 0 }
  0x80   : > { %p242_p1 = scmp.ne.s32.totalorder %s17317_s23, %s17313_s22  ;;  %p243_p2 = scmp.eq.s32.totalorder %s17321_s26, 0 }
  0x81   : > { %p248_p3 = scmp.ne.s32.totalorder %s17313_s22, %s17309_s0  ;;  %p249_p5 = scmp.eq.s32.totalorder %s17670_s28, 0 }
  0x82   : > { %s17683_s10 = scalar_select %p233_p0, %s17317_s23, %s235_s7  }
  0x83   : > { %p17685_p4 = por %p243_p2, %p242_p1  ;;  %p17690_p6 = por %p249_p5, %p248_p3 }
  0x84   : > { %20194 = sst [smem:[#allocation97_spill]] %s17683_s10  ;;  %p14410_p7 = scmp.ge.s32.totalorder %s17321_s26, 2 }
  0x85   : > { %s20196_s15 = scalar_select %p17690_p6, 1, 0 }
  0x86   : > { %1398 = sbr.rel (%p14410_p7) target bundleno = 746 (0x2ea), region = 32  ;;  %s17696_s16 = sand.u32 (!%p14410_p7), 1, %s17317_s23  }
  0x87   : > { %20197 = sst [smem:[#allocation98_spill]] %s20196_s15  ;;  %s17699_s18 = sshll.u32 (!%p14410_p7), %s17321_s26, 5 }
  0x88   : > { %s17702_s0 = sshll.u32 (!%p14410_p7), %s17696_s16, 1  ;;  %s17705_s2 = sand.u32 (!%p14410_p7), 1, %s17321_s26  }
  0x89   : > { %s17709_s7 = scalar_lea.hbm (!%p14410_p7), %s20190_s25, %s17699_s18  ;;  %s1427_s10 = scalar_lea.vmem (!%p14410_p7), [#allocation4], %s17702_s0 }
  0x8a   : > { %s1434_s1 = sshll.u32 (!%p14410_p7), %s1427_s10, 4  ;;  %s16567_s5 = scalar_lea.hbm (!%p14410_p7), %s17709_s7, 32  ;;  %s17712_s1 = int_to_ptr.vmem [resolvable:$true] %s1434_s1 }
  0x8b   : > { %p16568_p8 = scmp.ne.s32.totalorder (!%p14410_p7), %s17709_s7, %s16567_s5  ;;  %s16571_s3 = scalar_lea.hbm (!%p14410_p7), %s20190_s25, 64 }
  0x8c   : > { %p16572_p11 = scmp.lt.u32.totalorder (!%p14410_p7), %s17709_s7, %s20190_s25  ;;  %p16573_p12 = scmp.lt.u32.totalorder (!%p14410_p7), %s16571_s3, %s16567_s5 }
  0x8d   : > { %p16569_p9 = pnand %p16568_p8, %p17685_p4  ;;  %p16575_p0 = scmp.lt.u32.totalorder %s16567_s5, %s17709_s7 }
  0x8e   : > { %p16574_p13 = por %p16573_p12, %p16572_p11 }
  0x8f   : > { %p16570_p10 = pneg %p16569_p9 }
  0x90   : > { %p16576_p1 = por %p16575_p0, %p16574_p13 }
  0x92   : > { %p16577_p2 = pnand %p16576_p1, %p16570_p10 }
  0x94   : > { %16580 = shalt.err (!%p16577_p2)
}
  0x95   : > { %s16581_s10 = scalar_lea.vmem %s17712_s1, 32  ;;  %s17370_s23 = smov [#allocation4]  }
  0x96   : > { %p16582_p3 = scmp.ne.s32.totalorder %s17712_s1, %s16581_s10  ;;  %s16585_s27 = sshll.u32 %s17370_s23, 4  ;;  %s16586_s27 = int_to_ptr.vmem [resolvable:$false] %s16585_s27 }
  0x97   : > { %s16587_s17 = scalar_lea.vmem %s16586_s27, 64  ;;  %p16588_p8 = scmp.lt.s32.totalorder %s17712_s1, %s16586_s27 }
  0x98   : > { %p16583_p5 = pnand %p16582_p3, %p17685_p4  ;;  %p16589_p9 = scmp.lt.s32.totalorder %s16587_s17, %s16581_s10 }
  0x9a   : > { %p16584_p7 = pneg %p16583_p5  ;;  %p16590_p11 = por %p16589_p9, %p16588_p8 }
  0x9c   : > { %p16591_p12 = pnand %p16590_p11, %p16584_p7 }
  0x9e   : > { %16594 = shalt.err (!%p16591_p12)
}
  0x9f   : > { %s20099_s5 = smov 16   ;;  %s20101_s3 = smov 1  }
  0xa0   : > { %s20198_s17 = scalar_lea.sflag [#allocation5], %s17705_s2  ;;  %s17739_s27 = scalar_lea.hbm %s17469_s24, %s17699_s18 }
  0xa1   : > { %16025 = dma.hbm_to_vmem [thread:$0]  (%p17685_p4), %s17709_s7, 32, %s17712_s1, %s20198_s17, %s20099_s5, %s20099_s5, %s20101_s3  }
  0xa2   : > { %s1501_s23 = scalar_lea.vmem [#allocation7], %s17702_s0  ;;  %s20087_s25 = scalar_lea.sflag [#allocation8], %s17705_s2 }
  0xa3   : > { %s1508_s10 = sshll.u32 %s1501_s23, 4  ;;  %s16595_s28 = scalar_lea.hbm %s17739_s27, 32  ;;  %s17742_s10 = int_to_ptr.vmem [resolvable:$true] %s1508_s10 }
  0xa4   : > { %p16596_p10 = scmp.ne.s32.totalorder %s17739_s27, %s16595_s28  ;;  %s16599_s15 = scalar_lea.hbm %s17469_s24, 64 }
  0xa5   : > { %p16600_p1 = scmp.lt.u32.totalorder %s17739_s27, %s17469_s24  ;;  %p16601_p2 = scmp.lt.u32.totalorder %s16599_s15, %s16595_s28 }
  0xa6   : > { %p16597_p13 = pnand %p16596_p10, %p17685_p4  ;;  %p16603_p5 = scmp.lt.u32.totalorder %s16595_s28, %s17739_s27 }
  0xa7   : > { %p16602_p3 = por %p16601_p2, %p16600_p1 }
  0xa8   : > { %p16598_p0 = pneg %p16597_p13 }
  0xa9   : > { %p16604_p7 = por %p16603_p5, %p16602_p3 }
  0xab   : > { %p16605_p8 = pnand %p16604_p7, %p16598_p0 }
  0xad   : > { %16608 = shalt.err (!%p16605_p8)
}
  0xae   : > { %s16609_s1 = scalar_lea.vmem %s17742_s10, 32  ;;  %s17373_s7 = smov [#allocation7]  }
  0xaf   : > { %p16610_p9 = scmp.ne.s32.totalorder %s17742_s10, %s16609_s1  ;;  %s16613_s17 = sshll.u32 %s17373_s7, 4  ;;  %s16614_s17 = int_to_ptr.vmem [resolvable:$false] %s16613_s17 }
  0xb0   : > { %s16615_s23 = scalar_lea.vmem %s16614_s17, 64  ;;  %p16616_p10 = scmp.lt.s32.totalorder %s17742_s10, %s16614_s17 }
  0xb1   : > { %p16611_p11 = pnand %p16610_p9, %p17685_p4  ;;  %p16617_p13 = scmp.lt.s32.totalorder %s16615_s23, %s16609_s1 }
  0xb3   : > { %p16612_p12 = pneg %p16611_p11  ;;  %p16618_p1 = por %p16617_p13, %p16616_p10 }
  0xb5   : > { %p16619_p2 = pnand %p16618_p1, %p16612_p12 }
  0xb7   : > { %16622 = shalt.err (!%p16619_p2)
}
  0xb8   : > { %16027 = dma.hbm_to_vmem [thread:$0]  (%p17685_p4), %s17739_s27, 32, %s17742_s10, %s20087_s25, %s20099_s5, %s20099_s5, %s20101_s3  }
  0xb9   : > { %s17769_s28 = scalar_lea.hbm %s17489_s20, %s17699_s18  ;;  %s1559_s15 = scalar_lea.vmem [#allocation10], %s17702_s0 }
  0xba   : > { %s1566_s1 = sshll.u32 %s1559_s15, 4  ;;  %s20088_s7 = scalar_lea.sflag [#allocation11], %s17705_s2  ;;  %s17772_s1 = int_to_ptr.vmem [resolvable:$true] %s1566_s1 }
  0xbb   : > { %s16623_s17 = scalar_lea.hbm %s17769_s28, 32  ;;  %s16627_s23 = scalar_lea.hbm %s17489_s20, 64 }
  0xbc   : > { %p16624_p0 = scmp.ne.s32.totalorder %s17769_s28, %s16623_s17  ;;  %p16628_p7 = scmp.lt.u32.totalorder %s17769_s28, %s17489_s20 }
  0xbd   : > { %p16629_p8 = scmp.lt.u32.totalorder %s16627_s23, %s16623_s17  ;;  %p16631_p11 = scmp.lt.u32.totalorder %s16623_s17, %s17769_s28 }
  0xbe   : > { %p16625_p3 = pnand %p16624_p0, %p17685_p4 }
  0xbf   : > { %p16630_p9 = por %p16629_p8, %p16628_p7 }
  0xc0   : > { %p16626_p5 = pneg %p16625_p3 }
  0xc1   : > { %p16632_p12 = por %p16631_p11, %p16630_p9 }
  0xc3   : > { %p16633_p10 = pnand %p16632_p12, %p16626_p5 }
  0xc5   : > { %16636 = shalt.err (!%p16633_p10)
}
  0xc6   : > { %s16637_s27 = scalar_lea.vmem %s17772_s1, 32  ;;  %s17374_s10 = smov [#allocation10]  }
  0xc7   : > { %p16638_p13 = scmp.ne.s32.totalorder %s17772_s1, %s16637_s27  ;;  %s16641_s15 = sshll.u32 %s17374_s10, 4  ;;  %s16642_s15 = int_to_ptr.vmem [resolvable:$false] %s16641_s15 }
  0xc8   : > { %s16643_s25 = scalar_lea.vmem %s16642_s15, 64  ;;  %p16644_p0 = scmp.lt.s32.totalorder %s17772_s1, %s16642_s15 }
  0xc9   : > { %p16639_p1 = pnand %p16638_p13, %p17685_p4  ;;  %p16645_p3 = scmp.lt.s32.totalorder %s16643_s25, %s16637_s27 }
  0xcb   : > { %p16640_p2 = pneg %p16639_p1  ;;  %p16646_p7 = por %p16645_p3, %p16644_p0 }
  0xcd   : > { %p16647_p8 = pnand %p16646_p7, %p16640_p2 }
  0xcf   : > { %16650 = shalt.err (!%p16647_p8)
}
  0xd0   : > { %16029 = dma.hbm_to_vmem [thread:$0]  (%p17685_p4), %s17769_s28, 32, %s17772_s1, %s20088_s7, %s20099_s5, %s20099_s5, %s20101_s3  }
  0xd1   : > { %s17799_s25 = scalar_lea.hbm %s20189_s4, %s17699_s18  ;;  %s1601_s17 = scalar_lea.vmem [#allocation13], %s17702_s0 }
  0xd2   : > { %s1608_s23 = sshll.u32 %s1601_s17, 4  ;;  %s20089_s27 = scalar_lea.sflag [#allocation14], %s17705_s2  ;;  %s17802_s23 = int_to_ptr.vmem [resolvable:$true] %s1608_s23 }
  0xd3   : > { %s16651_s10 = scalar_lea.hbm %s17799_s25, 32  ;;  %s16655_s15 = scalar_lea.hbm %s20189_s4, 64 }
  0xd4   : > { %p16652_p5 = scmp.ne.s32.totalorder %s17799_s25, %s16651_s10  ;;  %p16656_p12 = scmp.lt.u32.totalorder %s17799_s25, %s20189_s4 }
  0xd5   : > { %p16657_p10 = scmp.lt.u32.totalorder %s16655_s15, %s16651_s10  ;;  %p16659_p1 = scmp.lt.u32.totalorder %s16651_s10, %s17799_s25 }
  0xd6   : > { %p16653_p9 = pnand %p16652_p5, %p17685_p4 }
  0xd7   : > { %p16658_p13 = por %p16657_p10, %p16656_p12 }
  0xd8   : > { %p16654_p11 = pneg %p16653_p9 }
  0xd9   : > { %p16660_p2 = por %p16659_p1, %p16658_p13 }
  0xdb   : > { %p16661_p0 = pnand %p16660_p2, %p16654_p11 }
  0xdd   : > { %16664 = shalt.err (!%p16661_p0)
}
  0xde   : > { %s16665_s28 = scalar_lea.vmem %s17802_s23, 32  ;;  %s17375_s1 = smov [#allocation13]  }
  0xdf   : > { %p16666_p3 = scmp.ne.s32.totalorder %s17802_s23, %s16665_s28  ;;  %s16669_s17 = sshll.u32 %s17375_s1, 4  ;;  %s16670_s17 = int_to_ptr.vmem [resolvable:$false] %s16669_s17 }
  0xe0   : > { %s16671_s7 = scalar_lea.vmem %s16670_s17, 64  ;;  %p16672_p5 = scmp.lt.s32.totalorder %s17802_s23, %s16670_s17 }
  0xe1   : > { %p16667_p7 = pnand %p16666_p3, %p17685_p4  ;;  %p16673_p9 = scmp.lt.s32.totalorder %s16671_s7, %s16665_s28 }
  0xe3   : > { %p16668_p8 = pneg %p16667_p7  ;;  %p16674_p12 = por %p16673_p9, %p16672_p5 }
  0xe5   : > { %p16675_p10 = pnand %p16674_p12, %p16668_p8 }
  0xe7   : > { %16678 = shalt.err (!%p16675_p10)
}
  0xe8   : > { %16031 = dma.hbm_to_vmem [thread:$0]  (%p17685_p4), %s17799_s25, 32, %s17802_s23, %s20089_s27, %s20099_s5, %s20099_s5, %s20101_s3  }
  0xe9   : > { %s17829_s7 = scalar_lea.hbm %s20184_s13, %s17699_s18  ;;  %s1643_s10 = scalar_lea.vmem [#allocation16], %s17702_s0 }
  0xea   : > { %s1650_s15 = sshll.u32 %s1643_s10, 4  ;;  %s20090_s28 = scalar_lea.sflag [#allocation17], %s17705_s2  ;;  %s17832_s15 = int_to_ptr.vmem [resolvable:$true] %s1650_s15 }
  0xeb   : > { %s16679_s1 = scalar_lea.hbm %s17829_s7, 32  ;;  %s16683_s17 = scalar_lea.hbm %s20184_s13, 64 }
  0xec   : > { %p16680_p11 = scmp.ne.s32.totalorder %s17829_s7, %s16679_s1  ;;  %p16684_p2 = scmp.lt.u32.totalorder %s17829_s7, %s20184_s13 }
  0xed   : > { %p16685_p0 = scmp.lt.u32.totalorder %s16683_s17, %s16679_s1  ;;  %p16687_p7 = scmp.lt.u32.totalorder %s16679_s1, %s17829_s7 }
  0xee   : > { %p16681_p13 = pnand %p16680_p11, %p17685_p4 }
  0xef   : > { %p16686_p3 = por %p16685_p0, %p16684_p2 }
  0xf0   : > { %p16682_p1 = pneg %p16681_p13 }
  0xf1   : > { %p16688_p8 = por %p16687_p7, %p16686_p3 }
  0xf3   : > { %p16689_p5 = pnand %p16688_p8, %p16682_p1 }
  0xf5   : > { %16692 = shalt.err (!%p16689_p5)
}
  0xf6   : > { %s16693_s25 = scalar_lea.vmem %s17832_s15, 32  ;;  %s17376_s23 = smov [#allocation16]  }
  0xf7   : > { %p16694_p9 = scmp.ne.s32.totalorder %s17832_s15, %s16693_s25  ;;  %s16697_s10 = sshll.u32 %s17376_s23, 4  ;;  %s16698_s10 = int_to_ptr.vmem [resolvable:$false] %s16697_s10 }
  0xf8   : > { %s16699_s27 = scalar_lea.vmem %s16698_s10, 64  ;;  %p16700_p11 = scmp.lt.s32.totalorder %s17832_s15, %s16698_s10 }
  0xf9   : > { %p16695_p12 = pnand %p16694_p9, %p17685_p4  ;;  %p16701_p13 = scmp.lt.s32.totalorder %s16699_s27, %s16693_s25 }
  0xfb   : > { %p16696_p10 = pneg %p16695_p12  ;;  %p16702_p2 = por %p16701_p13, %p16700_p11 }
  0xfd   : > { %p16703_p0 = pnand %p16702_p2, %p16696_p10 }
  0xff   : > { %16706 = shalt.err (!%p16703_p0)
}
 0x100   : > { %16033 = dma.hbm_to_vmem [thread:$0]  (%p17685_p4), %s17829_s7, 32, %s17832_s15, %s20090_s28, %s20099_s5, %s20099_s5, %s20101_s3  }
 0x101   : > { %s17859_s27 = scalar_lea.hbm %s20188_s6, %s17699_s18  ;;  %s1685_s1 = scalar_lea.vmem [#allocation19], %s17702_s0 }
 0x102   : > { %s1692_s17 = sshll.u32 %s1685_s1, 4  ;;  %s20091_s25 = scalar_lea.sflag [#allocation20], %s17705_s2  ;;  %s17862_s17 = int_to_ptr.vmem [resolvable:$true] %s1692_s17 }
 0x103   : > { %s16707_s23 = scalar_lea.hbm %s17859_s27, 32  ;;  %s16711_s10 = scalar_lea.hbm %s20188_s6, 64 }
 0x104   : > { %p16708_p1 = scmp.ne.s32.totalorder %s17859_s27, %s16707_s23  ;;  %p16712_p8 = scmp.lt.u32.totalorder %s17859_s27, %s20188_s6 }
 0x105   : > { %p16713_p5 = scmp.lt.u32.totalorder %s16711_s10, %s16707_s23  ;;  %p16715_p12 = scmp.lt.u32.totalorder %s16707_s23, %s17859_s27 }
 0x106   : > { %p16709_p3 = pnand %p16708_p1, %p17685_p4 }
 0x107   : > { %p16714_p9 = por %p16713_p5, %p16712_p8 }
 0x108   : > { %p16710_p7 = pneg %p16709_p3 }
 0x109   : > { %p16716_p10 = por %p16715_p12, %p16714_p9 }
 0x10b   : > { %p16717_p11 = pnand %p16716_p10, %p16710_p7 }
 0x10d   : > { %16720 = shalt.err (!%p16717_p11)
}
 0x10e   : > { %s16721_s7 = scalar_lea.vmem %s17862_s17, 32  ;;  %s17377_s15 = smov [#allocation19]  }
 0x10f   : > { %p16722_p13 = scmp.ne.s32.totalorder %s17862_s17, %s16721_s7  ;;  %s16725_s1 = sshll.u32 %s17377_s15, 4  ;;  %s16726_s1 = int_to_ptr.vmem [resolvable:$false] %s16725_s1 }
 0x110   : > { %s16727_s28 = scalar_lea.vmem %s16726_s1, 64  ;;  %p16728_p1 = scmp.lt.s32.totalorder %s17862_s17, %s16726_s1 }
 0x111   : > { %p16723_p2 = pnand %p16722_p13, %p17685_p4  ;;  %p16729_p3 = scmp.lt.s32.totalorder %s16727_s28, %s16721_s7 }
 0x113   : > { %p16724_p0 = pneg %p16723_p2  ;;  %p16730_p8 = por %p16729_p3, %p16728_p1 }
 0x115   : > { %p16731_p5 = pnand %p16730_p8, %p16724_p0 }
 0x117   : > { %16734 = shalt.err (!%p16731_p5)
}
 0x118   : > { %16035 = dma.hbm_to_vmem [thread:$0]  (%p17685_p4), %s17859_s27, 32, %s17862_s17, %s20091_s25, %s20099_s5, %s20099_s5, %s20101_s3  }
 0x119   : > { %s17889_s28 = scalar_lea.hbm %s17529_s19, %s17699_s18  ;;  %s1727_s23 = scalar_lea.vmem [#allocation22], %s17702_s0 }
 0x11a   : > { %s1734_s10 = sshll.u32 %s1727_s23, 4  ;;  %s20096_s7 = scalar_lea.sflag [#allocation23], %s17705_s2  ;;  %s17892_s10 = int_to_ptr.vmem [resolvable:$true] %s1734_s10 }
 0x11b   : > { %s16735_s15 = scalar_lea.hbm %s17889_s28, 32  ;;  %s16739_s1 = scalar_lea.hbm %s17529_s19, 64 }
 0x11c   : > { %p16736_p7 = scmp.ne.s32.totalorder %s17889_s28, %s16735_s15  ;;  %p16740_p10 = scmp.lt.u32.totalorder %s17889_s28, %s17529_s19 }
 0x11d   : > { %p16741_p11 = scmp.lt.u32.totalorder %s16739_s1, %s16735_s15  ;;  %p16743_p2 = scmp.lt.u32.totalorder %s16735_s15, %s17889_s28 }
 0x11e   : > { %p16737_p9 = pnand %p16736_p7, %p17685_p4 }
 0x11f   : > { %p16742_p13 = por %p16741_p11, %p16740_p10 }
 0x120   : > { %p16738_p12 = pneg %p16737_p9 }
 0x121   : > { %p16744_p0 = por %p16743_p2, %p16742_p13 }
 0x123   : > { %p16745_p1 = pnand %p16744_p0, %p16738_p12 }
 0x125   : > { %16748 = shalt.err (!%p16745_p1)
}
 0x126   : > { %s16749_s27 = scalar_lea.vmem %s17892_s10, 32  ;;  %s17378_s17 = smov [#allocation22]  }
 0x127   : > { %p16750_p3 = scmp.ne.s32.totalorder %s17892_s10, %s16749_s27  ;;  %s16753_s23 = sshll.u32 %s17378_s17, 4  ;;  %s16754_s23 = int_to_ptr.vmem [resolvable:$false] %s16753_s23 }
 0x128   : > { %s16755_s25 = scalar_lea.vmem %s16754_s23, 64  ;;  %p16756_p7 = scmp.lt.s32.totalorder %s17892_s10, %s16754_s23 }
 0x129   : > { %p16751_p8 = pnand %p16750_p3, %p17685_p4  ;;  %p16757_p9 = scmp.lt.s32.totalorder %s16755_s25, %s16749_s27 }
 0x12b   : > { %p16752_p5 = pneg %p16751_p8  ;;  %p16758_p10 = por %p16757_p9, %p16756_p7 }
 0x12d   : > { %p16759_p11 = pnand %p16758_p10, %p16752_p5 }
 0x12f   : > { %16762 = shalt.err (!%p16759_p11)
}
 0x130   : > { %16037 = dma.hbm_to_vmem [thread:$0]  (%p17685_p4), %s17889_s28, 32, %s17892_s10, %s20096_s7, %s20099_s5, %s20099_s5, %s20101_s3  }
 0x131   : > { %s20093_s25 = sshll.u32 %s17321_s26, 4  ;;  %s1792_s1 = scalar_lea.vmem [#allocation25], %s17696_s16 }
 0x132   : > { %s17921_s15 = scalar_lea.hbm %s20183_s14, %s20093_s25  ;;  %s1799_s27 = sshll.u32 %s1792_s1, 4  ;;  %s1800_s27 = int_to_ptr.vmem [resolvable:$true] %s1799_s27 }
 0x133   : > { %s20095_s17 = scalar_lea.sflag [#allocation26], %s17705_s2  ;;  %s16763_s23 = scalar_lea.hbm %s17921_s15, 16 }
 0x134   : > { %p16764_p12 = scmp.ne.s32.totalorder %s17921_s15, %s16763_s23  ;;  %s16767_s4 = scalar_lea.hbm %s20183_s14, 32 }
 0x135   : > { %p16768_p0 = scmp.lt.u32.totalorder %s17921_s15, %s20183_s14  ;;  %p16769_p1 = scmp.lt.u32.totalorder %s16767_s4, %s16763_s23 }
 0x136   : > { %p16765_p13 = pnand %p16764_p12, %p17685_p4  ;;  %p16771_p8 = scmp.lt.u32.totalorder %s16763_s23, %s17921_s15 }
 0x137   : > { %p16770_p3 = por %p16769_p1, %p16768_p0 }
 0x138   : > { %p16766_p2 = pneg %p16765_p13 }
 0x139   : > { %p16772_p5 = por %p16771_p8, %p16770_p3 }
 0x13b   : > { %p16773_p7 = pnand %p16772_p5, %p16766_p2 }
 0x13d   : > { %16776 = shalt.err (!%p16773_p7)
}
 0x13e   : > { %s16777_s28 = scalar_lea.vmem %s1800_s27, 16  ;;  %s17379_s10 = smov [#allocation25]  }
 0x13f   : > { %p16778_p9 = scmp.ne.s32.totalorder %s1800_s27, %s16777_s28  ;;  %s16781_s1 = sshll.u32 %s17379_s10, 4  ;;  %s16782_s1 = int_to_ptr.vmem [resolvable:$false] %s16781_s1 }
 0x140   : > { %s16783_s25 = scalar_lea.vmem %s16782_s1, 32  ;;  %p16784_p12 = scmp.lt.s32.totalorder %s1800_s27, %s16782_s1 }
 0x141   : > { %p16779_p10 = pnand %p16778_p9, %p17685_p4  ;;  %p16785_p13 = scmp.lt.s32.totalorder %s16783_s25, %s16777_s28 }
 0x143   : > { %p16780_p11 = pneg %p16779_p10  ;;  %p16786_p6 = por %p16785_p13, %p16784_p12 }
 0x145   : > { %p16787_p0 = pnand %p16786_p6, %p16780_p11 }
 0x147   : > { %16790 = shalt.err (!%p16787_p0)
}
 0x148   : > { %16039 = dma.hbm_to_vmem [thread:$0]  (%p17685_p4), %s17921_s15, 16, %s1800_s27, %s20095_s17  }
 0x149   : > { %s17942_s4 = scalar_lea.hbm %s20186_s9, %s17699_s18  ;;  %s1827_s25 = scalar_lea.vmem [#allocation28], %s17702_s0 }
 0x14a   : > { %s1834_s23 = sshll.u32 %s1827_s25, 4  ;;  %s20097_s28 = scalar_lea.sflag [#allocation29], %s17705_s2  ;;  %s17945_s23 = int_to_ptr.vmem [resolvable:$true] %s1834_s23 }
 0x14b   : > { %s16791_s10 = scalar_lea.hbm %s17942_s4, 32  ;;  %s16795_s1 = scalar_lea.hbm %s20186_s9, 64 }
 0x14c   : > { %p16792_p6 = scmp.ne.s32.totalorder %s17942_s4, %s16791_s10  ;;  %p16796_p3 = scmp.lt.u32.totalorder %s17942_s4, %s20186_s9 }
 0x14d   : > { %p16797_p8 = scmp.lt.u32.totalorder %s16795_s1, %s16791_s10  ;;  %p16799_p7 = scmp.lt.u32.totalorder %s16791_s10, %s17942_s4 }
 0x14e   : > { %p16793_p2 = pnand %p16792_p6, %p17685_p4 }
 0x14f   : > { %p16798_p5 = por %p16797_p8, %p16796_p3 }
 0x150   : > { %p16794_p1 = pneg %p16793_p2 }
 0x151   : > { %p16800_p9 = por %p16799_p7, %p16798_p5 }
 0x153   : > { %p16801_p10 = pnand %p16800_p9, %p16794_p1 }
 0x155   : > { %16804 = shalt.err (!%p16801_p10)
}
 0x156   : > { %s16805_s15 = scalar_lea.vmem %s17945_s23, 32  ;;  %s17380_s27 = smov [#allocation28]  }
 0x157   : > { %p16806_p11 = scmp.ne.s32.totalorder %s17945_s23, %s16805_s15  ;;  %s16809_s25 = sshll.u32 %s17380_s27, 4  ;;  %s16810_s25 = int_to_ptr.vmem [resolvable:$false] %s16809_s25 }
 0x158   : > { %s16811_s17 = scalar_lea.vmem %s16810_s25, 64  ;;  %p16812_p0 = scmp.lt.s32.totalorder %s17945_s23, %s16810_s25 }
 0x159   : > { %p16807_p12 = pnand %p16806_p11, %p17685_p4  ;;  %p16813_p6 = scmp.lt.s32.totalorder %s16811_s17, %s16805_s15 }
 0x15b   : > { %p16808_p13 = pneg %p16807_p12  ;;  %p16814_p2 = por %p16813_p6, %p16812_p0 }
 0x15d   : > { %p16815_p3 = pnand %p16814_p2, %p16808_p13 }
 0x15f   : > { %16818 = shalt.err (!%p16815_p3)
}
 0x160   : > { %16041 = dma.hbm_to_vmem [thread:$0]  (%p17685_p4), %s17942_s4, 32, %s17945_s23, %s20097_s28, %s20099_s5, %s20099_s5, %s20101_s3  }
 0x161   : > { %s17972_s17 = scalar_lea.hbm %s20187_s8, %s17699_s18  ;;  %s1869_s10 = scalar_lea.vmem [#allocation31], %s17702_s0 }
 0x162   : > { %s1876_s1 = sshll.u32 %s1869_s10, 4  ;;  %s17978_s15 = sshll.u32 %s17696_s16, 5  ;;  %s17975_s1 = int_to_ptr.vmem [resolvable:$true] %s1876_s1 }
 0x163   : > { %s20098_s27 = scalar_lea.sflag [#allocation32], %s17705_s2  ;;  %s16819_s25 = scalar_lea.hbm %s17972_s17, 32 }
 0x164   : > { %p16820_p1 = scmp.ne.s32.totalorder %s17972_s17, %s16819_s25  ;;  %s16823_s7 = scalar_lea.hbm %s20187_s8, 64 }
 0x165   : > { %p16824_p7 = scmp.lt.u32.totalorder %s17972_s17, %s20187_s8  ;;  %p16825_p9 = scmp.lt.u32.totalorder %s16823_s7, %s16819_s25 }
 0x166   : > { %p16821_p8 = pnand %p16820_p1, %p17685_p4  ;;  %p16827_p11 = scmp.lt.u32.totalorder %s16819_s25, %s17972_s17 }
 0x167   : > { %p16826_p10 = por %p16825_p9, %p16824_p7 }
 0x168   : > { %p16822_p5 = pneg %p16821_p8 }
 0x169   : > { %p16828_p12 = por %p16827_p11, %p16826_p10 }
 0x16b   : > { %p16829_p13 = pnand %p16828_p12, %p16822_p5 }
 0x16d   : > { %16832 = shalt.err (!%p16829_p13)
}
 0x16e   : > { %s16833_s4 = scalar_lea.vmem %s17975_s1, 32  ;;  %s17381_s23 = smov [#allocation31]  }
 0x16f   : > { %p16834_p0 = scmp.ne.s32.totalorder %s17975_s1, %s16833_s4  ;;  %s16837_s10 = sshll.u32 %s17381_s23, 4  ;;  %s16838_s10 = int_to_ptr.vmem [resolvable:$false] %s16837_s10 }
 0x170   : > { %s16839_s28 = scalar_lea.vmem %s16838_s10, 64  ;;  %p16840_p3 = scmp.lt.s32.totalorder %s17975_s1, %s16838_s10 }
 0x171   : > { %p16835_p6 = pnand %p16834_p0, %p17685_p4  ;;  %p16841_p1 = scmp.lt.s32.totalorder %s16839_s28, %s16833_s4 }
 0x173   : > { %p16836_p2 = pneg %p16835_p6  ;;  %p16842_p8 = por %p16841_p1, %p16840_p3 }
 0x175   : > { %p16843_p7 = pnand %p16842_p8, %p16836_p2 }
 0x177   : > { %16846 = shalt.err (!%p16843_p7)
}
 0x178   : > { %16043 = dma.hbm_to_vmem [thread:$0]  (%p17685_p4), %s17972_s17, 32, %s17975_s1, %s20098_s27, %s20099_s5, %s20099_s5, %s20101_s3  }
 0x179   : > { %s18004_s7 = sshll.u32 %s17321_s26, 9  ;;  %s1911_s25 = scalar_lea.vmem [#allocation34], %s17978_s15 }
 0x17a   : > { %s18008_s28 = scalar_lea.hbm %s20185_s12, %s18004_s7  ;;  %s1918_s4 = sshll.u32 %s1911_s25, 4  ;;  %s18011_s4 = int_to_ptr.vmem [resolvable:$true] %s1918_s4 }
 0x17b   : > { %s20104_s23 = scalar_lea.sflag [#allocation35], %s17705_s2  ;;  %s16847_s10 = scalar_lea.hbm %s18008_s28, 512 }
 0x17c   : > { %p16848_p5 = scmp.ne.s32.totalorder %s18008_s28, %s16847_s10  ;;  %s16851_s17 = scalar_lea.hbm %s20185_s12, 1024 }
 0x17d   : > { %p16852_p11 = scmp.lt.u32.totalorder %s18008_s28, %s20185_s12  ;;  %p16853_p12 = scmp.lt.u32.totalorder %s16851_s17, %s16847_s10 }
 0x17e   : > { %p16849_p9 = pnand %p16848_p5, %p17685_p4  ;;  %p16855_p0 = scmp.lt.u32.totalorder %s16847_s10, %s18008_s28 }
 0x17f   : > { %p16854_p13 = por %p16853_p12, %p16852_p11 }
 0x180   : > { %p16850_p10 = pneg %p16849_p9 }
 0x181   : > { %p16856_p6 = por %p16855_p0, %p16854_p13 }
 0x183   : > { %p16857_p2 = pnand %p16856_p6, %p16850_p10 }
 0x185   : > { %16860 = shalt.err (!%p16857_p2)
}
 0x186   : > { %s16861_s1 = scalar_lea.vmem %s18011_s4, 512  ;;  %s17382_s25 = smov [#allocation34]  }
 0x187   : > { %p16862_p3 = scmp.ne.s32.totalorder %s18011_s4, %s16861_s1  ;;  %s16865_s27 = sshll.u32 %s17382_s25, 4  ;;  %s16866_s27 = int_to_ptr.vmem [resolvable:$false] %s16865_s27 }
 0x188   : > { %s16867_s5 = scalar_lea.vmem %s16866_s27, 1024  ;;  %p16868_p7 = scmp.lt.s32.totalorder %s18011_s4, %s16866_s27 }
 0x189   : > { %p16863_p1 = pnand %p16862_p3, %p17685_p4  ;;  %p16869_p5 = scmp.lt.s32.totalorder %s16867_s5, %s16861_s1 }
 0x18b   : > { %p16864_p8 = pneg %p16863_p1  ;;  %p16870_p9 = por %p16869_p5, %p16868_p7 }
 0x18d   : > { %p16871_p11 = pnand %p16870_p9, %p16864_p8 }
 0x18f   : > { %16874 = shalt.err (!%p16871_p11)
}
 0x190   : > { %s20105_s10 = smov 64   ;;  %s20107_s17 = smov 4  }
 0x191   : > { %16045 = dma.hbm_to_vmem [thread:$0]  (%p17685_p4), %s18008_s28, 512, %s18011_s4, %s20104_s23, %s20105_s10, %s20105_s10, %s20107_s17  }
 0x192   : > { %s18038_s5 = scalar_lea.hbm %s17434_s21, %s17699_s18  ;;  %s1406_s27 = scalar_lea.vmem [#allocation2], %s17702_s0 }
 0x193   : > { %s1413_s1 = sshll.u32 %s1406_s27, 4  ;;  %s1403_s25 = scalar_lea.sflag [#allocation3], %s17696_s16  ;;  %s18041_s1 = int_to_ptr.vmem [resolvable:$true] %s1413_s1 }
 0x194   : > { %s16875_s3 = scalar_lea.hbm %s18038_s5, 32  ;;  %s16879_s6 = scalar_lea.hbm %s17434_s21, 64 }
 0x195   : > { %p16876_p10 = scmp.ne.s32.totalorder %s18038_s5, %s16875_s3  ;;  %p16880_p0 = scmp.lt.u32.totalorder %s18038_s5, %s17434_s21 }
 0x196   : > { %p16881_p6 = scmp.lt.u32.totalorder %s16879_s6, %s16875_s3  ;;  %p16883_p3 = scmp.lt.u32.totalorder %s16875_s3, %s18038_s5 }
 0x197   : > { %p16877_p12 = pnand %p16876_p10, %p17685_p4 }
 0x198   : > { %p16882_p2 = por %p16881_p6, %p16880_p0 }
 0x199   : > { %p16878_p13 = pneg %p16877_p12 }
 0x19a   : > { %p16884_p1 = por %p16883_p3, %p16882_p2 }
 0x19c   : > { %p16885_p8 = pnand %p16884_p1, %p16878_p13 }
 0x19e   : > { %16888 = shalt.err (!%p16885_p8)
}
 0x19f   : > { %s16889_s28 = scalar_lea.vmem %s18041_s1, 32  ;;  %s17385_s4 = smov [#allocation2]  }
 0x1a0   : > { %p16890_p7 = scmp.ne.s32.totalorder %s18041_s1, %s16889_s28  ;;  %s16893_s27 = sshll.u32 %s17385_s4, 4  ;;  %s16894_s27 = int_to_ptr.vmem [resolvable:$false] %s16893_s27 }
 0x1a1   : > { %s16895_s23 = scalar_lea.vmem %s16894_s27, 64  ;;  %p16896_p11 = scmp.lt.s32.totalorder %s18041_s1, %s16894_s27 }
 0x1a2   : > { %p16891_p5 = pnand %p16890_p7, %p17685_p4  ;;  %p16897_p10 = scmp.lt.s32.totalorder %s16895_s23, %s16889_s28 }
 0x1a4   : > { %p16892_p9 = pneg %p16891_p5  ;;  %p16898_p12 = por %p16897_p10, %p16896_p11 }
 0x1a6   : > { %p16899_p0 = pnand %p16898_p12, %p16892_p9 }
 0x1a8   : > { %16902 = shalt.err (!%p16899_p0)
}
 0x1a9   : > { %s20199_s6 = smov 1   ;;  %s20200_s3 = smov 16  }
 0x1aa   : > { %16024 = dma.hbm_to_vmem [thread:$0]  (%p17685_p4), %s18038_s5, 32, %s18041_s1, %s1403_s25, %s20200_s3, %s20200_s3, %s20199_s6  }
 0x1ab   : > { %s18068_s23 = scalar_lea.hbm %s17444_s29, %s17699_s18  ;;  %s1448_s28 = scalar_lea.vmem [#allocation6], %s17702_s0 }
 0x1ac   : > { %s1455_s4 = sshll.u32 %s1448_s28, 4  ;;  %s16903_s27 = scalar_lea.hbm %s18068_s23, 32  ;;  %s18071_s4 = int_to_ptr.vmem [resolvable:$true] %s1455_s4 }
 0x1ad   : > { %p16904_p13 = scmp.ne.s32.totalorder %s18068_s23, %s16903_s27  ;;  %s16907_s10 = scalar_lea.hbm %s17444_s29, 64 }
 0x1ae   : > { %p16908_p3 = scmp.lt.u32.totalorder %s18068_s23, %s17444_s29  ;;  %p16909_p1 = scmp.lt.u32.totalorder %s16907_s10, %s16903_s27 }
 0x1af   : > { %p16905_p6 = pnand %p16904_p13, %p17685_p4  ;;  %p16911_p7 = scmp.lt.u32.totalorder %s16903_s27, %s18068_s23 }
 0x1b0   : > { %p16910_p8 = por %p16909_p1, %p16908_p3 }
 0x1b1   : > { %p16906_p2 = pneg %p16905_p6 }
 0x1b2   : > { %p16912_p5 = por %p16911_p7, %p16910_p8 }
 0x1b4   : > { %p16913_p9 = pnand %p16912_p5, %p16906_p2 }
 0x1b6   : > { %16916 = shalt.err (!%p16913_p9)
}
 0x1b7   : > { %s16917_s5 = scalar_lea.vmem %s18071_s4, 32  ;;  %s17386_s1 = smov [#allocation6]  }
 0x1b8   : > { %p16918_p11 = scmp.ne.s32.totalorder %s18071_s4, %s16917_s5  ;;  %s16921_s25 = sshll.u32 %s17386_s1, 4  ;;  %s16922_s25 = int_to_ptr.vmem [resolvable:$false] %s16921_s25 }
 0x1b9   : > { %s16923_s28 = scalar_lea.vmem %s16922_s25, 64  ;;  %p16924_p0 = scmp.lt.s32.totalorder %s18071_s4, %s16922_s25 }
 0x1ba   : > { %p16919_p10 = pnand %p16918_p11, %p17685_p4  ;;  %p16925_p13 = scmp.lt.s32.totalorder %s16923_s28, %s16917_s5 }
 0x1bc   : > { %p16920_p12 = pneg %p16919_p10  ;;  %p16926_p6 = por %p16925_p13, %p16924_p0 }
 0x1be   : > { %p16927_p3 = pnand %p16926_p6, %p16920_p12 }
 0x1c0   : > { %16930 = shalt.err (!%p16927_p3)
}
 0x1c1   : > { %s20201_s10 = scalar_lea.sflag [#allocation5], %s17705_s2  ;;  %s18097_s27 = scalar_lea.hbm %s17474_s30, %s17699_s18 }
 0x1c2   : > { %16026 = dma.hbm_to_vmem [thread:$0]  (%p17685_p4), %s18068_s23, 32, %s18071_s4, %s20201_s10, %s20200_s3, %s20200_s3, %s20199_s6  }
 0x1c3   : > { %s1522_s5 = scalar_lea.vmem [#allocation9], %s17702_s0  ;;  %s16931_s25 = scalar_lea.hbm %s18097_s27, 32 }
 0x1c4   : > { %s1529_s1 = sshll.u32 %s1522_s5, 4  ;;  %p16932_p2 = scmp.ne.s32.totalorder %s18097_s27, %s16931_s25  ;;  %s18100_s1 = int_to_ptr.vmem [resolvable:$true] %s1529_s1 }
 0x1c5   : > { %s16935_s28 = scalar_lea.hbm %s17474_s30, 64  ;;  %p16936_p7 = scmp.lt.u32.totalorder %s18097_s27, %s17474_s30 }
 0x1c6   : > { %p16933_p1 = pnand %p16932_p2, %p17685_p4  ;;  %p16937_p5 = scmp.lt.u32.totalorder %s16935_s28, %s16931_s25 }
 0x1c7   : > { %p16939_p11 = scmp.lt.u32.totalorder %s16931_s25, %s18097_s27 }
 0x1c8   : > { %p16934_p8 = pneg %p16933_p1  ;;  %p16938_p9 = por %p16937_p5, %p16936_p7 }
 0x1ca   : > { %p16940_p10 = por %p16939_p11, %p16938_p9 }
 0x1cc   : > { %p16941_p12 = pnand %p16940_p10, %p16934_p8 }
 0x1ce   : > { %16944 = shalt.err (!%p16941_p12)
}
 0x1cf   : > { %s16945_s23 = scalar_lea.vmem %s18100_s1, 32  ;;  %s17387_s4 = smov [#allocation9]  }
 0x1d0   : > { %p16946_p0 = scmp.ne.s32.totalorder %s18100_s1, %s16945_s23  ;;  %s16949_s10 = sshll.u32 %s17387_s4, 4  ;;  %s16950_s10 = int_to_ptr.vmem [resolvable:$false] %s16949_s10 }
 0x1d1   : > { %s16951_s5 = scalar_lea.vmem %s16950_s10, 64  ;;  %p16952_p3 = scmp.lt.s32.totalorder %s18100_s1, %s16950_s10 }
 0x1d2   : > { %p16947_p13 = pnand %p16946_p0, %p17685_p4  ;;  %p16953_p2 = scmp.lt.s32.totalorder %s16951_s5, %s16945_s23 }
 0x1d4   : > { %p16948_p6 = pneg %p16947_p13  ;;  %p16954_p1 = por %p16953_p2, %p16952_p3 }
 0x1d6   : > { %p16955_p7 = pnand %p16954_p1, %p16948_p6 }
 0x1d8   : > { %16958 = shalt.err (!%p16955_p7)
}
 0x1d9   : > { %s20202_s25 = scalar_lea.sflag [#allocation8], %s17705_s2  ;;  %s20203_s28 = sld [smem:[#allocation63_spill]] }
 0x1da   : > { %16028 = dma.hbm_to_vmem [thread:$0]  (%p17685_p4), %s18097_s27, 32, %s18100_s1, %s20202_s25, %s20200_s3, %s20200_s3, %s20199_s6  }
 0x1db   : > { %s1580_s4 = scalar_lea.vmem [#allocation12], %s17702_s0 }
 0x1dc   : > { %s1587_s10 = sshll.u32 %s1580_s4, 4  ;;  %s18129_s10 = int_to_ptr.vmem [resolvable:$true] %s1587_s10 }
 0x1df   : > { %s18126_s23 = scalar_lea.hbm %s20203_s28, %s17699_s18  ;;  %s16963_s17 = scalar_lea.hbm %s20203_s28, 64 }
 0x1e0   : > { %s16959_s5 = scalar_lea.hbm %s18126_s23, 32  ;;  %p16964_p11 = scmp.lt.u32.totalorder %s18126_s23, %s20203_s28 }
 0x1e1   : > { %p16960_p8 = scmp.ne.s32.totalorder %s18126_s23, %s16959_s5  ;;  %p16965_p10 = scmp.lt.u32.totalorder %s16963_s17, %s16959_s5 }
 0x1e2   : > { %p16967_p0 = scmp.lt.u32.totalorder %s16959_s5, %s18126_s23 }
 0x1e3   : > { %p16961_p5 = pnand %p16960_p8, %p17685_p4  ;;  %p16966_p12 = por %p16965_p10, %p16964_p11 }
 0x1e5   : > { %p16962_p9 = pneg %p16961_p5  ;;  %p16968_p13 = por %p16967_p0, %p16966_p12 }
 0x1e7   : > { %p16969_p6 = pnand %p16968_p13, %p16962_p9 }
 0x1e9   : > { %16972 = shalt.err (!%p16969_p6)
}
 0x1ea   : > { %s16973_s27 = scalar_lea.vmem %s18129_s10, 32  ;;  %s17388_s1 = smov [#allocation12]  }
 0x1eb   : > { %p16974_p3 = scmp.ne.s32.totalorder %s18129_s10, %s16973_s27  ;;  %s16977_s25 = sshll.u32 %s17388_s1, 4  ;;  %s16978_s25 = int_to_ptr.vmem [resolvable:$false] %s16977_s25 }
 0x1ec   : > { %s16979_s4 = scalar_lea.vmem %s16978_s25, 64  ;;  %p16980_p7 = scmp.lt.s32.totalorder %s18129_s10, %s16978_s25 }
 0x1ed   : > { %p16975_p2 = pnand %p16974_p3, %p17685_p4  ;;  %p16981_p8 = scmp.lt.s32.totalorder %s16979_s4, %s16973_s27 }
 0x1ef   : > { %p16976_p1 = pneg %p16975_p2  ;;  %p16982_p5 = por %p16981_p8, %p16980_p7 }
 0x1f1   : > { %p16983_p11 = pnand %p16982_p5, %p16976_p1 }
 0x1f3   : > { %16986 = shalt.err (!%p16983_p11)
}
 0x1f4   : > { %s20204_s17 = scalar_lea.sflag [#allocation11], %s17705_s2  ;;  %s20205_s5 = sld [smem:[#allocation65_spill]] }
 0x1f5   : > { %16030 = dma.hbm_to_vmem [thread:$0]  (%p17685_p4), %s18126_s23, 32, %s18129_s10, %s20204_s17, %s20200_s3, %s20200_s3, %s20199_s6  }
 0x1f6   : > { %s1622_s1 = scalar_lea.vmem [#allocation15], %s17702_s0 }
 0x1f7   : > { %s1629_s25 = sshll.u32 %s1622_s1, 4  ;;  %s18158_s25 = int_to_ptr.vmem [resolvable:$true] %s1629_s25 }
 0x1fa   : > { %s18155_s27 = scalar_lea.hbm %s20205_s5, %s17699_s18  ;;  %s16991_s8 = scalar_lea.hbm %s20205_s5, 64 }
 0x1fb   : > { %s16987_s4 = scalar_lea.hbm %s18155_s27, 32  ;;  %p16992_p0 = scmp.lt.u32.totalorder %s18155_s27, %s20205_s5 }
 0x1fc   : > { %p16988_p9 = scmp.ne.s32.totalorder %s18155_s27, %s16987_s4  ;;  %p16993_p13 = scmp.lt.u32.totalorder %s16991_s8, %s16987_s4 }
 0x1fd   : > { %p16995_p3 = scmp.lt.u32.totalorder %s16987_s4, %s18155_s27 }
 0x1fe   : > { %p16989_p10 = pnand %p16988_p9, %p17685_p4  ;;  %p16994_p6 = por %p16993_p13, %p16992_p0 }
 0x200   : > { %p16990_p12 = pneg %p16989_p10  ;;  %p16996_p2 = por %p16995_p3, %p16994_p6 }
 0x202   : > { %p16997_p1 = pnand %p16996_p2, %p16990_p12 }
 0x204   : > { %17000 = shalt.err (!%p16997_p1)
}
 0x205   : > { %s17001_s23 = scalar_lea.vmem %s18158_s25, 32  ;;  %s17389_s10 = smov [#allocation15]  }
 0x206   : > { %p17002_p7 = scmp.ne.s32.totalorder %s18158_s25, %s17001_s23  ;;  %s17005_s17 = sshll.u32 %s17389_s10, 4  ;;  %s17006_s17 = int_to_ptr.vmem [resolvable:$false] %s17005_s17 }
 0x207   : > { %s17007_s1 = scalar_lea.vmem %s17006_s17, 64  ;;  %p17008_p11 = scmp.lt.s32.totalorder %s18158_s25, %s17006_s17 }
 0x208   : > { %p17003_p8 = pnand %p17002_p7, %p17685_p4  ;;  %p17009_p9 = scmp.lt.s32.totalorder %s17007_s1, %s17001_s23 }
 0x20a   : > { %p17004_p5 = pneg %p17003_p8  ;;  %p17010_p10 = por %p17009_p9, %p17008_p11 }
 0x20c   : > { %p17011_p0 = pnand %p17010_p10, %p17004_p5 }
 0x20e   : > { %17014 = shalt.err (!%p17011_p0)
}
 0x20f   : > { %s20206_s8 = scalar_lea.sflag [#allocation14], %s17705_s2  ;;  %s20207_s4 = sld [smem:[#allocation67_spill]] }
 0x210   : > { %16032 = dma.hbm_to_vmem [thread:$0]  (%p17685_p4), %s18155_s27, 32, %s18158_s25, %s20206_s8, %s20200_s3, %s20200_s3, %s20199_s6  }
 0x211   : > { %s1664_s10 = scalar_lea.vmem [#allocation18], %s17702_s0 }
 0x212   : > { %s1671_s17 = sshll.u32 %s1664_s10, 4  ;;  %s18187_s17 = int_to_ptr.vmem [resolvable:$true] %s1671_s17 }
 0x215   : > { %s18184_s23 = scalar_lea.hbm %s20207_s4, %s17699_s18  ;;  %s17019_s5 = scalar_lea.hbm %s20207_s4, 64 }
 0x216   : > { %s17015_s1 = scalar_lea.hbm %s18184_s23, 32  ;;  %p17020_p3 = scmp.lt.u32.totalorder %s18184_s23, %s20207_s4 }
 0x217   : > { %p17016_p12 = scmp.ne.s32.totalorder %s18184_s23, %s17015_s1  ;;  %p17021_p2 = scmp.lt.u32.totalorder %s17019_s5, %s17015_s1 }
 0x218   : > { %p17023_p7 = scmp.lt.u32.totalorder %s17015_s1, %s18184_s23 }
 0x219   : > { %p17017_p13 = pnand %p17016_p12, %p17685_p4  ;;  %p17022_p1 = por %p17021_p2, %p17020_p3 }
 0x21b   : > { %p17018_p6 = pneg %p17017_p13  ;;  %p17024_p8 = por %p17023_p7, %p17022_p1 }
 0x21d   : > { %p17025_p5 = pnand %p17024_p8, %p17018_p6 }
 0x21f   : > { %17028 = shalt.err (!%p17025_p5)
}
 0x220   : > { %s17029_s27 = scalar_lea.vmem %s18187_s17, 32  ;;  %s17390_s25 = smov [#allocation18]  }
 0x221   : > { %p17030_p11 = scmp.ne.s32.totalorder %s18187_s17, %s17029_s27  ;;  %s17033_s8 = sshll.u32 %s17390_s25, 4  ;;  %s17034_s8 = int_to_ptr.vmem [resolvable:$false] %s17033_s8 }
 0x222   : > { %s17035_s10 = scalar_lea.vmem %s17034_s8, 64  ;;  %p17036_p0 = scmp.lt.s32.totalorder %s18187_s17, %s17034_s8 }
 0x223   : > { %p17031_p9 = pnand %p17030_p11, %p17685_p4  ;;  %p17037_p12 = scmp.lt.s32.totalorder %s17035_s10, %s17029_s27 }
 0x225   : > { %p17032_p10 = pneg %p17031_p9  ;;  %p17038_p13 = por %p17037_p12, %p17036_p0 }
 0x227   : > { %p17039_p3 = pnand %p17038_p13, %p17032_p10 }
 0x229   : > { %17042 = shalt.err (!%p17039_p3)
}
 0x22a   : > { %s20208_s5 = scalar_lea.sflag [#allocation17], %s17705_s2  ;;  %s20209_s1 = sld [smem:[#allocation69_spill]] }
 0x22b   : > { %16034 = dma.hbm_to_vmem [thread:$0]  (%p17685_p4), %s18184_s23, 32, %s18187_s17, %s20208_s5, %s20200_s3, %s20200_s3, %s20199_s6  }
 0x22c   : > { %s1706_s25 = scalar_lea.vmem [#allocation21], %s17702_s0 }
 0x22d   : > { %s1713_s8 = sshll.u32 %s1706_s25, 4  ;;  %s18216_s8 = int_to_ptr.vmem [resolvable:$true] %s1713_s8 }
 0x230   : > { %s18213_s27 = scalar_lea.hbm %s20209_s1, %s17699_s18  ;;  %s17047_s4 = scalar_lea.hbm %s20209_s1, 64 }
 0x231   : > { %s17043_s10 = scalar_lea.hbm %s18213_s27, 32  ;;  %p17048_p7 = scmp.lt.u32.totalorder %s18213_s27, %s20209_s1 }
 0x232   : > { %p17044_p6 = scmp.ne.s32.totalorder %s18213_s27, %s17043_s10  ;;  %p17049_p8 = scmp.lt.u32.totalorder %s17047_s4, %s17043_s10 }
 0x233   : > { %p17051_p11 = scmp.lt.u32.totalorder %s17043_s10, %s18213_s27 }
 0x234   : > { %p17045_p2 = pnand %p17044_p6, %p17685_p4  ;;  %p17050_p5 = por %p17049_p8, %p17048_p7 }
 0x236   : > { %p17046_p1 = pneg %p17045_p2  ;;  %p17052_p9 = por %p17051_p11, %p17050_p5 }
 0x238   : > { %p17053_p10 = pnand %p17052_p9, %p17046_p1 }
 0x23a   : > { %17056 = shalt.err (!%p17053_p10)
}
 0x23b   : > { %s17057_s23 = scalar_lea.vmem %s18216_s8, 32  ;;  %s17391_s17 = smov [#allocation21]  }
 0x23c   : > { %p17058_p0 = scmp.ne.s32.totalorder %s18216_s8, %s17057_s23  ;;  %s17061_s5 = sshll.u32 %s17391_s17, 4  ;;  %s17062_s5 = int_to_ptr.vmem [resolvable:$false] %s17061_s5 }
 0x23d   : > { %s17063_s25 = scalar_lea.vmem %s17062_s5, 64  ;;  %p17064_p3 = scmp.lt.s32.totalorder %s18216_s8, %s17062_s5 }
 0x23e   : > { %p17059_p12 = pnand %p17058_p0, %p17685_p4  ;;  %p17065_p6 = scmp.lt.s32.totalorder %s17063_s25, %s17057_s23 }
 0x240   : > { %p17060_p13 = pneg %p17059_p12  ;;  %p17066_p2 = por %p17065_p6, %p17064_p3 }
 0x242   : > { %p17067_p7 = pnand %p17066_p2, %p17060_p13 }
 0x244   : > { %17070 = shalt.err (!%p17067_p7)
}
 0x245   : > { %s20210_s4 = scalar_lea.sflag [#allocation20], %s17705_s2  ;;  %s20211_s10 = sld [smem:[#allocation73_spill]] }
 0x246   : > { %16036 = dma.hbm_to_vmem [thread:$0]  (%p17685_p4), %s18213_s27, 32, %s18216_s8, %s20210_s4, %s20200_s3, %s20200_s3, %s20199_s6  }
 0x247   : > { %s1772_s17 = scalar_lea.vmem [#allocation24], %s17978_s15 }
 0x248   : > { %s1779_s5 = sshll.u32 %s1772_s17, 4  ;;  %s18245_s5 = int_to_ptr.vmem [resolvable:$true] %s1779_s5 }
 0x24b   : > { %s18242_s23 = scalar_lea.hbm %s20211_s10, %s18004_s7  ;;  %s17075_s1 = scalar_lea.hbm %s20211_s10, 1024 }
 0x24c   : > { %s17071_s25 = scalar_lea.hbm %s18242_s23, 512  ;;  %p17076_p11 = scmp.lt.u32.totalorder %s18242_s23, %s20211_s10 }
 0x24d   : > { %p17072_p1 = scmp.ne.s32.totalorder %s18242_s23, %s17071_s25  ;;  %p17077_p9 = scmp.lt.u32.totalorder %s17075_s1, %s17071_s25 }
 0x24e   : > { %p17079_p0 = scmp.lt.u32.totalorder %s17071_s25, %s18242_s23 }
 0x24f   : > { %p17073_p8 = pnand %p17072_p1, %p17685_p4  ;;  %p17078_p10 = por %p17077_p9, %p17076_p11 }
 0x251   : > { %p17074_p5 = pneg %p17073_p8  ;;  %p17080_p12 = por %p17079_p0, %p17078_p10 }
 0x253   : > { %p17081_p13 = pnand %p17080_p12, %p17074_p5 }
 0x255   : > { %17084 = shalt.err (!%p17081_p13)
}
 0x256   : > { %s17085_s27 = scalar_lea.vmem %s18245_s5, 512  ;;  %s17392_s8 = smov [#allocation24]  }
 0x257   : > { %p17086_p3 = scmp.ne.s32.totalorder %s18245_s5, %s17085_s27  ;;  %s17089_s4 = sshll.u32 %s17392_s8, 4  ;;  %s17090_s4 = int_to_ptr.vmem [resolvable:$false] %s17089_s4 }
 0x258   : > { %s17091_s17 = scalar_lea.vmem %s17090_s4, 1024  ;;  %p17092_p7 = scmp.lt.s32.totalorder %s18245_s5, %s17090_s4 }
 0x259   : > { %p17087_p6 = pnand %p17086_p3, %p17685_p4  ;;  %p17093_p1 = scmp.lt.s32.totalorder %s17091_s17, %s17085_s27 }
 0x25b   : > { %p17088_p2 = pneg %p17087_p6  ;;  %p17094_p8 = por %p17093_p1, %p17092_p7 }
 0x25d   : > { %p17095_p11 = pnand %p17094_p8, %p17088_p2 }
 0x25f   : > { %17098 = shalt.err (!%p17095_p11)
}
 0x260   : > { %s20212_s1 = smov 4   ;;  %s20213_s25 = smov 64  }
 0x261   : > { %s20214_s9 = scalar_lea.sflag [#allocation23], %s17705_s2  ;;  %s20215_s10 = sld [smem:[#allocation75_spill]] }
 0x262   : > { %16038 = dma.hbm_to_vmem [thread:$0]  (%p17685_p4), %s18242_s23, 512, %s18245_s5, %s20214_s9, %s20213_s25, %s20213_s25, %s20212_s1  }
 0x263   : > { %s20216_s27 = sshll.u32 %s17321_s26, 4  ;;  %s1809_s4 = scalar_lea.vmem [#allocation27], %s17696_s16 }
 0x264   : > { %s1816_s17 = sshll.u32 %s1809_s4, 4  ;;  %s1817_s17 = int_to_ptr.vmem [resolvable:$true] %s1816_s17 }
 0x267   : > { %s18272_s8 = scalar_lea.hbm %s20215_s10, %s20216_s27  ;;  %s17103_s13 = scalar_lea.hbm %s20215_s10, 32 }
 0x268   : > { %s17099_s12 = scalar_lea.hbm %s18272_s8, 16  ;;  %p17104_p0 = scmp.lt.u32.totalorder %s18272_s8, %s20215_s10 }
 0x269   : > { %p17100_p5 = scmp.ne.s32.totalorder %s18272_s8, %s17099_s12  ;;  %p17105_p12 = scmp.lt.u32.totalorder %s17103_s13, %s17099_s12 }
 0x26a   : > { %p17107_p3 = scmp.lt.u32.totalorder %s17099_s12, %s18272_s8 }
 0x26b   : > { %p17101_p9 = pnand %p17100_p5, %p17685_p4  ;;  %p17106_p13 = por %p17105_p12, %p17104_p0 }
 0x26d   : > { %p17102_p10 = pneg %p17101_p9  ;;  %p17108_p6 = por %p17107_p3, %p17106_p13 }
 0x26f   : > { %p17109_p2 = pnand %p17108_p6, %p17102_p10 }
 0x271   : > { %17112 = shalt.err (!%p17109_p2)
}
 0x272   : > { %s17113_s9 = scalar_lea.vmem %s1817_s17, 16  ;;  %s17393_s23 = smov [#allocation27]  }
 0x273   : > { %p17114_p7 = scmp.ne.s32.totalorder %s1817_s17, %s17113_s9  ;;  %s17117_s5 = sshll.u32 %s17393_s23, 4  ;;  %s17118_s5 = int_to_ptr.vmem [resolvable:$false] %s17117_s5 }
 0x274   : > { %s17119_s27 = scalar_lea.vmem %s17118_s5, 32  ;;  %p17120_p11 = scmp.lt.s32.totalorder %s1817_s17, %s17118_s5 }
 0x275   : > { %p17115_p1 = pnand %p17114_p7, %p17685_p4  ;;  %p17121_p5 = scmp.lt.s32.totalorder %s17119_s27, %s17113_s9 }
 0x277   : > { %p17116_p8 = pneg %p17115_p1  ;;  %p17122_p9 = por %p17121_p5, %p17120_p11 }
 0x279   : > { %p17123_p0 = pnand %p17122_p9, %p17116_p8 }
 0x27b   : > { %17126 = shalt.err (!%p17123_p0)
}
 0x27c   : > { %s20217_s13 = scalar_lea.sflag [#allocation26], %s17705_s2  ;;  %s20218_s12 = sld [smem:[#allocation77_spill]] }
 0x27d   : > { %16040 = dma.hbm_to_vmem [thread:$0]  (%p17685_p4), %s18272_s8, 16, %s1817_s17, %s20217_s13  }
 0x27e   : > { %s1848_s9 = scalar_lea.vmem [#allocation30], %s17702_s0 }
 0x27f   : > { %s1855_s23 = sshll.u32 %s1848_s9, 4  ;;  %s18295_s23 = int_to_ptr.vmem [resolvable:$true] %s1855_s23 }
 0x282   : > { %s18292_s4 = scalar_lea.hbm %s20218_s12, %s17699_s18  ;;  %s17131_s27 = scalar_lea.hbm %s20218_s12, 64 }
 0x283   : > { %s17127_s5 = scalar_lea.hbm %s18292_s4, 32  ;;  %p17132_p3 = scmp.lt.u32.totalorder %s18292_s4, %s20218_s12 }
 0x284   : > { %p17128_p10 = scmp.ne.s32.totalorder %s18292_s4, %s17127_s5  ;;  %p17133_p6 = scmp.lt.u32.totalorder %s17131_s27, %s17127_s5 }
 0x285   : > { %p17135_p7 = scmp.lt.u32.totalorder %s17127_s5, %s18292_s4 }
 0x286   : > { %p17129_p12 = pnand %p17128_p10, %p17685_p4  ;;  %p17134_p2 = por %p17133_p6, %p17132_p3 }
 0x288   : > { %p17130_p13 = pneg %p17129_p12  ;;  %p17136_p1 = por %p17135_p7, %p17134_p2 }
 0x28a   : > { %p17137_p8 = pnand %p17136_p1, %p17130_p13 }
 0x28c   : > { %17140 = shalt.err (!%p17137_p8)
}
 0x28d   : > { %s17141_s18 = scalar_lea.vmem %s18295_s23, 32  ;;  %s17394_s0 = smov [#allocation30]  }
 0x28e   : > { %p17142_p11 = scmp.ne.s32.totalorder %s18295_s23, %s17141_s18  ;;  %s17145_s8 = sshll.u32 %s17394_s0, 4  ;;  %s17146_s8 = int_to_ptr.vmem [resolvable:$false] %s17145_s8 }
 0x28f   : > { %s17147_s17 = scalar_lea.vmem %s17146_s8, 64  ;;  %p17148_p0 = scmp.lt.s32.totalorder %s18295_s23, %s17146_s8 }
 0x290   : > { %p17143_p5 = pnand %p17142_p11, %p17685_p4  ;;  %p17149_p10 = scmp.lt.s32.totalorder %s17147_s17, %s17141_s18 }
 0x292   : > { %p17144_p9 = pneg %p17143_p5  ;;  %p17150_p12 = por %p17149_p10, %p17148_p0 }
 0x294   : > { %p17151_p3 = pnand %p17150_p12, %p17144_p9 }
 0x296   : > { %17154 = shalt.err (!%p17151_p3)
}
 0x297   : > { %s20219_s13 = scalar_lea.sflag [#allocation29], %s17705_s2  ;;  %s20220_s9 = sld [smem:[#allocation79_spill]] }
 0x298   : > { %16042 = dma.hbm_to_vmem [thread:$0]  (%p17685_p4), %s18292_s4, 32, %s18295_s23, %s20219_s13, %s20200_s3, %s20200_s3, %s20199_s6  }
 0x299   : > { %s1890_s27 = scalar_lea.vmem [#allocation33], %s17978_s15 }
 0x29a   : > { %s1897_s18 = sshll.u32 %s1890_s27, 4  ;;  %s18324_s18 = int_to_ptr.vmem [resolvable:$true] %s1897_s18 }
 0x29d   : > { %s18321_s5 = scalar_lea.hbm %s20220_s9, %s18004_s7  ;;  %s17159_s8 = scalar_lea.hbm %s20220_s9, 1024 }
 0x29e   : > { %s17155_s0 = scalar_lea.hbm %s18321_s5, 512  ;;  %p17160_p7 = scmp.lt.u32.totalorder %s18321_s5, %s20220_s9 }
 0x29f   : > { %p17156_p13 = scmp.ne.s32.totalorder %s18321_s5, %s17155_s0  ;;  %p17161_p1 = scmp.lt.u32.totalorder %s17159_s8, %s17155_s0 }
 0x2a0   : > { %p17163_p11 = scmp.lt.u32.totalorder %s17155_s0, %s18321_s5 }
 0x2a1   : > { %p17157_p6 = pnand %p17156_p13, %p17685_p4  ;;  %p17162_p8 = por %p17161_p1, %p17160_p7 }
 0x2a3   : > { %p17158_p2 = pneg %p17157_p6  ;;  %p17164_p5 = por %p17163_p11, %p17162_p8 }
 0x2a5   : > { %p17165_p9 = pnand %p17164_p5, %p17158_p2 }
 0x2a7   : > { %17168 = shalt.err (!%p17165_p9)
}
 0x2a8   : > { %s17169_s6 = scalar_lea.vmem %s18324_s18, 512  ;;  %s17395_s3 = smov [#allocation33]  }
 0x2a9   : > { %p17170_p0 = scmp.ne.s32.totalorder %s18324_s18, %s17169_s6  ;;  %s17173_s4 = sshll.u32 %s17395_s3, 4  ;;  %s17174_s4 = int_to_ptr.vmem [resolvable:$false] %s17173_s4 }
 0x2aa   : > { %s17175_s23 = scalar_lea.vmem %s17174_s4, 1024  ;;  %p17176_p3 = scmp.lt.s32.totalorder %s18324_s18, %s17174_s4 }
 0x2ab   : > { %p17171_p10 = pnand %p17170_p0, %p17685_p4  ;;  %p17177_p13 = scmp.lt.s32.totalorder %s17175_s23, %s17169_s6 }
 0x2ad   : > { %p17172_p12 = pneg %p17171_p10  ;;  %p17178_p6 = por %p17177_p13, %p17176_p3 }
 0x2af   : > { %p17179_p7 = pnand %p17178_p6, %p17172_p12 }
 0x2b1   : > { %17182 = shalt.err (!%p17179_p7)
}
 0x2b2   : > { %s20221_s17 = scalar_lea.sflag [#allocation32], %s17705_s2  ;;  %s20222_s13 = sld [smem:[#allocation82_spill]] }
 0x2b3   : > { %16044 = dma.hbm_to_vmem [thread:$0]  (%p17685_p4), %s18321_s5, 512, %s18324_s18, %s20221_s17, %s20213_s25, %s20213_s25, %s20212_s1  }
 0x2b4   : > { %s1940_s0 = scalar_lea.vmem [#allocation36], %s17978_s15 }
 0x2b5   : > { %s1947_s8 = sshll.u32 %s1940_s0, 4  ;;  %s18353_s8 = int_to_ptr.vmem [resolvable:$true] %s1947_s8 }
 0x2b8   : > { %s18350_s27 = scalar_lea.hbm %s20222_s13, %s18004_s7  ;;  %s17187_s3 = scalar_lea.hbm %s20222_s13, 1024 }
 0x2b9   : > { %s17183_s6 = scalar_lea.hbm %s18350_s27, 512  ;;  %p17188_p11 = scmp.lt.u32.totalorder %s18350_s27, %s20222_s13 }
 0x2ba   : > { %p17184_p2 = scmp.ne.s32.totalorder %s18350_s27, %s17183_s6  ;;  %p17189_p5 = scmp.lt.u32.totalorder %s17187_s3, %s17183_s6 }
 0x2bb   : > { %p17191_p0 = scmp.lt.u32.totalorder %s17183_s6, %s18350_s27 }
 0x2bc   : > { %p17185_p1 = pnand %p17184_p2, %p17685_p4  ;;  %p17190_p9 = por %p17189_p5, %p17188_p11 }
 0x2be   : > { %p17186_p8 = pneg %p17185_p1  ;;  %p17192_p10 = por %p17191_p0, %p17190_p9 }
 0x2c0   : > { %p17193_p12 = pnand %p17192_p10, %p17186_p8 }
 0x2c2   : > { %17196 = shalt.err (!%p17193_p12)
}
 0x2c3   : > { %s17197_s5 = scalar_lea.vmem %s18353_s8, 512  ;;  %s17396_s18 = smov [#allocation36]  }
 0x2c4   : > { %p17198_p3 = scmp.ne.s32.totalorder %s18353_s8, %s17197_s5  ;;  %s17201_s4 = sshll.u32 %s17396_s18, 4  ;;  %s17202_s4 = int_to_ptr.vmem [resolvable:$false] %s17201_s4 }
 0x2c5   : > { %s17203_s23 = scalar_lea.vmem %s17202_s4, 1024  ;;  %p17204_p7 = scmp.lt.s32.totalorder %s18353_s8, %s17202_s4 }
 0x2c6   : > { %p17199_p13 = pnand %p17198_p3, %p17685_p4  ;;  %p17205_p2 = scmp.lt.s32.totalorder %s17203_s23, %s17197_s5 }
 0x2c8   : > { %p17200_p6 = pneg %p17199_p13  ;;  %p17206_p1 = por %p17205_p2, %p17204_p7 }
 0x2ca   : > { %p17207_p11 = pnand %p17206_p1, %p17200_p6 }
 0x2cc   : > { %17210 = shalt.err (!%p17207_p11)
}
 0x2cd   : > { %s20223_s17 = scalar_lea.sflag [#allocation35], %s17705_s2  ;;  %s20224_s0 = sld [smem:[#allocation85_spill]] }
 0x2ce   : > { %16046 = dma.hbm_to_vmem [thread:$0]  (%p17685_p4), %s18350_s27, 512, %s18353_s8, %s20223_s17, %s20213_s25, %s20213_s25, %s20212_s1  }
 0x2cf   : > { %s1975_s5 = scalar_lea.vmem [#allocation37], %s17978_s15  ;;  %s1972_s2 = scalar_lea.sflag [#allocation38], %s17696_s16 }
 0x2d0   : > { %s1982_s18 = sshll.u32 %s1975_s5, 4  ;;  %s18382_s18 = int_to_ptr.vmem [resolvable:$true] %s1982_s18 }
 0x2d3   : > { %s20225_s6 = smov %s20224_s0  ;;  %s18379_s3 = scalar_lea.hbm %s20224_s0, %s18004_s7 }
 0x2d4   : > { %s17211_s4 = scalar_lea.hbm %s18379_s3, 512  ;;  %s17215_s23 = scalar_lea.hbm %s20225_s6, 1024 }
 0x2d5   : > { %p17212_p8 = scmp.ne.s32.totalorder %s18379_s3, %s17211_s4  ;;  %p17216_p0 = scmp.lt.u32.totalorder %s18379_s3, %s20225_s6 }
 0x2d6   : > { %p17217_p10 = scmp.lt.u32.totalorder %s17215_s23, %s17211_s4  ;;  %p17219_p3 = scmp.lt.u32.totalorder %s17211_s4, %s18379_s3 }
 0x2d7   : > { %p17213_p5 = pnand %p17212_p8, %p17685_p4 }
 0x2d8   : > { %p17218_p12 = por %p17217_p10, %p17216_p0 }
 0x2d9   : > { %p17214_p9 = pneg %p17213_p5 }
 0x2da   : > { %p17220_p13 = por %p17219_p3, %p17218_p12 }
 0x2dc   : > { %p17221_p6 = pnand %p17220_p13, %p17214_p9 }
 0x2de   : > { %17224 = shalt.err (!%p17221_p6)
}
 0x2df   : > { %s17225_s15 = scalar_lea.vmem %s18382_s18, 512  ;;  %s17397_s7 = smov [#allocation37]  }
 0x2e0   : > { %p17226_p7 = scmp.ne.s32.totalorder %s18382_s18, %s17225_s15  ;;  %s17229_s27 = sshll.u32 %s17397_s7, 4  ;;  %s17230_s27 = int_to_ptr.vmem [resolvable:$false] %s17229_s27 }
 0x2e1   : > { %s17231_s8 = scalar_lea.vmem %s17230_s27, 1024  ;;  %p17232_p11 = scmp.lt.s32.totalorder %s18382_s18, %s17230_s27 }
 0x2e2   : > { %p17227_p2 = pnand %p17226_p7, %p17685_p4  ;;  %p17233_p8 = scmp.lt.s32.totalorder %s17231_s8, %s17225_s15 }
 0x2e4   : > { %p17228_p1 = pneg %p17227_p2  ;;  %p17234_p5 = por %p17233_p8, %p17232_p11 }
 0x2e6   : > { %p17235_p0 = pnand %p17234_p5, %p17228_p1 }
 0x2e8   : > { %17238 = shalt.err (!%p17235_p0)
}
 0x2e9   : > { %16047 = dma.hbm_to_vmem [thread:$0]  (%p17685_p4), %s18379_s3, 512, %s18382_s18, %s1972_s2, %s20213_s25, %s20213_s25, %s20212_s1  }
 0x2ea PF: > { %p14479_p9 = scmp.ge.s32.totalorder %s17321_s26, 1  ;;  %p2038_p10 = scmp.lt.s32.totalorder %s17321_s26, 3 }
 0x2ec   : > { %p2039_p12 = pnand %p14479_p9, %p2038_p10 }
 0x2ed   : > { %s20226_s17 = sld [smem:[#allocation98_spill]] (!%p2039_p12)  ;;  %s18410_s0 = sand.u32 (!%p2039_p12), 1, %s17313_s22  }
 0x2ee   : > { %2042 = sbr.rel (%p2039_p12) target bundleno = 22948 (0x59a4), region = 208  ;;  %s18413_s11 = sshll.u32 (!%p2039_p12), %s18410_s0, 1 }
 0x2ef   : > { %s2045_s16 = scalar_lea.sflag (!%p2039_p12), [#allocation3], %s18410_s0 }
 0x2f3   : > { %p20227_p3 = scmp.ne.s32.totalorder (!%p2039_p12), %s20226_s17, 0 }
 0x2f5   : > { %17256 = dma.done.wait (%p20227_p3), %s2045_s16, 32  }
 0x2f6   : > { %17258 = vsyncadd (%p20227_p3), %s2045_s16, 4294967264  ;;  %s20228_s1 = sld [smem:[#allocation95_spill]] }
 0x2fc   : > { %s18422_s26 = sand.u32 1, %s20228_s1  }
 0x2fd   : > { %s2054_s25 = scalar_lea.sflag [#allocation5], %s18422_s26 }
 0x2fe   : > { %17260 = dma.done.wait (%p20227_p3), %s2054_s25, 64  }
 0x2ff   : > { %17262 = vsyncadd (%p20227_p3), %s2054_s25, 4294967232  ;;  %s2072_s2 = scalar_lea.sflag [#allocation8], %s18422_s26 }
 0x300   : > { %17264 = dma.done.wait (%p20227_p3), %s2072_s2, 64  }
 0x301   : > { %17266 = vsyncadd (%p20227_p3), %s2072_s2, 4294967232  ;;  %s2090_s15 = scalar_lea.sflag [#allocation11], %s18422_s26 }
 0x302   : > { %17268 = dma.done.wait (%p20227_p3), %s2090_s15, 64  }
 0x303   : > { %17270 = vsyncadd (%p20227_p3), %s2090_s15, 4294967232  ;;  %s2108_s8 = scalar_lea.sflag [#allocation14], %s18422_s26 }
 0x304   : > { %17272 = dma.done.wait (%p20227_p3), %s2108_s8, 64  }
 0x305   : > { %17274 = vsyncadd (%p20227_p3), %s2108_s8, 4294967232  ;;  %s2126_s2 = scalar_lea.sflag [#allocation17], %s18422_s26 }
 0x306   : > { %17276 = dma.done.wait (%p20227_p3), %s2126_s2, 64  }
 0x307   : > { %17278 = vsyncadd (%p20227_p3), %s2126_s2, 4294967232  ;;  %s2144_s4 = scalar_lea.sflag [#allocation20], %s18422_s26 }
 0x308   : > { %17280 = dma.done.wait (%p20227_p3), %s2144_s4, 64  }
 0x309   : > { %17282 = vsyncadd (%p20227_p3), %s2144_s4, 4294967232  ;;  %s2162_s23 = scalar_lea.sflag [#allocation23], %s18422_s26 }
 0x30a   : > { %17284 = dma.done.wait (%p20227_p3), %s2162_s23, 544  }
 0x30b   : > { %17286 = vsyncadd (%p20227_p3), %s2162_s23, 4294966752  ;;  %s14494_s2 = sshll.u32 %s18410_s0, 5  ;;  %s2180_s4 = scalar_lea.sflag [#allocation26], %s18422_s26 }
 0x30c   : > { %s18473_s15 = scalar_lea.vmem [#allocation24], %s14494_s2 }
 0x30d   : > { %17288 = dma.done.wait (%p20227_p3), %s2180_s4, 32  }
 0x30e   : > { %17290 = vsyncadd (%p20227_p3), %s2180_s4, 4294967264  ;;  %s2196_s23 = scalar_lea.sflag [#allocation29], %s18422_s26  ;;  %s20123_s3 = scalar_lea.vmem [#allocation28], %s18413_s11 }
 0x30f   : > { %17292 = dma.done.wait (%p20227_p3), %s2196_s23, 64  }
 0x310   : > { %17294 = vsyncadd (%p20227_p3), %s2196_s23, 4294967232  ;;  %s20130_s5 = scalar_lea.vmem [#allocation30], %s18413_s11  ;;  %s2214_s7 = scalar_lea.sflag [#allocation32], %s18422_s26 }
 0x311   : > { %s20132_s27 = scalar_lea.vmem [#allocation31], %s18413_s11 }
 0x312   : > { %17296 = dma.done.wait (%p20227_p3), %s2214_s7, 544  }
 0x313   : > { %17298 = vsyncadd (%p20227_p3), %s2214_s7, 4294966752  ;;  %s18495_s4 = scalar_lea.vmem [#allocation33], %s14494_s2  ;;  %s2232_s18 = scalar_lea.sflag [#allocation35], %s18422_s26 }
 0x314   : > { %s18498_s16 = scalar_lea.vmem [#allocation34], %s14494_s2 }
 0x315   : > { %17300 = dma.done.wait (%p20227_p3), %s2232_s18, 1024  }
 0x316   : > { %17302 = vsyncadd (%p20227_p3), %s2232_s18, 4294966272  ;;  %s18504_s23 = scalar_lea.vmem [#allocation36], %s14494_s2  ;;  %s2250_s25 = scalar_lea.sflag [#allocation38], %s18410_s0 }
 0x317   : > { %s18507_s8 = scalar_lea.vmem [#allocation37], %s14494_s2 }
 0x318   : > { %17304 = dma.done.wait (%p20227_p3), %s2250_s25, 512  }
 0x319   : > { %17306 = vsyncadd (%p20227_p3), %s2250_s25, 4294966784  ;;  %s20229_s26 = sld [smem:[#allocation81_spill]]  ;;  %p2562_p4 = scmp.lt.s32.totalorder %s20228_s1, 1  ;;  %v17398_v0 = vmov 0.0   ;;  %vm17399_vm0 = vmmov 0   ;;  %v16254_v2 = vld [vmem:[%s18495_s4] sm:$0xff]  }
 0x31a   : > { %15264 = vmatprep.subr.bf16.mxu0 %v17398_v0  ;;  %s20230_s18 = sld [smem:[#allocation52_spill]]  ;;  %15272 = vmatprep.subr.bf16.mxu1 %v17398_v0  ;;  %v16256_v4 = vld [vmem:[%s18495_s4 + $0x8] sm:$0xff]   ;;  %vm2693_vm1 = vcmask 261120   ;;  %v14532_v8 = vld [vmem:[%s20130_s5] ss:$0 sm:$0xff]  ;;  %vm2850_vm2 = vcmask 64512  }
 0x31b   : > { %s20299_s1 = smov (!%p2562_p4, %s20228_s1), 1  ;;  %15268 = vmatprep.mubr.msk.bf16.mxu0 %vm17399_vm0, %v17398_v0  ;;  %15276 = vmatprep.mubr.msk.bf16.mxu1 %vm17399_vm0, %v17398_v0  ;;  %s20119_s25 = smov 120   ;;  %v16257_v19 = vld [vmem:[%s18504_s23] sm:$0xff]   ;;  %v16258_v20 = vld [vmem:[%s18504_s23 + $0x8] sm:$0xff]   ;;  %v14539_v42 = vld [vmem:[%s20132_s27] ss:$0 sm:$0xff] }
 0x31c   : > { %s18524_s17 = sshll.u32 %s20299_s1, 5  ;;  %15273 = vmatpush3.bf16.msra.mxu1 %v16254_v2  ;;  %s20117_s2 = smov 112   ;;  %vm4197_vm3 = vcmask 130048   ;;  %vm4200_vm4 = vcmask 195584   ;;  %vm4423_vm5 = vcmask 523264  }
 0x31d   : > { %15274 = vmatprep.subr.bf16.mxu1 %v17398_v0  ;;  %s20233_s5 = sld [smem:[#allocation87_spill]]  ;;  %s20234_s6 = sld [smem:[#allocation83_spill]] }
 0x31e   : > { %s20244_s10 = smov 16   ;;  %s20245_s12 = smov 24  }
 0x31f   : > { %s18528_s7 = scalar_lea.vmem %s20229_s26, %s18524_s17  ;;  %s20128_s26 = smov 104  }
 0x320   : > { %v16253_v1 = vld [vmem:[%s18528_s7] sm:$0xff]   ;;  %v16255_v3 = vld [vmem:[%s18528_s7 + $0x8] sm:$0xff]   ;;  %15275 = vmatpush3.bf16.msra.mxu1 %v16256_v4  ;;  %s20248_s13 = sld [smem:[#allocation70_spill]] }
 0x321   : > { %15265 = vmatpush3.bf16.msra.mxu0 %v16253_v1  ;;  %v18537_v5 = vld [vmem:[%s20230_s18] sm:$0xff]  ;;  %v18540_v6 = vld [vmem:[%s20230_s18 + $0x8] sm:$0xff]  ;;  %15288 = vmatprep.subr.mxu1 %v17398_v0 }
 0x322   : > { %15266 = vmatprep.subr.bf16.mxu0 %v17398_v0  ;;  %v2674_v7 = vpack.c.bf16 %v18540_v6, %v18537_v5 }
 0x324   : > { %15277 = vmatmul.mubr.msk.bf16.vlgmr.msra.gmra.mrb[0].mxu1 %vm2693_vm1, %v2674_v7 }
 0x325   : > { %15267 = vmatpush3.bf16.msra.mxu0 %v16255_v3  ;;  %15290 = vmatprep.mubr.msk.f32.mxu1 %vm17399_vm0, %v17398_v0 }
 0x326   : > { %15280 = vmatprep.subr.bf16.mxu0 %v17398_v0  ;;  %s19027_s18 = scalar_lea.vmem %s20248_s13, %s18524_s17  ;;  %s20249_s13 = sld [smem:[#allocation53_spill]] }
 0x328   : > { %15269 = vmatmul.mubr.msk.bf16.vlgmr.msra.gmra.mrb[0].mxu0 %vm2693_vm1, %v2674_v7 }
 0x329   : > { %15284 = vmatprep.mubr.msk.bf16.mxu0 %vm17399_vm0, %v17398_v0  ;;  %15281 = vmatpush3.bf16.msra.mxu0 %v16257_v19 }
 0x32a   : > { %15282 = vmatprep.subr.bf16.mxu0 %v17398_v0 }
 0x32d   : > { %15283 = vmatpush3.bf16.msra.mxu0 %v16258_v20 }
 0x32e   : > { %15308 = vmatprep.subr.mxu0 %v17398_v0 }
 0x330   : > { %15285 = vmatmul.mubr.msk.bf16.vlgmr.msra.gmra.mrb[4].mxu0 %vm2693_vm1, %v2674_v7 }
 0x331   : > { %15310 = vmatprep.mubr.msk.f32.mxu0 %vm17399_vm0, %v17398_v0 }
 0x3f7   : > { %v18556_v11 = vpop.f32.mrb[0].mxu1 }
 0x3f8   : > { %v15278_v13 = vpop.f32.mrb[1].mxu1  ;;  %15289 = vmatpush3.xpose.msk.msra.mxu1 %vm2850_vm2, %v18556_v11 }
 0x3f9   : > { %v18560_v15 = vpop.f32.mrb[2].mxu1  ;;  %15293 = vmatprep.subr.mxu1 %v17398_v0 }
 0x3fa   : > { %3253 = vrot.lane.b32.xlu1 %v18560_v15, %s20119_s25  ;;  %v15279_v17 = vpop.f32.mrb[3].mxu1 }
 0x3fb   : > { %v2731_v9 = vpop.f32.mrb[0].mxu0 }
 0x3fc   : > { %v18554_v10 = vadd.f32 %v14532_v8, %v2731_v9  ;;  %v15270_v12 = vpop.f32.mrb[1].mxu0 }
 0x3fd   : > { %v2734_v14 = vpop.f32.mrb[2].mxu0 }
 0x3fe   : > { %v15271_v16 = vpop.f32.mrb[3].mxu0  ;;  %15291 = vmatmul.mubr.msk.f32.vlgmr.msra.gmra.mrb[4].mxu1 %vm2850_vm2, %v18554_v10  ;;  %v18571_v18 = vadd.f32 %v14532_v8, %v2734_v14  ;;  %3173 = vrot.lane.b32.xlu1 %v18554_v10, %s20119_s25 }
 0x3ff   : > { %15294 = vmatpush3.xpose.msk.msra.mxu1 %vm2850_vm2, %v18560_v15  ;;  %15295 = vmatprep.mubr.msk.f32.mxu1 %vm17399_vm0, %v17398_v0 }
 0x400   : > { %15298 = vmatprep.subr.mxu1 %v17398_v0 }
 0x402   : > { %15296 = vmatmul.mubr.msk.f32.vlgmr.msra.gmra.mrb[6].mxu1 %vm2850_vm2, %v18571_v18 }
 0x403   : > { %15300 = vmatprep.mubr.msk.f32.mxu1 %vm17399_vm0, %v17398_v0  ;;  %v2843_v43 = vpop.f32.mrb[4].mxu0 }
 0x404   : > { %v18600_v44 = vadd.f32 %v14539_v42, %v2843_v43  ;;  %v15286_v45 = vpop.f32.mrb[5].mxu0 }
 0x405   : > { %v2846_v46 = vpop.f32.mrb[6].mxu0 }
 0x406   : > { %15299 = vmatpush3.msra.mxu1 %v18600_v44  ;;  %v18605_v47 = vadd.f32 %v14539_v42, %v2846_v46  ;;  %v15287_v48 = vpop.f32.mrb[7].mxu0 }
 0x407   : > { %15303 = vmatprep.subr.mxu1 %v17398_v0 }
 0x46c   : > { %v3254_v33 = vpop.permute.xlu1 %3253 }
 0x470   : > { %v3174_v37 = vpop.permute.xlu1 %3173 }
 0x4d1   : > { %v2923_v21 = vpop.f32.mrb[4].mxu1 }
 0x4d2   : > { %v3003_v22 = vmul.f32 0.35355338, %v2923_v21  ;;  %v15292_v23 = vpop.f32.mrb[5].mxu1 }
 0x4d4   : > { %v3005_v24 = vsel %vm2850_vm2, %v3003_v22, -inf }
 0x4d5   : > { %3006 = vmax.xlane.f32.xlu0 %v3005_v24  ;;  %v2999_v25 = vpop.f32.mrb[6].mxu1 }
 0x4d6   : > { %v3004_v26 = vmul.f32 0.35355338, %v2999_v25  ;;  %v15297_v27 = vpop.f32.mrb[7].mxu1 }
 0x4d8   : > { %v3008_v28 = vsel %vm2850_vm2, %v3004_v26, -inf }
 0x4d9   : > { %3009 = vmax.xlane.f32.xlu0 %v3008_v28 }
 0x4ef   : > { %3175 = vrot.lane.b32.xlu0 %v18556_v11, %s20119_s25 }
 0x562   : > { %v3007_v29 = vpop.xlane.xlu0 %3006 }
 0x563   : > { %v3011_v30 = vsub.f32 %v3003_v22, %v3007_v29 }
 0x565   : > { %v3013_v31 = vmul.f32 1.442695, %v3011_v30 }
 0x566   : > { %v3010_v32 = vpop.xlane.xlu0 %3009 }
 0x567   : > { %16327 = vpow2.f32 %v3013_v31  ;;  %v3012_v34 = vsub.f32 %v3004_v26, %v3010_v32 }
 0x569   : > { %v3015_v35 = vmul.f32 1.442695, %v3012_v34 }
 0x56a   : > { %v3176_v36 = vpop.permute.xlu0 %3175 }
 0x56b   : > { %16329 = vpow2.f32 %v3015_v35  ;;  %15309 = vmatpush3.xpose.msk.msra.mxu0 %vm2850_vm2, %v3176_v36 }
 0x56c   : > { %15318 = vmatprep.subr.mxu0 %v17398_v0 }
 0x56e   : > { %15311 = vmatmul.mubr.msk.f32.vlgmr.msra.gmra.mrb[8].mxu0 %vm2850_vm2, %v3174_v37 }
 0x56f   : > { %15320 = vmatprep.mubr.msk.f32.mxu0 %vm17399_vm0, %v17398_v0 }
 0x571   : > { %v16328_v38 = vpop.eup %16327 }
 0x572   : > { %v3017_v39 = vsel %vm2850_vm2, %v16328_v38, 0.0 }
 0x573   : > { %3018 = vadd.xlane.f32.xlu1 %v3017_v39 }
 0x575   : > { %v16330_v40 = vpop.eup %16329 }
 0x576   : > { %v3020_v41 = vsel %vm2850_vm2, %v16330_v40, 0.0 }
 0x577   : > { %3021 = vadd.xlane.f32.xlu1 %v3020_v41 }
 0x588   : > { %3251 = vrot.lane.b32.xlu1 %v18571_v18, %s20119_s25 }
 0x600   : > { %v3019_v49 = vpop.xlane.xlu1 %3018 }
 0x601   : > { %16331 = vrcp.f32 %v3019_v49 }
 0x604   : > { %v3022_v50 = vpop.xlane.xlu1 %3021 }
 0x605   : > { %16333 = vrcp.f32 %v3022_v50 }
 0x608   : > { %v3252_v55 = vpop.permute.xlu1 %3251 }
 0x60b   : > { %v16332_v51 = vpop.eup %16331 }
 0x60c   : > { %v3024_v52 = vmul.f32 %v16332_v51, %v16328_v38 }
 0x60e   : > { %15301 = vmatmul.mubr.msk.f32.vlgmr.msra.gmra.mrb[8].mxu1 %vm2850_vm2, %v3024_v52 }
 0x60f   : > { %v16334_v53 = vpop.eup %16333  ;;  %15304 = vmatpush3.msra.mxu1 %v18605_v47  ;;  %15305 = vmatprep.mubr.msk.f32.mxu1 %vm17399_vm0, %v17398_v0 }
 0x610   : > { %v3026_v54 = vmul.f32 %v16334_v53, %v16330_v40  ;;  %15313 = vmatprep.subr.mxu1 %v17398_v0 }
 0x612   : > { %15306 = vmatmul.mubr.msk.f32.vlgmr.msra.gmra.mrb[10].mxu1 %vm2850_vm2, %v3026_v54 }
 0x613   : > { %15315 = vmatprep.mubr.msk.f32.mxu1 %vm17399_vm0, %v17398_v0 }
 0x616   : > { %15314 = vmatpush3.xpose.msk.msra.mxu1 %vm2850_vm2, %v3254_v33 }
 0x617   : > { %15323 = vmatprep.subr.mxu1 %v17398_v0 }
 0x619   : > { %15316 = vmatmul.mubr.msk.f32.vlgmr.msra.gmra.mrb[12].mxu1 %vm2850_vm2, %v3252_v55 }
 0x61a   : > { %15325 = vmatprep.mubr.msk.f32.mxu1 %vm17399_vm0, %v17398_v0 }
 0x641   : > { %v3247_v56 = vpop.f32.mrb[8].mxu0 }
 0x642   : > { %v3329_v57 = vmul.f32 0.35355338, %v3247_v56  ;;  %v15312_v58 = vpop.f32.mrb[9].mxu0 }
 0x644   : > { %v3331_v59 = vsel %vm2850_vm2, %v3329_v57, -inf }
 0x645   : > { %3332 = vmax.xlane.f32.xlu0 %v3331_v59 }
 0x6d2   : > { %v3333_v60 = vpop.xlane.xlu0 %3332 }
 0x6d3   : > { %v3337_v61 = vsub.f32 %v3329_v57, %v3333_v60 }
 0x6d5   : > { %v3339_v62 = vmul.f32 1.442695, %v3337_v61 }
 0x6d7   : > { %16335 = vpow2.f32 %v3339_v62 }
 0x6e1   : > { %v16336_v63 = vpop.eup %16335  ;;  %v18622_v1 = vpop.f32.mrb[8].mxu1 }
 0x6e2   : > { %v15302_v2 = vpop.f32.mrb[9].mxu1  ;;  %v3343_v3 = vsel %vm2850_vm2, %v16336_v63, 0.0 }
 0x6e3   : > { %3344 = vadd.xlane.f32.xlu0 %v3343_v3 }
 0x6e5   : > { %v18625_v4 = vpop.f32.mrb[10].mxu1 }
 0x6e6   : > { %v15307_v7 = vpop.f32.mrb[11].mxu1 }
 0x6ec   : > { %v3325_v8 = vpop.f32.mrb[12].mxu1 }
 0x6ed   : > { %v3330_v9 = vmul.f32 0.35355338, %v3325_v8  ;;  %v15317_v12 = vpop.f32.mrb[13].mxu1 }
 0x6ef   : > { %v3334_v13 = vsel %vm2850_vm2, %v3330_v9, -inf }
 0x6f0   : > { %3335 = vmax.xlane.f32.xlu1 %v3334_v13 }
 0x6f9   : > { %3354 = vrot.lane.b32.xlu0 %v18600_v44, %s20119_s25 }
 0x701   : > { %3431 = vrot.lane.b32.xlu1 %v18605_v47, %s20119_s25  ;;  %s20121_s25 = smov 16  }
 0x705   : > { %3509 = vrot.lane.b32.xlu1 %v18556_v11, %s20117_s2 }
 0x709   : > { %3587 = vrot.lane.b32.xlu1 %v18560_v15, %s20117_s2 }
 0x70d   : > { %3585 = vrot.lane.b32.xlu1 %v18571_v18, %s20117_s2 }
 0x770   : > { %v3345_v14 = vpop.xlane.xlu0 %3344 }
 0x771   : > { %16337 = vrcp.f32 %v3345_v14 }
 0x774   : > { %v3355_v16 = vpop.permute.xlu0 %3354 }
 0x775   : > { %15319 = vmatpush3.msra.mxu0 %v3355_v16 }
 0x776   : > { %15328 = vmatprep.subr.mxu0 %v17398_v0 }
 0x77b   : > { %v16338_v17 = vpop.eup %16337 }
 0x77c   : > { %v3350_v19 = vmul.f32 %v16338_v17, %v16336_v63 }
 0x77d   : > { %v3336_v20 = vpop.xlane.xlu1 %3335 }
 0x77e   : > { %v3338_v21 = vsub.f32 %v3330_v9, %v3336_v20  ;;  %15321 = vmatmul.mubr.msk.f32.vlgmr.msra.gmra.mrb[10].mxu0 %vm2850_vm2, %v3350_v19 }
 0x77f   : > { %15330 = vmatprep.mubr.msk.f32.mxu0 %vm17399_vm0, %v17398_v0 }
 0x780   : > { %v3341_v22 = vmul.f32 1.442695, %v3338_v21 }
 0x781   : > { %v3432_v23 = vpop.permute.xlu1 %3431 }
 0x782   : > { %16339 = vpow2.f32 %v3341_v22  ;;  %15324 = vmatpush3.msra.mxu1 %v3432_v23 }
 0x783   : > { %15333 = vmatprep.subr.mxu1 %v17398_v0 }
 0x785   : > { %v3510_v24 = vpop.permute.xlu1 %3509 }
 0x786   : > { %15329 = vmatpush3.xpose.msk.msra.mxu0 %vm2850_vm2, %v3510_v24 }
 0x787   : > { %15338 = vmatprep.subr.mxu0 %v17398_v0 }
 0x789   : > { %v3588_v30 = vpop.permute.xlu1 %3587 }
 0x78c   : > { %v16340_v25 = vpop.eup %16339 }
 0x78d   : > { %v3346_v26 = vsel %vm2850_vm2, %v16340_v25, 0.0  ;;  %v3586_v32 = vpop.permute.xlu1 %3585 }
 0x78e   : > { %3347 = vadd.xlane.f32.xlu0 %v3346_v26 }
 0x7a4   : > { %3507 = vrot.lane.b32.xlu0 %v18554_v10, %s20117_s2 }
 0x81b   : > { %v3348_v27 = vpop.xlane.xlu0 %3347 }
 0x81c   : > { %16341 = vrcp.f32 %v3348_v27 }
 0x81f   : > { %v3508_v28 = vpop.permute.xlu0 %3507 }
 0x820   : > { %15331 = vmatmul.mubr.msk.f32.vlgmr.msra.gmra.mrb[12].mxu0 %vm2850_vm2, %v3508_v28 }
 0x821   : > { %15340 = vmatprep.mubr.msk.f32.mxu0 %vm17399_vm0, %v17398_v0 }
 0x826   : > { %v16342_v29 = vpop.eup %16341 }
 0x827   : > { %v3352_v31 = vmul.f32 %v16342_v29, %v16340_v25 }
 0x829   : > { %15326 = vmatmul.mubr.msk.f32.vlgmr.msra.gmra.mrb[14].mxu1 %vm2850_vm2, %v3352_v31 }
 0x82a   : > { %15334 = vmatpush3.xpose.msk.msra.mxu1 %vm2850_vm2, %v3588_v30  ;;  %15335 = vmatprep.mubr.msk.f32.mxu1 %vm17399_vm0, %v17398_v0 }
 0x82b   : > { %15343 = vmatprep.subr.mxu1 %v17398_v0 }
 0x82d   : > { %15336 = vmatmul.mubr.msk.f32.vlgmr.msra.gmra.mrb[16].mxu1 %vm2850_vm2, %v3586_v32 }
 0x82e   : > { %15345 = vmatprep.mubr.msk.f32.mxu1 %vm17399_vm0, %v17398_v0 }
 0x851   : > { %v18659_v33 = vpop.f32.mrb[10].mxu0 }
 0x852   : > { %v15322_v34 = vpop.f32.mrb[11].mxu0 }
 0x8f3   : > { %v3581_v35 = vpop.f32.mrb[12].mxu0 }
 0x8f4   : > { %v3663_v36 = vmul.f32 0.35355338, %v3581_v35  ;;  %v15332_v37 = vpop.f32.mrb[13].mxu0 }
 0x8f6   : > { %v3665_v38 = vsel %vm2850_vm2, %v3663_v36, -inf }
 0x8f7   : > { %3666 = vmax.xlane.f32.xlu0 %v3665_v38 }
 0x8fc   : > { %v18662_v39 = vpop.f32.mrb[14].mxu1 }
 0x8fd   : > { %v16163_v40 = vpack.i.bf16 %v18662_v39, %v18659_v33  ;;  %v15327_v41 = vpop.f32.mrb[15].mxu1 }
 0x8fe   : > { %v16260_v41 = vld [vmem:[%s18498_s16 + $0x8] sm:$0xff]  }
 0x900   : > { %v3659_v42 = vpop.f32.mrb[16].mxu1 }
 0x901   : > { %v3664_v43 = vmul.f32 0.35355338, %v3659_v42  ;;  %v15337_v45 = vpop.f32.mrb[17].mxu1 }
 0x903   : > { %v3668_v46 = vsel %vm2850_vm2, %v3664_v43, -inf }
 0x904   : > { %3669 = vmax.xlane.f32.xlu1 %v3668_v46 }
 0x915   : > { %3763 = vrot.lane.b32.xlu1 %v18605_v47, %s20117_s2 }
 0x919   : > { %3841 = vrot.lane.b32.xlu1 %v18556_v11, %s20128_s26 }
 0x91d   : > { %3919 = vrot.lane.b32.xlu1 %v18560_v15, %s20128_s26 }
 0x921   : > { %3917 = vrot.lane.b32.xlu1 %v18571_v18, %s20128_s26 }
 0x984   : > { %v3667_v48 = vpop.xlane.xlu0 %3666 }
 0x985   : > { %v3671_v49 = vsub.f32 %v3663_v36, %v3667_v48 }
 0x987   : > { %v3673_v50 = vmul.f32 1.442695, %v3671_v49 }
 0x989   : > { %16343 = vpow2.f32 %v3673_v50 }
 0x991   : > { %v3670_v51 = vpop.xlane.xlu1 %3669 }
 0x992   : > { %v3672_v11 = vsub.f32 %v3664_v43, %v3670_v51 }
 0x993   : > { %v16344_v52 = vpop.eup %16343 }
 0x994   : > { %v3677_v53 = vsel %vm2850_vm2, %v16344_v52, 0.0  ;;  %v3675_v15 = vmul.f32 1.442695, %v3672_v11 }
 0x995   : > { %v3764_v54 = vpop.permute.xlu1 %3763  ;;  %3678 = vadd.xlane.f32.xlu0 %v3677_v53 }
 0x996   : > { %15344 = vmatpush3.msra.mxu1 %v3764_v54  ;;  %16345 = vpow2.f32 %v3675_v15 }
 0x997   : > { %15353 = vmatprep.subr.mxu1 %v17398_v0 }
 0x999   : > { %v3842_v60 = vpop.permute.xlu1 %3841 }
 0x99d   : > { %v3920_v63 = vpop.permute.xlu1 %3919 }
 0x9a0   : > { %v16346_v18 = vpop.eup %16345 }
 0x9a1   : > { %v3680_v55 = vsel %vm2850_vm2, %v16346_v18, 0.0  ;;  %v3918_v3 = vpop.permute.xlu1 %3917 }
 0x9ab   : > { %3687 = vrot.lane.b32.xlu0 %v18600_v44, %s20117_s2  ;;  %s20126_s2 = smov 8  }
 0x9ca   : > { %3681 = vadd.xlane.f32.xlu0 %v3680_v55 }
 0x9e0   : > { %3839 = vrot.lane.b32.xlu0 %v18554_v10, %s20128_s26 }
 0xa22   : > { %v3679_v56 = vpop.xlane.xlu0 %3678 }
 0xa23   : > { %16347 = vrcp.f32 %v3679_v56 }
 0xa26   : > { %v3688_v57 = vpop.permute.xlu0 %3687 }
 0xa27   : > { %15339 = vmatpush3.msra.mxu0 %v3688_v57 }
 0xa28   : > { %15348 = vmatprep.subr.mxu0 %v17398_v0 }
 0xa2d   : > { %v16348_v58 = vpop.eup %16347 }
 0xa2e   : > { %v3684_v59 = vmul.f32 %v16348_v58, %v16344_v52 }
 0xa30   : > { %15341 = vmatmul.mubr.msk.f32.vlgmr.msra.gmra.mrb[14].mxu0 %vm2850_vm2, %v3684_v59 }
 0xa31   : > { %15349 = vmatpush3.xpose.msk.msra.mxu0 %vm2850_vm2, %v3842_v60  ;;  %15350 = vmatprep.mubr.msk.f32.mxu0 %vm17399_vm0, %v17398_v0 }
 0xa32   : > { %15358 = vmatprep.subr.mxu0 %v17398_v0 }
 0xa57   : > { %v3682_v61 = vpop.xlane.xlu0 %3681 }
 0xa58   : > { %16349 = vrcp.f32 %v3682_v61 }
 0xa5b   : > { %v3840_v10 = vpop.permute.xlu0 %3839 }
 0xa5c   : > { %15351 = vmatmul.mubr.msk.f32.vlgmr.msra.gmra.mrb[16].mxu0 %vm2850_vm2, %v3840_v10 }
 0xa5d   : > { %15360 = vmatprep.mubr.msk.f32.mxu0 %vm17399_vm0, %v17398_v0 }
 0xa62   : > { %v16350_v62 = vpop.eup %16349 }
 0xa63   : > { %v3686_v2 = vmul.f32 %v16350_v62, %v16346_v18 }
 0xa65   : > { %15346 = vmatmul.mubr.msk.f32.vlgmr.msra.gmra.mrb[18].mxu1 %vm2850_vm2, %v3686_v2 }
 0xa66   : > { %15354 = vmatpush3.xpose.msk.msra.mxu1 %vm2850_vm2, %v3920_v63  ;;  %15355 = vmatprep.mubr.msk.f32.mxu1 %vm17399_vm0, %v17398_v0 }
 0xa67   : > { %15363 = vmatprep.subr.mxu1 %v17398_v0 }
 0xa69   : > { %15356 = vmatmul.mubr.msk.f32.vlgmr.msra.gmra.mrb[20].mxu1 %vm2850_vm2, %v3918_v3 }
 0xa6a   : > { %15365 = vmatprep.mubr.msk.f32.mxu1 %vm17399_vm0, %v17398_v0 }
 0xb03   : > { %v3759_v7 = vpop.f32.mrb[14].mxu0 }
 0xb04   : > { %v15342_v8 = vpop.f32.mrb[15].mxu0 }
 0xb2f   : > { %v3913_v9 = vpop.f32.mrb[16].mxu0 }
 0xb30   : > { %v3995_v12 = vmul.f32 0.35355338, %v3913_v9  ;;  %v15352_v13 = vpop.f32.mrb[17].mxu0 }
 0xb32   : > { %v3997_v14 = vsel %vm2850_vm2, %v3995_v12, -inf }
 0xb33   : > { %3998 = vmax.xlane.f32.xlu0 %v3997_v14 }
 0xb38   : > { %v3835_v16 = vpop.f32.mrb[18].mxu1 }
 0xb39   : > { %v16168_v17 = vpack.i.bf16 %v3835_v16, %v3759_v7  ;;  %v15347_v19 = vpop.f32.mrb[19].mxu1 }
 0xb3c   : > { %v3991_v20 = vpop.f32.mrb[20].mxu1 }
 0xb3d   : > { %v3996_v21 = vmul.f32 0.35355338, %v3991_v20  ;;  %v15357_v22 = vpop.f32.mrb[21].mxu1 }
 0xb3f   : > { %v4000_v23 = vsel %vm2850_vm2, %v3996_v21, -inf }
 0xb40   : > { %4001 = vmax.xlane.f32.xlu1 %v4000_v23  ;;  %v16261_v23 = vld [vmem:[%s18507_s8] sm:$0xff]  }
 0xb51   : > { %4095 = vrot.lane.b32.xlu1 %v18605_v47, %s20128_s26 }
 0xb55   : > { %16164 = vrot.lane.b32.xlu1 %v16163_v40, %s20126_s2 }
 0xb59   : > { %16169 = vrot.lane.b32.xlu1 %v16168_v17, %s20121_s25  ;;  %s20124_s25 = smov 24  }
 0xbc0   : > { %v3999_v24 = vpop.xlane.xlu0 %3998 }
 0xbc1   : > { %v4003_v25 = vsub.f32 %v3995_v12, %v3999_v24  ;;  %v16262_v24 = vld [vmem:[%s18507_s8 + $0x8] sm:$0xff]  }
 0xbc3   : > { %v4005_v26 = vmul.f32 1.442695, %v4003_v25 }
 0xbc5   : > { %16351 = vpow2.f32 %v4005_v26 }
 0xbcd   : > { %v4002_v27 = vpop.xlane.xlu1 %4001 }
 0xbce   : > { %v4004_v28 = vsub.f32 %v3996_v21, %v4002_v27 }
 0xbcf   : > { %v16352_v29 = vpop.eup %16351 }
 0xbd0   : > { %v4007_v30 = vmul.f32 1.442695, %v4004_v28  ;;  %v4009_v31 = vsel %vm2850_vm2, %v16352_v29, 0.0 }
 0xbd1   : > { %v4096_v47 = vpop.permute.xlu1 %4095  ;;  %4010 = vadd.xlane.f32.xlu0 %v4009_v31 }
 0xbd2   : > { %16353 = vpow2.f32 %v4007_v30  ;;  %15364 = vmatpush3.msra.mxu1 %v4096_v47 }
 0xbd3   : > { %15376 = vmatprep.subr.bf16.mxu1 %v17398_v0 }
 0xbd5   : > { %v16165_v49 = vpop.permute.xlu1 %16164 }
 0xbd6   : > { %v16167_v51 = vunpack.i.h.bf16 %v16165_v49  ;;  %v16166_v52 = vunpack.i.l.bf16 %v16165_v49 }
 0xbd8   : > { %v4196_v15 = vsel %vm2850_vm2, %v18625_v4, %v16167_v51  ;;  %v4195_v18 = vsel %vm2850_vm2, %v18622_v1, %v16166_v52  ;;  %v14567_v4 = vld [vmem:[%s20123_s3] ss:$0 sm:$0xff]  ;;  %s20231_s3 = sld [smem:[#allocation86_spill]] }
 0xbd9   : > { %v16170_v50 = vpop.permute.xlu1 %16169 }
 0xbda   : > { %v16172_v53 = vunpack.i.h.bf16 %v16170_v50  ;;  %v16171_v54 = vunpack.i.l.bf16 %v16170_v50 }
 0xbdc   : > { %v16354_v32 = vpop.eup %16353  ;;  %v4199_v57 = vsel %vm4197_vm3, %v4196_v15, %v16172_v53  ;;  %v4198_v58 = vsel %vm4197_vm3, %v4195_v18, %v16171_v54 }
 0xbdd   : > { %v4012_v33 = vsel %vm2850_vm2, %v16354_v32, 0.0 }
 0xbde   : > { %4013 = vadd.xlane.f32.xlu0 %v4012_v33 }
 0xbf4   : > { %4019 = vrot.lane.b32.xlu0 %v18600_v44, %s20128_s26  ;;  %v16259_v44 = vld [vmem:[%s18498_s16] sm:$0xff]   ;;  %s20232_s26 = sld [smem:[#allocation88_spill]] }
 0xc5e   : > { %v4011_v34 = vpop.xlane.xlu0 %4010 }
 0xc5f   : > { %16355 = vrcp.f32 %v4011_v34 }
 0xc69   : > { %v16356_v36 = vpop.eup %16355 }
 0xc6a   : > { %v4016_v38 = vmul.f32 %v16356_v36, %v16352_v29 }
 0xc6b   : > { %v4014_v35 = vpop.xlane.xlu0 %4013 }
 0xc6c   : > { %16357 = vrcp.f32 %v4014_v35 }
 0xc6f   : > { %v4020_v37 = vpop.permute.xlu0 %4019 }
 0xc70   : > { %15359 = vmatpush3.msra.mxu0 %v4020_v37 }
 0xc71   : > { %15361 = vmatmul.mubr.msk.f32.vlgmr.msra.gmra.mrb[18].mxu0 %vm2850_vm2, %v4016_v38  ;;  %15368 = vmatprep.subr.bf16.mxu0 %v17398_v0 }
 0xc72   : > { %15372 = vmatprep.mubr.msk.bf16.mxu0 %vm17399_vm0, %v17398_v0  ;;  %15369 = vmatpush3.bf16.msra.mxu0 %v16259_v44 }
 0xc73   : > { %15370 = vmatprep.subr.bf16.mxu0 %v17398_v0 }
 0xc76   : > { %v16358_v39 = vpop.eup %16357  ;;  %15371 = vmatpush3.bf16.msra.mxu0 %v16260_v41 }
 0xc77   : > { %v4018_v40 = vmul.f32 %v16358_v39, %v16354_v32  ;;  %15384 = vmatprep.subr.bf16.mxu0 %v17398_v0 }
 0xc79   : > { %15366 = vmatmul.mubr.msk.f32.vlgmr.msra.gmra.mrb[22].mxu1 %vm2850_vm2, %v4018_v40 }
 0xc7a   : > { %15380 = vmatprep.mubr.msk.bf16.mxu1 %vm17399_vm0, %v17398_v0  ;;  %15377 = vmatpush3.bf16.msra.mxu1 %v16261_v23 }
 0xc7b   : > { %15378 = vmatprep.subr.bf16.mxu1 %v17398_v0 }
 0xc7e   : > { %15379 = vmatpush3.bf16.msra.mxu1 %v16262_v24 }
 0xc7f   : > { %15396 = vmatprep.subr.bf16.mxu1 %v17398_v0 }
 0xd44   : > { %v4091_v42 = vpop.f32.mrb[18].mxu0 }
 0xd45   : > { %v15362_v43 = vpop.f32.mrb[19].mxu0 }
 0xd4c   : > { %v4167_v45 = vpop.f32.mrb[22].mxu1 }
 0xd4d   : > { %v16173_v46 = vpack.i.bf16 %v4167_v45, %v4091_v42  ;;  %v15367_v48 = vpop.f32.mrb[23].mxu1 }
 0xd4f   : > { %16174 = vrot.lane.b32.xlu0 %v16173_v46, %s20124_s25  ;;  %s20131_s25 = sshll.u32 %s20299_s1, 6 }
 0xd50   : > { %s18752_s2 = scalar_lea.vmem %s20231_s3, %s20131_s25  ;;  %s18759_s3 = sshll.u32 %s20299_s1, 1 }
 0xd51   : > { %v16263_v25 = vld [vmem:[%s18752_s2] sm:$0xff]   ;;  %v16264_v26 = vld [vmem:[%s18752_s2 + $0x8] sm:$0xff]   ;;  %s18763_s25 = scalar_lea.vmem %s20232_s26, %s18759_s3  ;;  %s18768_s27 = scalar_lea.vmem %s20233_s5, %s18759_s3  ;;  %v16265_v42 = vld [vmem:[%s18752_s2 + $0x10] sm:$0xff]  }
 0xd52   : > { %v14571_v34 = vld [vmem:[%s18763_s25] ss:$0 sm:$0xff]  ;;  %v16266_v43 = vld [vmem:[%s18752_s2 + $0x18] sm:$0xff]   ;;  %s20235_s5 = sld [smem:[#allocation84_spill]]  ;;  %s18780_s26 = scalar_lea.vmem %s20234_s6, %s18759_s3 }
 0xd53   : > { %v14572_v38 = vld [vmem:[%s18768_s27] ss:$0 sm:$0xff]  ;;  %s20236_s6 = sld [smem:[#allocation90_spill]] }
 0xd54   : > { %v14573_v45 = vld [vmem:[%s18780_s26] ss:$0 sm:$0xff] }
 0xd58   : > { %s18788_s9 = scalar_lea.vmem %s20235_s5, %s18759_s3  ;;  %s20237_s5 = sld [smem:[#allocation89_spill]] }
 0xd59   : > { %v14577_v15 = vld [vmem:[%s18788_s9] ss:$0 sm:$0xff] }
 0xdc1   : > { %v16175_v11 = vpop.permute.xlu0 %16174 }
 0xdc2   : > { %v16177_v55 = vunpack.i.h.bf16 %v16175_v11  ;;  %v16176_v56 = vunpack.i.l.bf16 %v16175_v11 }
 0xdc4   : > { %v4202_v59 = vsel %vm4200_vm4, %v4199_v57, %v16177_v55  ;;  %v4201_v60 = vsel %vm4200_vm4, %v4198_v58, %v16176_v56 }
 0xdc5   : > { %v4203_v61 = vpack.c.bf16 %v4202_v59, %v4201_v60 }
 0xdc7   : > { %15373 = vmatmul.mubr.msk.bf16.vlgmr.msra.gmra.mrb[20].mxu0 %vm2693_vm1, %v4203_v61 }
 0xdc8   : > { %15392 = vmatprep.mubr.msk.bf16.mxu0 %vm17399_vm0, %v17398_v0  ;;  %15385 = vmatpush3.bf16.msra.mxu0 %v16263_v25 }
 0xdc9   : > { %15386 = vmatprep.subr.bf16.mxu0 %v17398_v0 }
 0xdcc   : > { %15387 = vmatpush3.bf16.msra.mxu0 %v16264_v26 }
 0xdcd   : > { %15388 = vmatprep.subr.bf16.mxu0 %v17398_v0 }
 0xdd0   : > { %15389 = vmatpush3.bf16.msra.mxu0 %v16265_v42 }
 0xdd1   : > { %15390 = vmatprep.subr.bf16.mxu0 %v17398_v0 }
 0xdd4   : > { %15391 = vmatpush3.bf16.msra.mxu0 %v16266_v43 }
 0xdd5   : > { %15412 = vmatprep.subr.bf16.mxu0 %v17398_v0 }
 0xe9a   : > { %v4259_v10 = vpop.f32.mrb[20].mxu0 }
 0xe9b   : > { %v4260_v1 = vadd.f32 %v14567_v4, %v4259_v10  ;;  %v15374_v62 = vpop.f32.mrb[21].mxu0 }
 0xe9c   : > { %v4262_v63 = vpop.f32.mrb[22].mxu0 }
 0xe9d   : > { %v4263_v2 = vadd.f32 %v14567_v4, %v4262_v63  ;;  %v15375_v3 = vpop.f32.mrb[23].mxu0  ;;  %v4266_v7 = vadd.f32 %v4260_v1, %v18537_v5 }
 0xe9f   : > { %v4270_v8 = vsel %vm2693_vm1, %v4266_v7, 0.0  ;;  %v4267_v9 = vadd.f32 %v4263_v2, %v18540_v6 }
 0xea0   : > { %4271 = vadd.xlane.f32.xlu1 %v4270_v8 }
 0xea1   : > { %v4273_v12 = vsel %vm2693_vm1, %v4267_v9, 0.0 }
 0xea2   : > { %4274 = vadd.xlane.f32.xlu0 %v4273_v12 }
 0xf2d   : > { %v4272_v13 = vpop.xlane.xlu1 %4271 }
 0xf2e   : > { %v4277_v14 = vmul.f32 0.03125, %v4272_v13 }
 0xf2f   : > { %v4275_v16 = vpop.xlane.xlu0 %4274 }
 0xf30   : > { %v4279_v17 = vsub.f32 %v4266_v7, %v4277_v14  ;;  %v4278_v19 = vmul.f32 0.03125, %v4275_v16  ;;  %v16267_v14 = vld [vmem:[%s18528_s7 + $0x10] sm:$0xff]   ;;  %v16268_v16 = vld [vmem:[%s18504_s23 + $0x10] sm:$0xff]  }
 0xf32   : > { %v4280_v20 = vsub.f32 %v4267_v9, %v4278_v19  ;;  %v4281_v5 = vmul.f32 %v4279_v17, %v4279_v17  ;;  %v16270_v19 = vld [vmem:[%s18504_s23 + $0x18] sm:$0xff]   ;;  %s18805_s23 = scalar_lea.vmem %s20236_s6, %s18759_s3  ;;  %s20240_s6 = smov 120  }
 0xf33   : > { %v14583_v25 = vld [vmem:[%s18805_s23] ss:$0 sm:$0xff] }
 0xf34   : > { %v4283_v21 = vsel %vm2693_vm1, %v4281_v5, 0.0  ;;  %v4282_v22 = vmul.f32 %v4280_v20, %v4280_v20 }
 0xf35   : > { %4284 = vadd.xlane.f32.xlu0 %v4283_v21 }
 0xf36   : > { %v4286_v6 = vsel %vm2693_vm1, %v4282_v22, 0.0 }
 0xf39   : > { %4287 = vadd.xlane.f32.xlu0 %v4286_v6 }
 0xfc2   : > { %v4285_v27 = vpop.xlane.xlu0 %4284 }
 0xfc3   : > { %v4289_v28 = vmul.f32 0.03125, %v4285_v27 }
 0xfc5   : > { %v4291_v29 = vadd.f32 1e-05, %v4289_v28 }
 0xfc6   : > { %v4288_v30 = vpop.xlane.xlu0 %4287 }
 0xfc7   : > { %16359 = vrsqrt.f32 %v4291_v29  ;;  %v4290_v31 = vmul.f32 0.03125, %v4288_v30 }
 0xfc9   : > { %v4292_v47 = vadd.f32 1e-05, %v4290_v31 }
 0xfcb   : > { %16361 = vrsqrt.f32 %v4292_v47 }
 0xfd1   : > { %v16360_v32 = vpop.eup %16359 }
 0xfd2   : > { %v4295_v33 = vmul.f32 %v16360_v32, %v4279_v17  ;;  %v16269_v17 = vld [vmem:[%s18528_s7 + $0x18] sm:$0xff]   ;;  %s18810_s7 = scalar_lea.vmem %s20237_s5, %s18759_s3  ;;  %s20238_s3 = scalar_lea.vmem [#allocation31], %s18413_s11 }
 0xfd3   : > { %v14584_v30 = vld [vmem:[%s18810_s7] ss:$0 sm:$0xff]  ;;  %s20241_s5 = smov 112  }
 0xfd4   : > { %v4303_v36 = vmul.f32 %v14571_v34, %v4295_v33  ;;  %v16271_v33 = vld [vmem:[%s18495_s4 + $0x10] sm:$0xff]  }
 0xfd5   : > { %v16362_v35 = vpop.eup %16361 }
 0xfd6   : > { %v4296_v37 = vmul.f32 %v16362_v35, %v4280_v20  ;;  %v4311_v40 = vadd.f32 %v14572_v38, %v4303_v36  ;;  %v16272_v35 = vld [vmem:[%s18495_s4 + $0x18] sm:$0xff]   ;;  %s20239_s4 = scalar_lea.vmem [#allocation30], %s18413_s11 }
 0xfd7   : > { %v14611_v36 = vld [vmem:[%s20238_s3 + $0x1] ss:$0 sm:$0xff]  ;;  %s20242_s3 = smov 104  }
 0xfd8   : > { %v4304_v39 = vmul.f32 %v14571_v34, %v4296_v37 }
 0xfda   : > { %v4312_v44 = vadd.f32 %v14572_v38, %v4304_v39 }
 0xfdc   : > { %v4317_v41 = vpack.c.bf16 %v4312_v44, %v4311_v40 }
 0xfde   : > { %15381 = vmatmul.mubr.msk.bf16.vlgmr.msra.gmra.mrb[24].mxu1 %vm2693_vm1, %v4317_v41 }
 0xfdf   : > { %15400 = vmatprep.mubr.msk.bf16.mxu1 %vm17399_vm0, %v17398_v0  ;;  %15397 = vmatpush3.bf16.msra.mxu1 %v16267_v14 }
 0xfe0   : > { %15398 = vmatprep.subr.bf16.mxu1 %v17398_v0 }
 0xfe3   : > { %15399 = vmatpush3.bf16.msra.mxu1 %v16269_v17 }
 0xfe4   : > { %15404 = vmatprep.subr.bf16.mxu1 %v17398_v0 }
0x10b1   : > { %v4374_v46 = vpop.f32.mrb[24].mxu1 }
0x10b2   : > { %v4375_v48 = vadd.f32 %v14573_v45, %v4374_v46  ;;  %v15382_v49 = vpop.f32.mrb[25].mxu1  ;;  %v14604_v46 = vld [vmem:[%s20239_s4 + $0x1] ss:$0 sm:$0xff]  ;;  %s20243_s4 = smov 8  }
0x10b3   : > { %v4377_v50 = vpop.f32.mrb[26].mxu1 }
0x10b4   : > { %v4378_v51 = vadd.f32 %v14573_v45, %v4377_v50  ;;  %v15383_v52 = vpop.f32.mrb[27].mxu1  ;;  %v4381_v53 = vmax.f32 %v4375_v48, 0.0 }
0x10b6   : > { %v4382_v54 = vmax.f32 %v4378_v51, 0.0 }
0x10b8   : > { %v4391_v11 = vpack.c.bf16 %v4382_v54, %v4381_v53 }
0x10ba   : > { %15393 = vmatmul.mubr.msk.bf16.vlgmr.msra.gmra.mrb[24].mxu0 %vm4423_vm5, %v4391_v11 }
0x10bb   : > { %15416 = vmatprep.mubr.msk.bf16.mxu0 %vm17399_vm0, %v17398_v0  ;;  %15413 = vmatpush3.bf16.msra.mxu0 %v16268_v16 }
0x10bc   : > { %15414 = vmatprep.subr.bf16.mxu0 %v17398_v0 }
0x10bf   : > { %15415 = vmatpush3.bf16.msra.mxu0 %v16270_v19 }
0x10c0   : > { %15430 = vmatprep.subr.mxu0 %v17398_v0 }
0x118d   : > { %v4461_v18 = vpop.f32.mrb[24].mxu0 }
0x118e   : > { %v4462_v55 = vadd.f32 %v14577_v15, %v4461_v18  ;;  %v15394_v56 = vpop.f32.mrb[25].mxu0 }
0x118f   : > { %v4464_v57 = vpop.f32.mrb[26].mxu0 }
0x1190   : > { %v4465_v58 = vadd.f32 %v14577_v15, %v4464_v57  ;;  %v15395_v59 = vpop.f32.mrb[27].mxu0  ;;  %v4468_v60 = vadd.f32 %v4462_v55, %v4311_v40 }
0x1192   : > { %v4472_v61 = vsel %vm2693_vm1, %v4468_v60, 0.0  ;;  %v4469_v4 = vadd.f32 %v4465_v58, %v4312_v44 }
0x1193   : > { %4473 = vadd.xlane.f32.xlu1 %v4472_v61 }
0x1194   : > { %v4475_v10 = vsel %vm2693_vm1, %v4469_v4, 0.0 }
0x1195   : > { %4476 = vadd.xlane.f32.xlu0 %v4475_v10 }
0x1220   : > { %v4474_v1 = vpop.xlane.xlu1 %4473 }
0x1221   : > { %v4478_v62 = vmul.f32 0.03125, %v4474_v1 }
0x1222   : > { %v4477_v63 = vpop.xlane.xlu0 %4476 }
0x1223   : > { %v4480_v2 = vsub.f32 %v4468_v60, %v4478_v62  ;;  %v4479_v3 = vmul.f32 0.03125, %v4477_v63 }
0x1225   : > { %v4481_v7 = vsub.f32 %v4469_v4, %v4479_v3  ;;  %v4482_v8 = vmul.f32 %v4480_v2, %v4480_v2 }
0x1227   : > { %v4484_v9 = vsel %vm2693_vm1, %v4482_v8, 0.0  ;;  %v4483_v12 = vmul.f32 %v4481_v7, %v4481_v7 }
0x1228   : > { %4485 = vadd.xlane.f32.xlu1 %v4484_v9 }
0x1229   : > { %v4487_v13 = vsel %vm2693_vm1, %v4483_v12, 0.0 }
0x122a   : > { %4488 = vadd.xlane.f32.xlu0 %v4487_v13 }
0x12b5   : > { %v4486_v20 = vpop.xlane.xlu1 %4485 }
0x12b6   : > { %v4490_v5 = vmul.f32 0.03125, %v4486_v20 }
0x12b7   : > { %v4489_v21 = vpop.xlane.xlu0 %4488 }
0x12b8   : > { %v4492_v22 = vadd.f32 1e-05, %v4490_v5  ;;  %v4491_v6 = vmul.f32 0.03125, %v4489_v21 }
0x12ba   : > { %16363 = vrsqrt.f32 %v4492_v22  ;;  %v4493_v23 = vadd.f32 1e-05, %v4491_v6 }
0x12bc   : > { %16365 = vrsqrt.f32 %v4493_v23 }
0x12c4   : > { %v16364_v24 = vpop.eup %16363 }
0x12c5   : > { %v4496_v26 = vmul.f32 %v16364_v24, %v4480_v2 }
0x12c6   : > { %v16366_v27 = vpop.eup %16365 }
0x12c7   : > { %v4504_v28 = vmul.f32 %v14583_v25, %v4496_v26  ;;  %v4497_v29 = vmul.f32 %v16366_v27, %v4481_v7 }
0x12c9   : > { %v4505_v31 = vmul.f32 %v14583_v25, %v4497_v29  ;;  %v18813_v47 = vadd.f32 %v14584_v30, %v4504_v28 }
0x12cb   : > { %v18815_v32 = vadd.f32 %v14584_v30, %v4505_v31 }
0x12cd   : > { %v4540_v34 = vpack.c.bf16 %v18815_v32, %v18813_v47 }
0x12cf   : > { %15401 = vmatmul.mubr.msk.bf16.vlgmr.msra.gmra.mrb[28].mxu1 %vm2693_vm1, %v4540_v34  ;;  %15417 = vmatmul.mubr.msk.bf16.vlgmr.msra.gmra.mrb[28].mxu0 %vm2693_vm1, %v4540_v34 }
0x12d0   : > { %15405 = vmatpush3.bf16.msra.mxu1 %v16271_v33  ;;  %15408 = vmatprep.mubr.msk.bf16.mxu1 %vm17399_vm0, %v17398_v0 }
0x12d1   : > { %15406 = vmatprep.subr.bf16.mxu1 %v17398_v0  ;;  %15432 = vmatprep.mubr.msk.f32.mxu0 %vm17399_vm0, %v17398_v0 }
0x12d4   : > { %15407 = vmatpush3.bf16.msra.mxu1 %v16272_v35 }
0x12d5   : > { %15420 = vmatprep.subr.mxu1 %v17398_v0 }
0x12d7   : > { %15409 = vmatmul.mubr.msk.bf16.vlgmr.msra.gmra.mrb[32].mxu1 %vm2693_vm1, %v4540_v34 }
0x12d8   : > { %15422 = vmatprep.mubr.msk.f32.mxu1 %vm17399_vm0, %v17398_v0 }
0x13a2   : > { %v4596_v37 = vpop.f32.mrb[28].mxu1  ;;  %v4708_v38 = vpop.f32.mrb[28].mxu0 }
0x13a3   : > { %v18834_v39 = vadd.f32 %v14611_v36, %v4708_v38  ;;  %v15402_v40 = vpop.f32.mrb[29].mxu1  ;;  %v15418_v44 = vpop.f32.mrb[29].mxu0  ;;  %v18844_v50 = vadd.f32 %v14604_v46, %v4596_v37 }
0x13a4   : > { %v4599_v41 = vpop.f32.mrb[30].mxu1  ;;  %v4711_v42 = vpop.f32.mrb[30].mxu0 }
0x13a5   : > { %v15403_v43 = vpop.f32.mrb[31].mxu1  ;;  %v15419_v45 = vpop.f32.mrb[31].mxu0  ;;  %15431 = vmatpush3.msra.mxu0 %v18834_v39  ;;  %v18855_v53 = vadd.f32 %v14604_v46, %v4599_v41  ;;  %v18858_v54 = vadd.f32 %v14611_v36, %v4711_v42 }
0x13a6   : > { %15440 = vmatprep.subr.mxu0 %v17398_v0 }
0x13aa   : > { %v18840_v48 = vpop.f32.mrb[32].mxu1 }
0x13ab   : > { %v15410_v49 = vpop.f32.mrb[33].mxu1  ;;  %15421 = vmatpush3.xpose.msk.msra.mxu1 %vm2850_vm2, %v18840_v48 }
0x13ac   : > { %v18846_v51 = vpop.f32.mrb[34].mxu1  ;;  %15425 = vmatprep.subr.mxu1 %v17398_v0 }
0x13ad   : > { %v15411_v52 = vpop.f32.mrb[35].mxu1 }
0x13ae   : > { %15423 = vmatmul.mubr.msk.f32.vlgmr.msra.gmra.mrb[36].mxu1 %vm2850_vm2, %v18844_v50 }
0x13af   : > { %15426 = vmatpush3.xpose.msk.msra.mxu1 %vm2850_vm2, %v18846_v51  ;;  %15427 = vmatprep.mubr.msk.f32.mxu1 %vm17399_vm0, %v17398_v0 }
0x13b0   : > { %15435 = vmatprep.subr.mxu1 %v17398_v0 }
0x13b2   : > { %15428 = vmatmul.mubr.msk.f32.vlgmr.msra.gmra.mrb[38].mxu1 %vm2850_vm2, %v18855_v53 }
0x13b3   : > { %15436 = vmatpush3.msra.mxu1 %v18858_v54  ;;  %15437 = vmatprep.mubr.msk.f32.mxu1 %vm17399_vm0, %v17398_v0 }
0x13b4   : > { %15445 = vmatprep.subr.mxu1 %v17398_v0 }
0x1481   : > { %v4787_v11 = vpop.f32.mrb[36].mxu1 }
0x1482   : > { %v4867_v15 = vmul.f32 0.35355338, %v4787_v11  ;;  %v15424_v18 = vpop.f32.mrb[37].mxu1 }
0x1484   : > { %v4869_v55 = vsel %vm2850_vm2, %v4867_v15, -inf }
0x1485   : > { %4870 = vmax.xlane.f32.xlu1 %v4869_v55  ;;  %v4863_v56 = vpop.f32.mrb[38].mxu1 }
0x1486   : > { %v4868_v57 = vmul.f32 0.35355338, %v4863_v56  ;;  %v15429_v58 = vpop.f32.mrb[39].mxu1 }
0x1488   : > { %v4872_v59 = vsel %vm2850_vm2, %v4868_v57, -inf }
0x1489   : > { %4873 = vmax.xlane.f32.xlu0 %v4872_v59 }
0x1496   : > { %5039 = vrot.lane.b32.xlu1 %v18840_v48, %s20240_s6 }
0x1512   : > { %v4871_v60 = vpop.xlane.xlu1 %4870 }
0x1513   : > { %v4875_v61 = vsub.f32 %v4867_v15, %v4871_v60 }
0x1515   : > { %v4877_v4 = vmul.f32 1.442695, %v4875_v61 }
0x1516   : > { %v4874_v10 = vpop.xlane.xlu0 %4873  ;;  %v5040_v8 = vpop.permute.xlu1 %5039 }
0x1517   : > { %16367 = vpow2.f32 %v4877_v4  ;;  %v4876_v1 = vsub.f32 %v4868_v57, %v4874_v10 }
0x1519   : > { %v4879_v62 = vmul.f32 1.442695, %v4876_v1 }
0x151b   : > { %16369 = vpow2.f32 %v4879_v62 }
0x1521   : > { %v16368_v63 = vpop.eup %16367 }
0x1522   : > { %v4881_v2 = vsel %vm2850_vm2, %v16368_v63, 0.0 }
0x1523   : > { %4882 = vadd.xlane.f32.xlu1 %v4881_v2 }
0x1525   : > { %v16370_v3 = vpop.eup %16369 }
0x1526   : > { %v4884_v7 = vsel %vm2850_vm2, %v16370_v3, 0.0 }
0x1527   : > { %4885 = vadd.xlane.f32.xlu0 %v4884_v7 }
0x1534   : > { %5037 = vrot.lane.b32.xlu1 %v18844_v50, %s20240_s6 }
0x1538   : > { %5115 = vrot.lane.b32.xlu1 %v18855_v53, %s20240_s6 }
0x153d   : > { %5117 = vrot.lane.b32.xlu0 %v18846_v51, %s20240_s6 }
0x15b0   : > { %v4883_v9 = vpop.xlane.xlu1 %4882 }
0x15b1   : > { %16371 = vrcp.f32 %v4883_v9 }
0x15b4   : > { %v4886_v12 = vpop.xlane.xlu0 %4885  ;;  %v5038_v17 = vpop.permute.xlu1 %5037 }
0x15b5   : > { %16373 = vrcp.f32 %v4886_v12 }
0x15b8   : > { %v5118_v20 = vpop.permute.xlu0 %5117  ;;  %v5116_v5 = vpop.permute.xlu1 %5115 }
0x15bb   : > { %v16372_v13 = vpop.eup %16371 }
0x15bc   : > { %v4888_v14 = vmul.f32 %v16372_v13, %v16368_v63 }
0x15be   : > { %15433 = vmatmul.mubr.msk.f32.vlgmr.msra.gmra.mrb[32].mxu0 %vm2850_vm2, %v4888_v14 }
0x15bf   : > { %v16374_v16 = vpop.eup %16373  ;;  %15441 = vmatpush3.xpose.msk.msra.mxu0 %vm2850_vm2, %v5040_v8  ;;  %15442 = vmatprep.mubr.msk.f32.mxu0 %vm17399_vm0, %v17398_v0 }
0x15c0   : > { %v4890_v19 = vmul.f32 %v16374_v16, %v16370_v3  ;;  %15450 = vmatprep.subr.mxu0 %v17398_v0 }
0x15c2   : > { %15438 = vmatmul.mubr.msk.f32.vlgmr.msra.gmra.mrb[40].mxu1 %vm2850_vm2, %v4890_v19  ;;  %15443 = vmatmul.mubr.msk.f32.vlgmr.msra.gmra.mrb[34].mxu0 %vm2850_vm2, %v5038_v17 }
0x15c3   : > { %15446 = vmatpush3.xpose.msk.msra.mxu1 %vm2850_vm2, %v5118_v20  ;;  %15447 = vmatprep.mubr.msk.f32.mxu1 %vm17399_vm0, %v17398_v0 }
0x15c4   : > { %15455 = vmatprep.subr.mxu1 %v17398_v0  ;;  %15452 = vmatprep.mubr.msk.f32.mxu0 %vm17399_vm0, %v17398_v0 }
0x15c6   : > { %15448 = vmatmul.mubr.msk.f32.vlgmr.msra.gmra.mrb[42].mxu1 %vm2850_vm2, %v5116_v5 }
0x15c7   : > { %15457 = vmatprep.mubr.msk.f32.mxu1 %vm17399_vm0, %v17398_v0 }
0x1691   : > { %v18894_v21 = vpop.f32.mrb[32].mxu0 }
0x1692   : > { %v15434_v22 = vpop.f32.mrb[33].mxu0 }
0x1695   : > { %v18896_v6 = vpop.f32.mrb[40].mxu1  ;;  %v5111_v23 = vpop.f32.mrb[34].mxu0 }
0x1696   : > { %v5193_v24 = vmul.f32 0.35355338, %v5111_v23  ;;  %v15439_v25 = vpop.f32.mrb[41].mxu1  ;;  %v15444_v26 = vpop.f32.mrb[35].mxu0 }
0x1698   : > { %v5195_v27 = vsel %vm2850_vm2, %v5193_v24, -inf }
0x1699   : > { %v5189_v28 = vpop.f32.mrb[42].mxu1  ;;  %5196 = vmax.xlane.f32.xlu1 %v5195_v27 }
0x169a   : > { %v5194_v29 = vmul.f32 0.35355338, %v5189_v28  ;;  %v15449_v30 = vpop.f32.mrb[43].mxu1 }
0x169c   : > { %v5198_v31 = vsel %vm2850_vm2, %v5194_v29, -inf }
0x169d   : > { %5199 = vmax.xlane.f32.xlu0 %v5198_v31 }
0x16aa   : > { %5218 = vrot.lane.b32.xlu1 %v18834_v39, %s20240_s6 }
0x16ae   : > { %5373 = vrot.lane.b32.xlu1 %v18840_v48, %s20241_s5 }
0x16b2   : > { %5451 = vrot.lane.b32.xlu1 %v18846_v51, %s20241_s5 }
0x16b3   : > { %5295 = vrot.lane.b32.xlu0 %v18858_v54, %s20240_s6 }
0x16b6   : > { %5371 = vrot.lane.b32.xlu1 %v18844_v50, %s20241_s5 }
0x1726   : > { %v5197_v33 = vpop.xlane.xlu1 %5196 }
0x1727   : > { %v5201_v34 = vsub.f32 %v5193_v24, %v5197_v33 }
0x1729   : > { %v5203_v35 = vmul.f32 1.442695, %v5201_v34 }
0x172a   : > { %v5200_v36 = vpop.xlane.xlu0 %5199  ;;  %v5219_v37 = vpop.permute.xlu1 %5218 }
0x172b   : > { %16375 = vpow2.f32 %v5203_v35  ;;  %v5202_v38 = vsub.f32 %v5194_v29, %v5200_v36  ;;  %15451 = vmatpush3.msra.mxu0 %v5219_v37 }
0x172c   : > { %15460 = vmatprep.subr.mxu0 %v17398_v0 }
0x172d   : > { %v5205_v40 = vmul.f32 1.442695, %v5202_v38 }
0x172e   : > { %v5296_v44 = vpop.permute.xlu0 %5295  ;;  %v5374_v52 = vpop.permute.xlu1 %5373 }
0x172f   : > { %16377 = vpow2.f32 %v5205_v40  ;;  %15456 = vmatpush3.msra.mxu1 %v5296_v44 }
0x1730   : > { %15465 = vmatprep.subr.mxu1 %v17398_v0 }
0x1732   : > { %v5452_v15 = vpop.permute.xlu1 %5451 }
0x1735   : > { %v16376_v41 = vpop.eup %16375 }
0x1736   : > { %v5207_v42 = vsel %vm2850_vm2, %v16376_v41, 0.0  ;;  %v5372_v57 = vpop.permute.xlu1 %5371 }
0x1737   : > { %5208 = vadd.xlane.f32.xlu0 %v5207_v42 }
0x1739   : > { %v16378_v43 = vpop.eup %16377 }
0x173a   : > { %v5210_v45 = vsel %vm2850_vm2, %v16378_v43, 0.0 }
0x173b   : > { %5211 = vadd.xlane.f32.xlu0 %v5210_v45 }
0x1751   : > { %5449 = vrot.lane.b32.xlu0 %v18855_v53, %s20241_s5 }
0x17c4   : > { %v5209_v46 = vpop.xlane.xlu0 %5208 }
0x17c5   : > { %16379 = vrcp.f32 %v5209_v46 }
0x17c8   : > { %v5212_v49 = vpop.xlane.xlu0 %5211 }
0x17c9   : > { %16381 = vrcp.f32 %v5212_v49 }
0x17cc   : > { %v5450_v58 = vpop.permute.xlu0 %5449 }
0x17cf   : > { %v16380_v11 = vpop.eup %16379 }
0x17d0   : > { %v5214_v18 = vmul.f32 %v16380_v11, %v16376_v41 }
0x17d2   : > { %15453 = vmatmul.mubr.msk.f32.vlgmr.msra.gmra.mrb[36].mxu0 %vm2850_vm2, %v5214_v18 }
0x17d3   : > { %v16382_v55 = vpop.eup %16381  ;;  %15461 = vmatpush3.xpose.msk.msra.mxu0 %vm2850_vm2, %v5374_v52  ;;  %15462 = vmatprep.mubr.msk.f32.mxu0 %vm17399_vm0, %v17398_v0 }
0x17d4   : > { %v5216_v56 = vmul.f32 %v16382_v55, %v16378_v43  ;;  %15470 = vmatprep.subr.mxu0 %v17398_v0 }
0x17d6   : > { %15458 = vmatmul.mubr.msk.f32.vlgmr.msra.gmra.mrb[44].mxu1 %vm2850_vm2, %v5216_v56  ;;  %15463 = vmatmul.mubr.msk.f32.vlgmr.msra.gmra.mrb[38].mxu0 %vm2850_vm2, %v5372_v57 }
0x17d7   : > { %15466 = vmatpush3.xpose.msk.msra.mxu1 %vm2850_vm2, %v5452_v15  ;;  %15467 = vmatprep.mubr.msk.f32.mxu1 %vm17399_vm0, %v17398_v0 }
0x17d8   : > { %15475 = vmatprep.subr.mxu1 %v17398_v0  ;;  %15472 = vmatprep.mubr.msk.f32.mxu0 %vm17399_vm0, %v17398_v0 }
0x17da   : > { %15468 = vmatmul.mubr.msk.f32.vlgmr.msra.gmra.mrb[46].mxu1 %vm2850_vm2, %v5450_v58 }
0x17db   : > { %15477 = vmatprep.mubr.msk.f32.mxu1 %vm17399_vm0, %v17398_v0 }
0x18a5   : > { %v18932_v59 = vpop.f32.mrb[36].mxu0 }
0x18a6   : > { %v15454_v60 = vpop.f32.mrb[37].mxu0 }
0x18a9   : > { %v18934_v61 = vpop.f32.mrb[44].mxu1  ;;  %v5445_v4 = vpop.f32.mrb[38].mxu0 }
0x18aa   : > { %v16178_v10 = vpack.i.bf16 %v18934_v61, %v18932_v59  ;;  %v5527_v1 = vmul.f32 0.35355338, %v5445_v4  ;;  %v15459_v62 = vpop.f32.mrb[45].mxu1  ;;  %v15464_v63 = vpop.f32.mrb[39].mxu0 }
0x18ac   : > { %v5529_v2 = vsel %vm2850_vm2, %v5527_v1, -inf }
0x18ad   : > { %v5523_v3 = vpop.f32.mrb[46].mxu1  ;;  %5530 = vmax.xlane.f32.xlu1 %v5529_v2  ;;  %v16274_v2 = vld [vmem:[%s18498_s16 + $0x18] sm:$0xff]  }
0x18ae   : > { %v5528_v7 = vmul.f32 0.35355338, %v5523_v3  ;;  %v15469_v8 = vpop.f32.mrb[47].mxu1 }
0x18b0   : > { %v5532_v9 = vsel %vm2850_vm2, %v5528_v7, -inf }
0x18b1   : > { %5533 = vmax.xlane.f32.xlu0 %v5532_v9 }
0x18be   : > { %5551 = vrot.lane.b32.xlu1 %v18834_v39, %s20241_s5 }
0x18c2   : > { %5705 = vrot.lane.b32.xlu1 %v18840_v48, %s20242_s3 }
0x18c6   : > { %5783 = vrot.lane.b32.xlu1 %v18846_v51, %s20242_s3 }
0x18c7   : > { %5627 = vrot.lane.b32.xlu0 %v18858_v54, %s20241_s5 }
0x18ca   : > { %5703 = vrot.lane.b32.xlu1 %v18844_v50, %s20242_s3 }
0x193a   : > { %v5531_v12 = vpop.xlane.xlu1 %5530 }
0x193b   : > { %v5535_v13 = vsub.f32 %v5527_v1, %v5531_v12 }
0x193d   : > { %v5537_v14 = vmul.f32 1.442695, %v5535_v13 }
0x193e   : > { %v5534_v16 = vpop.xlane.xlu0 %5533  ;;  %v5552_v17 = vpop.permute.xlu1 %5551 }
0x193f   : > { %16383 = vpow2.f32 %v5537_v14  ;;  %v5536_v19 = vsub.f32 %v5528_v7, %v5534_v16  ;;  %15471 = vmatpush3.msra.mxu0 %v5552_v17 }
0x1940   : > { %15480 = vmatprep.subr.mxu0 %v17398_v0 }
0x1941   : > { %v5539_v48 = vmul.f32 1.442695, %v5536_v19 }
0x1942   : > { %v5628_v20 = vpop.permute.xlu0 %5627  ;;  %v5706_v25 = vpop.permute.xlu1 %5705 }
0x1943   : > { %16385 = vpow2.f32 %v5539_v48  ;;  %15476 = vmatpush3.msra.mxu1 %v5628_v20 }
0x1944   : > { %15485 = vmatprep.subr.mxu1 %v17398_v0 }
0x1946   : > { %v5784_v27 = vpop.permute.xlu1 %5783 }
0x1949   : > { %v16384_v51 = vpop.eup %16383 }
0x194a   : > { %v5541_v5 = vsel %vm2850_vm2, %v16384_v51, 0.0 }
0x194b   : > { %5542 = vadd.xlane.f32.xlu0 %v5541_v5 }
0x194d   : > { %v16386_v50 = vpop.eup %16385 }
0x194e   : > { %v5544_v22 = vsel %vm2850_vm2, %v16386_v50, 0.0 }
0x194f   : > { %5545 = vadd.xlane.f32.xlu0 %v5544_v22 }
0x1965   : > { %5781 = vrot.lane.b32.xlu0 %v18855_v53, %s20242_s3  ;;  %v5704_v53 = vpop.permute.xlu1 %5703 }
0x19d8   : > { %v5543_v23 = vpop.xlane.xlu0 %5542 }
0x19d9   : > { %16387 = vrcp.f32 %v5543_v23 }
0x19dc   : > { %v5546_v24 = vpop.xlane.xlu0 %5545 }
0x19dd   : > { %16389 = vrcp.f32 %v5546_v24 }
0x19e0   : > { %v5782_v31 = vpop.permute.xlu0 %5781 }
0x19e3   : > { %v16388_v26 = vpop.eup %16387 }
0x19e4   : > { %v5548_v28 = vmul.f32 %v16388_v26, %v16384_v51 }
0x19e6   : > { %15473 = vmatmul.mubr.msk.f32.vlgmr.msra.gmra.mrb[40].mxu0 %vm2850_vm2, %v5548_v28 }
0x19e7   : > { %v16390_v29 = vpop.eup %16389  ;;  %15481 = vmatpush3.xpose.msk.msra.mxu0 %vm2850_vm2, %v5706_v25  ;;  %15482 = vmatprep.mubr.msk.f32.mxu0 %vm17399_vm0, %v17398_v0 }
0x19e8   : > { %v5550_v30 = vmul.f32 %v16390_v29, %v16386_v50  ;;  %15490 = vmatprep.subr.mxu0 %v17398_v0 }
0x19ea   : > { %15478 = vmatmul.mubr.msk.f32.vlgmr.msra.gmra.mrb[48].mxu1 %vm2850_vm2, %v5550_v30  ;;  %15483 = vmatmul.mubr.msk.f32.vlgmr.msra.gmra.mrb[42].mxu0 %vm2850_vm2, %v5704_v53 }
0x19eb   : > { %15486 = vmatpush3.xpose.msk.msra.mxu1 %vm2850_vm2, %v5784_v27  ;;  %15487 = vmatprep.mubr.msk.f32.mxu1 %vm17399_vm0, %v17398_v0 }
0x19ec   : > { %15495 = vmatprep.subr.mxu1 %v17398_v0  ;;  %15492 = vmatprep.mubr.msk.f32.mxu0 %vm17399_vm0, %v17398_v0 }
0x19ee   : > { %15488 = vmatmul.mubr.msk.f32.vlgmr.msra.gmra.mrb[50].mxu1 %vm2850_vm2, %v5782_v31 }
0x19ef   : > { %15497 = vmatprep.mubr.msk.f32.mxu1 %vm17399_vm0, %v17398_v0 }
0x1ab9   : > { %v5623_v33 = vpop.f32.mrb[40].mxu0 }
0x1aba   : > { %v15474_v34 = vpop.f32.mrb[41].mxu0 }
0x1abd   : > { %v5699_v35 = vpop.f32.mrb[48].mxu1  ;;  %v5777_v36 = vpop.f32.mrb[42].mxu0 }
0x1abe   : > { %v16183_v37 = vpack.i.bf16 %v5699_v35, %v5623_v33  ;;  %v5859_v38 = vmul.f32 0.35355338, %v5777_v36  ;;  %v15479_v40 = vpop.f32.mrb[49].mxu1  ;;  %v15484_v44 = vpop.f32.mrb[43].mxu0 }
0x1ac0   : > { %v5861_v41 = vsel %vm2850_vm2, %v5859_v38, -inf }
0x1ac1   : > { %v5855_v42 = vpop.f32.mrb[50].mxu1  ;;  %5862 = vmax.xlane.f32.xlu1 %v5861_v41 }
0x1ac2   : > { %v5860_v43 = vmul.f32 0.35355338, %v5855_v42  ;;  %v15489_v45 = vpop.f32.mrb[51].mxu1 }
0x1ac4   : > { %v5864_v46 = vsel %vm2850_vm2, %v5860_v43, -inf }
0x1ac5   : > { %5865 = vmax.xlane.f32.xlu0 %v5864_v46  ;;  %v16275_v46 = vld [vmem:[%s18507_s8 + $0x10] sm:$0xff]  }
0x1ad2   : > { %5883 = vrot.lane.b32.xlu1 %v18834_v39, %s20242_s3 }
0x1ad6   : > { %16179 = vrot.lane.b32.xlu1 %v16178_v10, %s20243_s4 }
0x1ada   : > { %16184 = vrot.lane.b32.xlu1 %v16183_v37, %s20244_s10 }
0x1b4e   : > { %v5863_v49 = vpop.xlane.xlu1 %5862 }
0x1b4f   : > { %v5867_v52 = vsub.f32 %v5859_v38, %v5863_v49  ;;  %v16276_v49 = vld [vmem:[%s18507_s8 + $0x18] sm:$0xff]   ;;  %s20252_s8 = sld [smem:[#allocation71_spill]] }
0x1b51   : > { %v5869_v11 = vmul.f32 1.442695, %v5867_v52  ;;  %v16281_v52 = vld [vmem:[%s18752_s2 + $0x20] sm:$0xff]  }
0x1b52   : > { %v5866_v15 = vpop.xlane.xlu0 %5865  ;;  %v5884_v18 = vpop.permute.xlu1 %5883 }
0x1b53   : > { %16391 = vpow2.f32 %v5869_v11  ;;  %v5868_v55 = vsub.f32 %v5860_v43, %v5866_v15  ;;  %15491 = vmatpush3.msra.mxu0 %v5884_v18  ;;  %v16282_v11 = vld [vmem:[%s18752_s2 + $0x28] sm:$0xff]  }
0x1b54   : > { %15500 = vmatprep.subr.bf16.mxu0 %v17398_v0 }
0x1b55   : > { %v5871_v56 = vmul.f32 1.442695, %v5868_v55 }
0x1b56   : > { %v16180_v13 = vpop.permute.xlu1 %16179 }
0x1b57   : > { %16393 = vpow2.f32 %v5871_v56  ;;  %v16182_v16 = vunpack.i.h.bf16 %v16180_v13  ;;  %v16181_v17 = vunpack.i.l.bf16 %v16180_v13  ;;  %v16279_v13 = vld [vmem:[%s19027_s18] sm:$0xff]  }
0x1b59   : > { %v6060_v51 = vsel %vm2850_vm2, %v18896_v6, %v16182_v16  ;;  %v6059_v5 = vsel %vm2850_vm2, %v18894_v21, %v16181_v17  ;;  %v16283_v16 = vld [vmem:[%s18752_s2 + $0x30] sm:$0xff]   ;;  %v16284_v17 = vld [vmem:[%s18752_s2 + $0x38] sm:$0xff]   ;;  %s20253_s2 = scalar_lea.vmem [#allocation19], %s18413_s11 }
0x1b5a   : > { %v16185_v14 = vpop.permute.xlu1 %16184 }
0x1b5b   : > { %v16187_v19 = vunpack.i.h.bf16 %v16185_v14  ;;  %v16186_v48 = vunpack.i.l.bf16 %v16185_v14  ;;  %v16280_v14 = vld [vmem:[%s19027_s18 + $0x8] sm:$0xff]  }
0x1b5d   : > { %v16392_v39 = vpop.eup %16391  ;;  %v6061_v23 = vsel %vm4197_vm3, %v6059_v5, %v16186_v48  ;;  %v6062_v24 = vsel %vm4197_vm3, %v6060_v51, %v16187_v19  ;;  %v14652_v19 = vld [vmem:[%s18780_s26 + $0x1] ss:$0 sm:$0xff]  ;;  %s20254_s26 = sld [smem:[#allocation57_spill]] }
0x1b5e   : > { %v5873_v57 = vsel %vm2850_vm2, %v16392_v39, 0.0 }
0x1b5f   : > { %5874 = vadd.xlane.f32.xlu0 %v5873_v57 }
0x1b61   : > { %v16394_v58 = vpop.eup %16393 }
0x1b62   : > { %v5876_v59 = vsel %vm2850_vm2, %v16394_v58, 0.0 }
0x1b63   : > { %5877 = vadd.xlane.f32.xlu0 %v5876_v59 }
0x1b79   : > { %5959 = vrot.lane.b32.xlu0 %v18858_v54, %s20242_s3  ;;  %v16273_v54 = vld [vmem:[%s18498_s16 + $0x10] sm:$0xff]   ;;  %s20246_s16 = scalar_lea.vmem [#allocation28], %s18413_s11 }
0x1b7a   : > { %v14639_v6 = vld [vmem:[%s20246_s16 + $0x1] ss:$0 sm:$0xff]  ;;  %s20247_s16 = sld [smem:[#allocation72_spill]] }
0x1b80   : > { %s19023_s14 = scalar_lea.vmem %s20247_s16, %s18524_s17  ;;  %s19295_s16 = scalar_lea.vmem %s20254_s26, %s18524_s17 }
0x1bec   : > { %v5875_v60 = vpop.xlane.xlu0 %5874 }
0x1bed   : > { %16395 = vrcp.f32 %v5875_v60  ;;  %v14645_v60 = vld [vmem:[%s18763_s25 + $0x1] ss:$0 sm:$0xff]  ;;  %s19256_s25 = scalar_lea.vmem %s20252_s8, %s18524_s17  ;;  %s20257_s8 = sld [smem:[#allocation92_spill]] }
0x1bf0   : > { %v5878_v61 = vpop.xlane.xlu0 %5877 }
0x1bf1   : > { %16397 = vrcp.f32 %v5878_v61 }
0x1bf3   : > { %s2646_s26 = scalar_lea.vmem %s20257_s8, %s20299_s1  ;;  %s20260_s8 = scalar_lea.vmem [#allocation10], %s18413_s11 }
0x1bf4   : > { %v5960_v4 = vpop.permute.xlu0 %5959 }
0x1bf5   : > { %15496 = vmatpush3.msra.mxu1 %v5960_v4 }
0x1bf6   : > { %15508 = vmatprep.subr.bf16.mxu1 %v17398_v0 }
0x1bf7   : > { %v16396_v10 = vpop.eup %16395 }
0x1bf8   : > { %v5880_v1 = vmul.f32 %v16396_v10, %v16392_v39 }
0x1bfa   : > { %15493 = vmatmul.mubr.msk.f32.vlgmr.msra.gmra.mrb[44].mxu0 %vm2850_vm2, %v5880_v1  ;;  %v14646_v1 = vld [vmem:[%s18768_s27 + $0x1] ss:$0 sm:$0xff]  ;;  %s20250_s27 = scalar_lea.vmem [#allocation21], %s18413_s11 }
0x1bfb   : > { %v16398_v62 = vpop.eup %16397  ;;  %15504 = vmatprep.mubr.msk.bf16.mxu0 %vm17399_vm0, %v17398_v0  ;;  %15501 = vmatpush3.bf16.msra.mxu0 %v16273_v54 }
0x1bfc   : > { %v5882_v63 = vmul.f32 %v16398_v62, %v16394_v58  ;;  %15502 = vmatprep.subr.bf16.mxu0 %v17398_v0 }
0x1bfe   : > { %15498 = vmatmul.mubr.msk.f32.vlgmr.msra.gmra.mrb[52].mxu1 %vm2850_vm2, %v5882_v63 }
0x1bff   : > { %15512 = vmatprep.mubr.msk.bf16.mxu1 %vm17399_vm0, %v17398_v0  ;;  %15503 = vmatpush3.bf16.msra.mxu0 %v16274_v2  ;;  %v16277_v2 = vld [vmem:[%s19023_s14] sm:$0xff]  }
0x1c00   : > { %15516 = vmatprep.subr.bf16.mxu0 %v17398_v0  ;;  %15509 = vmatpush3.bf16.msra.mxu1 %v16275_v46 }
0x1c01   : > { %15510 = vmatprep.subr.bf16.mxu1 %v17398_v0 }
0x1c04   : > { %15511 = vmatpush3.bf16.msra.mxu1 %v16276_v49 }
0x1c05   : > { %15528 = vmatprep.subr.bf16.mxu1 %v17398_v0 }
0x1ccd   : > { %v5955_v3 = vpop.f32.mrb[44].mxu0 }
0x1cce   : > { %v15494_v7 = vpop.f32.mrb[45].mxu0 }
0x1ccf   : > { %v16278_v7 = vld [vmem:[%s19023_s14 + $0x8] sm:$0xff]  }
0x1cd1   : > { %v6031_v8 = vpop.f32.mrb[52].mxu1 }
0x1cd2   : > { %v16188_v9 = vpack.i.bf16 %v6031_v8, %v5955_v3  ;;  %v15499_v12 = vpop.f32.mrb[53].mxu1  ;;  %v19047_v8 = vld [vmem:[%s20249_s13] sm:$0xff] }
0x1cd4   : > { %16189 = vrot.lane.b32.xlu1 %v16188_v9, %s20245_s12  ;;  %v19050_v9 = vld [vmem:[%s20249_s13 + $0x8] sm:$0xff] }
0x1cd5   : > { %v6447_v12 = vpack.c.bf16 %v19050_v9, %v19047_v8 }
0x1d46   : > { %v16190_v20 = vpop.permute.xlu1 %16189 }
0x1d47   : > { %v16192_v50 = vunpack.i.h.bf16 %v16190_v20  ;;  %v16191_v22 = vunpack.i.l.bf16 %v16190_v20 }
0x1d49   : > { %v6064_v25 = vsel %vm4200_vm4, %v6062_v24, %v16192_v50  ;;  %v6063_v26 = vsel %vm4200_vm4, %v6061_v23, %v16191_v22 }
0x1d4a   : > { %v6065_v27 = vpack.c.bf16 %v6064_v25, %v6063_v26 }
0x1d4c   : > { %15505 = vmatmul.mubr.msk.bf16.vlgmr.msra.gmra.mrb[48].mxu0 %vm2693_vm1, %v6065_v27 }
0x1d4d   : > { %15524 = vmatprep.mubr.msk.bf16.mxu0 %vm17399_vm0, %v17398_v0  ;;  %15517 = vmatpush3.bf16.msra.mxu0 %v16281_v52 }
0x1d4e   : > { %15518 = vmatprep.subr.bf16.mxu0 %v17398_v0 }
0x1d51   : > { %15519 = vmatpush3.bf16.msra.mxu0 %v16282_v11 }
0x1d52   : > { %15520 = vmatprep.subr.bf16.mxu0 %v17398_v0 }
0x1d55   : > { %15521 = vmatpush3.bf16.msra.mxu0 %v16283_v16 }
0x1d56   : > { %15522 = vmatprep.subr.bf16.mxu0 %v17398_v0 }
0x1d59   : > { %15523 = vmatpush3.bf16.msra.mxu0 %v16284_v17 }
0x1d5a   : > { %15544 = vmatprep.subr.bf16.mxu0 %v17398_v0 }
0x1e1f   : > { %v6121_v28 = vpop.f32.mrb[48].mxu0 }
0x1e20   : > { %v6122_v21 = vadd.f32 %v14639_v6, %v6121_v28  ;;  %v15506_v29 = vpop.f32.mrb[49].mxu0 }
0x1e21   : > { %v6124_v30 = vpop.f32.mrb[50].mxu0 }
0x1e22   : > { %v6125_v53 = vadd.f32 %v14639_v6, %v6124_v30  ;;  %v15507_v31 = vpop.f32.mrb[51].mxu0  ;;  %v6128_v33 = vadd.f32 %v6122_v21, %v18813_v47  ;;  %v14677_v21 = vld [vmem:[%s20250_s27] ss:$0 sm:$0xff] }
0x1e24   : > { %v6134_v34 = vsel %vm2693_vm1, %v6128_v33, 0.0  ;;  %v6129_v35 = vadd.f32 %v6125_v53, %v18815_v32 }
0x1e25   : > { %6135 = vadd.xlane.f32.xlu0 %v6134_v34 }
0x1e26   : > { %v6137_v36 = vsel %vm2693_vm1, %v6129_v35, 0.0 }
0x1e27   : > { %6138 = vadd.xlane.f32.xlu1 %v6137_v36  ;;  %v16286_v36 = vld [vmem:[%s18473_s15 + $0x8] sm:$0xff]  }
0x1eb2   : > { %v6136_v37 = vpop.xlane.xlu0 %6135 }
0x1eb3   : > { %v6140_v38 = vmul.f32 0.03125, %v6136_v37 }
0x1eb4   : > { %v6139_v40 = vpop.xlane.xlu1 %6138 }
0x1eb5   : > { %v6142_v44 = vsub.f32 %v6128_v33, %v6140_v38  ;;  %v6141_v41 = vmul.f32 0.03125, %v6139_v40  ;;  %v19108_v40 = vld [vmem:[%s18788_s9 + $0x1] ss:$0 sm:$0xff]  ;;  %s20251_s9 = scalar_lea.vmem [#allocation22], %s18413_s11 }
0x1eb7   : > { %v6143_v47 = vsub.f32 %v6129_v35, %v6141_v41  ;;  %v6144_v42 = vmul.f32 %v6142_v44, %v6142_v44  ;;  %v16285_v35 = vld [vmem:[%s18473_s15] sm:$0xff]  }
0x1eb9   : > { %v6146_v32 = vsel %vm2693_vm1, %v6144_v42, 0.0  ;;  %v6145_v43 = vmul.f32 %v6143_v47, %v6143_v47 }
0x1eba   : > { %6147 = vadd.xlane.f32.xlu0 %v6146_v32 }
0x1ebb   : > { %v6149_v45 = vsel %vm2693_vm1, %v6145_v43, 0.0 }
0x1ebe   : > { %6150 = vadd.xlane.f32.xlu0 %v6149_v45 }
0x1f47   : > { %v6148_v15 = vpop.xlane.xlu0 %6147 }
0x1f48   : > { %v6152_v18 = vmul.f32 0.03125, %v6148_v15 }
0x1f4a   : > { %v6154_v55 = vadd.f32 1e-05, %v6152_v18 }
0x1f4b   : > { %v6151_v56 = vpop.xlane.xlu0 %6150 }
0x1f4c   : > { %16399 = vrsqrt.f32 %v6154_v55  ;;  %v6153_v39 = vmul.f32 0.03125, %v6151_v56 }
0x1f4e   : > { %v6155_v57 = vadd.f32 1e-05, %v6153_v39 }
0x1f50   : > { %16401 = vrsqrt.f32 %v6155_v57 }
0x1f56   : > { %v16400_v58 = vpop.eup %16399 }
0x1f57   : > { %v6158_v59 = vmul.f32 %v16400_v58, %v6142_v44 }
0x1f59   : > { %v6166_v4 = vmul.f32 %v14645_v60, %v6158_v59 }
0x1f5a   : > { %v16402_v61 = vpop.eup %16401 }
0x1f5b   : > { %v6159_v10 = vmul.f32 %v16402_v61, %v6143_v47  ;;  %v19035_v63 = vadd.f32 %v14646_v1, %v6166_v4  ;;  %v14684_v4 = vld [vmem:[%s20251_s9] ss:$0 sm:$0xff] }
0x1f5d   : > { %v6167_v62 = vmul.f32 %v14645_v60, %v6159_v10 }
0x1f5f   : > { %v19037_v54 = vadd.f32 %v14646_v1, %v6167_v62 }
0x1f61   : > { %v6181_v3 = vpack.c.bf16 %v19037_v54, %v19035_v63 }
0x1f63   : > { %15513 = vmatmul.mubr.msk.bf16.vlgmr.msra.gmra.mrb[56].mxu1 %vm2693_vm1, %v6181_v3 }
0x1f64   : > { %15529 = vmatpush3.bf16.msra.mxu1 %v16277_v2  ;;  %15532 = vmatprep.mubr.msk.bf16.mxu1 %vm17399_vm0, %v17398_v0 }
0x1f65   : > { %15530 = vmatprep.subr.bf16.mxu1 %v17398_v0 }
0x1f68   : > { %15531 = vmatpush3.bf16.msra.mxu1 %v16278_v7 }
0x1f69   : > { %15536 = vmatprep.subr.bf16.mxu1 %v17398_v0 }
0x1f6b   : > { %15533 = vmatmul.mubr.msk.bf16.vlgmr.msra.gmra.mrb[60].mxu1 %vm2693_vm1, %v6447_v12 }
0x1f6c   : > { %15537 = vmatpush3.bf16.msra.mxu1 %v16279_v13  ;;  %15540 = vmatprep.mubr.msk.bf16.mxu1 %vm17399_vm0, %v17398_v0 }
0x1f6d   : > { %15538 = vmatprep.subr.bf16.mxu1 %v17398_v0 }
0x1f70   : > { %15539 = vmatpush3.bf16.msra.mxu1 %v16280_v14 }
0x1f71   : > { %15552 = vmatprep.subr.mxu1 %v17398_v0 }
0x1f73   : > { %15541 = vmatmul.mubr.msk.bf16.vlgmr.msra.gmra.mrb[64].mxu1 %vm2693_vm1, %v6447_v12 }
0x1f74   : > { %15554 = vmatprep.mubr.msk.f32.mxu1 %vm17399_vm0, %v17398_v0 }
0x2036   : > { %v6239_v48 = vpop.f32.mrb[56].mxu1 }
0x2037   : > { %v6240_v20 = vadd.f32 %v14652_v19, %v6239_v48  ;;  %v15514_v51 = vpop.f32.mrb[57].mxu1 }
0x2038   : > { %v6242_v5 = vpop.f32.mrb[58].mxu1 }
0x2039   : > { %v6243_v50 = vadd.f32 %v14652_v19, %v6242_v5  ;;  %v15515_v22 = vpop.f32.mrb[59].mxu1  ;;  %v6246_v23 = vmax.f32 %v6240_v20, 0.0 }
0x203b   : > { %v6247_v24 = vmax.f32 %v6243_v50, 0.0 }
0x203d   : > { %v6257_v25 = vpack.c.bf16 %v6247_v24, %v6246_v23 }
0x203e   : > { %v6503_v26 = vpop.f32.mrb[60].mxu1 }
0x203f   : > { %15525 = vmatmul.mubr.msk.bf16.vlgmr.msra.gmra.mrb[52].mxu0 %vm4423_vm5, %v6257_v25  ;;  %v15534_v27 = vpop.f32.mrb[61].mxu1  ;;  %v19080_v53 = vadd.f32 %v14677_v21, %v6503_v26 }
0x2040   : > { %v6506_v6 = vpop.f32.mrb[62].mxu1  ;;  %15548 = vmatprep.mubr.msk.bf16.mxu0 %vm17399_vm0, %v17398_v0  ;;  %15545 = vmatpush3.bf16.msra.mxu0 %v16285_v35 }
0x2041   : > { %v15535_v28 = vpop.f32.mrb[63].mxu1  ;;  %v19091_v34 = vadd.f32 %v14677_v21, %v6506_v6  ;;  %15546 = vmatprep.subr.bf16.mxu0 %v17398_v0 }
0x2044   : > { %15547 = vmatpush3.bf16.msra.mxu0 %v16286_v36 }
0x2045   : > { %15562 = vmatprep.subr.mxu0 %v17398_v0 }
0x2046   : > { %v19076_v29 = vpop.f32.mrb[64].mxu1 }
0x2047   : > { %v15542_v30 = vpop.f32.mrb[65].mxu1  ;;  %15553 = vmatpush3.xpose.msk.msra.mxu1 %vm2850_vm2, %v19076_v29  ;;  %15549 = vmatmul.mubr.msk.bf16.vlgmr.msra.gmra.mrb[56].mxu0 %vm2693_vm1, %v6447_v12 }
0x2048   : > { %v19082_v31 = vpop.f32.mrb[66].mxu1  ;;  %15557 = vmatprep.subr.mxu1 %v17398_v0  ;;  %15564 = vmatprep.mubr.msk.f32.mxu0 %vm17399_vm0, %v17398_v0 }
0x2049   : > { %v15543_v33 = vpop.f32.mrb[67].mxu1 }
0x204a   : > { %15555 = vmatmul.mubr.msk.f32.vlgmr.msra.gmra.mrb[54].mxu1 %vm2850_vm2, %v19080_v53 }
0x204b   : > { %15558 = vmatpush3.xpose.msk.msra.mxu1 %vm2850_vm2, %v19082_v31  ;;  %15559 = vmatprep.mubr.msk.f32.mxu1 %vm17399_vm0, %v17398_v0 }
0x204c   : > { %15567 = vmatprep.subr.mxu1 %v17398_v0 }
0x204e   : > { %15560 = vmatmul.mubr.msk.f32.vlgmr.msra.gmra.mrb[68].mxu1 %vm2850_vm2, %v19091_v34 }
0x204f   : > { %15569 = vmatprep.mubr.msk.f32.mxu1 %vm17399_vm0, %v17398_v0 }
0x2112   : > { %v19105_v37 = vpop.f32.mrb[52].mxu0 }
0x2113   : > { %v15526_v38 = vpop.f32.mrb[53].mxu0 }
0x2114   : > { %v6330_v44 = vpop.f32.mrb[54].mxu0 }
0x2115   : > { %v19111_v41 = vadd.f32 %v19108_v40, %v6330_v44  ;;  %v15527_v47 = vpop.f32.mrb[55].mxu0 }
0x211a   : > { %v6615_v10 = vpop.f32.mrb[56].mxu0 }
0x211b   : > { %v19123_v1 = vadd.f32 %v14684_v4, %v6615_v10  ;;  %v15550_v62 = vpop.f32.mrb[57].mxu0 }
0x211c   : > { %v6618_v2 = vpop.f32.mrb[58].mxu0 }
0x211d   : > { %v6694_v42 = vpop.f32.mrb[54].mxu1  ;;  %15563 = vmatpush3.msra.mxu0 %v19123_v1  ;;  %v19127_v3 = vadd.f32 %v14684_v4, %v6618_v2  ;;  %v15551_v7 = vpop.f32.mrb[59].mxu0 }
0x211e   : > { %v6774_v32 = vmul.f32 0.35355338, %v6694_v42  ;;  %v15556_v43 = vpop.f32.mrb[55].mxu1  ;;  %15572 = vmatprep.subr.mxu0 %v17398_v0 }
0x211f   : > { %15568 = vmatpush3.msra.mxu1 %v19127_v3 }
0x2120   : > { %v6776_v45 = vsel %vm2850_vm2, %v6774_v32, -inf  ;;  %15577 = vmatprep.subr.mxu1 %v17398_v0 }
0x2121   : > { %6777 = vmax.xlane.f32.xlu0 %v6776_v45  ;;  %v6770_v46 = vpop.f32.mrb[68].mxu1 }
0x2122   : > { %v6775_v49 = vmul.f32 0.35355338, %v6770_v46  ;;  %v15561_v52 = vpop.f32.mrb[69].mxu1 }
0x2124   : > { %v6779_v11 = vsel %vm2850_vm2, %v6775_v49, -inf }
0x2125   : > { %6780 = vmax.xlane.f32.xlu1 %v6779_v11 }
0x2136   : > { %7024 = vrot.lane.b32.xlu1 %v19082_v31, %s20240_s6 }
0x213a   : > { %6944 = vrot.lane.b32.xlu1 %v19080_v53, %s20240_s6 }
0x21ae   : > { %v6778_v15 = vpop.xlane.xlu0 %6777 }
0x21af   : > { %v6782_v18 = vsub.f32 %v6774_v32, %v6778_v15 }
0x21b1   : > { %v6784_v55 = vmul.f32 1.442695, %v6782_v18 }
0x21b2   : > { %v6781_v56 = vpop.xlane.xlu1 %6780 }
0x21b3   : > { %16403 = vpow2.f32 %v6784_v55  ;;  %v6783_v39 = vsub.f32 %v6775_v49, %v6781_v56 }
0x21b5   : > { %v6786_v57 = vmul.f32 1.442695, %v6783_v39 }
0x21b6   : > { %v7025_v12 = vpop.permute.xlu1 %7024 }
0x21b7   : > { %16405 = vpow2.f32 %v6786_v57 }
0x21ba   : > { %v6945_v13 = vpop.permute.xlu1 %6944 }
0x21bd   : > { %v16404_v58 = vpop.eup %16403 }
0x21be   : > { %v6788_v59 = vsel %vm2850_vm2, %v16404_v58, 0.0 }
0x21bf   : > { %6789 = vadd.xlane.f32.xlu0 %v6788_v59 }
0x21c1   : > { %v16406_v60 = vpop.eup %16405 }
0x21c2   : > { %v6791_v61 = vsel %vm2850_vm2, %v16406_v60, 0.0 }
0x21c3   : > { %6792 = vadd.xlane.f32.xlu1 %v6791_v61 }
0x21d4   : > { %7022 = vrot.lane.b32.xlu1 %v19091_v34, %s20240_s6 }
0x21d5   : > { %6946 = vrot.lane.b32.xlu0 %v19076_v29, %s20240_s6 }
0x224c   : > { %v6790_v14 = vpop.xlane.xlu0 %6789 }
0x224d   : > { %16407 = vrcp.f32 %v6790_v14 }
0x2250   : > { %v6793_v16 = vpop.xlane.xlu1 %6792  ;;  %v6947_v48 = vpop.permute.xlu0 %6946 }
0x2251   : > { %16409 = vrcp.f32 %v6793_v16 }
0x2254   : > { %v7023_v5 = vpop.permute.xlu1 %7022 }
0x2257   : > { %v16408_v17 = vpop.eup %16407 }
0x2258   : > { %v6795_v19 = vmul.f32 %v16408_v17, %v16404_v58 }
0x225a   : > { %15565 = vmatmul.mubr.msk.f32.vlgmr.msra.gmra.mrb[46].mxu0 %vm2850_vm2, %v6795_v19 }
0x225b   : > { %v16410_v20 = vpop.eup %16409  ;;  %15573 = vmatpush3.xpose.msk.msra.mxu0 %vm2850_vm2, %v6947_v48  ;;  %15574 = vmatprep.mubr.msk.f32.mxu0 %vm17399_vm0, %v17398_v0 }
0x225c   : > { %v6797_v51 = vmul.f32 %v16410_v20, %v16406_v60  ;;  %15582 = vmatprep.subr.mxu0 %v17398_v0 }
0x225e   : > { %15570 = vmatmul.mubr.msk.f32.vlgmr.msra.gmra.mrb[70].mxu1 %vm2850_vm2, %v6797_v51  ;;  %15575 = vmatmul.mubr.msk.f32.vlgmr.msra.gmra.mrb[60].mxu0 %vm2850_vm2, %v6945_v13 }
0x225f   : > { %15578 = vmatpush3.xpose.msk.msra.mxu1 %vm2850_vm2, %v7025_v12  ;;  %15579 = vmatprep.mubr.msk.f32.mxu1 %vm17399_vm0, %v17398_v0 }
0x2260   : > { %15587 = vmatprep.subr.mxu1 %v17398_v0  ;;  %15584 = vmatprep.mubr.msk.f32.mxu0 %vm17399_vm0, %v17398_v0 }
0x2262   : > { %15580 = vmatmul.mubr.msk.f32.vlgmr.msra.gmra.mrb[72].mxu1 %vm2850_vm2, %v7023_v5 }
0x2263   : > { %15589 = vmatprep.mubr.msk.f32.mxu1 %vm17399_vm0, %v17398_v0 }
0x232d   : > { %v19151_v50 = vpop.f32.mrb[46].mxu0 }
0x232e   : > { %v15566_v22 = vpop.f32.mrb[47].mxu0 }
0x2331   : > { %v19153_v23 = vpop.f32.mrb[70].mxu1  ;;  %v7018_v24 = vpop.f32.mrb[60].mxu0 }
0x2332   : > { %v7100_v25 = vmul.f32 0.35355338, %v7018_v24  ;;  %v15571_v26 = vpop.f32.mrb[71].mxu1  ;;  %v15576_v27 = vpop.f32.mrb[61].mxu0 }
0x2334   : > { %v7102_v6 = vsel %vm2850_vm2, %v7100_v25, -inf }
0x2335   : > { %v7096_v28 = vpop.f32.mrb[72].mxu1  ;;  %7103 = vmax.xlane.f32.xlu0 %v7102_v6 }
0x2336   : > { %v7101_v21 = vmul.f32 0.35355338, %v7096_v28  ;;  %v15581_v30 = vpop.f32.mrb[73].mxu1 }
0x2338   : > { %v7105_v33 = vsel %vm2850_vm2, %v7101_v21, -inf }
0x2339   : > { %7106 = vmax.xlane.f32.xlu1 %v7105_v33 }
0x234a   : > { %7202 = vrot.lane.b32.xlu1 %v19127_v3, %s20240_s6 }
0x234b   : > { %7125 = vrot.lane.b32.xlu0 %v19123_v1, %s20240_s6 }
0x234e   : > { %7280 = vrot.lane.b32.xlu1 %v19076_v29, %s20241_s5 }
0x2352   : > { %7358 = vrot.lane.b32.xlu1 %v19082_v31, %s20241_s5 }
0x2356   : > { %7356 = vrot.lane.b32.xlu1 %v19091_v34, %s20241_s5 }
0x23c2   : > { %v7104_v35 = vpop.xlane.xlu0 %7103 }
0x23c3   : > { %v7108_v36 = vsub.f32 %v7100_v25, %v7104_v35 }
0x23c5   : > { %v7110_v38 = vmul.f32 1.442695, %v7108_v36 }
0x23c6   : > { %v7107_v44 = vpop.xlane.xlu1 %7106  ;;  %v7126_v47 = vpop.permute.xlu0 %7125 }
0x23c7   : > { %16411 = vpow2.f32 %v7110_v38  ;;  %v7109_v42 = vsub.f32 %v7101_v21, %v7107_v44  ;;  %15583 = vmatpush3.msra.mxu0 %v7126_v47 }
0x23c8   : > { %15592 = vmatprep.subr.mxu0 %v17398_v0 }
0x23c9   : > { %v7112_v32 = vmul.f32 1.442695, %v7109_v42 }
0x23ca   : > { %v7203_v43 = vpop.permute.xlu1 %7202 }
0x23cb   : > { %16413 = vpow2.f32 %v7112_v32  ;;  %15588 = vmatpush3.msra.mxu1 %v7203_v43 }
0x23cc   : > { %15597 = vmatprep.subr.mxu1 %v17398_v0 }
0x23ce   : > { %v7281_v18 = vpop.permute.xlu1 %7280 }
0x23d1   : > { %v16412_v45 = vpop.eup %16411 }
0x23d2   : > { %v7114_v46 = vsel %vm2850_vm2, %v16412_v45, 0.0  ;;  %v7359_v57 = vpop.permute.xlu1 %7358 }
0x23d3   : > { %7115 = vadd.xlane.f32.xlu0 %v7114_v46 }
0x23d5   : > { %v16414_v49 = vpop.eup %16413 }
0x23d6   : > { %v7117_v52 = vsel %vm2850_vm2, %v16414_v49, 0.0  ;;  %v7357_v60 = vpop.permute.xlu1 %7356 }
0x23d7   : > { %7118 = vadd.xlane.f32.xlu0 %v7117_v52 }
0x23ed   : > { %7278 = vrot.lane.b32.xlu0 %v19080_v53, %s20241_s5 }
0x2460   : > { %v7116_v11 = vpop.xlane.xlu0 %7115 }
0x2461   : > { %16415 = vrcp.f32 %v7116_v11 }
0x2464   : > { %v7119_v15 = vpop.xlane.xlu0 %7118 }
0x2465   : > { %16417 = vrcp.f32 %v7119_v15 }
0x2468   : > { %v7279_v59 = vpop.permute.xlu0 %7278 }
0x246b   : > { %v16416_v55 = vpop.eup %16415 }
0x246c   : > { %v7121_v56 = vmul.f32 %v16416_v55, %v16412_v45 }
0x246e   : > { %15585 = vmatmul.mubr.msk.f32.vlgmr.msra.gmra.mrb[62].mxu0 %vm2850_vm2, %v7121_v56 }
0x246f   : > { %v16418_v39 = vpop.eup %16417  ;;  %15593 = vmatpush3.xpose.msk.msra.mxu0 %vm2850_vm2, %v7281_v18  ;;  %15594 = vmatprep.mubr.msk.f32.mxu0 %vm17399_vm0, %v17398_v0 }
0x2470   : > { %v7123_v58 = vmul.f32 %v16418_v39, %v16414_v49  ;;  %15602 = vmatprep.subr.mxu0 %v17398_v0 }
0x2472   : > { %15590 = vmatmul.mubr.msk.f32.vlgmr.msra.gmra.mrb[74].mxu1 %vm2850_vm2, %v7123_v58  ;;  %15595 = vmatmul.mubr.msk.f32.vlgmr.msra.gmra.mrb[64].mxu0 %vm2850_vm2, %v7279_v59 }
0x2473   : > { %15598 = vmatpush3.xpose.msk.msra.mxu1 %vm2850_vm2, %v7359_v57  ;;  %15599 = vmatprep.mubr.msk.f32.mxu1 %vm17399_vm0, %v17398_v0  ;;  %v6328_v57 = vadd.f32 %v19108_v40, %v19105_v37 }
0x2474   : > { %15607 = vmatprep.subr.mxu1 %v17398_v0  ;;  %15604 = vmatprep.mubr.msk.f32.mxu0 %vm17399_vm0, %v17398_v0 }
0x2475   : > { %v6334_v58 = vadd.f32 %v6328_v57, %v19035_v63 }
0x2476   : > { %15600 = vmatmul.mubr.msk.f32.vlgmr.msra.gmra.mrb[76].mxu1 %vm2850_vm2, %v7357_v60 }
0x2477   : > { %15609 = vmatprep.mubr.msk.f32.mxu1 %vm17399_vm0, %v17398_v0  ;;  %v6340_v59 = vsel %vm2693_vm1, %v6334_v58, 0.0 }
0x2541   : > { %v19189_v61 = vpop.f32.mrb[62].mxu0 }
0x2542   : > { %v15586_v4 = vpop.f32.mrb[63].mxu0 }
0x2545   : > { %v19191_v10 = vpop.f32.mrb[74].mxu1  ;;  %v7352_v62 = vpop.f32.mrb[64].mxu0 }
0x2546   : > { %v16193_v2 = vpack.i.bf16 %v19191_v10, %v19189_v61  ;;  %v7434_v7 = vmul.f32 0.35355338, %v7352_v62  ;;  %v15591_v12 = vpop.f32.mrb[75].mxu1  ;;  %v15596_v13 = vpop.f32.mrb[65].mxu0 }
0x2548   : > { %v7436_v14 = vsel %vm2850_vm2, %v7434_v7, -inf }
0x2549   : > { %v7430_v16 = vpop.f32.mrb[76].mxu1  ;;  %7437 = vmax.xlane.f32.xlu0 %v7436_v14 }
0x254a   : > { %v7435_v17 = vmul.f32 0.35355338, %v7430_v16  ;;  %v15601_v19 = vpop.f32.mrb[77].mxu1 }
0x254c   : > { %v7439_v48 = vsel %vm2850_vm2, %v7435_v17, -inf }
0x254d   : > { %7440 = vmax.xlane.f32.xlu1 %v7439_v48 }
0x255e   : > { %7534 = vrot.lane.b32.xlu1 %v19127_v3, %s20241_s5 }
0x255f   : > { %7458 = vrot.lane.b32.xlu0 %v19123_v1, %s20241_s5 }
0x2562   : > { %7612 = vrot.lane.b32.xlu1 %v19076_v29, %s20242_s3 }
0x2566   : > { %7690 = vrot.lane.b32.xlu1 %v19082_v31, %s20242_s3 }
0x256a   : > { %7688 = vrot.lane.b32.xlu1 %v19091_v34, %s20242_s3 }
0x25d6   : > { %v7438_v20 = vpop.xlane.xlu0 %7437 }
0x25d7   : > { %v7442_v51 = vsub.f32 %v7434_v7, %v7438_v20  ;;  %v16288_v20 = vld [vmem:[%s19256_s25 + $0x8] sm:$0xff]  }
0x25d9   : > { %v7444_v5 = vmul.f32 1.442695, %v7442_v51 }
0x25da   : > { %v7441_v22 = vpop.xlane.xlu1 %7440  ;;  %v7459_v24 = vpop.permute.xlu0 %7458 }
0x25db   : > { %16419 = vpow2.f32 %v7444_v5  ;;  %v7443_v25 = vsub.f32 %v7435_v17, %v7441_v22  ;;  %15603 = vmatpush3.msra.mxu0 %v7459_v24 }
0x25dc   : > { %15612 = vmatprep.subr.mxu0 %v17398_v0 }
0x25dd   : > { %v7446_v26 = vmul.f32 1.442695, %v7443_v25 }
0x25de   : > { %v7535_v27 = vpop.permute.xlu1 %7534 }
0x25df   : > { %16421 = vpow2.f32 %v7446_v26  ;;  %15608 = vmatpush3.msra.mxu1 %v7535_v27 }
0x25e0   : > { %15617 = vmatprep.subr.mxu1 %v17398_v0 }
0x25e2   : > { %v7613_v30 = vpop.permute.xlu1 %7612 }
0x25e5   : > { %v16420_v29 = vpop.eup %16419 }
0x25e6   : > { %v7448_v31 = vsel %vm2850_vm2, %v16420_v29, 0.0  ;;  %v7691_v38 = vpop.permute.xlu1 %7690 }
0x25e7   : > { %7449 = vadd.xlane.f32.xlu0 %v7448_v31 }
0x25e9   : > { %v16422_v34 = vpop.eup %16421 }
0x25ea   : > { %v7451_v6 = vsel %vm2850_vm2, %v16422_v34, 0.0  ;;  %v7689_v47 = vpop.permute.xlu1 %7688 }
0x25eb   : > { %7452 = vadd.xlane.f32.xlu0 %v7451_v6 }
0x2601   : > { %7610 = vrot.lane.b32.xlu0 %v19080_v53, %s20242_s3 }
0x2674   : > { %v7450_v28 = vpop.xlane.xlu0 %7449 }
0x2675   : > { %16423 = vrcp.f32 %v7450_v28 }
0x2678   : > { %v7453_v21 = vpop.xlane.xlu0 %7452 }
0x2679   : > { %16425 = vrcp.f32 %v7453_v21 }
0x267c   : > { %v7611_v53 = vpop.permute.xlu0 %7610 }
0x267f   : > { %v16424_v33 = vpop.eup %16423 }
0x2680   : > { %v7455_v35 = vmul.f32 %v16424_v33, %v16420_v29 }
0x2682   : > { %15605 = vmatmul.mubr.msk.f32.vlgmr.msra.gmra.mrb[66].mxu0 %vm2850_vm2, %v7455_v35 }
0x2683   : > { %v16426_v36 = vpop.eup %16425  ;;  %15613 = vmatpush3.xpose.msk.msra.mxu0 %vm2850_vm2, %v7613_v30  ;;  %15614 = vmatprep.mubr.msk.f32.mxu0 %vm17399_vm0, %v17398_v0 }
0x2684   : > { %v7457_v44 = vmul.f32 %v16426_v36, %v16422_v34  ;;  %15622 = vmatprep.subr.mxu0 %v17398_v0  ;;  %v6335_v34 = vadd.f32 %v19111_v41, %v19037_v54 }
0x2686   : > { %15610 = vmatmul.mubr.msk.f32.vlgmr.msra.gmra.mrb[78].mxu1 %vm2850_vm2, %v7457_v44  ;;  %15615 = vmatmul.mubr.msk.f32.vlgmr.msra.gmra.mrb[68].mxu0 %vm2850_vm2, %v7611_v53  ;;  %v6343_v28 = vsel %vm2693_vm1, %v6335_v34, 0.0 }
0x2687   : > { %15618 = vmatpush3.xpose.msk.msra.mxu1 %vm2850_vm2, %v7691_v38  ;;  %15619 = vmatprep.mubr.msk.f32.mxu1 %vm17399_vm0, %v17398_v0 }
0x2688   : > { %15627 = vmatprep.subr.mxu1 %v17398_v0  ;;  %15624 = vmatprep.mubr.msk.f32.mxu0 %vm17399_vm0, %v17398_v0 }
0x268a   : > { %15620 = vmatmul.mubr.msk.f32.vlgmr.msra.gmra.mrb[80].mxu1 %vm2850_vm2, %v7689_v47 }
0x268b   : > { %15629 = vmatprep.mubr.msk.f32.mxu1 %vm17399_vm0, %v17398_v0 }
0x2755   : > { %v7530_v42 = vpop.f32.mrb[66].mxu0 }
0x2756   : > { %v15606_v32 = vpop.f32.mrb[67].mxu0 }
0x2759   : > { %v7606_v43 = vpop.f32.mrb[78].mxu1  ;;  %v7684_v45 = vpop.f32.mrb[68].mxu0 }
0x275a   : > { %v16198_v46 = vpack.i.bf16 %v7606_v43, %v7530_v42  ;;  %v7766_v49 = vmul.f32 0.35355338, %v7684_v45  ;;  %v15611_v52 = vpop.f32.mrb[79].mxu1  ;;  %v15616_v11 = vpop.f32.mrb[69].mxu0 }
0x275c   : > { %v7768_v15 = vsel %vm2850_vm2, %v7766_v49, -inf }
0x275d   : > { %v7762_v18 = vpop.f32.mrb[80].mxu1  ;;  %7769 = vmax.xlane.f32.xlu0 %v7768_v15 }
0x275e   : > { %v7767_v55 = vmul.f32 0.35355338, %v7762_v18  ;;  %v15621_v56 = vpop.f32.mrb[81].mxu1 }
0x2760   : > { %v7771_v39 = vsel %vm2850_vm2, %v7767_v55, -inf }
0x2761   : > { %7772 = vmax.xlane.f32.xlu1 %v7771_v39  ;;  %v14673_v39 = vld [vmem:[%s18805_s23 + $0x1] ss:$0 sm:$0xff]  ;;  %s20255_s23 = sld [smem:[#allocation59_spill]] }
0x2767   : > { %s19301_s27 = scalar_lea.vmem %s20255_s23, %s18524_s17 }
0x2772   : > { %7866 = vrot.lane.b32.xlu1 %v19127_v3, %s20242_s3 }
0x2776   : > { %16194 = vrot.lane.b32.xlu1 %v16193_v2, %s20243_s4 }
0x277a   : > { %16199 = vrot.lane.b32.xlu1 %v16198_v46, %s20244_s10 }
0x279e   : > { %6341 = vadd.xlane.f32.xlu1 %v6340_v59 }
0x27ea   : > { %v7770_v60 = vpop.xlane.xlu0 %7769 }
0x27eb   : > { %v7774_v4 = vsub.f32 %v7766_v49, %v7770_v60 }
0x27ed   : > { %v7776_v62 = vmul.f32 1.442695, %v7774_v4 }
0x27ee   : > { %v7773_v7 = vpop.xlane.xlu1 %7772 }
0x27ef   : > { %16427 = vpow2.f32 %v7776_v62  ;;  %v7775_v3 = vsub.f32 %v7767_v55, %v7773_v7 }
0x27f1   : > { %v7778_v12 = vmul.f32 1.442695, %v7775_v3 }
0x27f2   : > { %v7867_v13 = vpop.permute.xlu1 %7866 }
0x27f3   : > { %16429 = vpow2.f32 %v7778_v12  ;;  %15628 = vmatpush3.msra.mxu1 %v7867_v13  ;;  %v14712_v12 = vld [vmem:[%s20253_s2] ss:$0 sm:$0xff]  ;;  %s20258_s2 = sld [smem:[#allocation91_spill]] }
0x27f4   : > { %15640 = vmatprep.subr.bf16.mxu1 %v17398_v0 }
0x27f6   : > { %v16195_v26 = vpop.permute.xlu1 %16194 }
0x27f7   : > { %v16197_v33 = vunpack.i.h.bf16 %v16195_v26  ;;  %v16196_v35 = vunpack.i.l.bf16 %v16195_v26 }
0x27f9   : > { %v16428_v61 = vpop.eup %16427  ;;  %v7967_v53 = vsel %vm2850_vm2, %v19153_v23, %v16197_v33  ;;  %v7966_v47 = vsel %vm2850_vm2, %v19151_v50, %v16196_v35  ;;  %s2643_s23 = scalar_lea.vmem %s20258_s2, %s20299_s1  ;;  %s20261_s2 = scalar_lea.vmem [#allocation4], %s18413_s11 }
0x27fa   : > { %v7780_v37 = vsel %vm2850_vm2, %v16428_v61, 0.0  ;;  %v16200_v27 = vpop.permute.xlu1 %16199 }
0x27fb   : > { %7781 = vadd.xlane.f32.xlu0 %v7780_v37  ;;  %v16202_v36 = vunpack.i.h.bf16 %v16200_v27  ;;  %v16201_v38 = vunpack.i.l.bf16 %v16200_v27 }
0x27fd   : > { %v16430_v63 = vpop.eup %16429  ;;  %v7969_v42 = vsel %vm4197_vm3, %v7967_v53, %v16202_v36  ;;  %v7968_v32 = vsel %vm4197_vm3, %v7966_v47, %v16201_v38  ;;  %v16289_v53 = vld [vmem:[%s19295_s16] sm:$0xff]  }
0x27fe   : > { %v7783_v40 = vsel %vm2850_vm2, %v16430_v63, 0.0  ;;  %v16290_v47 = vld [vmem:[%s19301_s27] sm:$0xff]  }
0x27ff   : > { %7784 = vadd.xlane.f32.xlu0 %v7783_v40 }
0x2815   : > { %7790 = vrot.lane.b32.xlu0 %v19123_v1, %s20242_s3  ;;  %v16287_v1 = vld [vmem:[%s19256_s25] sm:$0xff]  }
0x282b   : > { %v6342_v29 = vpop.xlane.xlu1 %6341 }
0x282c   : > { %v6346_v31 = vmul.f32 0.03125, %v6342_v29 }
0x282e   : > { %v6348_v6 = vsub.f32 %v6334_v58, %v6346_v31  ;;  %v14674_v58 = vld [vmem:[%s18810_s7 + $0x1] ss:$0 sm:$0xff]  ;;  %s20256_s7 = sld [smem:[#allocation60_spill]] }
0x2830   : > { %v6350_v21 = vmul.f32 %v6348_v6, %v6348_v6 }
0x2832   : > { %v6352_v30 = vsel %vm2693_vm1, %v6350_v21, 0.0 }
0x2834   : > { %s19311_s9 = scalar_lea.vmem %s20256_s7, %s18524_s17  ;;  %s20259_s7 = scalar_lea.vmem [#allocation12], %s18413_s11 }
0x2888   : > { %v7782_v10 = vpop.xlane.xlu0 %7781 }
0x2889   : > { %16431 = vrcp.f32 %v7782_v10 }
0x288c   : > { %v7785_v2 = vpop.xlane.xlu0 %7784 }
0x288d   : > { %16433 = vrcp.f32 %v7785_v2 }
0x2890   : > { %v7791_v14 = vpop.permute.xlu0 %7790 }
0x2891   : > { %15623 = vmatpush3.msra.mxu0 %v7791_v14 }
0x2892   : > { %15632 = vmatprep.subr.bf16.mxu0 %v17398_v0 }
0x2893   : > { %v16432_v16 = vpop.eup %16431 }
0x2894   : > { %v7787_v17 = vmul.f32 %v16432_v16, %v16428_v61 }
0x2896   : > { %15625 = vmatmul.mubr.msk.f32.vlgmr.msra.gmra.mrb[70].mxu0 %vm2850_vm2, %v7787_v17 }
0x2897   : > { %v16434_v19 = vpop.eup %16433  ;;  %15636 = vmatprep.mubr.msk.bf16.mxu0 %vm17399_vm0, %v17398_v0  ;;  %15633 = vmatpush3.bf16.msra.mxu0 %v16287_v1 }
0x2898   : > { %v7789_v48 = vmul.f32 %v16434_v19, %v16430_v63  ;;  %15634 = vmatprep.subr.bf16.mxu0 %v17398_v0 }
0x289a   : > { %15630 = vmatmul.mubr.msk.f32.vlgmr.msra.gmra.mrb[82].mxu1 %vm2850_vm2, %v7789_v48 }
0x289b   : > { %15644 = vmatprep.mubr.msk.bf16.mxu1 %vm17399_vm0, %v17398_v0  ;;  %15635 = vmatpush3.bf16.msra.mxu0 %v16288_v20 }
0x289c   : > { %15648 = vmatprep.subr.bf16.mxu0 %v17398_v0  ;;  %15641 = vmatpush3.bf16.msra.mxu1 %v16290_v47 }
0x289d   : > { %15642 = vmatprep.subr.bf16.mxu1 %v17398_v0 }
0x2969   : > { %v7862_v51 = vpop.f32.mrb[70].mxu0 }
0x296a   : > { %v15626_v5 = vpop.f32.mrb[71].mxu0 }
0x296d   : > { %v7938_v22 = vpop.f32.mrb[82].mxu1 }
0x296e   : > { %v16203_v24 = vpack.i.bf16 %v7938_v22, %v7862_v51  ;;  %v15631_v25 = vpop.f32.mrb[83].mxu1 }
0x2970   : > { %16204 = vrot.lane.b32.xlu0 %v16203_v24, %s20245_s12 }
0x298f   : > { %6344 = vadd.xlane.f32.xlu0 %v6343_v28 }
0x2993   : > { %6353 = vadd.xlane.f32.xlu0 %v6352_v30 }
0x29e2   : > { %v16205_v44 = vpop.permute.xlu0 %16204 }
0x29e3   : > { %v16207_v54 = vunpack.i.h.bf16 %v16205_v44  ;;  %v16206_v41 = vunpack.i.l.bf16 %v16205_v44 }
0x29e5   : > { %v7971_v43 = vsel %vm4200_vm4, %v7969_v42, %v16207_v54  ;;  %v7970_v45 = vsel %vm4200_vm4, %v7968_v32, %v16206_v41  ;;  %v16291_v54 = vld [vmem:[%s19295_s16 + $0x8] sm:$0xff]  }
0x29e6   : > { %v7972_v46 = vpack.c.bf16 %v7971_v43, %v7970_v45  ;;  %v16292_v41 = vld [vmem:[%s19301_s27 + $0x8] sm:$0xff]  }
0x29e7   : > { %15643 = vmatpush3.bf16.msra.mxu1 %v16292_v41 }
0x29e8   : > { %15637 = vmatmul.mubr.msk.bf16.vlgmr.msra.gmra.mrb[72].mxu0 %vm2693_vm1, %v7972_v46  ;;  %15656 = vmatprep.subr.bf16.mxu1 %v17398_v0 }
0x29e9   : > { %15652 = vmatprep.mubr.msk.bf16.mxu0 %vm17399_vm0, %v17398_v0  ;;  %15649 = vmatpush3.bf16.msra.mxu0 %v16289_v53 }
0x29ea   : > { %15650 = vmatprep.subr.bf16.mxu0 %v17398_v0 }
0x29ed   : > { %15651 = vmatpush3.bf16.msra.mxu0 %v16291_v54 }
0x29ee   : > { %15664 = vmatprep.subr.mxu0 %v17398_v0 }
0x2a1c   : > { %v6345_v23 = vpop.xlane.xlu0 %6344 }
0x2a1d   : > { %v6347_v50 = vmul.f32 0.03125, %v6345_v23 }
0x2a1f   : > { %v6349_v49 = vsub.f32 %v6335_v34, %v6347_v50 }
0x2a20   : > { %v6354_v52 = vpop.xlane.xlu0 %6353 }
0x2a21   : > { %v6358_v11 = vmul.f32 0.03125, %v6354_v52  ;;  %v6351_v15 = vmul.f32 %v6349_v49, %v6349_v49 }
0x2a23   : > { %v6360_v18 = vadd.f32 1e-05, %v6358_v11  ;;  %v6355_v55 = vsel %vm2693_vm1, %v6351_v15, 0.0 }
0x2a24   : > { %6356 = vadd.xlane.f32.xlu0 %v6355_v55 }
0x2a25   : > { %16435 = vrsqrt.f32 %v6360_v18 }
0x2a2f   : > { %v16436_v56 = vpop.eup %16435 }
0x2a30   : > { %v6364_v57 = vmul.f32 %v16436_v56, %v6348_v6 }
0x2a32   : > { %v6372_v59 = vmul.f32 %v14673_v39, %v6364_v57  ;;  %v14675_v57 = vld [vmem:[%s2646_s26] ss:$0 sm:$0xff]  ;;  %s20262_s26 = scalar_lea.vmem [#allocation6], %s18413_s11 }
0x2a34   : > { %v6380_v60 = vadd.f32 %v14674_v58, %v6372_v59 }
0x2a36   : > { %v6384_v4 = vsel %vm2693_vm1, %v6380_v60, 0.0 }
0x2a37   : > { %6385 = vadd.xlane.f32.xlu1 %v6384_v4 }
0x2ab1   : > { %v6357_v62 = vpop.xlane.xlu0 %6356 }
0x2ab2   : > { %v6359_v7 = vmul.f32 0.03125, %v6357_v62  ;;  %v14716_v62 = vld [vmem:[%s20259_s7] ss:$0 sm:$0xff] }
0x2ab4   : > { %v6361_v3 = vadd.f32 1e-05, %v6359_v7  ;;  %v14676_v7 = vld [vmem:[%s2643_s23] ss:$0 sm:$0xff]  ;;  %s20263_s23 = sld [smem:[#allocation58_spill]] }
0x2ab6   : > { %16437 = vrsqrt.f32 %v6361_v3 }
0x2aba   : > { %s19507_s7 = scalar_lea.vmem %s20263_s23, %s18524_s17 }
0x2abb   : > { %v8028_v13 = vpop.f32.mrb[72].mxu0 }
0x2abc   : > { %v8029_v61 = vadd.f32 %v14712_v12, %v8028_v13  ;;  %v15638_v37 = vpop.f32.mrb[73].mxu0 }
0x2abd   : > { %v8031_v63 = vpop.f32.mrb[74].mxu0 }
0x2abe   : > { %v8035_v40 = vadd.f32 %v8029_v61, %v19047_v8  ;;  %v15639_v10 = vpop.f32.mrb[75].mxu0  ;;  %v8032_v17 = vadd.f32 %v14712_v12, %v8031_v63 }
0x2ac0   : > { %v16438_v2 = vpop.eup %16437  ;;  %v8039_v14 = vsel %vm2693_vm1, %v8035_v40, 0.0  ;;  %v8036_v51 = vadd.f32 %v8032_v17, %v19050_v9  ;;  %v16293_v17 = vld [vmem:[%s19311_s9] sm:$0xff]  }
0x2ac1   : > { %8040 = vadd.xlane.f32.xlu1 %v8039_v14  ;;  %v6365_v16 = vmul.f32 %v16438_v2, %v6349_v49 }
0x2ac2   : > { %v8042_v25 = vsel %vm2693_vm1, %v8036_v51, 0.0 }
0x2ac3   : > { %v6373_v19 = vmul.f32 %v14673_v39, %v6365_v16 }
0x2ac4   : > { %v6386_v48 = vpop.xlane.xlu1 %6385 }
0x2ac5   : > { %v6390_v1 = vmul.f32 0.03125, %v6386_v48  ;;  %v6381_v20 = vadd.f32 %v14674_v58, %v6373_v19  ;;  %v16294_v48 = vld [vmem:[%s19311_s9 + $0x8] sm:$0xff]  }
0x2ac7   : > { %v6392_v5 = vsub.f32 %v6380_v60, %v6390_v1  ;;  %v6387_v22 = vsel %vm2693_vm1, %v6381_v20, 0.0 }
0x2ac8   : > { %6388 = vadd.xlane.f32.xlu0 %v6387_v22 }
0x2ac9   : > { %v6394_v24 = vmul.f32 %v6392_v5, %v6392_v5 }
0x2acb   : > { %v6396_v8 = vsel %vm2693_vm1, %v6394_v24, 0.0 }
0x2acc   : > { %6397 = vadd.xlane.f32.xlu1 %v6396_v8  ;;  %8043 = vadd.xlane.f32.xlu0 %v8042_v25 }
0x2b4e   : > { %v8041_v26 = vpop.xlane.xlu1 %8040 }
0x2b4f   : > { %v8045_v27 = vmul.f32 0.03125, %v8041_v26 }
0x2b51   : > { %v8047_v29 = vsub.f32 %v8035_v40, %v8045_v27  ;;  %v14717_v40 = vld [vmem:[%s20260_s8] ss:$0 sm:$0xff]  ;;  %s20264_s8 = scalar_lea.vmem [#allocation2], %s18413_s11 }
0x2b53   : > { %v8049_v31 = vmul.f32 %v8047_v29, %v8047_v29 }
0x2b55   : > { %v6389_v34 = vpop.xlane.xlu0 %6388  ;;  %v8051_v9 = vsel %vm2693_vm1, %v8049_v31, 0.0  ;;  %v14725_v31 = vld [vmem:[%s20262_s26] ss:$0 sm:$0xff]  ;;  %s20266_s26 = sld [smem:[#allocation62_spill]] }
0x2b56   : > { %v6391_v6 = vmul.f32 0.03125, %v6389_v34  ;;  %8052 = vadd.xlane.f32.xlu1 %v8051_v9 }
0x2b58   : > { %v6393_v28 = vsub.f32 %v6381_v20, %v6391_v6 }
0x2b59   : > { %v8044_v21 = vpop.xlane.xlu0 %8043  ;;  %v6398_v42 = vpop.xlane.xlu1 %6397 }
0x2b5a   : > { %v8046_v30 = vmul.f32 0.03125, %v8044_v21  ;;  %v6395_v33 = vmul.f32 %v6393_v28, %v6393_v28  ;;  %v6402_v32 = vmul.f32 0.03125, %v6398_v42 }
0x2b5c   : > { %v8048_v35 = vsub.f32 %v8036_v51, %v8046_v30  ;;  %v6399_v36 = vsel %vm2693_vm1, %v6395_v33, 0.0  ;;  %v6404_v45 = vadd.f32 1e-05, %v6402_v32 }
0x2b5d   : > { %6400 = vadd.xlane.f32.xlu0 %v6399_v36 }
0x2b5e   : > { %v8050_v38 = vmul.f32 %v8048_v35, %v8048_v35  ;;  %16439 = vrsqrt.f32 %v6404_v45 }
0x2b60   : > { %v8054_v44 = vsel %vm2693_vm1, %v8050_v38, 0.0 }
0x2b61   : > { %8055 = vadd.xlane.f32.xlu0 %v8054_v44 }
0x2b68   : > { %v16440_v55 = vpop.eup %16439 }
0x2b69   : > { %v6408_v56 = vmul.f32 %v16440_v55, %v6392_v5  ;;  %v14718_v5 = vld [vmem:[%s20261_s2] ss:$0 sm:$0xff]  ;;  %s20265_s2 = sld [smem:[#allocation61_spill]] }
0x2b6b   : > { %v6416_v59 = vmul.f32 %v14675_v57, %v6408_v56 }
0x2b6d   : > { %v6424_v37 = vadd.f32 %v14676_v7, %v6416_v59 }
0x2b6f   : > { %s19535_s23 = scalar_lea.vmem %s20265_s2, %s18524_s17  ;;  %s20268_s17 = scalar_lea.vmem [#allocation15], %s18413_s11 }
0x2b70   : > { %s20269_s2 = scalar_lea.vmem [#allocation13], %s18413_s11 }
0x2be3   : > { %v8053_v43 = vpop.xlane.xlu1 %8052 }
0x2be4   : > { %v8057_v46 = vmul.f32 0.03125, %v8053_v43 }
0x2be6   : > { %v8059_v23 = vadd.f32 1e-05, %v8057_v46 }
0x2be8   : > { %16441 = vrsqrt.f32 %v8059_v23 }
0x2bea   : > { %v6401_v50 = vpop.xlane.xlu0 %6400 }
0x2beb   : > { %v6403_v49 = vmul.f32 0.03125, %v6401_v50 }
0x2bed   : > { %v6405_v52 = vadd.f32 1e-05, %v6403_v49 }
0x2bee   : > { %v8056_v11 = vpop.xlane.xlu0 %8055 }
0x2bef   : > { %16443 = vrsqrt.f32 %v6405_v52  ;;  %v8058_v15 = vmul.f32 0.03125, %v8056_v11 }
0x2bf1   : > { %v8060_v18 = vadd.f32 1e-05, %v8058_v15 }
0x2bf2   : > { %v16442_v39 = vpop.eup %16441 }
0x2bf3   : > { %16445 = vrsqrt.f32 %v8060_v18  ;;  %v8063_v60 = vmul.f32 %v16442_v39, %v8047_v29 }
0x2bf5   : > { %v8071_v13 = vmul.f32 %v14716_v62, %v8063_v60 }
0x2bf7   : > { %v19325_v14 = vadd.f32 %v14717_v40, %v8071_v13 }
0x2bf9   : > { %v16444_v58 = vpop.eup %16443 }
0x2bfa   : > { %v6409_v4 = vmul.f32 %v16444_v58, %v6393_v28 }
0x2bfc   : > { %v6417_v3 = vmul.f32 %v14675_v57, %v6409_v4 }
0x2bfd   : > { %v16446_v12 = vpop.eup %16445 }
0x2bfe   : > { %v8064_v61 = vmul.f32 %v16446_v12, %v8048_v35  ;;  %v6425_v63 = vadd.f32 %v14676_v7, %v6417_v3 }
0x2c00   : > { %v8072_v10 = vmul.f32 %v14716_v62, %v8064_v61  ;;  %v19321_v2 = vpack.c.bf16 %v6425_v63, %v6424_v37 }
0x2c02   : > { %15653 = vmatmul.mubr.msk.bf16.vlgmr.msra.gmra.mrb[76].mxu0 %vm2693_vm1, %v19321_v2  ;;  %v19327_v16 = vadd.f32 %v14717_v40, %v8072_v10 }
0x2c03   : > { %15666 = vmatprep.mubr.msk.f32.mxu0 %vm17399_vm0, %v17398_v0 }
0x2c04   : > { %v8100_v19 = vpack.c.bf16 %v19327_v16, %v19325_v14 }
0x2c06   : > { %15645 = vmatmul.mubr.msk.bf16.vlgmr.msra.gmra.mrb[84].mxu1 %vm2693_vm1, %v8100_v19 }
0x2c07   : > { %15657 = vmatpush3.bf16.msra.mxu1 %v16293_v17  ;;  %15660 = vmatprep.mubr.msk.bf16.mxu1 %vm17399_vm0, %v17398_v0 }
0x2c08   : > { %15658 = vmatprep.subr.bf16.mxu1 %v17398_v0 }
0x2c0b   : > { %15659 = vmatpush3.bf16.msra.mxu1 %v16294_v48 }
0x2c0c   : > { %15669 = vmatprep.subr.mxu1 %v17398_v0 }
0x2c0e   : > { %15661 = vmatmul.mubr.msk.bf16.vlgmr.msra.gmra.mrb[88].mxu1 %vm2693_vm1, %v19321_v2 }
0x2c0f   : > { %15671 = vmatprep.mubr.msk.f32.mxu1 %vm17399_vm0, %v17398_v0 }
0x2cd5   : > { %v19344_v1 = vpop.f32.mrb[76].mxu0 }
0x2cd6   : > { %v15654_v20 = vpop.f32.mrb[77].mxu0  ;;  %15665 = vmatpush3.xpose.msk.msra.mxu0 %vm2850_vm2, %v19344_v1 }
0x2cd7   : > { %v19348_v51 = vpop.f32.mrb[78].mxu0  ;;  %15674 = vmatprep.subr.mxu0 %v17398_v0 }
0x2cd8   : > { %v15655_v22 = vpop.f32.mrb[79].mxu0  ;;  %15670 = vmatpush3.xpose.msk.msra.mxu1 %vm2850_vm2, %v19348_v51 }
0x2cd9   : > { %v8156_v24 = vpop.f32.mrb[84].mxu1  ;;  %15679 = vmatprep.subr.mxu1 %v17398_v0 }
0x2cda   : > { %v19356_v8 = vadd.f32 %v14718_v5, %v8156_v24  ;;  %v15646_v25 = vpop.f32.mrb[85].mxu1 }
0x2cdb   : > { %v8159_v26 = vpop.f32.mrb[86].mxu1 }
0x2cdc   : > { %v19358_v27 = vadd.f32 %v14718_v5, %v8159_v26  ;;  %v15647_v29 = vpop.f32.mrb[87].mxu1  ;;  %15667 = vmatmul.mubr.msk.f32.vlgmr.msra.gmra.mrb[80].mxu0 %vm2850_vm2, %v19356_v8 }
0x2cdd   : > { %15676 = vmatprep.mubr.msk.f32.mxu0 %vm17399_vm0, %v17398_v0 }
0x2cde   : > { %15672 = vmatmul.mubr.msk.f32.vlgmr.msra.gmra.mrb[92].mxu1 %vm2850_vm2, %v19358_v27 }
0x2cdf   : > { %15681 = vmatprep.mubr.msk.f32.mxu1 %vm17399_vm0, %v17398_v0 }
0x2ce1   : > { %v8272_v34 = vpop.f32.mrb[88].mxu1 }
0x2ce2   : > { %v19370_v9 = vadd.f32 %v14725_v31, %v8272_v34  ;;  %v15662_v6 = vpop.f32.mrb[89].mxu1 }
0x2ce3   : > { %v8275_v28 = vpop.f32.mrb[90].mxu1 }
0x2ce4   : > { %v19372_v21 = vadd.f32 %v14725_v31, %v8275_v28  ;;  %v15663_v30 = vpop.f32.mrb[91].mxu1  ;;  %15675 = vmatpush3.msra.mxu0 %v19370_v9 }
0x2ce5   : > { %15684 = vmatprep.subr.mxu0 %v17398_v0 }
0x2ce6   : > { %15680 = vmatpush3.msra.mxu1 %v19372_v21 }
0x2ce7   : > { %15689 = vmatprep.subr.mxu1 %v17398_v0 }
0x2daf   : > { %v8351_v33 = vpop.f32.mrb[80].mxu0 }
0x2db0   : > { %v8431_v35 = vmul.f32 0.35355338, %v8351_v33  ;;  %v15668_v36 = vpop.f32.mrb[81].mxu0 }
0x2db1   : > { %v8427_v38 = vpop.f32.mrb[92].mxu1 }
0x2db2   : > { %v8432_v44 = vmul.f32 0.35355338, %v8427_v38  ;;  %v15673_v53 = vpop.f32.mrb[93].mxu1  ;;  %v8433_v47 = vsel %vm2850_vm2, %v8431_v35, -inf }
0x2db3   : > { %8434 = vmax.xlane.f32.xlu1 %v8433_v47 }
0x2db4   : > { %v8436_v54 = vsel %vm2850_vm2, %v8432_v44, -inf }
0x2db5   : > { %8437 = vmax.xlane.f32.xlu0 %v8436_v54 }
0x2dc4   : > { %8603 = vrot.lane.b32.xlu1 %v19344_v1, %s20240_s6 }
0x2e40   : > { %v8435_v41 = vpop.xlane.xlu1 %8434 }
0x2e41   : > { %v8439_v42 = vsub.f32 %v8431_v35, %v8435_v41 }
0x2e42   : > { %v8438_v32 = vpop.xlane.xlu0 %8437 }
0x2e43   : > { %v8441_v43 = vmul.f32 1.442695, %v8439_v42  ;;  %v8440_v45 = vsub.f32 %v8432_v44, %v8438_v32 }
0x2e44   : > { %v8604_v11 = vpop.permute.xlu1 %8603 }
0x2e45   : > { %16447 = vpow2.f32 %v8441_v43  ;;  %v8443_v46 = vmul.f32 1.442695, %v8440_v45 }
0x2e47   : > { %16449 = vpow2.f32 %v8443_v46 }
0x2e4f   : > { %v16448_v23 = vpop.eup %16447 }
0x2e50   : > { %v8445_v50 = vsel %vm2850_vm2, %v16448_v23, 0.0 }
0x2e51   : > { %v16450_v49 = vpop.eup %16449  ;;  %8446 = vadd.xlane.f32.xlu1 %v8445_v50 }
0x2e52   : > { %v8448_v52 = vsel %vm2850_vm2, %v16450_v49, 0.0 }
0x2e53   : > { %8449 = vadd.xlane.f32.xlu0 %v8448_v52 }
0x2e62   : > { %8601 = vrot.lane.b32.xlu1 %v19356_v8, %s20240_s6 }
0x2e66   : > { %8679 = vrot.lane.b32.xlu1 %v19358_v27, %s20240_s6 }
0x2e69   : > { %8681 = vrot.lane.b32.xlu0 %v19348_v51, %s20240_s6 }
0x2ede   : > { %v8447_v15 = vpop.xlane.xlu1 %8446 }
0x2edf   : > { %16451 = vrcp.f32 %v8447_v15 }
0x2ee0   : > { %v8450_v18 = vpop.xlane.xlu0 %8449 }
0x2ee1   : > { %16453 = vrcp.f32 %v8450_v18 }
0x2ee2   : > { %v8602_v57 = vpop.permute.xlu1 %8601 }
0x2ee4   : > { %v8682_v59 = vpop.permute.xlu0 %8681 }
0x2ee6   : > { %v8680_v60 = vpop.permute.xlu1 %8679 }
0x2ee9   : > { %v16452_v55 = vpop.eup %16451 }
0x2eea   : > { %v8452_v56 = vmul.f32 %v16452_v55, %v16448_v23 }
0x2eeb   : > { %v16454_v39 = vpop.eup %16453 }
0x2eec   : > { %15677 = vmatmul.mubr.msk.f32.vlgmr.msra.gmra.mrb[82].mxu0 %vm2850_vm2, %v8452_v56  ;;  %v8454_v58 = vmul.f32 %v16454_v39, %v16450_v49 }
0x2eed   : > { %15685 = vmatpush3.xpose.msk.msra.mxu0 %vm2850_vm2, %v8604_v11  ;;  %15686 = vmatprep.mubr.msk.f32.mxu0 %vm17399_vm0, %v17398_v0 }
0x2eee   : > { %15682 = vmatmul.mubr.msk.f32.vlgmr.msra.gmra.mrb[94].mxu1 %vm2850_vm2, %v8454_v58  ;;  %15694 = vmatprep.subr.mxu0 %v17398_v0 }
0x2eef   : > { %15690 = vmatpush3.xpose.msk.msra.mxu1 %vm2850_vm2, %v8682_v59  ;;  %15691 = vmatprep.mubr.msk.f32.mxu1 %vm17399_vm0, %v17398_v0 }
0x2ef0   : > { %15687 = vmatmul.mubr.msk.f32.vlgmr.msra.gmra.mrb[84].mxu0 %vm2850_vm2, %v8602_v57  ;;  %15699 = vmatprep.subr.mxu1 %v17398_v0 }
0x2ef1   : > { %15696 = vmatprep.mubr.msk.f32.mxu0 %vm17399_vm0, %v17398_v0 }
0x2ef2   : > { %15692 = vmatmul.mubr.msk.f32.vlgmr.msra.gmra.mrb[96].mxu1 %vm2850_vm2, %v8680_v60 }
0x2ef3   : > { %15701 = vmatprep.mubr.msk.f32.mxu1 %vm17399_vm0, %v17398_v0 }
0x2fbf   : > { %v19406_v4 = vpop.f32.mrb[82].mxu0 }
0x2fc0   : > { %v15678_v62 = vpop.f32.mrb[83].mxu0 }
0x2fc1   : > { %v19408_v7 = vpop.f32.mrb[94].mxu1 }
0x2fc2   : > { %v15683_v3 = vpop.f32.mrb[95].mxu1 }
0x2fc3   : > { %v8675_v12 = vpop.f32.mrb[84].mxu0 }
0x2fc4   : > { %v8757_v13 = vmul.f32 0.35355338, %v8675_v12  ;;  %v15688_v61 = vpop.f32.mrb[85].mxu0 }
0x2fc5   : > { %v8753_v37 = vpop.f32.mrb[96].mxu1 }
0x2fc6   : > { %v8758_v63 = vmul.f32 0.35355338, %v8753_v37  ;;  %v15693_v40 = vpop.f32.mrb[97].mxu1  ;;  %v8759_v10 = vsel %vm2850_vm2, %v8757_v13, -inf }
0x2fc7   : > { %8760 = vmax.xlane.f32.xlu1 %v8759_v10 }
0x2fc8   : > { %v8762_v17 = vsel %vm2850_vm2, %v8758_v63, -inf }
0x2fc9   : > { %8763 = vmax.xlane.f32.xlu0 %v8762_v17 }
0x2fd8   : > { %8782 = vrot.lane.b32.xlu1 %v19370_v9, %s20240_s6 }
0x2fdc   : > { %8937 = vrot.lane.b32.xlu1 %v19344_v1, %s20241_s5 }
0x2fdf   : > { %8859 = vrot.lane.b32.xlu0 %v19372_v21, %s20240_s6 }
0x2fe0   : > { %9015 = vrot.lane.b32.xlu1 %v19348_v51, %s20241_s5 }
0x2fe4   : > { %8935 = vrot.lane.b32.xlu1 %v19356_v8, %s20241_s5 }
0x3054   : > { %v8761_v19 = vpop.xlane.xlu1 %8760 }
0x3055   : > { %v8765_v48 = vsub.f32 %v8757_v13, %v8761_v19 }
0x3056   : > { %v8764_v20 = vpop.xlane.xlu0 %8763 }
0x3057   : > { %v8767_v5 = vmul.f32 1.442695, %v8765_v48  ;;  %v8766_v22 = vsub.f32 %v8758_v63, %v8764_v20 }
0x3058   : > { %v8783_v24 = vpop.permute.xlu1 %8782 }
0x3059   : > { %16455 = vpow2.f32 %v8767_v5  ;;  %v8769_v25 = vmul.f32 1.442695, %v8766_v22  ;;  %15695 = vmatpush3.msra.mxu0 %v8783_v24 }
0x305a   : > { %v8860_v26 = vpop.permute.xlu0 %8859  ;;  %15704 = vmatprep.subr.mxu0 %v17398_v0 }
0x305b   : > { %16457 = vpow2.f32 %v8769_v25  ;;  %15700 = vmatpush3.msra.mxu1 %v8860_v26 }
0x305c   : > { %15709 = vmatprep.subr.mxu1 %v17398_v0  ;;  %v8938_v33 = vpop.permute.xlu1 %8937 }
0x3060   : > { %v9016_v36 = vpop.permute.xlu1 %9015 }
0x3063   : > { %v16456_v29 = vpop.eup %16455 }
0x3064   : > { %v8771_v31 = vsel %vm2850_vm2, %v16456_v29, 0.0  ;;  %v8936_v47 = vpop.permute.xlu1 %8935 }
0x3065   : > { %v16458_v34 = vpop.eup %16457  ;;  %8772 = vadd.xlane.f32.xlu0 %v8771_v31 }
0x3066   : > { %v8774_v6 = vsel %vm2850_vm2, %v16458_v34, 0.0 }
0x3069   : > { %8775 = vadd.xlane.f32.xlu0 %v8774_v6 }
0x307f   : > { %9013 = vrot.lane.b32.xlu0 %v19358_v27, %s20241_s5 }
0x30f2   : > { %v8773_v28 = vpop.xlane.xlu0 %8772 }
0x30f3   : > { %16459 = vrcp.f32 %v8773_v28 }
0x30f6   : > { %v8776_v30 = vpop.xlane.xlu0 %8775 }
0x30f7   : > { %16461 = vrcp.f32 %v8776_v30 }
0x30fa   : > { %v9014_v54 = vpop.permute.xlu0 %9013 }
0x30fd   : > { %v16460_v35 = vpop.eup %16459 }
0x30fe   : > { %v8778_v38 = vmul.f32 %v16460_v35, %v16456_v29 }
0x3100   : > { %15697 = vmatmul.mubr.msk.f32.vlgmr.msra.gmra.mrb[86].mxu0 %vm2850_vm2, %v8778_v38 }
0x3101   : > { %v16462_v44 = vpop.eup %16461  ;;  %15705 = vmatpush3.xpose.msk.msra.mxu0 %vm2850_vm2, %v8938_v33  ;;  %15706 = vmatprep.mubr.msk.f32.mxu0 %vm17399_vm0, %v17398_v0 }
0x3102   : > { %v8780_v53 = vmul.f32 %v16462_v44, %v16458_v34  ;;  %15714 = vmatprep.subr.mxu0 %v17398_v0 }
0x3104   : > { %15702 = vmatmul.mubr.msk.f32.vlgmr.msra.gmra.mrb[98].mxu1 %vm2850_vm2, %v8780_v53  ;;  %15707 = vmatmul.mubr.msk.f32.vlgmr.msra.gmra.mrb[88].mxu0 %vm2850_vm2, %v8936_v47 }
0x3105   : > { %15710 = vmatpush3.xpose.msk.msra.mxu1 %vm2850_vm2, %v9016_v36  ;;  %15711 = vmatprep.mubr.msk.f32.mxu1 %vm17399_vm0, %v17398_v0 }
0x3106   : > { %15719 = vmatprep.subr.mxu1 %v17398_v0  ;;  %15716 = vmatprep.mubr.msk.f32.mxu0 %vm17399_vm0, %v17398_v0 }
0x3108   : > { %15712 = vmatmul.mubr.msk.f32.vlgmr.msra.gmra.mrb[100].mxu1 %vm2850_vm2, %v9014_v54 }
0x3109   : > { %15721 = vmatprep.mubr.msk.f32.mxu1 %vm17399_vm0, %v17398_v0 }
0x31d3   : > { %v19444_v41 = vpop.f32.mrb[86].mxu0 }
0x31d4   : > { %v15698_v42 = vpop.f32.mrb[87].mxu0 }
0x31d7   : > { %v19446_v32 = vpop.f32.mrb[98].mxu1  ;;  %v9009_v43 = vpop.f32.mrb[88].mxu0 }
0x31d8   : > { %v16208_v45 = vpack.i.bf16 %v19446_v32, %v19444_v41  ;;  %v9091_v46 = vmul.f32 0.35355338, %v9009_v43  ;;  %v15703_v23 = vpop.f32.mrb[99].mxu1  ;;  %v15708_v50 = vpop.f32.mrb[89].mxu0 }
0x31da   : > { %v9093_v49 = vsel %vm2850_vm2, %v9091_v46, -inf }
0x31db   : > { %v9087_v52 = vpop.f32.mrb[100].mxu1  ;;  %9094 = vmax.xlane.f32.xlu1 %v9093_v49 }
0x31dc   : > { %v9092_v11 = vmul.f32 0.35355338, %v9087_v52  ;;  %v15713_v15 = vpop.f32.mrb[101].mxu1  ;;  %v16296_v52 = vld [vmem:[%s19507_s7 + $0x8] sm:$0xff]  }
0x31de   : > { %v9096_v18 = vsel %vm2850_vm2, %v9092_v11, -inf }
0x31df   : > { %9097 = vmax.xlane.f32.xlu0 %v9096_v18 }
0x31ec   : > { %9115 = vrot.lane.b32.xlu1 %v19370_v9, %s20241_s5 }
0x31f0   : > { %9269 = vrot.lane.b32.xlu1 %v19344_v1, %s20242_s3 }
0x31f4   : > { %9347 = vrot.lane.b32.xlu1 %v19348_v51, %s20242_s3 }
0x31f5   : > { %9191 = vrot.lane.b32.xlu0 %v19372_v21, %s20241_s5 }
0x31f8   : > { %9267 = vrot.lane.b32.xlu1 %v19356_v8, %s20242_s3 }
0x3268   : > { %v9095_v55 = vpop.xlane.xlu1 %9094 }
0x3269   : > { %v9099_v56 = vsub.f32 %v9091_v46, %v9095_v55 }
0x326b   : > { %v9101_v39 = vmul.f32 1.442695, %v9099_v56 }
0x326c   : > { %v9098_v57 = vpop.xlane.xlu0 %9097  ;;  %v9116_v58 = vpop.permute.xlu1 %9115 }
0x326d   : > { %16463 = vpow2.f32 %v9101_v39  ;;  %v9100_v59 = vsub.f32 %v9092_v11, %v9098_v57  ;;  %15715 = vmatpush3.msra.mxu0 %v9116_v58 }
0x326e   : > { %15724 = vmatprep.subr.mxu0 %v17398_v0 }
0x326f   : > { %v9103_v1 = vmul.f32 1.442695, %v9100_v59 }
0x3270   : > { %v9192_v60 = vpop.permute.xlu0 %9191  ;;  %v9270_v61 = vpop.permute.xlu1 %9269 }
0x3271   : > { %16465 = vpow2.f32 %v9103_v1  ;;  %15720 = vmatpush3.msra.mxu1 %v9192_v60 }
0x3272   : > { %15729 = vmatprep.subr.mxu1 %v17398_v0 }
0x3274   : > { %v9348_v63 = vpop.permute.xlu1 %9347 }
0x3277   : > { %v16464_v51 = vpop.eup %16463 }
0x3278   : > { %v9105_v62 = vsel %vm2850_vm2, %v16464_v51, 0.0 }
0x3279   : > { %9106 = vadd.xlane.f32.xlu0 %v9105_v62 }
0x327b   : > { %v16466_v8 = vpop.eup %16465 }
0x327c   : > { %v9108_v3 = vsel %vm2850_vm2, %v16466_v8, 0.0 }
0x327d   : > { %9109 = vadd.xlane.f32.xlu0 %v9108_v3 }
0x3293   : > { %9345 = vrot.lane.b32.xlu0 %v19358_v27, %s20242_s3  ;;  %v9268_v27 = vpop.permute.xlu1 %9267 }
0x3306   : > { %v9107_v12 = vpop.xlane.xlu0 %9106 }
0x3307   : > { %16467 = vrcp.f32 %v9107_v12 }
0x330a   : > { %v9110_v13 = vpop.xlane.xlu0 %9109 }
0x330b   : > { %16469 = vrcp.f32 %v9110_v13 }
0x330e   : > { %v9346_v19 = vpop.permute.xlu0 %9345 }
0x3311   : > { %v16468_v37 = vpop.eup %16467 }
0x3312   : > { %v9112_v40 = vmul.f32 %v16468_v37, %v16464_v51 }
0x3314   : > { %15717 = vmatmul.mubr.msk.f32.vlgmr.msra.gmra.mrb[90].mxu0 %vm2850_vm2, %v9112_v40 }
0x3315   : > { %v16470_v10 = vpop.eup %16469  ;;  %15725 = vmatpush3.xpose.msk.msra.mxu0 %vm2850_vm2, %v9270_v61  ;;  %15726 = vmatprep.mubr.msk.f32.mxu0 %vm17399_vm0, %v17398_v0 }
0x3316   : > { %v9114_v17 = vmul.f32 %v16470_v10, %v16466_v8  ;;  %15734 = vmatprep.subr.mxu0 %v17398_v0 }
0x3318   : > { %15722 = vmatmul.mubr.msk.f32.vlgmr.msra.gmra.mrb[102].mxu1 %vm2850_vm2, %v9114_v17  ;;  %15727 = vmatmul.mubr.msk.f32.vlgmr.msra.gmra.mrb[92].mxu0 %vm2850_vm2, %v9268_v27 }
0x3319   : > { %15730 = vmatpush3.xpose.msk.msra.mxu1 %vm2850_vm2, %v9348_v63  ;;  %15731 = vmatprep.mubr.msk.f32.mxu1 %vm17399_vm0, %v17398_v0 }
0x331a   : > { %15739 = vmatprep.subr.mxu1 %v17398_v0  ;;  %15736 = vmatprep.mubr.msk.f32.mxu0 %vm17399_vm0, %v17398_v0 }
0x331c   : > { %15732 = vmatmul.mubr.msk.f32.vlgmr.msra.gmra.mrb[104].mxu1 %vm2850_vm2, %v9346_v19 }
0x331d   : > { %15741 = vmatprep.mubr.msk.f32.mxu1 %vm17399_vm0, %v17398_v0 }
0x33e7   : > { %v9187_v48 = vpop.f32.mrb[90].mxu0 }
0x33e8   : > { %v15718_v20 = vpop.f32.mrb[91].mxu0 }
0x33eb   : > { %v9263_v5 = vpop.f32.mrb[102].mxu1  ;;  %v9341_v22 = vpop.f32.mrb[92].mxu0 }
0x33ec   : > { %v16213_v24 = vpack.i.bf16 %v9263_v5, %v9187_v48  ;;  %v9423_v25 = vmul.f32 0.35355338, %v9341_v22  ;;  %v15723_v26 = vpop.f32.mrb[103].mxu1  ;;  %v15728_v29 = vpop.f32.mrb[93].mxu0 }
0x33ee   : > { %v9425_v31 = vsel %vm2850_vm2, %v9423_v25, -inf }
0x33ef   : > { %v9419_v34 = vpop.f32.mrb[104].mxu1  ;;  %9426 = vmax.xlane.f32.xlu1 %v9425_v31 }
0x33f0   : > { %v9424_v6 = vmul.f32 0.35355338, %v9419_v34  ;;  %v15733_v28 = vpop.f32.mrb[105].mxu1 }
0x33f2   : > { %v9428_v30 = vsel %vm2850_vm2, %v9424_v6, -inf }
0x33f3   : > { %9429 = vmax.xlane.f32.xlu0 %v9428_v30 }
0x3400   : > { %9447 = vrot.lane.b32.xlu1 %v19370_v9, %s20242_s3 }
0x3404   : > { %16209 = vrot.lane.b32.xlu1 %v16208_v45, %s20243_s4 }
0x3408   : > { %16214 = vrot.lane.b32.xlu1 %v16213_v24, %s20244_s10 }
0x347c   : > { %v9427_v33 = vpop.xlane.xlu1 %9426 }
0x347d   : > { %v9431_v35 = vsub.f32 %v9423_v25, %v9427_v33  ;;  %v16297_v33 = vld [vmem:[%s19535_s23] sm:$0xff]  }
0x347f   : > { %v9433_v36 = vmul.f32 1.442695, %v9431_v35  ;;  %v16298_v35 = vld [vmem:[%s19535_s23 + $0x8] sm:$0xff]  }
0x3480   : > { %v9430_v38 = vpop.xlane.xlu0 %9429  ;;  %v9448_v44 = vpop.permute.xlu1 %9447 }
0x3481   : > { %16471 = vpow2.f32 %v9433_v36  ;;  %v9432_v53 = vsub.f32 %v9424_v6, %v9430_v38  ;;  %15735 = vmatpush3.msra.mxu0 %v9448_v44 }
0x3482   : > { %15744 = vmatprep.subr.bf16.mxu0 %v17398_v0 }
0x3483   : > { %v9435_v47 = vmul.f32 1.442695, %v9432_v53 }
0x3484   : > { %v16210_v39 = vpop.permute.xlu1 %16209 }
0x3485   : > { %16473 = vpow2.f32 %v9435_v47  ;;  %v16212_v58 = vunpack.i.h.bf16 %v16210_v39  ;;  %v16211_v59 = vunpack.i.l.bf16 %v16210_v39 }
0x3487   : > { %v9624_v62 = vsel %vm2850_vm2, %v19408_v7, %v16212_v58  ;;  %v9623_v8 = vsel %vm2850_vm2, %v19406_v4, %v16211_v59  ;;  %v14753_v7 = vld [vmem:[%s20264_s8] ss:$0 sm:$0xff]  ;;  %s20267_s8 = sshll.u32 %s20299_s1, 6 }
0x3488   : > { %v16215_v57 = vpop.permute.xlu1 %16214  ;;  %s19544_s13 = scalar_lea.vmem %s20266_s26, %s20267_s8  ;;  %s20270_s26 = scalar_lea.vmem [#allocation7], %s18413_s11 }
0x3489   : > { %v16217_v1 = vunpack.i.h.bf16 %v16215_v57  ;;  %v16216_v60 = vunpack.i.l.bf16 %v16215_v57  ;;  %v16299_v36 = vld [vmem:[%s19544_s13] sm:$0xff]   ;;  %v16300_v38 = vld [vmem:[%s19544_s13 + $0x8] sm:$0xff]   ;;  %s20271_s8 = scalar_lea.vmem [#allocation9], %s18413_s11 }
0x348b   : > { %v16472_v9 = vpop.eup %16471  ;;  %v9625_v13 = vsel %vm4197_vm3, %v9623_v8, %v16216_v60  ;;  %v9626_v61 = vsel %vm4197_vm3, %v9624_v62, %v16217_v1  ;;  %v14763_v8 = vld [vmem:[%s20271_s8] ss:$0 sm:$0xff] }
0x348c   : > { %v9437_v54 = vsel %vm2850_vm2, %v16472_v9, 0.0 }
0x348d   : > { %9438 = vadd.xlane.f32.xlu0 %v9437_v54 }
0x348f   : > { %v16474_v41 = vpop.eup %16473 }
0x3490   : > { %v9440_v42 = vsel %vm2850_vm2, %v16474_v41, 0.0 }
0x3491   : > { %9441 = vadd.xlane.f32.xlu0 %v9440_v42 }
0x34a7   : > { %9523 = vrot.lane.b32.xlu0 %v19372_v21, %s20242_s3  ;;  %v16295_v21 = vld [vmem:[%s19507_s7] sm:$0xff]  }
0x351a   : > { %v9439_v32 = vpop.xlane.xlu0 %9438 }
0x351b   : > { %16475 = vrcp.f32 %v9439_v32 }
0x351e   : > { %v9442_v43 = vpop.xlane.xlu0 %9441 }
0x351f   : > { %16477 = vrcp.f32 %v9442_v43  ;;  %v14757_v43 = vld [vmem:[%s20268_s17] ss:$0 sm:$0xff]  ;;  %s20274_s17 = scalar_lea.vmem [#allocation22], %s18413_s11 }
0x3522   : > { %v9524_v45 = vpop.permute.xlu0 %9523 }
0x3523   : > { %15740 = vmatpush3.msra.mxu1 %v9524_v45 }
0x3524   : > { %15752 = vmatprep.subr.bf16.mxu1 %v17398_v0 }
0x3525   : > { %v16476_v46 = vpop.eup %16475 }
0x3526   : > { %v9444_v23 = vmul.f32 %v16476_v46, %v16472_v9 }
0x3528   : > { %15737 = vmatmul.mubr.msk.f32.vlgmr.msra.gmra.mrb[94].mxu0 %vm2850_vm2, %v9444_v23 }
0x3529   : > { %v16478_v50 = vpop.eup %16477  ;;  %15748 = vmatprep.mubr.msk.bf16.mxu0 %vm17399_vm0, %v17398_v0  ;;  %15745 = vmatpush3.bf16.msra.mxu0 %v16295_v21 }
0x352a   : > { %v9446_v49 = vmul.f32 %v16478_v50, %v16474_v41  ;;  %15746 = vmatprep.subr.bf16.mxu0 %v17398_v0  ;;  %v14758_v50 = vld [vmem:[%s20269_s2] ss:$0 sm:$0xff]  ;;  %s20280_s2 = scalar_lea.vmem [#allocation6], %s18413_s11 }
0x352c   : > { %15742 = vmatmul.mubr.msk.f32.vlgmr.msra.gmra.mrb[106].mxu1 %vm2850_vm2, %v9446_v49 }
0x352d   : > { %15756 = vmatprep.mubr.msk.bf16.mxu1 %vm17399_vm0, %v17398_v0  ;;  %15747 = vmatpush3.bf16.msra.mxu0 %v16296_v52 }
0x352e   : > { %15760 = vmatprep.subr.bf16.mxu0 %v17398_v0  ;;  %15753 = vmatpush3.bf16.msra.mxu1 %v16297_v33 }
0x352f   : > { %15754 = vmatprep.subr.bf16.mxu1 %v17398_v0 }
0x3532   : > { %15755 = vmatpush3.bf16.msra.mxu1 %v16298_v35 }
0x3533   : > { %15772 = vmatprep.subr.bf16.mxu1 %v17398_v0 }
0x35fb   : > { %v9519_v11 = vpop.f32.mrb[94].mxu0 }
0x35fc   : > { %v15738_v15 = vpop.f32.mrb[95].mxu0 }
0x35fd   : > { %v16301_v15 = vld [vmem:[%s19544_s13 + $0x10] sm:$0xff]  }
0x35ff   : > { %v9595_v18 = vpop.f32.mrb[106].mxu1 }
0x3600   : > { %v16218_v55 = vpack.i.bf16 %v9595_v18, %v9519_v11  ;;  %v15743_v56 = vpop.f32.mrb[107].mxu1  ;;  %v16302_v18 = vld [vmem:[%s19544_s13 + $0x18] sm:$0xff]  }
0x3602   : > { %16219 = vrot.lane.b32.xlu1 %v16218_v55, %s20245_s12  ;;  %v14759_v55 = vld [vmem:[%s20270_s26] ss:$0 sm:$0xff] }
0x3674   : > { %v16220_v51 = vpop.permute.xlu1 %16219 }
0x3675   : > { %v16222_v3 = vunpack.i.h.bf16 %v16220_v51  ;;  %v16221_v12 = vunpack.i.l.bf16 %v16220_v51 }
0x3677   : > { %v9628_v37 = vsel %vm4200_vm4, %v9626_v61, %v16222_v3  ;;  %v9627_v63 = vsel %vm4200_vm4, %v9625_v13, %v16221_v12 }
0x3678   : > { %v9629_v40 = vpack.c.bf16 %v9628_v37, %v9627_v63 }
0x367a   : > { %15749 = vmatmul.mubr.msk.bf16.vlgmr.msra.gmra.mrb[96].mxu0 %vm2693_vm1, %v9629_v40 }
0x367b   : > { %15768 = vmatprep.mubr.msk.bf16.mxu0 %vm17399_vm0, %v17398_v0  ;;  %15761 = vmatpush3.bf16.msra.mxu0 %v16299_v36 }
0x367c   : > { %15762 = vmatprep.subr.bf16.mxu0 %v17398_v0 }
0x367f   : > { %15763 = vmatpush3.bf16.msra.mxu0 %v16300_v38 }
0x3680   : > { %15764 = vmatprep.subr.bf16.mxu0 %v17398_v0 }
0x3683   : > { %15765 = vmatpush3.bf16.msra.mxu0 %v16301_v15 }
0x3684   : > { %15766 = vmatprep.subr.bf16.mxu0 %v17398_v0 }
0x3687   : > { %15767 = vmatpush3.bf16.msra.mxu0 %v16302_v18 }
0x3688   : > { %15788 = vmatprep.subr.bf16.mxu0 %v17398_v0 }
0x374d   : > { %v9685_v10 = vpop.f32.mrb[96].mxu0 }
0x374e   : > { %v9686_v4 = vadd.f32 %v14753_v7, %v9685_v10  ;;  %v15750_v17 = vpop.f32.mrb[97].mxu0 }
0x374f   : > { %v9688_v27 = vpop.f32.mrb[98].mxu0 }
0x3750   : > { %v9692_v19 = vadd.f32 %v9686_v4, %v19325_v14  ;;  %v9689_v48 = vadd.f32 %v14753_v7, %v9688_v27  ;;  %v15751_v20 = vpop.f32.mrb[99].mxu0 }
0x3752   : > { %v9693_v5 = vadd.f32 %v9689_v48, %v19327_v16  ;;  %v9696_v22 = vsel %vm2693_vm1, %v9692_v19, 0.0 }
0x3753   : > { %9697 = vadd.xlane.f32.xlu0 %v9696_v22 }
0x3754   : > { %v9699_v24 = vsel %vm2693_vm1, %v9693_v5, 0.0 }
0x3755   : > { %9700 = vadd.xlane.f32.xlu1 %v9699_v24 }
0x37e0   : > { %v9698_v25 = vpop.xlane.xlu0 %9697 }
0x37e1   : > { %v9702_v26 = vmul.f32 0.03125, %v9698_v25 }
0x37e2   : > { %v9701_v29 = vpop.xlane.xlu1 %9700 }
0x37e3   : > { %v9704_v31 = vsub.f32 %v9692_v19, %v9702_v26  ;;  %v9703_v34 = vmul.f32 0.03125, %v9701_v29  ;;  %v16303_v29 = vld [vmem:[%s19023_s14 + $0x10] sm:$0xff]  }
0x37e5   : > { %v9705_v14 = vsub.f32 %v9693_v5, %v9703_v34  ;;  %v9706_v6 = vmul.f32 %v9704_v31, %v9704_v31  ;;  %v16305_v34 = vld [vmem:[%s19023_s14 + $0x18] sm:$0xff]   ;;  %s20272_s14 = scalar_lea.vmem [#allocation18], %s18413_s11 }
0x37e6   : > { %v14769_v38 = vld [vmem:[%s20272_s14] ss:$0 sm:$0xff] }
0x37e7   : > { %v9708_v28 = vsel %vm2693_vm1, %v9706_v6, 0.0  ;;  %v9707_v16 = vmul.f32 %v9705_v14, %v9705_v14 }
0x37e8   : > { %9709 = vadd.xlane.f32.xlu0 %v9708_v28 }
0x37e9   : > { %v9711_v30 = vsel %vm2693_vm1, %v9707_v16, 0.0 }
0x37ec   : > { %9712 = vadd.xlane.f32.xlu0 %v9711_v30 }
0x3875   : > { %v9710_v44 = vpop.xlane.xlu0 %9709 }
0x3876   : > { %v9714_v53 = vmul.f32 0.03125, %v9710_v44 }
0x3878   : > { %v9716_v47 = vadd.f32 1e-05, %v9714_v53 }
0x3879   : > { %v9713_v9 = vpop.xlane.xlu0 %9712 }
0x387a   : > { %16479 = vrsqrt.f32 %v9716_v47  ;;  %v9715_v54 = vmul.f32 0.03125, %v9713_v9 }
0x387c   : > { %v9717_v41 = vadd.f32 1e-05, %v9715_v54 }
0x387e   : > { %16481 = vrsqrt.f32 %v9717_v41 }
0x3884   : > { %v16480_v42 = vpop.eup %16479 }
0x3885   : > { %v9720_v32 = vmul.f32 %v16480_v42, %v9704_v31  ;;  %v16304_v31 = vld [vmem:[%s18473_s15 + $0x10] sm:$0xff]  }
0x3887   : > { %v9728_v46 = vmul.f32 %v14757_v43, %v9720_v32 }
0x3888   : > { %v16482_v45 = vpop.eup %16481 }
0x3889   : > { %v9721_v23 = vmul.f32 %v16482_v45, %v9705_v14  ;;  %v9736_v21 = vadd.f32 %v14758_v50, %v9728_v46  ;;  %v16306_v14 = vld [vmem:[%s18473_s15 + $0x18] sm:$0xff]   ;;  %s20273_s15 = scalar_lea.vmem [#allocation16], %s18413_s11  ;;  %v16308_v46 = vld [vmem:[%s19027_s18 + $0x18] sm:$0xff]  }
0x388a   : > { %v14770_v54 = vld [vmem:[%s20273_s15] ss:$0 sm:$0xff] }
0x388b   : > { %v9729_v49 = vmul.f32 %v14757_v43, %v9721_v23  ;;  %v16307_v43 = vld [vmem:[%s19027_s18 + $0x10] sm:$0xff]   ;;  %s20275_s18 = scalar_lea.vmem [#allocation21], %s18413_s11 }
0x388c   : > { %v14797_v23 = vld [vmem:[%s20274_s17 + $0x1] ss:$0 sm:$0xff] }
0x388d   : > { %v9737_v52 = vadd.f32 %v14758_v50, %v9729_v49 }
0x388f   : > { %v9742_v11 = vpack.c.bf16 %v9737_v52, %v9736_v21 }
0x3891   : > { %15757 = vmatmul.mubr.msk.bf16.vlgmr.msra.gmra.mrb[108].mxu1 %vm2693_vm1, %v9742_v11 }
0x3892   : > { %15776 = vmatprep.mubr.msk.bf16.mxu1 %vm17399_vm0, %v17398_v0  ;;  %15773 = vmatpush3.bf16.msra.mxu1 %v16303_v29 }
0x3893   : > { %15774 = vmatprep.subr.bf16.mxu1 %v17398_v0 }
0x3896   : > { %15775 = vmatpush3.bf16.msra.mxu1 %v16305_v34 }
0x3897   : > { %15780 = vmatprep.subr.bf16.mxu1 %v17398_v0 }
0x3964   : > { %v9799_v56 = vpop.f32.mrb[108].mxu1 }
0x3965   : > { %v9800_v39 = vadd.f32 %v14759_v55, %v9799_v56  ;;  %v15758_v57 = vpop.f32.mrb[109].mxu1 }
0x3966   : > { %v9802_v58 = vpop.f32.mrb[110].mxu1 }
0x3967   : > { %v9803_v59 = vadd.f32 %v14759_v55, %v9802_v58  ;;  %v15759_v1 = vpop.f32.mrb[111].mxu1  ;;  %v9806_v60 = vmax.f32 %v9800_v39, 0.0  ;;  %v14790_v39 = vld [vmem:[%s20275_s18 + $0x1] ss:$0 sm:$0xff] }
0x3969   : > { %v9807_v51 = vmax.f32 %v9803_v59, 0.0 }
0x396b   : > { %v9816_v62 = vpack.c.bf16 %v9807_v51, %v9806_v60 }
0x396d   : > { %15769 = vmatmul.mubr.msk.bf16.vlgmr.msra.gmra.mrb[100].mxu0 %vm4423_vm5, %v9816_v62 }
0x396e   : > { %15792 = vmatprep.mubr.msk.bf16.mxu0 %vm17399_vm0, %v17398_v0  ;;  %15789 = vmatpush3.bf16.msra.mxu0 %v16304_v31 }
0x396f   : > { %15790 = vmatprep.subr.bf16.mxu0 %v17398_v0 }
0x3972   : > { %15791 = vmatpush3.bf16.msra.mxu0 %v16306_v14 }
0x3973   : > { %15806 = vmatprep.subr.mxu0 %v17398_v0 }
0x3a40   : > { %v9885_v3 = vpop.f32.mrb[100].mxu0 }
0x3a41   : > { %v9886_v12 = vadd.f32 %v14763_v8, %v9885_v3  ;;  %v15770_v13 = vpop.f32.mrb[101].mxu0 }
0x3a42   : > { %v9888_v61 = vpop.f32.mrb[102].mxu0 }
0x3a43   : > { %v9892_v37 = vadd.f32 %v9886_v12, %v9736_v21  ;;  %v9889_v63 = vadd.f32 %v14763_v8, %v9888_v61  ;;  %v15771_v40 = vpop.f32.mrb[103].mxu0 }
0x3a45   : > { %v9893_v7 = vadd.f32 %v9889_v63, %v9737_v52  ;;  %v9896_v10 = vsel %vm2693_vm1, %v9892_v37, 0.0 }
0x3a46   : > { %9897 = vadd.xlane.f32.xlu0 %v9896_v10 }
0x3a47   : > { %v9899_v4 = vsel %vm2693_vm1, %v9893_v7, 0.0 }
0x3a48   : > { %9900 = vadd.xlane.f32.xlu1 %v9899_v4 }
0x3ad3   : > { %v9898_v17 = vpop.xlane.xlu0 %9897 }
0x3ad4   : > { %v9902_v27 = vmul.f32 0.03125, %v9898_v17 }
0x3ad5   : > { %v9901_v19 = vpop.xlane.xlu1 %9900 }
0x3ad6   : > { %v9904_v48 = vsub.f32 %v9892_v37, %v9902_v27  ;;  %v9903_v20 = vmul.f32 0.03125, %v9901_v19 }
0x3ad8   : > { %v9905_v5 = vsub.f32 %v9893_v7, %v9903_v20  ;;  %v9906_v22 = vmul.f32 %v9904_v48, %v9904_v48 }
0x3ada   : > { %v9908_v24 = vsel %vm2693_vm1, %v9906_v22, 0.0  ;;  %v9907_v25 = vmul.f32 %v9905_v5, %v9905_v5 }
0x3adb   : > { %9909 = vadd.xlane.f32.xlu0 %v9908_v24 }
0x3adc   : > { %v9911_v26 = vsel %vm2693_vm1, %v9907_v25, 0.0 }
0x3add   : > { %9912 = vadd.xlane.f32.xlu1 %v9911_v26 }
0x3b68   : > { %v9910_v6 = vpop.xlane.xlu0 %9909 }
0x3b69   : > { %v9914_v28 = vmul.f32 0.03125, %v9910_v6 }
0x3b6a   : > { %v9913_v16 = vpop.xlane.xlu1 %9912 }
0x3b6b   : > { %v9916_v30 = vadd.f32 1e-05, %v9914_v28  ;;  %v9915_v33 = vmul.f32 0.03125, %v9913_v16 }
0x3b6d   : > { %16483 = vrsqrt.f32 %v9916_v30  ;;  %v9917_v35 = vadd.f32 1e-05, %v9915_v33 }
0x3b6f   : > { %16485 = vrsqrt.f32 %v9917_v35 }
0x3b77   : > { %v16484_v36 = vpop.eup %16483 }
0x3b78   : > { %v9920_v44 = vmul.f32 %v16484_v36, %v9904_v48 }
0x3b79   : > { %v16486_v53 = vpop.eup %16485 }
0x3b7a   : > { %v9928_v47 = vmul.f32 %v14769_v38, %v9920_v44  ;;  %v9921_v9 = vmul.f32 %v16486_v53, %v9905_v5 }
0x3b7c   : > { %v9929_v41 = vmul.f32 %v14769_v38, %v9921_v9  ;;  %v19584_v42 = vadd.f32 %v14770_v54, %v9928_v47 }
0x3b7e   : > { %v19586_v32 = vadd.f32 %v14770_v54, %v9929_v41 }
0x3b80   : > { %v9964_v45 = vpack.c.bf16 %v19586_v32, %v19584_v42 }
0x3b82   : > { %15777 = vmatmul.mubr.msk.bf16.vlgmr.msra.gmra.mrb[112].mxu1 %vm2693_vm1, %v9964_v45  ;;  %15793 = vmatmul.mubr.msk.bf16.vlgmr.msra.gmra.mrb[104].mxu0 %vm2693_vm1, %v9964_v45 }
0x3b83   : > { %15781 = vmatpush3.bf16.msra.mxu1 %v16307_v43  ;;  %15784 = vmatprep.mubr.msk.bf16.mxu1 %vm17399_vm0, %v17398_v0 }
0x3b84   : > { %15782 = vmatprep.subr.bf16.mxu1 %v17398_v0  ;;  %15808 = vmatprep.mubr.msk.f32.mxu0 %vm17399_vm0, %v17398_v0 }
0x3b87   : > { %15783 = vmatpush3.bf16.msra.mxu1 %v16308_v46 }
0x3b88   : > { %15796 = vmatprep.subr.mxu1 %v17398_v0 }
0x3b8a   : > { %15785 = vmatmul.mubr.msk.bf16.vlgmr.msra.gmra.mrb[116].mxu1 %vm2693_vm1, %v9964_v45 }
0x3b8b   : > { %15798 = vmatprep.mubr.msk.f32.mxu1 %vm17399_vm0, %v17398_v0 }
0x3c55   : > { %v10020_v50 = vpop.f32.mrb[112].mxu1  ;;  %v10132_v49 = vpop.f32.mrb[104].mxu0 }
0x3c56   : > { %v19605_v21 = vadd.f32 %v14797_v23, %v10132_v49  ;;  %v15778_v52 = vpop.f32.mrb[113].mxu1  ;;  %v15794_v11 = vpop.f32.mrb[105].mxu0  ;;  %v19615_v59 = vadd.f32 %v14790_v39, %v10020_v50 }
0x3c57   : > { %v10023_v15 = vpop.f32.mrb[114].mxu1  ;;  %v10135_v18 = vpop.f32.mrb[106].mxu0 }
0x3c58   : > { %v15779_v55 = vpop.f32.mrb[115].mxu1  ;;  %v15795_v56 = vpop.f32.mrb[107].mxu0  ;;  %15807 = vmatpush3.msra.mxu0 %v19605_v21  ;;  %v19626_v51 = vadd.f32 %v14790_v39, %v10023_v15  ;;  %v19629_v62 = vadd.f32 %v14797_v23, %v10135_v18 }
0x3c59   : > { %15816 = vmatprep.subr.mxu0 %v17398_v0 }
0x3c5d   : > { %v19611_v57 = vpop.f32.mrb[116].mxu1 }
0x3c5e   : > { %v15786_v58 = vpop.f32.mrb[117].mxu1  ;;  %15797 = vmatpush3.xpose.msk.msra.mxu1 %vm2850_vm2, %v19611_v57 }
0x3c5f   : > { %v19617_v1 = vpop.f32.mrb[118].mxu1  ;;  %15801 = vmatprep.subr.mxu1 %v17398_v0 }
0x3c60   : > { %v15787_v60 = vpop.f32.mrb[119].mxu1 }
0x3c61   : > { %15799 = vmatmul.mubr.msk.f32.vlgmr.msra.gmra.mrb[120].mxu1 %vm2850_vm2, %v19615_v59 }
0x3c62   : > { %15802 = vmatpush3.xpose.msk.msra.mxu1 %vm2850_vm2, %v19617_v1  ;;  %15803 = vmatprep.mubr.msk.f32.mxu1 %vm17399_vm0, %v17398_v0 }
0x3c63   : > { %15811 = vmatprep.subr.mxu1 %v17398_v0 }
0x3c65   : > { %15804 = vmatmul.mubr.msk.f32.vlgmr.msra.gmra.mrb[122].mxu1 %vm2850_vm2, %v19626_v51 }
0x3c66   : > { %15812 = vmatpush3.msra.mxu1 %v19629_v62  ;;  %15813 = vmatprep.mubr.msk.f32.mxu1 %vm17399_vm0, %v17398_v0 }
0x3c67   : > { %15821 = vmatprep.subr.mxu1 %v17398_v0 }
0x3d34   : > { %v10211_v8 = vpop.f32.mrb[120].mxu1 }
0x3d35   : > { %v10291_v3 = vmul.f32 0.35355338, %v10211_v8  ;;  %v15800_v12 = vpop.f32.mrb[121].mxu1 }
0x3d37   : > { %v10293_v13 = vsel %vm2850_vm2, %v10291_v3, -inf }
0x3d38   : > { %10294 = vmax.xlane.f32.xlu0 %v10293_v13  ;;  %v10287_v61 = vpop.f32.mrb[122].mxu1 }
0x3d39   : > { %v10292_v37 = vmul.f32 0.35355338, %v10287_v61  ;;  %v15805_v63 = vpop.f32.mrb[123].mxu1 }
0x3d3b   : > { %v10296_v40 = vsel %vm2850_vm2, %v10292_v37, -inf }
0x3d3c   : > { %10297 = vmax.xlane.f32.xlu1 %v10296_v40 }
0x3d4d   : > { %10541 = vrot.lane.b32.xlu1 %v19617_v1, %s20240_s6 }
0x3d51   : > { %10461 = vrot.lane.b32.xlu1 %v19615_v59, %s20240_s6 }
0x3dc5   : > { %v10295_v7 = vpop.xlane.xlu0 %10294 }
0x3dc6   : > { %v10299_v10 = vsub.f32 %v10291_v3, %v10295_v7 }
0x3dc8   : > { %v10301_v4 = vmul.f32 1.442695, %v10299_v10 }
0x3dc9   : > { %v10298_v17 = vpop.xlane.xlu1 %10297 }
0x3dca   : > { %16487 = vpow2.f32 %v10301_v4  ;;  %v10300_v27 = vsub.f32 %v10292_v37, %v10298_v17 }
0x3dcc   : > { %v10303_v19 = vmul.f32 1.442695, %v10300_v27 }
0x3dcd   : > { %v10542_v24 = vpop.permute.xlu1 %10541 }
0x3dce   : > { %16489 = vpow2.f32 %v10303_v19 }
0x3dd1   : > { %v10462_v25 = vpop.permute.xlu1 %10461 }
0x3dd4   : > { %v16488_v48 = vpop.eup %16487 }
0x3dd5   : > { %v10305_v20 = vsel %vm2850_vm2, %v16488_v48, 0.0 }
0x3dd6   : > { %10306 = vadd.xlane.f32.xlu0 %v10305_v20 }
0x3dd8   : > { %v16490_v5 = vpop.eup %16489 }
0x3dd9   : > { %v10308_v22 = vsel %vm2850_vm2, %v16490_v5, 0.0 }
0x3dda   : > { %10309 = vadd.xlane.f32.xlu1 %v10308_v22 }
0x3deb   : > { %10539 = vrot.lane.b32.xlu1 %v19626_v51, %s20240_s6 }
0x3dec   : > { %10463 = vrot.lane.b32.xlu0 %v19611_v57, %s20240_s6 }
0x3e63   : > { %v10307_v26 = vpop.xlane.xlu0 %10306 }
0x3e64   : > { %16491 = vrcp.f32 %v10307_v26 }
0x3e67   : > { %v10310_v29 = vpop.xlane.xlu1 %10309  ;;  %v10464_v14 = vpop.permute.xlu0 %10463 }
0x3e68   : > { %16493 = vrcp.f32 %v10310_v29 }
0x3e6b   : > { %v10540_v16 = vpop.permute.xlu1 %10539 }
0x3e6e   : > { %v16492_v31 = vpop.eup %16491 }
0x3e6f   : > { %v10312_v34 = vmul.f32 %v16492_v31, %v16488_v48 }
0x3e71   : > { %15809 = vmatmul.mubr.msk.f32.vlgmr.msra.gmra.mrb[108].mxu0 %vm2850_vm2, %v10312_v34 }
0x3e72   : > { %v16494_v6 = vpop.eup %16493  ;;  %15817 = vmatpush3.xpose.msk.msra.mxu0 %vm2850_vm2, %v10464_v14  ;;  %15818 = vmatprep.mubr.msk.f32.mxu0 %vm17399_vm0, %v17398_v0 }
0x3e73   : > { %v10314_v28 = vmul.f32 %v16494_v6, %v16490_v5  ;;  %15826 = vmatprep.subr.mxu0 %v17398_v0 }
0x3e75   : > { %15814 = vmatmul.mubr.msk.f32.vlgmr.msra.gmra.mrb[124].mxu1 %vm2850_vm2, %v10314_v28  ;;  %15819 = vmatmul.mubr.msk.f32.vlgmr.msra.gmra.mrb[110].mxu0 %vm2850_vm2, %v10462_v25 }
0x3e76   : > { %15822 = vmatpush3.xpose.msk.msra.mxu1 %vm2850_vm2, %v10542_v24  ;;  %15823 = vmatprep.mubr.msk.f32.mxu1 %vm17399_vm0, %v17398_v0 }
0x3e77   : > { %15831 = vmatprep.subr.mxu1 %v17398_v0  ;;  %15828 = vmatprep.mubr.msk.f32.mxu0 %vm17399_vm0, %v17398_v0 }
0x3e79   : > { %15824 = vmatmul.mubr.msk.f32.vlgmr.msra.gmra.mrb[126].mxu1 %vm2850_vm2, %v10540_v16 }
0x3e7a   : > { %15833 = vmatprep.mubr.msk.f32.mxu1 %vm17399_vm0, %v17398_v0 }
0x3f44   : > { %v19665_v30 = vpop.f32.mrb[108].mxu0 }
0x3f45   : > { %v15810_v33 = vpop.f32.mrb[109].mxu0 }
0x3f48   : > { %v19667_v35 = vpop.f32.mrb[124].mxu1  ;;  %v10535_v36 = vpop.f32.mrb[110].mxu0 }
0x3f49   : > { %v10617_v38 = vmul.f32 0.35355338, %v10535_v36  ;;  %v15815_v44 = vpop.f32.mrb[125].mxu1  ;;  %v15820_v53 = vpop.f32.mrb[111].mxu0 }
0x3f4b   : > { %v10619_v47 = vsel %vm2850_vm2, %v10617_v38, -inf }
0x3f4c   : > { %v10613_v9 = vpop.f32.mrb[126].mxu1  ;;  %10620 = vmax.xlane.f32.xlu0 %v10619_v47 }
0x3f4d   : > { %v10618_v54 = vmul.f32 0.35355338, %v10613_v9  ;;  %v15825_v41 = vpop.f32.mrb[127].mxu1 }
0x3f4f   : > { %v10622_v43 = vsel %vm2850_vm2, %v10618_v54, -inf }
0x3f50   : > { %10623 = vmax.xlane.f32.xlu1 %v10622_v43 }
0x3f61   : > { %10719 = vrot.lane.b32.xlu1 %v19629_v62, %s20240_s6 }
0x3f62   : > { %10642 = vrot.lane.b32.xlu0 %v19605_v21, %s20240_s6 }
0x3f65   : > { %10797 = vrot.lane.b32.xlu1 %v19611_v57, %s20241_s5 }
0x3f69   : > { %10875 = vrot.lane.b32.xlu1 %v19617_v1, %s20241_s5 }
0x3f6d   : > { %10873 = vrot.lane.b32.xlu1 %v19626_v51, %s20241_s5 }
0x3fd9   : > { %v10621_v45 = vpop.xlane.xlu0 %10620 }
0x3fda   : > { %v10625_v46 = vsub.f32 %v10617_v38, %v10621_v45 }
0x3fdc   : > { %v10627_v23 = vmul.f32 1.442695, %v10625_v46 }
0x3fdd   : > { %v10624_v50 = vpop.xlane.xlu1 %10623  ;;  %v10643_v49 = vpop.permute.xlu0 %10642 }
0x3fde   : > { %16495 = vpow2.f32 %v10627_v23  ;;  %v10626_v52 = vsub.f32 %v10618_v54, %v10624_v50  ;;  %15827 = vmatpush3.msra.mxu0 %v10643_v49 }
0x3fdf   : > { %15836 = vmatprep.subr.mxu0 %v17398_v0 }
0x3fe0   : > { %v10629_v11 = vmul.f32 1.442695, %v10626_v52 }
0x3fe1   : > { %v10720_v15 = vpop.permute.xlu1 %10719 }
0x3fe2   : > { %16497 = vpow2.f32 %v10629_v11  ;;  %15832 = vmatpush3.msra.mxu1 %v10720_v15 }
0x3fe3   : > { %15841 = vmatprep.subr.mxu1 %v17398_v0 }
0x3fe5   : > { %v10798_v8 = vpop.permute.xlu1 %10797 }
0x3fe8   : > { %v16496_v18 = vpop.eup %16495 }
0x3fe9   : > { %v10631_v55 = vsel %vm2850_vm2, %v16496_v18, 0.0  ;;  %v10876_v61 = vpop.permute.xlu1 %10875 }
0x3fea   : > { %10632 = vadd.xlane.f32.xlu0 %v10631_v55 }
0x3fec   : > { %v16498_v56 = vpop.eup %16497 }
0x3fed   : > { %v10634_v39 = vsel %vm2850_vm2, %v16498_v56, 0.0  ;;  %v10874_v40 = vpop.permute.xlu1 %10873 }
0x3fee   : > { %10635 = vadd.xlane.f32.xlu0 %v10634_v39 }
0x4004   : > { %10795 = vrot.lane.b32.xlu0 %v19615_v59, %s20241_s5 }
0x4077   : > { %v10633_v58 = vpop.xlane.xlu0 %10632 }
0x4078   : > { %16499 = vrcp.f32 %v10633_v58 }
0x407b   : > { %v10636_v60 = vpop.xlane.xlu0 %10635 }
0x407c   : > { %16501 = vrcp.f32 %v10636_v60 }
0x407f   : > { %v10796_v63 = vpop.permute.xlu0 %10795 }
0x4082   : > { %v16500_v3 = vpop.eup %16499 }
0x4083   : > { %v10638_v12 = vmul.f32 %v16500_v3, %v16496_v18 }
0x4085   : > { %15829 = vmatmul.mubr.msk.f32.vlgmr.msra.gmra.mrb[112].mxu0 %vm2850_vm2, %v10638_v12 }
0x4086   : > { %v16502_v13 = vpop.eup %16501  ;;  %15837 = vmatpush3.xpose.msk.msra.mxu0 %vm2850_vm2, %v10798_v8  ;;  %15838 = vmatprep.mubr.msk.f32.mxu0 %vm17399_vm0, %v17398_v0 }
0x4087   : > { %v10640_v37 = vmul.f32 %v16502_v13, %v16498_v56  ;;  %15846 = vmatprep.subr.mxu0 %v17398_v0 }
0x4089   : > { %15834 = vmatmul.mubr.msk.f32.vlgmr.msra.gmra.mrb[128].mxu1 %vm2850_vm2, %v10640_v37  ;;  %15839 = vmatmul.mubr.msk.f32.vlgmr.msra.gmra.mrb[114].mxu0 %vm2850_vm2, %v10796_v63 }
0x408a   : > { %15842 = vmatpush3.xpose.msk.msra.mxu1 %vm2850_vm2, %v10876_v61  ;;  %15843 = vmatprep.mubr.msk.f32.mxu1 %vm17399_vm0, %v17398_v0 }
0x408b   : > { %15851 = vmatprep.subr.mxu1 %v17398_v0  ;;  %15848 = vmatprep.mubr.msk.f32.mxu0 %vm17399_vm0, %v17398_v0 }
0x408d   : > { %15844 = vmatmul.mubr.msk.f32.vlgmr.msra.gmra.mrb[130].mxu1 %vm2850_vm2, %v10874_v40 }
0x408e   : > { %15853 = vmatprep.mubr.msk.f32.mxu1 %vm17399_vm0, %v17398_v0 }
0x4158   : > { %v19703_v7 = vpop.f32.mrb[112].mxu0 }
0x4159   : > { %v15830_v10 = vpop.f32.mrb[113].mxu0 }
0x415c   : > { %v19705_v4 = vpop.f32.mrb[128].mxu1  ;;  %v10869_v17 = vpop.f32.mrb[114].mxu0 }
0x415d   : > { %v16223_v27 = vpack.i.bf16 %v19705_v4, %v19703_v7  ;;  %v10951_v19 = vmul.f32 0.35355338, %v10869_v17  ;;  %v15835_v48 = vpop.f32.mrb[129].mxu1  ;;  %v15840_v20 = vpop.f32.mrb[115].mxu0 }
0x415f   : > { %v10953_v5 = vsel %vm2850_vm2, %v10951_v19, -inf }
0x4160   : > { %v10947_v22 = vpop.f32.mrb[130].mxu1  ;;  %10954 = vmax.xlane.f32.xlu0 %v10953_v5 }
0x4161   : > { %v10952_v24 = vmul.f32 0.35355338, %v10947_v22  ;;  %v15845_v25 = vpop.f32.mrb[131].mxu1  ;;  %v16310_v22 = vld [vmem:[%s19256_s25 + $0x18] sm:$0xff]  }
0x4163   : > { %v10956_v26 = vsel %vm2850_vm2, %v10952_v24, -inf }
0x4164   : > { %10957 = vmax.xlane.f32.xlu1 %v10956_v26 }
0x4175   : > { %11051 = vrot.lane.b32.xlu1 %v19629_v62, %s20241_s5 }
0x4176   : > { %10975 = vrot.lane.b32.xlu0 %v19605_v21, %s20241_s5 }
0x4179   : > { %11129 = vrot.lane.b32.xlu1 %v19611_v57, %s20242_s3 }
0x417d   : > { %11207 = vrot.lane.b32.xlu1 %v19617_v1, %s20242_s3 }
0x4181   : > { %11205 = vrot.lane.b32.xlu1 %v19626_v51, %s20242_s3 }
0x41ed   : > { %v10955_v29 = vpop.xlane.xlu0 %10954 }
0x41ee   : > { %v10959_v31 = vsub.f32 %v10951_v19, %v10955_v29 }
0x41f0   : > { %v10961_v34 = vmul.f32 1.442695, %v10959_v31 }
0x41f1   : > { %v10958_v14 = vpop.xlane.xlu1 %10957  ;;  %v10976_v6 = vpop.permute.xlu0 %10975 }
0x41f2   : > { %16503 = vpow2.f32 %v10961_v34  ;;  %v10960_v28 = vsub.f32 %v10952_v24, %v10958_v14  ;;  %15847 = vmatpush3.msra.mxu0 %v10976_v6 }
0x41f3   : > { %15856 = vmatprep.subr.mxu0 %v17398_v0 }
0x41f4   : > { %v10963_v16 = vmul.f32 1.442695, %v10960_v28 }
0x41f5   : > { %v11052_v33 = vpop.permute.xlu1 %11051 }
0x41f6   : > { %16505 = vpow2.f32 %v10963_v16  ;;  %15852 = vmatpush3.msra.mxu1 %v11052_v33 }
0x41f7   : > { %15861 = vmatprep.subr.mxu1 %v17398_v0 }
0x41f9   : > { %v11130_v53 = vpop.permute.xlu1 %11129 }
0x41fc   : > { %v16504_v57 = vpop.eup %16503 }
0x41fd   : > { %v10965_v1 = vsel %vm2850_vm2, %v16504_v57, 0.0  ;;  %v11208_v41 = vpop.permute.xlu1 %11207 }
0x41fe   : > { %10966 = vadd.xlane.f32.xlu0 %v10965_v1 }
0x4200   : > { %v16506_v51 = vpop.eup %16505 }
0x4201   : > { %v10968_v36 = vsel %vm2850_vm2, %v16506_v51, 0.0  ;;  %v11206_v45 = vpop.permute.xlu1 %11205 }
0x4202   : > { %10969 = vadd.xlane.f32.xlu0 %v10968_v36 }
0x4218   : > { %11127 = vrot.lane.b32.xlu0 %v19615_v59, %s20242_s3 }
0x428b   : > { %v10967_v38 = vpop.xlane.xlu0 %10966 }
0x428c   : > { %16507 = vrcp.f32 %v10967_v38 }
0x428f   : > { %v10970_v44 = vpop.xlane.xlu0 %10969 }
0x4290   : > { %16509 = vrcp.f32 %v10970_v44 }
0x4293   : > { %v11128_v59 = vpop.permute.xlu0 %11127 }
0x4296   : > { %v16508_v47 = vpop.eup %16507 }
0x4297   : > { %v10972_v9 = vmul.f32 %v16508_v47, %v16504_v57 }
0x4299   : > { %15849 = vmatmul.mubr.msk.f32.vlgmr.msra.gmra.mrb[116].mxu0 %vm2850_vm2, %v10972_v9 }
0x429a   : > { %v16510_v54 = vpop.eup %16509  ;;  %15857 = vmatpush3.xpose.msk.msra.mxu0 %vm2850_vm2, %v11130_v53  ;;  %15858 = vmatprep.mubr.msk.f32.mxu0 %vm17399_vm0, %v17398_v0 }
0x429b   : > { %v10974_v43 = vmul.f32 %v16510_v54, %v16506_v51  ;;  %15866 = vmatprep.subr.mxu0 %v17398_v0  ;;  %v16311_v54 = vld [vmem:[%s19295_s16 + $0x10] sm:$0xff]  }
0x429d   : > { %15854 = vmatmul.mubr.msk.f32.vlgmr.msra.gmra.mrb[132].mxu1 %vm2850_vm2, %v10974_v43  ;;  %15859 = vmatmul.mubr.msk.f32.vlgmr.msra.gmra.mrb[118].mxu0 %vm2850_vm2, %v11128_v59 }
0x429e   : > { %15862 = vmatpush3.xpose.msk.msra.mxu1 %vm2850_vm2, %v11208_v41  ;;  %15863 = vmatprep.mubr.msk.f32.mxu1 %vm17399_vm0, %v17398_v0 }
0x429f   : > { %15871 = vmatprep.subr.mxu1 %v17398_v0  ;;  %15868 = vmatprep.mubr.msk.f32.mxu0 %vm17399_vm0, %v17398_v0 }
0x42a1   : > { %15864 = vmatmul.mubr.msk.f32.vlgmr.msra.gmra.mrb[134].mxu1 %vm2850_vm2, %v11206_v45 }
0x42a2   : > { %15873 = vmatprep.mubr.msk.f32.mxu1 %vm17399_vm0, %v17398_v0 }
0x436c   : > { %v11047_v46 = vpop.f32.mrb[116].mxu0 }
0x436d   : > { %v15850_v23 = vpop.f32.mrb[117].mxu0 }
0x4370   : > { %v11123_v50 = vpop.f32.mrb[132].mxu1  ;;  %v11201_v49 = vpop.f32.mrb[118].mxu0 }
0x4371   : > { %v16228_v52 = vpack.i.bf16 %v11123_v50, %v11047_v46  ;;  %v11283_v11 = vmul.f32 0.35355338, %v11201_v49  ;;  %v15855_v15 = vpop.f32.mrb[133].mxu1  ;;  %v15860_v18 = vpop.f32.mrb[119].mxu0 }
0x4373   : > { %v11285_v55 = vsel %vm2850_vm2, %v11283_v11, -inf }
0x4374   : > { %v11279_v56 = vpop.f32.mrb[134].mxu1  ;;  %11286 = vmax.xlane.f32.xlu0 %v11285_v55 }
0x4375   : > { %v11284_v39 = vmul.f32 0.35355338, %v11279_v56  ;;  %v15865_v58 = vpop.f32.mrb[135].mxu1 }
0x4377   : > { %v11288_v60 = vsel %vm2850_vm2, %v11284_v39, -inf }
0x4378   : > { %11289 = vmax.xlane.f32.xlu1 %v11288_v60 }
0x4389   : > { %11383 = vrot.lane.b32.xlu1 %v19629_v62, %s20242_s3 }
0x438d   : > { %16224 = vrot.lane.b32.xlu1 %v16223_v27, %s20243_s4 }
0x4391   : > { %16229 = vrot.lane.b32.xlu1 %v16228_v52, %s20244_s10 }
0x4401   : > { %v11287_v8 = vpop.xlane.xlu0 %11286 }
0x4402   : > { %v11291_v3 = vsub.f32 %v11283_v11, %v11287_v8 }
0x4404   : > { %v11293_v12 = vmul.f32 1.442695, %v11291_v3 }
0x4405   : > { %v11290_v13 = vpop.xlane.xlu1 %11289 }
0x4406   : > { %16511 = vpow2.f32 %v11293_v12  ;;  %v11292_v61 = vsub.f32 %v11284_v39, %v11290_v13 }
0x4408   : > { %v11295_v37 = vmul.f32 1.442695, %v11292_v61 }
0x4409   : > { %v11384_v63 = vpop.permute.xlu1 %11383 }
0x440a   : > { %16513 = vpow2.f32 %v11295_v37  ;;  %15872 = vmatpush3.msra.mxu1 %v11384_v63  ;;  %v16313_v63 = vld [vmem:[%s19301_s27 + $0x10] sm:$0xff]  }
0x440b   : > { %15884 = vmatprep.subr.bf16.mxu1 %v17398_v0 }
0x440d   : > { %v16225_v34 = vpop.permute.xlu1 %16224 }
0x440e   : > { %v16227_v6 = vunpack.i.h.bf16 %v16225_v34  ;;  %v16226_v28 = vunpack.i.l.bf16 %v16225_v34 }
0x4410   : > { %v16512_v62 = vpop.eup %16511  ;;  %v11484_v1 = vsel %vm2850_vm2, %v19667_v35, %v16227_v6  ;;  %v11483_v51 = vsel %vm2850_vm2, %v19665_v30, %v16226_v28  ;;  %v16312_v35 = vld [vmem:[%s19295_s16 + $0x18] sm:$0xff]   ;;  %s20277_s16 = scalar_lea.vmem [#allocation12], %s18413_s11 }
0x4411   : > { %v11297_v40 = vsel %vm2850_vm2, %v16512_v62, 0.0  ;;  %v16230_v14 = vpop.permute.xlu1 %16229 }
0x4412   : > { %11298 = vadd.xlane.f32.xlu0 %v11297_v40  ;;  %v16232_v16 = vunpack.i.h.bf16 %v16230_v14  ;;  %v16231_v33 = vunpack.i.l.bf16 %v16230_v14  ;;  %v16316_v14 = vld [vmem:[%s19311_s9 + $0x18] sm:$0xff]  }
0x4414   : > { %v16514_v7 = vpop.eup %16513  ;;  %v11486_v44 = vsel %vm4197_vm3, %v11484_v1, %v16232_v16  ;;  %v11485_v53 = vsel %vm4197_vm3, %v11483_v51, %v16231_v33 }
0x4415   : > { %v11300_v10 = vsel %vm2850_vm2, %v16514_v7, 0.0 }
0x4416   : > { %11301 = vadd.xlane.f32.xlu0 %v11300_v10 }
0x442c   : > { %11307 = vrot.lane.b32.xlu0 %v19605_v21, %s20242_s3  ;;  %v16309_v21 = vld [vmem:[%s19256_s25 + $0x10] sm:$0xff]   ;;  %s20276_s25 = scalar_lea.vmem [#allocation19], %s18413_s11 }
0x442d   : > { %v14825_v30 = vld [vmem:[%s20276_s25 + $0x1] ss:$0 sm:$0xff] }
0x449f   : > { %v11299_v4 = vpop.xlane.xlu0 %11298 }
0x44a0   : > { %16515 = vrcp.f32 %v11299_v4 }
0x44a3   : > { %v11302_v17 = vpop.xlane.xlu0 %11301 }
0x44a4   : > { %16517 = vrcp.f32 %v11302_v17 }
0x44a7   : > { %v11308_v27 = vpop.permute.xlu0 %11307 }
0x44a8   : > { %15867 = vmatpush3.msra.mxu0 %v11308_v27 }
0x44a9   : > { %15876 = vmatprep.subr.bf16.mxu0 %v17398_v0 }
0x44aa   : > { %v16516_v19 = vpop.eup %16515 }
0x44ab   : > { %v11304_v48 = vmul.f32 %v16516_v19, %v16512_v62  ;;  %v16314_v62 = vld [vmem:[%s19301_s27 + $0x18] sm:$0xff]   ;;  %s20278_s27 = scalar_lea.vmem [#allocation10], %s18413_s11 }
0x44ad   : > { %15869 = vmatmul.mubr.msk.f32.vlgmr.msra.gmra.mrb[120].mxu0 %vm2850_vm2, %v11304_v48 }
0x44ae   : > { %v16518_v20 = vpop.eup %16517  ;;  %15880 = vmatprep.mubr.msk.bf16.mxu0 %vm17399_vm0, %v17398_v0  ;;  %15877 = vmatpush3.bf16.msra.mxu0 %v16309_v21 }
0x44af   : > { %v11306_v5 = vmul.f32 %v16518_v20, %v16514_v7  ;;  %15878 = vmatprep.subr.bf16.mxu0 %v17398_v0  ;;  %v14831_v20 = vld [vmem:[%s20277_s16 + $0x1] ss:$0 sm:$0xff] }
0x44b1   : > { %15874 = vmatmul.mubr.msk.f32.vlgmr.msra.gmra.mrb[136].mxu1 %vm2850_vm2, %v11306_v5 }
0x44b2   : > { %15888 = vmatprep.mubr.msk.bf16.mxu1 %vm17399_vm0, %v17398_v0  ;;  %15879 = vmatpush3.bf16.msra.mxu0 %v16310_v22 }
0x44b3   : > { %15892 = vmatprep.subr.bf16.mxu0 %v17398_v0  ;;  %15885 = vmatpush3.bf16.msra.mxu1 %v16313_v63 }
0x44b4   : > { %15886 = vmatprep.subr.bf16.mxu1 %v17398_v0 }
0x44b7   : > { %15887 = vmatpush3.bf16.msra.mxu1 %v16314_v62 }
0x44b8   : > { %15900 = vmatprep.subr.bf16.mxu1 %v17398_v0 }
0x4580   : > { %v11379_v24 = vpop.f32.mrb[120].mxu0 }
0x4581   : > { %v15870_v25 = vpop.f32.mrb[121].mxu0 }
0x4584   : > { %v11455_v26 = vpop.f32.mrb[136].mxu1 }
0x4585   : > { %v16233_v29 = vpack.i.bf16 %v11455_v26, %v11379_v24  ;;  %v15875_v31 = vpop.f32.mrb[137].mxu1  ;;  %v14832_v24 = vld [vmem:[%s20278_s27 + $0x1] ss:$0 sm:$0xff] }
0x4586   : > { %v16315_v31 = vld [vmem:[%s19311_s9 + $0x10] sm:$0xff]   ;;  %s20279_s9 = scalar_lea.vmem [#allocation4], %s18413_s11 }
0x4587   : > { %16234 = vrot.lane.b32.xlu0 %v16233_v29, %s20245_s12  ;;  %v14852_v6 = vld [vmem:[%s20279_s9 + $0x1] ss:$0 sm:$0xff] }
0x45f9   : > { %v16235_v57 = vpop.permute.xlu0 %16234 }
0x45fa   : > { %v16237_v36 = vunpack.i.h.bf16 %v16235_v57  ;;  %v16236_v38 = vunpack.i.l.bf16 %v16235_v57 }
0x45fc   : > { %v11488_v47 = vsel %vm4200_vm4, %v11486_v44, %v16237_v36  ;;  %v11487_v9 = vsel %vm4200_vm4, %v11485_v53, %v16236_v38 }
0x45fd   : > { %v11489_v41 = vpack.c.bf16 %v11488_v47, %v11487_v9 }
0x45ff   : > { %15881 = vmatmul.mubr.msk.bf16.vlgmr.msra.gmra.mrb[124].mxu0 %vm2693_vm1, %v11489_v41 }
0x4600   : > { %15893 = vmatpush3.bf16.msra.mxu0 %v16311_v54  ;;  %15896 = vmatprep.mubr.msk.bf16.mxu0 %vm17399_vm0, %v17398_v0 }
0x4601   : > { %15894 = vmatprep.subr.bf16.mxu0 %v17398_v0 }
0x4604   : > { %15895 = vmatpush3.bf16.msra.mxu0 %v16312_v35 }
0x4605   : > { %15908 = vmatprep.subr.mxu0 %v17398_v0 }
0x4607   : > { %15897 = vmatmul.mubr.msk.bf16.vlgmr.msra.gmra.mrb[128].mxu0 %vm2693_vm1, %v19321_v2 }
0x4608   : > { %15910 = vmatprep.mubr.msk.f32.mxu0 %vm17399_vm0, %v17398_v0 }
0x46d2   : > { %v11545_v43 = vpop.f32.mrb[124].mxu0 }
0x46d3   : > { %v11546_v59 = vadd.f32 %v14825_v30, %v11545_v43  ;;  %v15882_v45 = vpop.f32.mrb[125].mxu0 }
0x46d4   : > { %v11548_v46 = vpop.f32.mrb[126].mxu0 }
0x46d5   : > { %v11552_v23 = vadd.f32 %v11546_v59, %v19584_v42  ;;  %v11549_v50 = vadd.f32 %v14825_v30, %v11548_v46  ;;  %v15883_v49 = vpop.f32.mrb[127].mxu0 }
0x46d7   : > { %v11553_v52 = vadd.f32 %v11549_v50, %v19586_v32  ;;  %v11558_v11 = vsel %vm2693_vm1, %v11552_v23, 0.0 }
0x46d8   : > { %11559 = vadd.xlane.f32.xlu1 %v11558_v11 }
0x46d9   : > { %v11561_v15 = vsel %vm2693_vm1, %v11553_v52, 0.0 }
0x46da   : > { %11562 = vadd.xlane.f32.xlu0 %v11561_v15  ;;  %v19794_v18 = vpop.f32.mrb[128].mxu0 }
0x46db   : > { %v15898_v55 = vpop.f32.mrb[129].mxu0  ;;  %15909 = vmatpush3.xpose.msk.msra.mxu0 %vm2850_vm2, %v19794_v18 }
0x46dc   : > { %v19798_v56 = vpop.f32.mrb[130].mxu0  ;;  %15918 = vmatprep.subr.mxu0 %v17398_v0 }
0x46dd   : > { %v15899_v42 = vpop.f32.mrb[131].mxu0 }
0x4765   : > { %v11560_v32 = vpop.xlane.xlu1 %11559 }
0x4766   : > { %v11564_v39 = vmul.f32 0.03125, %v11560_v32 }
0x4767   : > { %v11563_v58 = vpop.xlane.xlu0 %11562 }
0x4768   : > { %v11566_v60 = vsub.f32 %v11552_v23, %v11564_v39  ;;  %v11565_v8 = vmul.f32 0.03125, %v11563_v58 }
0x476a   : > { %v11567_v3 = vsub.f32 %v11553_v52, %v11565_v8  ;;  %v11568_v12 = vmul.f32 %v11566_v60, %v11566_v60 }
0x476c   : > { %v11570_v13 = vsel %vm2693_vm1, %v11568_v12, 0.0  ;;  %v11569_v61 = vmul.f32 %v11567_v3, %v11567_v3 }
0x476d   : > { %11571 = vadd.xlane.f32.xlu0 %v11570_v13 }
0x476e   : > { %v11573_v37 = vsel %vm2693_vm1, %v11569_v61, 0.0 }
0x4771   : > { %11574 = vadd.xlane.f32.xlu0 %v11573_v37 }
0x47fa   : > { %v11572_v40 = vpop.xlane.xlu0 %11571 }
0x47fb   : > { %v11576_v7 = vmul.f32 0.03125, %v11572_v40 }
0x47fd   : > { %v11578_v10 = vadd.f32 1e-05, %v11576_v7 }
0x47fe   : > { %v11575_v4 = vpop.xlane.xlu0 %11574 }
0x47ff   : > { %16519 = vrsqrt.f32 %v11578_v10  ;;  %v11577_v17 = vmul.f32 0.03125, %v11575_v4 }
0x4801   : > { %v11579_v27 = vadd.f32 1e-05, %v11577_v17 }
0x4803   : > { %16521 = vrsqrt.f32 %v11579_v27 }
0x4809   : > { %v16520_v19 = vpop.eup %16519 }
0x480a   : > { %v11582_v48 = vmul.f32 %v16520_v19, %v11566_v60 }
0x480c   : > { %v11590_v21 = vmul.f32 %v14831_v20, %v11582_v48 }
0x480d   : > { %v16522_v5 = vpop.eup %16521 }
0x480e   : > { %v11583_v22 = vmul.f32 %v16522_v5, %v11567_v3  ;;  %v19811_v26 = vadd.f32 %v14832_v24, %v11590_v21 }
0x4810   : > { %v11591_v25 = vmul.f32 %v14831_v20, %v11583_v22 }
0x4812   : > { %v19813_v29 = vadd.f32 %v14832_v24, %v11591_v25 }
0x4814   : > { %v11626_v34 = vpack.c.bf16 %v19813_v29, %v19811_v26 }
0x4816   : > { %15889 = vmatmul.mubr.msk.bf16.vlgmr.msra.gmra.mrb[140].mxu1 %vm2693_vm1, %v11626_v34 }
0x4817   : > { %15901 = vmatpush3.bf16.msra.mxu1 %v16315_v31  ;;  %15904 = vmatprep.mubr.msk.bf16.mxu1 %vm17399_vm0, %v17398_v0 }
0x4818   : > { %15902 = vmatprep.subr.bf16.mxu1 %v17398_v0 }
0x481b   : > { %15903 = vmatpush3.bf16.msra.mxu1 %v16316_v14 }
0x481c   : > { %15913 = vmatprep.subr.mxu1 %v17398_v0 }
0x481e   : > { %15905 = vmatmul.mubr.msk.bf16.vlgmr.msra.gmra.mrb[144].mxu1 %vm2693_vm1, %v19321_v2  ;;  %v14859_v2 = vld [vmem:[%s20280_s2 + $0x1] ss:$0 sm:$0xff] }
0x481f   : > { %15915 = vmatprep.mubr.msk.f32.mxu1 %vm17399_vm0, %v17398_v0 }
0x4824   : > { %15914 = vmatpush3.xpose.msk.msra.mxu1 %vm2850_vm2, %v19798_v56 }
0x4825   : > { %15923 = vmatprep.subr.mxu1 %v17398_v0 }
0x48e9   : > { %v11682_v28 = vpop.f32.mrb[140].mxu1 }
0x48ea   : > { %v19833_v16 = vadd.f32 %v14852_v6, %v11682_v28  ;;  %v15890_v33 = vpop.f32.mrb[141].mxu1 }
0x48eb   : > { %v11685_v57 = vpop.f32.mrb[142].mxu1 }
0x48ec   : > { %v19835_v1 = vadd.f32 %v14852_v6, %v11685_v57  ;;  %v15891_v51 = vpop.f32.mrb[143].mxu1  ;;  %15911 = vmatmul.mubr.msk.f32.vlgmr.msra.gmra.mrb[122].mxu0 %vm2850_vm2, %v19833_v16 }
0x48ed   : > { %15920 = vmatprep.mubr.msk.f32.mxu0 %vm17399_vm0, %v17398_v0 }
0x48ee   : > { %15916 = vmatmul.mubr.msk.f32.vlgmr.msra.gmra.mrb[138].mxu1 %vm2850_vm2, %v19835_v1 }
0x48ef   : > { %15925 = vmatprep.mubr.msk.f32.mxu1 %vm17399_vm0, %v17398_v0 }
0x48f1   : > { %v11794_v36 = vpop.f32.mrb[144].mxu1 }
0x48f2   : > { %v19847_v38 = vadd.f32 %v14859_v2, %v11794_v36  ;;  %v15906_v44 = vpop.f32.mrb[145].mxu1 }
0x48f3   : > { %v11797_v53 = vpop.f32.mrb[146].mxu1 }
0x48f4   : > { %v19849_v47 = vadd.f32 %v14859_v2, %v11797_v53  ;;  %v15907_v9 = vpop.f32.mrb[147].mxu1  ;;  %15919 = vmatpush3.msra.mxu0 %v19847_v38 }
0x48f5   : > { %15928 = vmatprep.subr.mxu0 %v17398_v0 }
0x48f6   : > { %15924 = vmatpush3.msra.mxu1 %v19849_v47 }
0x48f7   : > { %15933 = vmatprep.subr.mxu1 %v17398_v0 }
0x49bf   : > { %v11873_v54 = vpop.f32.mrb[122].mxu0 }
0x49c0   : > { %v11953_v41 = vmul.f32 0.35355338, %v11873_v54  ;;  %v15912_v35 = vpop.f32.mrb[123].mxu0 }
0x49c1   : > { %v11949_v30 = vpop.f32.mrb[138].mxu1 }
0x49c2   : > { %v11954_v43 = vmul.f32 0.35355338, %v11949_v30  ;;  %v15917_v59 = vpop.f32.mrb[139].mxu1  ;;  %v11955_v45 = vsel %vm2850_vm2, %v11953_v41, -inf }
0x49c3   : > { %11956 = vmax.xlane.f32.xlu1 %v11955_v45 }
0x49c4   : > { %v11958_v46 = vsel %vm2850_vm2, %v11954_v43, -inf }
0x49c5   : > { %11959 = vmax.xlane.f32.xlu0 %v11958_v46 }
0x49d4   : > { %12125 = vrot.lane.b32.xlu1 %v19794_v18, %s20240_s6 }
0x4a50   : > { %v11957_v23 = vpop.xlane.xlu1 %11956 }
0x4a51   : > { %v11961_v50 = vsub.f32 %v11953_v41, %v11957_v23 }
0x4a52   : > { %v11960_v49 = vpop.xlane.xlu0 %11959 }
0x4a53   : > { %v11963_v52 = vmul.f32 1.442695, %v11961_v50  ;;  %v11962_v11 = vsub.f32 %v11954_v43, %v11960_v49 }
0x4a54   : > { %v12126_v58 = vpop.permute.xlu1 %12125 }
0x4a55   : > { %16523 = vpow2.f32 %v11963_v52  ;;  %v11965_v15 = vmul.f32 1.442695, %v11962_v11 }
0x4a57   : > { %16525 = vpow2.f32 %v11965_v15 }
0x4a5f   : > { %v16524_v55 = vpop.eup %16523 }
0x4a60   : > { %v11967_v42 = vsel %vm2850_vm2, %v16524_v55, 0.0 }
0x4a61   : > { %v16526_v32 = vpop.eup %16525  ;;  %11968 = vadd.xlane.f32.xlu1 %v11967_v42 }
0x4a62   : > { %v11970_v39 = vsel %vm2850_vm2, %v16526_v32, 0.0 }
0x4a63   : > { %11971 = vadd.xlane.f32.xlu0 %v11970_v39 }
0x4a72   : > { %12123 = vrot.lane.b32.xlu1 %v19833_v16, %s20240_s6 }
0x4a76   : > { %12201 = vrot.lane.b32.xlu1 %v19835_v1, %s20240_s6 }
0x4a79   : > { %12203 = vrot.lane.b32.xlu0 %v19798_v56, %s20240_s6 }
0x4aee   : > { %v11969_v60 = vpop.xlane.xlu1 %11968 }
0x4aef   : > { %16527 = vrcp.f32 %v11969_v60 }
0x4af0   : > { %v11972_v8 = vpop.xlane.xlu0 %11971 }
0x4af1   : > { %16529 = vrcp.f32 %v11972_v8 }
0x4af2   : > { %v12124_v61 = vpop.permute.xlu1 %12123 }
0x4af4   : > { %v12204_v63 = vpop.permute.xlu0 %12203 }
0x4af6   : > { %v12202_v62 = vpop.permute.xlu1 %12201 }
0x4af9   : > { %v16528_v3 = vpop.eup %16527 }
0x4afa   : > { %v11974_v12 = vmul.f32 %v16528_v3, %v16524_v55 }
0x4afb   : > { %v16530_v13 = vpop.eup %16529 }
0x4afc   : > { %v11976_v37 = vmul.f32 %v16530_v13, %v16526_v32  ;;  %15921 = vmatmul.mubr.msk.f32.vlgmr.msra.gmra.mrb[132].mxu0 %vm2850_vm2, %v11974_v12 }
0x4afd   : > { %15929 = vmatpush3.xpose.msk.msra.mxu0 %vm2850_vm2, %v12126_v58  ;;  %15930 = vmatprep.mubr.msk.f32.mxu0 %vm17399_vm0, %v17398_v0 }
0x4afe   : > { %15926 = vmatmul.mubr.msk.f32.vlgmr.msra.gmra.mrb[148].mxu1 %vm2850_vm2, %v11976_v37  ;;  %15938 = vmatprep.subr.mxu0 %v17398_v0 }
0x4aff   : > { %15934 = vmatpush3.xpose.msk.msra.mxu1 %vm2850_vm2, %v12204_v63  ;;  %15935 = vmatprep.mubr.msk.f32.mxu1 %vm17399_vm0, %v17398_v0 }
0x4b00   : > { %15931 = vmatmul.mubr.msk.f32.vlgmr.msra.gmra.mrb[134].mxu0 %vm2850_vm2, %v12124_v61  ;;  %15943 = vmatprep.subr.mxu1 %v17398_v0 }
0x4b01   : > { %15940 = vmatprep.mubr.msk.f32.mxu0 %vm17399_vm0, %v17398_v0 }
0x4b02   : > { %15936 = vmatmul.mubr.msk.f32.vlgmr.msra.gmra.mrb[150].mxu1 %vm2850_vm2, %v12202_v62 }
0x4b03   : > { %15945 = vmatprep.mubr.msk.f32.mxu1 %vm17399_vm0, %v17398_v0 }
0x4bcf   : > { %v19883_v40 = vpop.f32.mrb[132].mxu0 }
0x4bd0   : > { %v15922_v7 = vpop.f32.mrb[133].mxu0 }
0x4bd1   : > { %v19885_v10 = vpop.f32.mrb[148].mxu1 }
0x4bd2   : > { %v15927_v4 = vpop.f32.mrb[149].mxu1 }
0x4bd3   : > { %v12197_v17 = vpop.f32.mrb[134].mxu0 }
0x4bd4   : > { %v12279_v27 = vmul.f32 0.35355338, %v12197_v17  ;;  %v15932_v19 = vpop.f32.mrb[135].mxu0 }
0x4bd5   : > { %v12275_v48 = vpop.f32.mrb[150].mxu1 }
0x4bd6   : > { %v12280_v20 = vmul.f32 0.35355338, %v12275_v48  ;;  %v15937_v5 = vpop.f32.mrb[151].mxu1  ;;  %v12281_v21 = vsel %vm2850_vm2, %v12279_v27, -inf }
0x4bd7   : > { %12282 = vmax.xlane.f32.xlu1 %v12281_v21 }
0x4bd8   : > { %v12284_v22 = vsel %vm2850_vm2, %v12280_v20, -inf }
0x4bd9   : > { %12285 = vmax.xlane.f32.xlu0 %v12284_v22 }
0x4be8   : > { %12304 = vrot.lane.b32.xlu1 %v19847_v38, %s20240_s6 }
0x4bec   : > { %12459 = vrot.lane.b32.xlu1 %v19794_v18, %s20241_s5 }
0x4bef   : > { %12381 = vrot.lane.b32.xlu0 %v19849_v47, %s20240_s6  ;;  %s20283_s6 = scalar_lea.vmem [#allocation13], %s18413_s11 }
0x4bf0   : > { %12537 = vrot.lane.b32.xlu1 %v19798_v56, %s20241_s5 }
0x4bf4   : > { %12457 = vrot.lane.b32.xlu1 %v19833_v16, %s20241_s5 }
0x4c64   : > { %v12283_v24 = vpop.xlane.xlu1 %12282 }
0x4c65   : > { %v12287_v25 = vsub.f32 %v12279_v27, %v12283_v24 }
0x4c66   : > { %v12286_v31 = vpop.xlane.xlu0 %12285 }
0x4c67   : > { %v12289_v34 = vmul.f32 1.442695, %v12287_v25  ;;  %v12288_v14 = vsub.f32 %v12280_v20, %v12286_v31 }
0x4c68   : > { %v12305_v6 = vpop.permute.xlu1 %12304 }
0x4c69   : > { %16531 = vpow2.f32 %v12289_v34  ;;  %v12291_v28 = vmul.f32 1.442695, %v12288_v14  ;;  %15939 = vmatpush3.msra.mxu0 %v12305_v6 }
0x4c6a   : > { %v12382_v33 = vpop.permute.xlu0 %12381  ;;  %15948 = vmatprep.subr.mxu0 %v17398_v0 }
0x4c6b   : > { %16533 = vpow2.f32 %v12291_v28  ;;  %15944 = vmatpush3.msra.mxu1 %v12382_v33 }
0x4c6c   : > { %15953 = vmatprep.subr.mxu1 %v17398_v0  ;;  %v12460_v9 = vpop.permute.xlu1 %12459 }
0x4c70   : > { %v12538_v41 = vpop.permute.xlu1 %12537 }
0x4c73   : > { %v16532_v57 = vpop.eup %16531 }
0x4c74   : > { %v12293_v51 = vsel %vm2850_vm2, %v16532_v57, 0.0  ;;  %v12458_v59 = vpop.permute.xlu1 %12457 }
0x4c75   : > { %v16534_v2 = vpop.eup %16533  ;;  %12294 = vadd.xlane.f32.xlu0 %v12293_v51 }
0x4c76   : > { %v12296_v36 = vsel %vm2850_vm2, %v16534_v2, 0.0 }
0x4c79   : > { %12297 = vadd.xlane.f32.xlu0 %v12296_v36 }
0x4c8f   : > { %12535 = vrot.lane.b32.xlu0 %v19835_v1, %s20241_s5 }
0x4d02   : > { %v12295_v44 = vpop.xlane.xlu0 %12294 }
0x4d03   : > { %16535 = vrcp.f32 %v12295_v44 }
0x4d06   : > { %v12298_v53 = vpop.xlane.xlu0 %12297 }
0x4d07   : > { %16537 = vrcp.f32 %v12298_v53 }
0x4d0a   : > { %v12536_v45 = vpop.permute.xlu0 %12535 }
0x4d0d   : > { %v16536_v54 = vpop.eup %16535 }
0x4d0e   : > { %v12300_v35 = vmul.f32 %v16536_v54, %v16532_v57 }
0x4d10   : > { %15941 = vmatmul.mubr.msk.f32.vlgmr.msra.gmra.mrb[136].mxu0 %vm2850_vm2, %v12300_v35 }
0x4d11   : > { %v16538_v30 = vpop.eup %16537  ;;  %15949 = vmatpush3.xpose.msk.msra.mxu0 %vm2850_vm2, %v12460_v9  ;;  %15950 = vmatprep.mubr.msk.f32.mxu0 %vm17399_vm0, %v17398_v0 }
0x4d12   : > { %v12302_v43 = vmul.f32 %v16538_v30, %v16534_v2  ;;  %15958 = vmatprep.subr.mxu0 %v17398_v0 }
0x4d14   : > { %15946 = vmatmul.mubr.msk.f32.vlgmr.msra.gmra.mrb[152].mxu1 %vm2850_vm2, %v12302_v43  ;;  %15951 = vmatmul.mubr.msk.f32.vlgmr.msra.gmra.mrb[138].mxu0 %vm2850_vm2, %v12458_v59 }
0x4d15   : > { %15954 = vmatpush3.xpose.msk.msra.mxu1 %vm2850_vm2, %v12538_v41  ;;  %15955 = vmatprep.mubr.msk.f32.mxu1 %vm17399_vm0, %v17398_v0 }
0x4d16   : > { %15963 = vmatprep.subr.mxu1 %v17398_v0  ;;  %15960 = vmatprep.mubr.msk.f32.mxu0 %vm17399_vm0, %v17398_v0 }
0x4d18   : > { %15956 = vmatmul.mubr.msk.f32.vlgmr.msra.gmra.mrb[154].mxu1 %vm2850_vm2, %v12536_v45 }
0x4d19   : > { %15965 = vmatprep.mubr.msk.f32.mxu1 %vm17399_vm0, %v17398_v0 }
0x4de3   : > { %v19921_v46 = vpop.f32.mrb[136].mxu0 }
0x4de4   : > { %v15942_v23 = vpop.f32.mrb[137].mxu0 }
0x4de7   : > { %v19923_v50 = vpop.f32.mrb[152].mxu1  ;;  %v12531_v49 = vpop.f32.mrb[138].mxu0 }
0x4de8   : > { %v16238_v52 = vpack.i.bf16 %v19923_v50, %v19921_v46  ;;  %v12613_v11 = vmul.f32 0.35355338, %v12531_v49  ;;  %v15947_v15 = vpop.f32.mrb[153].mxu1  ;;  %v15952_v55 = vpop.f32.mrb[139].mxu0 }
0x4dea   : > { %v12615_v42 = vsel %vm2850_vm2, %v12613_v11, -inf }
0x4deb   : > { %v12609_v32 = vpop.f32.mrb[154].mxu1  ;;  %12616 = vmax.xlane.f32.xlu1 %v12615_v42  ;;  %v16318_v42 = vld [vmem:[%s19507_s7 + $0x18] sm:$0xff]  }
0x4dec   : > { %v12614_v39 = vmul.f32 0.35355338, %v12609_v32  ;;  %v15957_v58 = vpop.f32.mrb[155].mxu1 }
0x4dee   : > { %v12618_v60 = vsel %vm2850_vm2, %v12614_v39, -inf }
0x4def   : > { %12619 = vmax.xlane.f32.xlu0 %v12618_v60 }
0x4dfc   : > { %12637 = vrot.lane.b32.xlu1 %v19847_v38, %s20241_s5 }
0x4e00   : > { %12791 = vrot.lane.b32.xlu1 %v19794_v18, %s20242_s3 }
0x4e04   : > { %12869 = vrot.lane.b32.xlu1 %v19798_v56, %s20242_s3 }
0x4e05   : > { %12713 = vrot.lane.b32.xlu0 %v19849_v47, %s20241_s5  ;;  %s20284_s5 = smov %s20270_s26  ;;  %s20291_s26 = scalar_lea.vmem [#allocation27], %s18410_s0 }
0x4e08   : > { %12789 = vrot.lane.b32.xlu1 %v19833_v16, %s20242_s3 }
0x4e78   : > { %v12617_v8 = vpop.xlane.xlu1 %12616 }
0x4e79   : > { %v12621_v3 = vsub.f32 %v12613_v11, %v12617_v8 }
0x4e7b   : > { %v12623_v12 = vmul.f32 1.442695, %v12621_v3 }
0x4e7c   : > { %v12620_v13 = vpop.xlane.xlu0 %12619  ;;  %v12638_v61 = vpop.permute.xlu1 %12637 }
0x4e7d   : > { %16539 = vpow2.f32 %v12623_v12  ;;  %v12622_v37 = vsub.f32 %v12614_v39, %v12620_v13  ;;  %15959 = vmatpush3.msra.mxu0 %v12638_v61 }
0x4e7e   : > { %15968 = vmatprep.subr.mxu0 %v17398_v0 }
0x4e7f   : > { %v12625_v18 = vmul.f32 1.442695, %v12622_v37 }
0x4e80   : > { %v12714_v63 = vpop.permute.xlu0 %12713  ;;  %v12792_v27 = vpop.permute.xlu1 %12791 }
0x4e81   : > { %16541 = vpow2.f32 %v12625_v18  ;;  %15964 = vmatpush3.msra.mxu1 %v12714_v63 }
0x4e82   : > { %15973 = vmatprep.subr.mxu1 %v17398_v0 }
0x4e84   : > { %v12870_v48 = vpop.permute.xlu1 %12869 }
0x4e87   : > { %v16540_v56 = vpop.eup %16539 }
0x4e88   : > { %v12627_v62 = vsel %vm2850_vm2, %v16540_v56, 0.0 }
0x4e89   : > { %12628 = vadd.xlane.f32.xlu0 %v12627_v62 }
0x4e8b   : > { %v16542_v16 = vpop.eup %16541 }
0x4e8c   : > { %v12630_v7 = vsel %vm2850_vm2, %v16542_v16, 0.0 }
0x4e8d   : > { %12631 = vadd.xlane.f32.xlu0 %v12630_v7 }
0x4ea3   : > { %12867 = vrot.lane.b32.xlu0 %v19835_v1, %s20242_s3  ;;  %v12790_v1 = vpop.permute.xlu1 %12789 }
0x4f16   : > { %v12629_v4 = vpop.xlane.xlu0 %12628 }
0x4f17   : > { %16543 = vrcp.f32 %v12629_v4 }
0x4f1a   : > { %v12632_v17 = vpop.xlane.xlu0 %12631 }
0x4f1b   : > { %16545 = vrcp.f32 %v12632_v17 }
0x4f1e   : > { %v12868_v22 = vpop.permute.xlu0 %12867 }
0x4f21   : > { %v16544_v19 = vpop.eup %16543 }
0x4f22   : > { %v12634_v20 = vmul.f32 %v16544_v19, %v16540_v56 }
0x4f24   : > { %15961 = vmatmul.mubr.msk.f32.vlgmr.msra.gmra.mrb[140].mxu0 %vm2850_vm2, %v12634_v20 }
0x4f25   : > { %v16546_v5 = vpop.eup %16545  ;;  %15969 = vmatpush3.xpose.msk.msra.mxu0 %vm2850_vm2, %v12792_v27  ;;  %15970 = vmatprep.mubr.msk.f32.mxu0 %vm17399_vm0, %v17398_v0 }
0x4f26   : > { %v12636_v21 = vmul.f32 %v16546_v5, %v16542_v16  ;;  %15978 = vmatprep.subr.mxu0 %v17398_v0 }
0x4f28   : > { %15966 = vmatmul.mubr.msk.f32.vlgmr.msra.gmra.mrb[156].mxu1 %vm2850_vm2, %v12636_v21  ;;  %15971 = vmatmul.mubr.msk.f32.vlgmr.msra.gmra.mrb[142].mxu0 %vm2850_vm2, %v12790_v1 }
0x4f29   : > { %15974 = vmatpush3.xpose.msk.msra.mxu1 %vm2850_vm2, %v12870_v48  ;;  %15975 = vmatprep.mubr.msk.f32.mxu1 %vm17399_vm0, %v17398_v0 }
0x4f2a   : > { %15983 = vmatprep.subr.mxu1 %v17398_v0  ;;  %15980 = vmatprep.mubr.msk.f32.mxu0 %vm17399_vm0, %v17398_v0 }
0x4f2c   : > { %15976 = vmatmul.mubr.msk.f32.vlgmr.msra.gmra.mrb[158].mxu1 %vm2850_vm2, %v12868_v22 }
0x4f2d   : > { %15985 = vmatprep.mubr.msk.f32.mxu1 %vm17399_vm0, %v17398_v0 }
0x4ff7   : > { %v12709_v24 = vpop.f32.mrb[140].mxu0 }
0x4ff8   : > { %v15962_v25 = vpop.f32.mrb[141].mxu0 }
0x4ffb   : > { %v12785_v31 = vpop.f32.mrb[156].mxu1  ;;  %v12863_v34 = vpop.f32.mrb[142].mxu0 }
0x4ffc   : > { %v16243_v14 = vpack.i.bf16 %v12785_v31, %v12709_v24  ;;  %v12945_v6 = vmul.f32 0.35355338, %v12863_v34  ;;  %v15967_v28 = vpop.f32.mrb[157].mxu1  ;;  %v15972_v33 = vpop.f32.mrb[143].mxu0 }
0x4ffe   : > { %v12947_v57 = vsel %vm2850_vm2, %v12945_v6, -inf }
0x4fff   : > { %v12941_v51 = vpop.f32.mrb[158].mxu1  ;;  %12948 = vmax.xlane.f32.xlu1 %v12947_v57 }
0x5000   : > { %v12946_v2 = vmul.f32 0.35355338, %v12941_v51  ;;  %v15977_v36 = vpop.f32.mrb[159].mxu1 }
0x5002   : > { %v12950_v44 = vsel %vm2850_vm2, %v12946_v2, -inf }
0x5003   : > { %12951 = vmax.xlane.f32.xlu0 %v12950_v44  ;;  %v16319_v44 = vld [vmem:[%s19535_s23 + $0x10] sm:$0xff]  }
0x5010   : > { %12969 = vrot.lane.b32.xlu1 %v19847_v38, %s20242_s3 }
0x5014   : > { %16239 = vrot.lane.b32.xlu1 %v16238_v52, %s20243_s4  ;;  %s20286_s4 = smov %s20272_s14  ;;  %s14964_s14 = sshll.u32 %s20299_s1, 4 }
0x5018   : > { %16244 = vrot.lane.b32.xlu1 %v16243_v14, %s20244_s10  ;;  %s20281_s10 = scalar_lea.vmem [#allocation2], %s18413_s11 }
0x508c   : > { %v12949_v53 = vpop.xlane.xlu1 %12948 }
0x508d   : > { %v12953_v9 = vsub.f32 %v12945_v6, %v12949_v53  ;;  %v16320_v53 = vld [vmem:[%s19535_s23 + $0x18] sm:$0xff]   ;;  %s20290_s23 = sld [smem:[#allocation93_spill]] }
0x508f   : > { %v12955_v54 = vmul.f32 1.442695, %v12953_v9  ;;  %v16321_v9 = vld [vmem:[%s19544_s13 + $0x20] sm:$0xff]  }
0x5090   : > { %v12952_v41 = vpop.xlane.xlu0 %12951  ;;  %v12970_v35 = vpop.permute.xlu1 %12969 }
0x5091   : > { %16547 = vpow2.f32 %v12955_v54  ;;  %v12954_v30 = vsub.f32 %v12946_v2, %v12952_v41  ;;  %15979 = vmatpush3.msra.mxu0 %v12970_v35  ;;  %v16322_v54 = vld [vmem:[%s19544_s13 + $0x28] sm:$0xff]  }
0x5092   : > { %15988 = vmatprep.subr.bf16.mxu0 %v17398_v0 }
0x5093   : > { %v12957_v43 = vmul.f32 1.442695, %v12954_v30 }
0x5094   : > { %v16240_v3 = vpop.permute.xlu1 %16239 }
0x5095   : > { %16549 = vpow2.f32 %v12957_v43  ;;  %v16242_v13 = vunpack.i.h.bf16 %v16240_v3  ;;  %v16241_v61 = vunpack.i.l.bf16 %v16240_v3 }
0x5097   : > { %v13146_v56 = vsel %vm2850_vm2, %v19885_v10, %v16242_v13  ;;  %v13145_v62 = vsel %vm2850_vm2, %v19883_v40, %v16241_v61  ;;  %v14887_v10 = vld [vmem:[%s20281_s10 + $0x1] ss:$0 sm:$0xff] }
0x5098   : > { %v16245_v12 = vpop.permute.xlu1 %16244 }
0x5099   : > { %v16247_v37 = vunpack.i.h.bf16 %v16245_v12  ;;  %v16246_v18 = vunpack.i.l.bf16 %v16245_v12 }
0x509b   : > { %v16548_v38 = vpop.eup %16547  ;;  %v13147_v4 = vsel %vm4197_vm3, %v13145_v62, %v16246_v18  ;;  %v13148_v17 = vsel %vm4197_vm3, %v13146_v56, %v16247_v37 }
0x509c   : > { %v12959_v59 = vsel %vm2850_vm2, %v16548_v38, 0.0 }
0x509d   : > { %12960 = vadd.xlane.f32.xlu0 %v12959_v59 }
0x509f   : > { %v16550_v45 = vpop.eup %16549 }
0x50a0   : > { %v12962_v46 = vsel %vm2850_vm2, %v16550_v45, 0.0 }
0x50a1   : > { %12963 = vadd.xlane.f32.xlu0 %v12962_v46 }
0x50b7   : > { %13045 = vrot.lane.b32.xlu0 %v19849_v47, %s20242_s3  ;;  %v16317_v47 = vld [vmem:[%s19507_s7 + $0x10] sm:$0xff]   ;;  %s20285_s3 = smov %s20271_s8  ;;  %s20288_s7 = sld [smem:[#allocation54_spill]] }
0x50b8   : > { %v14913_v56 = vld [vmem:[%s20285_s3 + $0x1] ss:$0 sm:$0xff]  ;;  %s20292_s8 = scalar_lea.vmem [#allocation25], %s18410_s0 }
0x512a   : > { %v12961_v23 = vpop.xlane.xlu0 %12960 }
0x512b   : > { %16551 = vrcp.f32 %v12961_v23 }
0x512e   : > { %v12964_v50 = vpop.xlane.xlu0 %12963 }
0x512f   : > { %16553 = vrcp.f32 %v12964_v50 }
0x5132   : > { %v13046_v49 = vpop.permute.xlu0 %13045 }
0x5133   : > { %15984 = vmatpush3.msra.mxu1 %v13046_v49 }
0x5134   : > { %15996 = vmatprep.subr.bf16.mxu1 %v17398_v0 }
0x5135   : > { %v16552_v52 = vpop.eup %16551 }
0x5136   : > { %v12966_v11 = vmul.f32 %v16552_v52, %v16548_v38 }
0x5138   : > { %15981 = vmatmul.mubr.msk.f32.vlgmr.msra.gmra.mrb[144].mxu0 %vm2850_vm2, %v12966_v11  ;;  %v14894_v11 = vld [vmem:[%s20283_s6 + $0x1] ss:$0 sm:$0xff] }
0x5139   : > { %v16554_v15 = vpop.eup %16553  ;;  %15992 = vmatprep.mubr.msk.bf16.mxu0 %vm17399_vm0, %v17398_v0  ;;  %15989 = vmatpush3.bf16.msra.mxu0 %v16317_v47 }
0x513a   : > { %v12968_v55 = vmul.f32 %v16554_v15, %v16550_v45  ;;  %15990 = vmatprep.subr.bf16.mxu0 %v17398_v0 }
0x513c   : > { %15986 = vmatmul.mubr.msk.f32.vlgmr.msra.gmra.mrb[160].mxu1 %vm2850_vm2, %v12968_v55 }
0x513d   : > { %16000 = vmatprep.mubr.msk.bf16.mxu1 %vm17399_vm0, %v17398_v0  ;;  %15991 = vmatpush3.bf16.msra.mxu0 %v16318_v42 }
0x513e   : > { %16004 = vmatprep.subr.bf16.mxu0 %v17398_v0  ;;  %15997 = vmatpush3.bf16.msra.mxu1 %v16319_v44 }
0x513f   : > { %15998 = vmatprep.subr.bf16.mxu1 %v17398_v0 }
0x5142   : > { %15999 = vmatpush3.bf16.msra.mxu1 %v16320_v53 }
0x5143   : > { %16016 = vmatprep.subr.bf16.mxu1 %v17398_v0 }
0x520b   : > { %v13041_v32 = vpop.f32.mrb[144].mxu0 }
0x520c   : > { %v15982_v39 = vpop.f32.mrb[145].mxu0 }
0x520d   : > { %v16324_v39 = vld [vmem:[%s19544_s13 + $0x38] sm:$0xff]  }
0x520f   : > { %v13117_v58 = vpop.f32.mrb[160].mxu1 }
0x5210   : > { %v16248_v60 = vpack.i.bf16 %v13117_v58, %v13041_v32  ;;  %v15987_v8 = vpop.f32.mrb[161].mxu1  ;;  %v16323_v32 = vld [vmem:[%s19544_s13 + $0x30] sm:$0xff]   ;;  %v14900_v58 = vld [vmem:[%s20284_s5 + $0x1] ss:$0 sm:$0xff]  ;;  %s20287_s13 = smov %s20273_s15  ;;  %s2651_s15 = scalar_lea.vmem %s20290_s23, %s14964_s14 }
0x5211   : > { %v14922_v53 = vld [vmem:[%s20287_s13 + $0x1] ss:$0 sm:$0xff] }
0x5212   : > { %16249 = vrot.lane.b32.xlu1 %v16248_v60, %s20245_s12  ;;  %s20282_s12 = scalar_lea.vmem [#allocation15], %s18413_s11  ;;  %s20289_s11 = sld [smem:[#allocation55_spill]] }
0x5213   : > { %v14893_v23 = vld [vmem:[%s20282_s12 + $0x1] ss:$0 sm:$0xff] }
0x5284   : > { %v16250_v63 = vpop.permute.xlu1 %16249 }
0x5285   : > { %v16252_v16 = vunpack.i.h.bf16 %v16250_v63  ;;  %v16251_v7 = vunpack.i.l.bf16 %v16250_v63 }
0x5287   : > { %v13150_v27 = vsel %vm4200_vm4, %v13148_v17, %v16252_v16  ;;  %v13149_v19 = vsel %vm4200_vm4, %v13147_v4, %v16251_v7 }
0x5288   : > { %v13151_v48 = vpack.c.bf16 %v13150_v27, %v13149_v19 }
0x528a   : > { %15993 = vmatmul.mubr.msk.bf16.vlgmr.msra.gmra.mrb[148].mxu0 %vm2693_vm1, %v13151_v48 }
0x528b   : > { %16012 = vmatprep.mubr.msk.bf16.mxu0 %vm17399_vm0, %v17398_v0  ;;  %16005 = vmatpush3.bf16.msra.mxu0 %v16321_v9 }
0x528c   : > { %16006 = vmatprep.subr.bf16.mxu0 %v17398_v0 }
0x528f   : > { %16007 = vmatpush3.bf16.msra.mxu0 %v16322_v54 }
0x5290   : > { %16008 = vmatprep.subr.bf16.mxu0 %v17398_v0 }
0x5293   : > { %16009 = vmatpush3.bf16.msra.mxu0 %v16323_v32 }
0x5294   : > { %16010 = vmatprep.subr.bf16.mxu0 %v17398_v0 }
0x5297   : > { %16011 = vmatpush3.bf16.msra.mxu0 %v16324_v39 }
0x535d   : > { %v13207_v20 = vpop.f32.mrb[148].mxu0 }
0x535e   : > { %v13208_v40 = vadd.f32 %v14887_v10, %v13207_v20  ;;  %v15994_v5 = vpop.f32.mrb[149].mxu0 }
0x535f   : > { %v13210_v21 = vpop.f32.mrb[150].mxu0 }
0x5360   : > { %v13214_v1 = vadd.f32 %v13208_v40, %v19811_v26  ;;  %v13211_v22 = vadd.f32 %v14887_v10, %v13210_v21  ;;  %v15995_v24 = vpop.f32.mrb[151].mxu0 }
0x5362   : > { %v13215_v25 = vadd.f32 %v13211_v22, %v19813_v29  ;;  %v13220_v31 = vsel %vm2693_vm1, %v13214_v1, 0.0 }
0x5363   : > { %13221 = vadd.xlane.f32.xlu0 %v13220_v31 }
0x5364   : > { %v13223_v34 = vsel %vm2693_vm1, %v13215_v25, 0.0 }
0x5365   : > { %13224 = vadd.xlane.f32.xlu1 %v13223_v34 }
0x53f0   : > { %v13222_v14 = vpop.xlane.xlu0 %13221 }
0x53f1   : > { %v13226_v6 = vmul.f32 0.03125, %v13222_v14 }
0x53f2   : > { %v13225_v28 = vpop.xlane.xlu1 %13224 }
0x53f3   : > { %v13228_v33 = vsub.f32 %v13214_v1, %v13226_v6  ;;  %v13227_v57 = vmul.f32 0.03125, %v13225_v28 }
0x53f5   : > { %v13229_v26 = vsub.f32 %v13215_v25, %v13227_v57  ;;  %v13230_v51 = vmul.f32 %v13228_v33, %v13228_v33 }
0x53f7   : > { %v13232_v2 = vsel %vm2693_vm1, %v13230_v51, 0.0  ;;  %v13231_v29 = vmul.f32 %v13229_v26, %v13229_v26 }
0x53f8   : > { %13233 = vadd.xlane.f32.xlu0 %v13232_v2 }
0x53f9   : > { %v13235_v36 = vsel %vm2693_vm1, %v13231_v29, 0.0  ;;  %v14921_v29 = vld [vmem:[%s20286_s4 + $0x1] ss:$0 sm:$0xff] }
0x53fc   : > { %13236 = vadd.xlane.f32.xlu0 %v13235_v36 }
0x5485   : > { %v13234_v41 = vpop.xlane.xlu0 %13233 }
0x5486   : > { %v13238_v35 = vmul.f32 0.03125, %v13234_v41 }
0x5488   : > { %v13240_v30 = vadd.f32 1e-05, %v13238_v35 }
0x5489   : > { %v13237_v43 = vpop.xlane.xlu0 %13236 }
0x548a   : > { %16555 = vrsqrt.f32 %v13240_v30  ;;  %v13239_v38 = vmul.f32 0.03125, %v13237_v43 }
0x548c   : > { %v13241_v59 = vadd.f32 1e-05, %v13239_v38 }
0x548e   : > { %16557 = vrsqrt.f32 %v13241_v59 }
0x5494   : > { %v16556_v45 = vpop.eup %16555 }
0x5495   : > { %v13244_v46 = vmul.f32 %v16556_v45, %v13228_v33 }
0x5497   : > { %v13252_v49 = vmul.f32 %v14893_v23, %v13244_v46 }
0x5498   : > { %v16558_v50 = vpop.eup %16557 }
0x5499   : > { %v13245_v52 = vmul.f32 %v16558_v50, %v13229_v26  ;;  %v13260_v55 = vadd.f32 %v14894_v11, %v13252_v49 }
0x549b   : > { %v13253_v15 = vmul.f32 %v14893_v23, %v13245_v52 }
0x549d   : > { %v13261_v47 = vadd.f32 %v14894_v11, %v13253_v15 }
0x549f   : > { %v13267_v42 = vpack.c.bf16 %v13261_v47, %v13260_v55 }
0x54a1   : > { %16001 = vmatmul.mubr.msk.bf16.vlgmr.msra.gmra.mrb[164].mxu1 %vm2693_vm1, %v13267_v42  ;;  %v16326_v42 = vld [vmem:[%s20288_s7 + $0x8] sm:$0xff]  }
0x54a2   : > { %16020 = vmatprep.mubr.msk.bf16.mxu1 %vm17399_vm0, %v17398_v0 }
0x5574   : > { %v13325_v60 = vpop.f32.mrb[164].mxu1 }
0x5575   : > { %v13326_v8 = vadd.f32 %v14900_v58, %v13325_v60  ;;  %v16002_v3 = vpop.f32.mrb[165].mxu1 }
0x5576   : > { %v13328_v12 = vpop.f32.mrb[166].mxu1 }
0x5577   : > { %v13329_v13 = vadd.f32 %v14900_v58, %v13328_v12  ;;  %v16003_v61 = vpop.f32.mrb[167].mxu1  ;;  %v13332_v37 = vmax.f32 %v13326_v8, 0.0 }
0x5579   : > { %v13333_v18 = vmax.f32 %v13329_v13, 0.0  ;;  %v14923_v13 = vld [vmem:[%s20291_s26] ss:$0 sm:$0xff] }
0x557b   : > { %v13343_v63 = vpack.c.bf16 %v13333_v18, %v13332_v37 }
0x557d   : > { %16013 = vmatmul.mubr.msk.bf16.vlgmr.msra.gmra.mrb[152].mxu0 %vm4423_vm5, %v13343_v63  ;;  %v14924_v63 = vld [vmem:[%s20292_s8] ss:$0 sm:$0xff] }
0x5650   : > { %v13413_v62 = vpop.f32.mrb[152].mxu0 }
0x5651   : > { %v13414_v16 = vadd.f32 %v14913_v56, %v13413_v62  ;;  %v16014_v7 = vpop.f32.mrb[153].mxu0 }
0x5652   : > { %v13416_v4 = vpop.f32.mrb[154].mxu0 }
0x5653   : > { %v13420_v17 = vadd.f32 %v13414_v16, %v13260_v55  ;;  %v13417_v27 = vadd.f32 %v14913_v56, %v13416_v4  ;;  %v16015_v19 = vpop.f32.mrb[155].mxu0  ;;  %v14925_v4 = vld [vmem:[%s20289_s11] ss:$0 sm:$0xff] }
0x5655   : > { %v13421_v48 = vadd.f32 %v13417_v27, %v13261_v47  ;;  %v13426_v10 = vsel %vm2693_vm1, %v13420_v17, 0.0  ;;  %v16325_v47 = vld [vmem:[%s20288_s7] sm:$0xff]  }
0x5656   : > { %13427 = vadd.xlane.f32.xlu0 %v13426_v10  ;;  %16017 = vmatpush3.bf16.msra.mxu1 %v16325_v47 }
0x5657   : > { %v13429_v20 = vsel %vm2693_vm1, %v13421_v48, 0.0  ;;  %16018 = vmatprep.subr.bf16.mxu1 %v17398_v0 }
0x5658   : > { %13430 = vadd.xlane.f32.xlu1 %v13429_v20 }
0x565a   : > { %16019 = vmatpush3.bf16.msra.mxu1 %v16326_v42 }
0x56e3   : > { %v13428_v40 = vpop.xlane.xlu0 %13427 }
0x56e4   : > { %v13432_v5 = vmul.f32 0.03125, %v13428_v40 }
0x56e5   : > { %v13431_v21 = vpop.xlane.xlu1 %13430 }
0x56e6   : > { %v13434_v1 = vsub.f32 %v13420_v17, %v13432_v5  ;;  %v13433_v22 = vmul.f32 0.03125, %v13431_v21 }
0x56e8   : > { %v13435_v24 = vsub.f32 %v13421_v48, %v13433_v22  ;;  %v13436_v25 = vmul.f32 %v13434_v1, %v13434_v1 }
0x56ea   : > { %v13438_v31 = vsel %vm2693_vm1, %v13436_v25, 0.0  ;;  %v13437_v34 = vmul.f32 %v13435_v24, %v13435_v24 }
0x56eb   : > { %13439 = vadd.xlane.f32.xlu0 %v13438_v31 }
0x56ec   : > { %v13441_v14 = vsel %vm2693_vm1, %v13437_v34, 0.0 }
0x56ed   : > { %13442 = vadd.xlane.f32.xlu1 %v13441_v14 }
0x5778   : > { %v13440_v6 = vpop.xlane.xlu0 %13439 }
0x5779   : > { %v13444_v28 = vmul.f32 0.03125, %v13440_v6 }
0x577a   : > { %v13443_v33 = vpop.xlane.xlu1 %13442 }
0x577b   : > { %v13446_v57 = vadd.f32 1e-05, %v13444_v28  ;;  %v13445_v26 = vmul.f32 0.03125, %v13443_v33 }
0x577d   : > { %16559 = vrsqrt.f32 %v13446_v57  ;;  %v13447_v51 = vadd.f32 1e-05, %v13445_v26 }
0x577f   : > { %16561 = vrsqrt.f32 %v13447_v51 }
0x5787   : > { %v16560_v2 = vpop.eup %16559 }
0x5788   : > { %v13450_v36 = vmul.f32 %v16560_v2, %v13434_v1 }
0x5789   : > { %v16562_v44 = vpop.eup %16561 }
0x578a   : > { %v13458_v9 = vmul.f32 %v14921_v29, %v13450_v36  ;;  %v13451_v54 = vmul.f32 %v16562_v44, %v13435_v24 }
0x578c   : > { %v13466_v41 = vadd.f32 %v14922_v53, %v13458_v9  ;;  %v13459_v35 = vmul.f32 %v14921_v29, %v13451_v54 }
0x578e   : > { %v13470_v30 = vsel %vm2693_vm1, %v13466_v41, 0.0  ;;  %v13467_v43 = vadd.f32 %v14922_v53, %v13459_v35 }
0x578f   : > { %13471 = vadd.xlane.f32.xlu0 %v13470_v30 }
0x5790   : > { %v13473_v38 = vsel %vm2693_vm1, %v13467_v43, 0.0 }
0x5791   : > { %13474 = vadd.xlane.f32.xlu1 %v13473_v38 }
0x581c   : > { %v13472_v59 = vpop.xlane.xlu0 %13471 }
0x581d   : > { %v13476_v45 = vmul.f32 0.03125, %v13472_v59 }
0x581e   : > { %v13475_v46 = vpop.xlane.xlu1 %13474 }
0x581f   : > { %v13478_v23 = vsub.f32 %v13466_v41, %v13476_v45  ;;  %v13477_v50 = vmul.f32 0.03125, %v13475_v46 }
0x5821   : > { %v13479_v49 = vsub.f32 %v13467_v43, %v13477_v50  ;;  %v13480_v52 = vmul.f32 %v13478_v23, %v13478_v23 }
0x5823   : > { %v13482_v11 = vsel %vm2693_vm1, %v13480_v52, 0.0  ;;  %v13481_v15 = vmul.f32 %v13479_v49, %v13479_v49 }
0x5824   : > { %13483 = vadd.xlane.f32.xlu0 %v13482_v11 }
0x5825   : > { %v13485_v55 = vsel %vm2693_vm1, %v13481_v15, 0.0 }
0x5826   : > { %13486 = vadd.xlane.f32.xlu1 %v13485_v55 }
0x58b1   : > { %v13484_v32 = vpop.xlane.xlu0 %13483 }
0x58b2   : > { %v13488_v39 = vmul.f32 0.03125, %v13484_v32 }
0x58b3   : > { %v13487_v58 = vpop.xlane.xlu1 %13486 }
0x58b4   : > { %v13490_v60 = vadd.f32 1e-05, %v13488_v39  ;;  %v13489_v8 = vmul.f32 0.03125, %v13487_v58 }
0x58b6   : > { %16563 = vrsqrt.f32 %v13490_v60  ;;  %v13491_v3 = vadd.f32 1e-05, %v13489_v8 }
0x58b8   : > { %16565 = vrsqrt.f32 %v13491_v3 }
0x58c0   : > { %v16564_v12 = vpop.eup %16563 }
0x58c1   : > { %v13494_v61 = vmul.f32 %v16564_v12, %v13478_v23 }
0x58c2   : > { %v16566_v37 = vpop.eup %16565 }
0x58c3   : > { %v13502_v18 = vmul.f32 %v14923_v13, %v13494_v61  ;;  %v13495_v0 = vmul.f32 %v16566_v37, %v13479_v49 }
0x58c5   : > { %v13503_v56 = vmul.f32 %v14923_v13, %v13495_v0  ;;  %v13510_v62 = vadd.f32 %v14924_v63, %v13502_v18 }
0x58c7   : > { %v13511_v16 = vadd.f32 %v14924_v63, %v13503_v56 }
0x58c9   : > { %v13516_v7 = vpack.c.bf16 %v13511_v16, %v13510_v62 }
0x58cb   : > { %16021 = vmatmul.mubr.msk.bf16.vlgmr.msra.gmra.mrb[168].mxu1 %vm2693_vm1, %v13516_v7 }
0x599e   : > { %v13573_v17 = vpop.f32.mrb[168].mxu1 }
0x599f   : > { %v13574_v27 = vadd.f32 %v14925_v4, %v13573_v17  ;;  %v16022_v19 = vpop.f32.mrb[169].mxu1 }
0x59a0   : > { %v13576_v48 = vpop.f32.mrb[170].mxu1 }
0x59a1   : > { %13580 = vst [vmem:[%s2651_s15] sm:$0xff] %v13574_v27  ;;  %v13577_v10 = vadd.f32 %v14925_v4, %v13576_v48  ;;  %v16023_v20 = vpop.f32.mrb[171].mxu1 }
0x59a3   : > { %13581 = vst [vmem:[%s2651_s15 + $0x8] sm:$0xff] %v13577_v10 }
0x59a4 PF: > { %s20293_s26 = sld [smem:[#allocation96_spill]]  ;;  %s20294_s17 = sld [smem:[#allocation94_spill]] }
0x59a5   : > { %s20295_s23 = sld [smem:[#allocation97_spill]]  ;;  %s20296_s0 = smov %s17313_s22 }
0x59aa   : > { %p141_p13 = scmp.ge.s32.totalorder %s20293_s26, 4   ;;  %s20297_s22 = smov %s20294_s17 }
0x59ac   :  { %143 = sbr.rel (!%p141_p13) target bundleno = 120 (0x78), region = 668 }
0x59b3   :  { %13603 = vsyncpa [#allocation3], 1 }
0x59b4   :  { %13605 = vsyncpa [#allocation3 + $0x1], 1 }
0x59b5   :  { %13606 = vsyncpa [#allocation5], 1 }
0x59b6   :  { %13608 = vsyncpa [#allocation5 + $0x1], 1 }
0x59b7   :  { %13609 = vsyncpa [#allocation8], 1 }
0x59b8   :  { %13611 = vsyncpa [#allocation8 + $0x1], 1 }
0x59b9   :  { %13612 = vsyncpa [#allocation11], 1 }
0x59ba   :  { %13614 = vsyncpa [#allocation11 + $0x1], 1 }
0x59bb   :  { %13615 = vsyncpa [#allocation14], 1 }
0x59bc   :  { %13617 = vsyncpa [#allocation14 + $0x1], 1 }
0x59bd   :  { %13618 = vsyncpa [#allocation17], 1 }
0x59be   :  { %13620 = vsyncpa [#allocation17 + $0x1], 1 }
0x59bf   :  { %13621 = vsyncpa [#allocation20], 1 }
0x59c0   :  { %13623 = vsyncpa [#allocation20 + $0x1], 1 }
0x59c1   :  { %13624 = vsyncpa [#allocation23], 1 }
0x59c2   :  { %13626 = vsyncpa [#allocation23 + $0x1], 1 }
0x59c3   :  { %13627 = vsyncpa [#allocation26], 1 }
0x59c4   :  { %13629 = vsyncpa [#allocation26 + $0x1], 1 }
0x59c5   :  { %13630 = vsyncpa [#allocation29], 1 }
0x59c6   :  { %13632 = vsyncpa [#allocation29 + $0x1], 1 }
0x59c7   :  { %13633 = vsyncpa [#allocation32], 1 }
0x59c8   :  { %13635 = vsyncpa [#allocation32 + $0x1], 1 }
0x59c9   :  { %13636 = vsyncpa [#allocation35], 1 }
0x59ca   :  { %13638 = vsyncpa [#allocation35 + $0x1], 1 }
0x59cb   :  { %13639 = vsyncpa [#allocation38], 1 }
0x59cc   :  { %13641 = vsyncpa [#allocation38 + $0x1], 1 }

</bundles_post_ra>
